<compile_context>
chip_gen: v6e
topology: v6e:2x2x1
jax: 0.10.0
libtpu: 0.0.40
codegen_flags: <defaults>
</compile_context>

<pallas_src>
import functools
import math

import jax
import jax.numpy as jnp
from jax import lax
from jax.experimental import pallas as pl
from jax.experimental.pallas import tpu as pltpu


# ---------------------------------------------------------------------------
# Pallas kernels
# ---------------------------------------------------------------------------

def _gemm_bias_act_kernel(x_ref, w_ref, b_ref, o_ref, *, relu):
    """One row-tile of  out = act(x @ w + b)  with f32 MXU accumulation."""
    acc = jnp.dot(x_ref[...], w_ref[...], preferred_element_type=jnp.float32)
    acc = acc + b_ref[...]
    if relu:
        acc = jnp.maximum(acc, 0.0)
    o_ref[...] = acc.astype(o_ref.dtype)


def _max4_kernel(a_ref, b_ref, c_ref, d_ref, o_ref):
    """Elementwise max of the four shifted views of a 2x2 max-pool window."""
    o_ref[...] = jnp.maximum(jnp.maximum(a_ref[...], b_ref[...]),
                             jnp.maximum(c_ref[...], d_ref[...]))


# ---------------------------------------------------------------------------
# Wrappers: layout-only prep (im2col / dilation / padding) + pallas_call
# ---------------------------------------------------------------------------

_ROW_TILE = 256   # GEMM row tile (sublane dim), multiple of 8
_LANE = 128       # K / N are zero-padded to multiples of this (lane-dense)


def _round_up(v, m):
    return ((v + m - 1) // m) * m


def _gemm_bias_act(patches, wmat, bias, relu):
    """act(patches @ wmat + bias): patches [M,K], wmat [K,N], bias [N] -> [M,N]."""
    M, K = patches.shape
    _, N = wmat.shape

    Kp = _round_up(K, _LANE)
    Np = _round_up(N, _LANE)
    Mp = _round_up(M, _ROW_TILE)

    if Kp != K:
        patches = jnp.pad(patches, ((0, 0), (0, Kp - K)))
        wmat = jnp.pad(wmat, ((0, Kp - K), (0, 0)))
    if Np != N:
        wmat = jnp.pad(wmat, ((0, 0), (0, Np - N)))
        bias = jnp.pad(bias, (0, Np - N))
    if Mp != M:
        patches = jnp.pad(patches, ((0, Mp - M), (0, 0)))
    bias2d = bias.reshape(1, Np)

    out = pl.pallas_call(
        functools.partial(_gemm_bias_act_kernel, relu=relu),
        out_shape=jax.ShapeDtypeStruct((Mp, Np), jnp.float32),
        grid=(Mp // _ROW_TILE,),
        in_specs=[
            pl.BlockSpec((_ROW_TILE, Kp), lambda i: (i, 0)),   # row tile of patches
            pl.BlockSpec((Kp, Np), lambda i: (0, 0)),          # VMEM-resident weight
            pl.BlockSpec((1, Np), lambda i: (0, 0)),           # VMEM-resident bias
        ],
        out_specs=pl.BlockSpec((_ROW_TILE, Np), lambda i: (i, 0)),
        compiler_params=pltpu.CompilerParams(
            dimension_semantics=("parallel",)),
    )(patches, wmat, bias2d)
    return out[:M, :N]


def _extract_patches(xp, k, stride):
    """xp: [N, C, Hp, Wp] (already padded) -> ([N*Ho*Wo, C*k*k], Ho, Wo)."""
    n, c, hp, wp = xp.shape
    ho = (hp - k) // stride + 1
    wo = (wp - k) // stride + 1
    cols = []
    for di in range(k):
        for dj in range(k):
            cols.append(xp[:, :,
                           di:di + stride * (ho - 1) + 1:stride,
                           dj:dj + stride * (wo - 1) + 1:stride])
    p = jnp.stack(cols, axis=2)            # [N, C, k*k, Ho, Wo]
    p = p.transpose(0, 3, 4, 1, 2)         # [N, Ho, Wo, C, k*k]
    return p.reshape(n * ho * wo, c * k * k), ho, wo


def conv2d(x, w, b, stride, padding, relu):
    """PyTorch-style Conv2d (cross-correlation) + bias + optional ReLU."""
    n = x.shape[0]
    cout, cin, k, _ = w.shape
    if padding:
        x = jnp.pad(x, ((0, 0), (0, 0), (padding, padding), (padding, padding)))
    patches, ho, wo = _extract_patches(x, k, stride)
    wmat = w.transpose(1, 2, 3, 0).reshape(cin * k * k, cout)   # (ci,di,dj) x co
    y = _gemm_bias_act(patches, wmat, b, relu)                  # [N*Ho*Wo, Cout]
    return y.reshape(n, ho, wo, cout).transpose(0, 3, 1, 2)


def _dilate(x, s):
    if s == 1:
        return x
    n, c, h, w = x.shape
    out = jnp.zeros((n, c, (h - 1) * s + 1, (w - 1) * s + 1), x.dtype)
    return out.at[:, :, ::s, ::s].set(x)


def conv_transpose2d(x, w, b, stride, padding, relu):
    """PyTorch-style ConvTranspose2d; weight layout [Cin, Cout, k, k]."""
    k = w.shape[2]
    wc = jnp.flip(w, axis=(2, 3)).transpose(1, 0, 2, 3)   # -> [Cout, Cin, k, k]
    xd = _dilate(x, stride)
    return conv2d(xd, wc, b, stride=1, padding=k - 1 - padding, relu=relu)


def maxpool2x2(x, stride, padding):
    """PyTorch-style MaxPool2d(kernel_size=2, stride, padding)."""
    n, c, _, _ = x.shape
    if padding:
        x = jnp.pad(x, ((0, 0), (0, 0), (padding, padding), (padding, padding)),
                    constant_values=-jnp.inf)
    hp, wp = x.shape[2], x.shape[3]
    ho = (hp - 2) // stride + 1
    wo = (wp - 2) // stride + 1
    wins = []
    for di in range(2):
        for dj in range(2):
            v = x[:, :,
                  di:di + stride * (ho - 1) + 1:stride,
                  dj:dj + stride * (wo - 1) + 1:stride]          # [N, C, Ho, Wo]
            wins.append(v.transpose(0, 2, 3, 1).reshape(n * ho * wo, c))
    m = n * ho * wo
    full = lambda shape: pl.BlockSpec(shape, lambda: (0,) * len(shape))
    out = pl.pallas_call(
        _max4_kernel,
        out_shape=jax.ShapeDtypeStruct((m, c), x.dtype),
        grid=(),
        in_specs=[full((m, c)) for _ in range(4)],
        out_specs=full((m, c)),
    )(*wins)
    return out.reshape(n, ho, wo, c).transpose(0, 3, 1, 2)


# ---------------------------------------------------------------------------
# Full forward pass of autoencoder_9
# ---------------------------------------------------------------------------

def autoencoder9_forward(x, p):
    # encoder
    h = conv2d(x, p["e1_w"], p["e1_b"], stride=3, padding=1, relu=True)   # [N,64,19,19]
    h = maxpool2x2(h, stride=2, padding=0)                                # [N,64,9,9]
    h = conv2d(h, p["e2_w"], p["e2_b"], stride=2, padding=1, relu=True)   # [N,128,5,5]
    h = maxpool2x2(h, stride=1, padding=0)                                # [N,128,4,4]
    h = conv2d(h, p["e3_w"], p["e3_b"], stride=1, padding=1, relu=True)   # [N,64,4,4]
    h = maxpool2x2(h, stride=1, padding=1)                                # [N,64,5,5]
    h = conv2d(h, p["e4_w"], p["e4_b"], stride=2, padding=1, relu=True)   # [N,32,3,3]
    # decoder
    h = conv_transpose2d(h, p["d1_w"], p["d1_b"], 2, 0, relu=True)        # [N,64,7,7]
    h = conv_transpose2d(h, p["d2_w"], p["d2_b"], 2, 0, relu=True)        # [N,128,15,15]
    h = conv_transpose2d(h, p["d3_w"], p["d3_b"], 2, 2, relu=True)        # [N,64,27,27]
    h = conv_transpose2d(h, p["d4_w"], p["d4_b"], 2, 0, relu=False)       # [N,1,56,56]
    return h


def init_params(key):
    keys = jax.random.split(key, 16)

    def conv_p(kw, kb, cin, cout, k):
        bound = math.sqrt(6.0 / (cin * k * k))
        w = jax.random.uniform(kw, (cout, cin, k, k), jnp.float32, -bound, bound)
        b = jax.random.uniform(kb, (cout,), jnp.float32, -0.1, 0.1)
        return w, b

    def convT_p(kw, kb, cin, cout, k):
        bound = math.sqrt(6.0 / (cin * k * k))
        w = jax.random.uniform(kw, (cin, cout, k, k), jnp.float32, -bound, bound)
        b = jax.random.uniform(kb, (cout,), jnp.float32, -0.1, 0.1)
        return w, b

    p = {}
    p["e1_w"], p["e1_b"] = conv_p(keys[0], keys[1], 1, 64, 3)
    p["e2_w"], p["e2_b"] = conv_p(keys[2], keys[3], 64, 128, 3)
    p["e3_w"], p["e3_b"] = conv_p(keys[4], keys[5], 128, 64, 3)
    p["e4_w"], p["e4_b"] = conv_p(keys[6], keys[7], 64, 32, 3)
    p["d1_w"], p["d1_b"] = convT_p(keys[8], keys[9], 32, 64, 3)
    p["d2_w"], p["d2_b"] = convT_p(keys[10], keys[11], 64, 128, 3)
    p["d3_w"], p["d3_b"] = convT_p(keys[12], keys[13], 128, 64, 3)
    p["d4_w"], p["d4_b"] = convT_p(keys[14], keys[15], 64, 1, 4)
    return p


# ---------------------------------------------------------------------------
# Pure-JAX reference (XLA convs) for correctness check
# ---------------------------------------------------------------------------

def _reference(x, p):
    dn = ("NCHW", "OIHW", "NCHW")

    def conv(x, w, b, s, pad):
        y = lax.conv_general_dilated(x, w, (s, s), [(pad, pad)] * 2,
                                     dimension_numbers=dn,
                                     precision=lax.Precision.HIGHEST)
        return y + b.reshape(1, -1, 1, 1)

    def convT(x, w, b, s, pad):
        k = w.shape[2]
        wc = jnp.flip(w, axis=(2, 3)).transpose(1, 0, 2, 3)
        y = lax.conv_general_dilated(x, wc, (1, 1), [(k - 1 - pad, k - 1 - pad)] * 2,
                                     lhs_dilation=(s, s), dimension_numbers=dn,
                                     precision=lax.Precision.HIGHEST)
        return y + b.reshape(1, -1, 1, 1)

    def pool(x, s, pad):
        return lax.reduce_window(x, -jnp.inf, lax.max, (1, 1, 2, 2), (1, 1, s, s),
                                 [(0, 0), (0, 0), (pad, pad), (pad, pad)])

    relu = lambda v: jnp.maximum(v, 0.0)
    h = pool(relu(conv(x, p["e1_w"], p["e1_b"], 3, 1)), 2, 0)
    h = pool(relu(conv(h, p["e2_w"], p["e2_b"], 2, 1)), 1, 0)
    h = pool(relu(conv(h, p["e3_w"], p["e3_b"], 1, 1)), 1, 1)
    h = relu(conv(h, p["e4_w"], p["e4_b"], 2, 1))
    h = relu(convT(h, p["d1_w"], p["d1_b"], 2, 0))
    h = relu(convT(h, p["d2_w"], p["d2_b"], 2, 0))
    h = relu(convT(h, p["d3_w"], p["d3_b"], 2, 2))
    h = convT(h, p["d4_w"], p["d4_b"], 2, 0)
    return h


if __name__ == "__main__":
    key = jax.random.PRNGKey(0)
    kx, kp = jax.random.split(key)

    batch = 2
    x = jax.random.normal(kx, (batch, 1, 56, 56), jnp.float32)
    params = init_params(kp)

    fwd = jax.jit(autoencoder9_forward)
    out = jax.block_until_ready(fwd(x, params))

    ref = _reference(x, params)
    assert out.shape == (batch, 1, 56, 56), out.shape
    max_err = float(jnp.max(jnp.abs(out - ref)))
    assert jnp.allclose(out, ref, atol=2e-3, rtol=2e-3), f"mismatch vs reference: {max_err}"

    print("KERNEL_OK")
</pallas_src>

<mosaic_0001>
module attributes {stable_mosaic.version = 11 : i64} {
  func.func @_gemm_bias_act_kernel(%arg0: i32, %arg1: memref<256x128xf32, #tpu.memory_space<vmem>>, %arg2: memref<128x128xf32, #tpu.memory_space<vmem>>, %arg3: memref<1x128xf32, #tpu.memory_space<vmem>>, %arg4: memref<256x128xf32, #tpu.memory_space<vmem>>) attributes {dimension_semantics = [#tpu.dimension_semantics<parallel>], iteration_bounds = array<i64: 3>, scalar_prefetch = 0 : i64, scratch_operands = 0 : i64, tpu.core_type = #tpu.core_type<tc>, window_params = [{transform_indices = @transform_0, window_bounds = array<i64: 256, 128>}, {pipeline_mode = #tpu.pipeline_mode<synchronous>, transform_indices = @transform_1, window_bounds = array<i64: 128, 128>}, {pipeline_mode = #tpu.pipeline_mode<synchronous>, transform_indices = @transform_2, window_bounds = array<i64: 1, 128>}, {transform_indices = @transform_3, window_bounds = array<i64: 256, 128>}]} {
    %c0 = arith.constant 0 : index
    %c0_0 = arith.constant 0 : index
    %0 = vector.load %arg1[%c0, %c0_0] : memref<256x128xf32, #tpu.memory_space<vmem>>, vector<256x128xf32>
    %c0_1 = arith.constant 0 : index
    %c0_2 = arith.constant 0 : index
    %1 = vector.load %arg2[%c0_1, %c0_2] : memref<128x128xf32, #tpu.memory_space<vmem>>, vector<128x128xf32>
    %cst = arith.constant dense<0.000000e+00> : vector<256x128xf32>
    %2 = tpu.matmul %0, %1, %cst {dimension_numbers = #tpu.dot_dimension_numbers<[1], [0], [0], [1], [0, 0, 1, 1], [], []>} : vector<256x128xf32>, vector<128x128xf32>, vector<256x128xf32> -> vector<256x128xf32>
    %c0_3 = arith.constant 0 : index
    %c0_4 = arith.constant 0 : index
    %3 = vector.load %arg3[%c0_3, %c0_4] : memref<1x128xf32, #tpu.memory_space<vmem>>, vector<1x128xf32>
    %4 = vector.broadcast %3 : vector<1x128xf32> to vector<256x128xf32>
    %5 = arith.addf %2, %4 : vector<256x128xf32>
    %cst_5 = arith.constant 0.000000e+00 : f32
    %6 = vector.broadcast %cst_5 : f32 to vector<256x128xf32>
    %7 = arith.maximumf %5, %6 : vector<256x128xf32>
    %c0_6 = arith.constant 0 : index
    %c0_7 = arith.constant 0 : index
    %8 = vector.load %arg4[%c0_6, %c0_7] : memref<256x128xf32, #tpu.memory_space<vmem>>, vector<256x128xf32>
    tpu.vector_store %arg4[%c0_6, %c0_7], %7 {strides = array<i32>} : memref<256x128xf32, #tpu.memory_space<vmem>>, vector<256x128xf32>,
    return
  }
  func.func @transform_0(%arg0: i32) -> (i32, i32) {
    %c0_i32 = arith.constant 0 : i32
    %c0_i32_0 = arith.constant 0 : i32
    return %arg0, %c0_i32 : i32, i32
  }
  func.func @transform_1(%arg0: i32) -> (i32, i32) {
    %c0_i32 = arith.constant 0 : i32
    %c0_i32_0 = arith.constant 0 : i32
    %c0_i32_1 = arith.constant 0 : i32
    return %c0_i32, %c0_i32_0 : i32, i32
  }
  func.func @transform_2(%arg0: i32) -> (i32, i32) {
    %c0_i32 = arith.constant 0 : i32
    %c0_i32_0 = arith.constant 0 : i32
    %c0_i32_1 = arith.constant 0 : i32
    return %c0_i32, %c0_i32_0 : i32, i32
  }
  func.func @transform_3(%arg0: i32) -> (i32, i32) {
    %c0_i32 = arith.constant 0 : i32
    %c0_i32_0 = arith.constant 0 : i32
    return %arg0, %c0_i32 : i32, i32
  }
}

module attributes {stable_mosaic.version = 11 : i64} {
  func.func @_max4_kernel(%arg0: memref<162x64xf32, #tpu.memory_space<vmem>>, %arg1: memref<162x64xf32, #tpu.memory_space<vmem>>, %arg2: memref<162x64xf32, #tpu.memory_space<vmem>>, %arg3: memref<162x64xf32, #tpu.memory_space<vmem>>, %arg4: memref<162x64xf32, #tpu.memory_space<vmem>>) attributes {dimension_semantics = [], scalar_prefetch = 0 : i64, scratch_operands = 0 : i64, tpu.core_type = #tpu.core_type<tc>} {
    %c0 = arith.constant 0 : index
    %c0_0 = arith.constant 0 : index
    %0 = vector.load %arg0[%c0, %c0_0] : memref<162x64xf32, #tpu.memory_space<vmem>>, vector<162x64xf32>
    %c0_1 = arith.constant 0 : index
    %c0_2 = arith.constant 0 : index
    %1 = vector.load %arg1[%c0_1, %c0_2] : memref<162x64xf32, #tpu.memory_space<vmem>>, vector<162x64xf32>
    %2 = arith.maximumf %0, %1 : vector<162x64xf32>
    %c0_3 = arith.constant 0 : index
    %c0_4 = arith.constant 0 : index
    %3 = vector.load %arg2[%c0_3, %c0_4] : memref<162x64xf32, #tpu.memory_space<vmem>>, vector<162x64xf32>
    %c0_5 = arith.constant 0 : index
    %c0_6 = arith.constant 0 : index
    %4 = vector.load %arg3[%c0_5, %c0_6] : memref<162x64xf32, #tpu.memory_space<vmem>>, vector<162x64xf32>
    %5 = arith.maximumf %3, %4 : vector<162x64xf32>
    %6 = arith.maximumf %2, %5 : vector<162x64xf32>
    %c0_7 = arith.constant 0 : index
    %c0_8 = arith.constant 0 : index
    %7 = vector.load %arg4[%c0_7, %c0_8] : memref<162x64xf32, #tpu.memory_space<vmem>>, vector<162x64xf32>
    tpu.vector_store %arg4[%c0_7, %c0_8], %6 {strides = array<i32>} : memref<162x64xf32, #tpu.memory_space<vmem>>, vector<162x64xf32>,
    return
  }
}

module attributes {stable_mosaic.version = 11 : i64} {
  func.func @_gemm_bias_act_kernel(%arg0: i32, %arg1: memref<256x640xf32, #tpu.memory_space<vmem>>, %arg2: memref<640x128xf32, #tpu.memory_space<vmem>>, %arg3: memref<1x128xf32, #tpu.memory_space<vmem>>, %arg4: memref<256x128xf32, #tpu.memory_space<vmem>>) attributes {dimension_semantics = [#tpu.dimension_semantics<parallel>], iteration_bounds = array<i64: 1>, scalar_prefetch = 0 : i64, scratch_operands = 0 : i64, tpu.core_type = #tpu.core_type<tc>, window_params = [{transform_indices = @transform_0, window_bounds = array<i64: 256, 640>}, {pipeline_mode = #tpu.pipeline_mode<synchronous>, transform_indices = @transform_1, window_bounds = array<i64: 640, 128>}, {pipeline_mode = #tpu.pipeline_mode<synchronous>, transform_indices = @transform_2, window_bounds = array<i64: 1, 128>}, {transform_indices = @transform_3, window_bounds = array<i64: 256, 128>}]} {
    %c0 = arith.constant 0 : index
    %c0_0 = arith.constant 0 : index
    %0 = vector.load %arg1[%c0, %c0_0] : memref<256x640xf32, #tpu.memory_space<vmem>>, vector<256x640xf32>
    %c0_1 = arith.constant 0 : index
    %c0_2 = arith.constant 0 : index
    %1 = vector.load %arg2[%c0_1, %c0_2] : memref<640x128xf32, #tpu.memory_space<vmem>>, vector<640x128xf32>
    %cst = arith.constant dense<0.000000e+00> : vector<256x128xf32>
    %2 = tpu.matmul %0, %1, %cst {dimension_numbers = #tpu.dot_dimension_numbers<[1], [0], [0], [1], [0, 0, 1, 1], [], []>} : vector<256x640xf32>, vector<640x128xf32>, vector<256x128xf32> -> vector<256x128xf32>
    %c0_3 = arith.constant 0 : index
    %c0_4 = arith.constant 0 : index
    %3 = vector.load %arg3[%c0_3, %c0_4] : memref<1x128xf32, #tpu.memory_space<vmem>>, vector<1x128xf32>
    %4 = vector.broadcast %3 : vector<1x128xf32> to vector<256x128xf32>
    %5 = arith.addf %2, %4 : vector<256x128xf32>
    %cst_5 = arith.constant 0.000000e+00 : f32
    %6 = vector.broadcast %cst_5 : f32 to vector<256x128xf32>
    %7 = arith.maximumf %5, %6 : vector<256x128xf32>
    %c0_6 = arith.constant 0 : index
    %c0_7 = arith.constant 0 : index
    %8 = vector.load %arg4[%c0_6, %c0_7] : memref<256x128xf32, #tpu.memory_space<vmem>>, vector<256x128xf32>
    tpu.vector_store %arg4[%c0_6, %c0_7], %7 {strides = array<i32>} : memref<256x128xf32, #tpu.memory_space<vmem>>, vector<256x128xf32>,
    return
  }
  func.func @transform_0(%arg0: i32) -> (i32, i32) {
    %c0_i32 = arith.constant 0 : i32
    %c0_i32_0 = arith.constant 0 : i32
    return %arg0, %c0_i32 : i32, i32
  }
  func.func @transform_1(%arg0: i32) -> (i32, i32) {
    %c0_i32 = arith.constant 0 : i32
    %c0_i32_0 = arith.constant 0 : i32
    %c0_i32_1 = arith.constant 0 : i32
    return %c0_i32, %c0_i32_0 : i32, i32
  }
  func.func @transform_2(%arg0: i32) -> (i32, i32) {
    %c0_i32 = arith.constant 0 : i32
    %c0_i32_0 = arith.constant 0 : i32
    %c0_i32_1 = arith.constant 0 : i32
    return %c0_i32, %c0_i32_0 : i32, i32
  }
  func.func @transform_3(%arg0: i32) -> (i32, i32) {
    %c0_i32 = arith.constant 0 : i32
    %c0_i32_0 = arith.constant 0 : i32
    return %arg0, %c0_i32 : i32, i32
  }
}

module attributes {stable_mosaic.version = 11 : i64} {
  func.func @_max4_kernel(%arg0: memref<32x128xf32, #tpu.memory_space<vmem>>, %arg1: memref<32x128xf32, #tpu.memory_space<vmem>>, %arg2: memref<32x128xf32, #tpu.memory_space<vmem>>, %arg3: memref<32x128xf32, #tpu.memory_space<vmem>>, %arg4: memref<32x128xf32, #tpu.memory_space<vmem>>) attributes {dimension_semantics = [], scalar_prefetch = 0 : i64, scratch_operands = 0 : i64, tpu.core_type = #tpu.core_type<tc>} {
    %c0 = arith.constant 0 : index
    %c0_0 = arith.constant 0 : index
    %0 = vector.load %arg0[%c0, %c0_0] : memref<32x128xf32, #tpu.memory_space<vmem>>, vector<32x128xf32>
    %c0_1 = arith.constant 0 : index
    %c0_2 = arith.constant 0 : index
    %1 = vector.load %arg1[%c0_1, %c0_2] : memref<32x128xf32, #tpu.memory_space<vmem>>, vector<32x128xf32>
    %2 = arith.maximumf %0, %1 : vector<32x128xf32>
    %c0_3 = arith.constant 0 : index
    %c0_4 = arith.constant 0 : index
    %3 = vector.load %arg2[%c0_3, %c0_4] : memref<32x128xf32, #tpu.memory_space<vmem>>, vector<32x128xf32>
    %c0_5 = arith.constant 0 : index
    %c0_6 = arith.constant 0 : index
    %4 = vector.load %arg3[%c0_5, %c0_6] : memref<32x128xf32, #tpu.memory_space<vmem>>, vector<32x128xf32>
    %5 = arith.maximumf %3, %4 : vector<32x128xf32>
    %6 = arith.maximumf %2, %5 : vector<32x128xf32>
    %c0_7 = arith.constant 0 : index
    %c0_8 = arith.constant 0 : index
    %7 = vector.load %arg4[%c0_7, %c0_8] : memref<32x128xf32, #tpu.memory_space<vmem>>, vector<32x128xf32>
    tpu.vector_store %arg4[%c0_7, %c0_8], %6 {strides = array<i32>} : memref<32x128xf32, #tpu.memory_space<vmem>>, vector<32x128xf32>,
    return
  }
}

module attributes {stable_mosaic.version = 11 : i64} {
  func.func @_gemm_bias_act_kernel(%arg0: i32, %arg1: memref<256x1152xf32, #tpu.memory_space<vmem>>, %arg2: memref<1152x128xf32, #tpu.memory_space<vmem>>, %arg3: memref<1x128xf32, #tpu.memory_space<vmem>>, %arg4: memref<256x128xf32, #tpu.memory_space<vmem>>) attributes {dimension_semantics = [#tpu.dimension_semantics<parallel>], iteration_bounds = array<i64: 1>, scalar_prefetch = 0 : i64, scratch_operands = 0 : i64, tpu.core_type = #tpu.core_type<tc>, window_params = [{transform_indices = @transform_0, window_bounds = array<i64: 256, 1152>}, {pipeline_mode = #tpu.pipeline_mode<synchronous>, transform_indices = @transform_1, window_bounds = array<i64: 1152, 128>}, {pipeline_mode = #tpu.pipeline_mode<synchronous>, transform_indices = @transform_2, window_bounds = array<i64: 1, 128>}, {transform_indices = @transform_3, window_bounds = array<i64: 256, 128>}]} {
    %c0 = arith.constant 0 : index
    %c0_0 = arith.constant 0 : index
    %0 = vector.load %arg1[%c0, %c0_0] : memref<256x1152xf32, #tpu.memory_space<vmem>>, vector<256x1152xf32>
    %c0_1 = arith.constant 0 : index
    %c0_2 = arith.constant 0 : index
    %1 = vector.load %arg2[%c0_1, %c0_2] : memref<1152x128xf32, #tpu.memory_space<vmem>>, vector<1152x128xf32>
    %cst = arith.constant dense<0.000000e+00> : vector<256x128xf32>
    %2 = tpu.matmul %0, %1, %cst {dimension_numbers = #tpu.dot_dimension_numbers<[1], [0], [0], [1], [0, 0, 1, 1], [], []>} : vector<256x1152xf32>, vector<1152x128xf32>, vector<256x128xf32> -> vector<256x128xf32>
    %c0_3 = arith.constant 0 : index
    %c0_4 = arith.constant 0 : index
    %3 = vector.load %arg3[%c0_3, %c0_4] : memref<1x128xf32, #tpu.memory_space<vmem>>, vector<1x128xf32>
    %4 = vector.broadcast %3 : vector<1x128xf32> to vector<256x128xf32>
    %5 = arith.addf %2, %4 : vector<256x128xf32>
    %cst_5 = arith.constant 0.000000e+00 : f32
    %6 = vector.broadcast %cst_5 : f32 to vector<256x128xf32>
    %7 = arith.maximumf %5, %6 : vector<256x128xf32>
    %c0_6 = arith.constant 0 : index
    %c0_7 = arith.constant 0 : index
    %8 = vector.load %arg4[%c0_6, %c0_7] : memref<256x128xf32, #tpu.memory_space<vmem>>, vector<256x128xf32>
    tpu.vector_store %arg4[%c0_6, %c0_7], %7 {strides = array<i32>} : memref<256x128xf32, #tpu.memory_space<vmem>>, vector<256x128xf32>,
    return
  }
  func.func @transform_0(%arg0: i32) -> (i32, i32) {
    %c0_i32 = arith.constant 0 : i32
    %c0_i32_0 = arith.constant 0 : i32
    return %arg0, %c0_i32 : i32, i32
  }
  func.func @transform_1(%arg0: i32) -> (i32, i32) {
    %c0_i32 = arith.constant 0 : i32
    %c0_i32_0 = arith.constant 0 : i32
    %c0_i32_1 = arith.constant 0 : i32
    return %c0_i32, %c0_i32_0 : i32, i32
  }
  func.func @transform_2(%arg0: i32) -> (i32, i32) {
    %c0_i32 = arith.constant 0 : i32
    %c0_i32_0 = arith.constant 0 : i32
    %c0_i32_1 = arith.constant 0 : i32
    return %c0_i32, %c0_i32_0 : i32, i32
  }
  func.func @transform_3(%arg0: i32) -> (i32, i32) {
    %c0_i32 = arith.constant 0 : i32
    %c0_i32_0 = arith.constant 0 : i32
    return %arg0, %c0_i32 : i32, i32
  }
}

module attributes {stable_mosaic.version = 11 : i64} {
  func.func @_max4_kernel(%arg0: memref<50x64xf32, #tpu.memory_space<vmem>>, %arg1: memref<50x64xf32, #tpu.memory_space<vmem>>, %arg2: memref<50x64xf32, #tpu.memory_space<vmem>>, %arg3: memref<50x64xf32, #tpu.memory_space<vmem>>, %arg4: memref<50x64xf32, #tpu.memory_space<vmem>>) attributes {dimension_semantics = [], scalar_prefetch = 0 : i64, scratch_operands = 0 : i64, tpu.core_type = #tpu.core_type<tc>} {
    %c0 = arith.constant 0 : index
    %c0_0 = arith.constant 0 : index
    %0 = vector.load %arg0[%c0, %c0_0] : memref<50x64xf32, #tpu.memory_space<vmem>>, vector<50x64xf32>
    %c0_1 = arith.constant 0 : index
    %c0_2 = arith.constant 0 : index
    %1 = vector.load %arg1[%c0_1, %c0_2] : memref<50x64xf32, #tpu.memory_space<vmem>>, vector<50x64xf32>
    %2 = arith.maximumf %0, %1 : vector<50x64xf32>
    %c0_3 = arith.constant 0 : index
    %c0_4 = arith.constant 0 : index
    %3 = vector.load %arg2[%c0_3, %c0_4] : memref<50x64xf32, #tpu.memory_space<vmem>>, vector<50x64xf32>
    %c0_5 = arith.constant 0 : index
    %c0_6 = arith.constant 0 : index
    %4 = vector.load %arg3[%c0_5, %c0_6] : memref<50x64xf32, #tpu.memory_space<vmem>>, vector<50x64xf32>
    %5 = arith.maximumf %3, %4 : vector<50x64xf32>
    %6 = arith.maximumf %2, %5 : vector<50x64xf32>
    %c0_7 = arith.constant 0 : index
    %c0_8 = arith.constant 0 : index
    %7 = vector.load %arg4[%c0_7, %c0_8] : memref<50x64xf32, #tpu.memory_space<vmem>>, vector<50x64xf32>
    tpu.vector_store %arg4[%c0_7, %c0_8], %6 {strides = array<i32>} : memref<50x64xf32, #tpu.memory_space<vmem>>, vector<50x64xf32>,
    return
  }
}

module attributes {stable_mosaic.version = 11 : i64} {
  func.func @_gemm_bias_act_kernel(%arg0: i32, %arg1: memref<256x384xf32, #tpu.memory_space<vmem>>, %arg2: memref<384x128xf32, #tpu.memory_space<vmem>>, %arg3: memref<1x128xf32, #tpu.memory_space<vmem>>, %arg4: memref<256x128xf32, #tpu.memory_space<vmem>>) attributes {dimension_semantics = [#tpu.dimension_semantics<parallel>], iteration_bounds = array<i64: 1>, scalar_prefetch = 0 : i64, scratch_operands = 0 : i64, tpu.core_type = #tpu.core_type<tc>, window_params = [{transform_indices = @transform_0, window_bounds = array<i64: 256, 384>}, {pipeline_mode = #tpu.pipeline_mode<synchronous>, transform_indices = @transform_1, window_bounds = array<i64: 384, 128>}, {pipeline_mode = #tpu.pipeline_mode<synchronous>, transform_indices = @transform_2, window_bounds = array<i64: 1, 128>}, {transform_indices = @transform_3, window_bounds = array<i64: 256, 128>}]} {
    %c0 = arith.constant 0 : index
    %c0_0 = arith.constant 0 : index
    %0 = vector.load %arg1[%c0, %c0_0] : memref<256x384xf32, #tpu.memory_space<vmem>>, vector<256x384xf32>
    %c0_1 = arith.constant 0 : index
    %c0_2 = arith.constant 0 : index
    %1 = vector.load %arg2[%c0_1, %c0_2] : memref<384x128xf32, #tpu.memory_space<vmem>>, vector<384x128xf32>
    %cst = arith.constant dense<0.000000e+00> : vector<256x128xf32>
    %2 = tpu.matmul %0, %1, %cst {dimension_numbers = #tpu.dot_dimension_numbers<[1], [0], [0], [1], [0, 0, 1, 1], [], []>} : vector<256x384xf32>, vector<384x128xf32>, vector<256x128xf32> -> vector<256x128xf32>
    %c0_3 = arith.constant 0 : index
    %c0_4 = arith.constant 0 : index
    %3 = vector.load %arg3[%c0_3, %c0_4] : memref<1x128xf32, #tpu.memory_space<vmem>>, vector<1x128xf32>
    %4 = vector.broadcast %3 : vector<1x128xf32> to vector<256x128xf32>
    %5 = arith.addf %2, %4 : vector<256x128xf32>
    %cst_5 = arith.constant 0.000000e+00 : f32
    %6 = vector.broadcast %cst_5 : f32 to vector<256x128xf32>
    %7 = arith.maximumf %5, %6 : vector<256x128xf32>
    %c0_6 = arith.constant 0 : index
    %c0_7 = arith.constant 0 : index
    %8 = vector.load %arg4[%c0_6, %c0_7] : memref<256x128xf32, #tpu.memory_space<vmem>>, vector<256x128xf32>
    tpu.vector_store %arg4[%c0_6, %c0_7], %7 {strides = array<i32>} : memref<256x128xf32, #tpu.memory_space<vmem>>, vector<256x128xf32>,
    return
  }
  func.func @transform_0(%arg0: i32) -> (i32, i32) {
    %c0_i32 = arith.constant 0 : i32
    %c0_i32_0 = arith.constant 0 : i32
    return %arg0, %c0_i32 : i32, i32
  }
  func.func @transform_1(%arg0: i32) -> (i32, i32) {
    %c0_i32 = arith.constant 0 : i32
    %c0_i32_0 = arith.constant 0 : i32
    %c0_i32_1 = arith.constant 0 : i32
    return %c0_i32, %c0_i32_0 : i32, i32
  }
  func.func @transform_2(%arg0: i32) -> (i32, i32) {
    %c0_i32 = arith.constant 0 : i32
    %c0_i32_0 = arith.constant 0 : i32
    %c0_i32_1 = arith.constant 0 : i32
    return %c0_i32, %c0_i32_0 : i32, i32
  }
  func.func @transform_3(%arg0: i32) -> (i32, i32) {
    %c0_i32 = arith.constant 0 : i32
    %c0_i32_0 = arith.constant 0 : i32
    return %arg0, %c0_i32 : i32, i32
  }
}

module attributes {stable_mosaic.version = 11 : i64} {
  func.func @_gemm_bias_act_kernel(%arg0: i32, %arg1: memref<256x640xf32, #tpu.memory_space<vmem>>, %arg2: memref<640x128xf32, #tpu.memory_space<vmem>>, %arg3: memref<1x128xf32, #tpu.memory_space<vmem>>, %arg4: memref<256x128xf32, #tpu.memory_space<vmem>>) attributes {dimension_semantics = [#tpu.dimension_semantics<parallel>], iteration_bounds = array<i64: 2>, scalar_prefetch = 0 : i64, scratch_operands = 0 : i64, tpu.core_type = #tpu.core_type<tc>, window_params = [{transform_indices = @transform_0, window_bounds = array<i64: 256, 640>}, {pipeline_mode = #tpu.pipeline_mode<synchronous>, transform_indices = @transform_1, window_bounds = array<i64: 640, 128>}, {pipeline_mode = #tpu.pipeline_mode<synchronous>, transform_indices = @transform_2, window_bounds = array<i64: 1, 128>}, {transform_indices = @transform_3, window_bounds = array<i64: 256, 128>}]} {
    %c0 = arith.constant 0 : index
    %c0_0 = arith.constant 0 : index
    %0 = vector.load %arg1[%c0, %c0_0] : memref<256x640xf32, #tpu.memory_space<vmem>>, vector<256x640xf32>
    %c0_1 = arith.constant 0 : index
    %c0_2 = arith.constant 0 : index
    %1 = vector.load %arg2[%c0_1, %c0_2] : memref<640x128xf32, #tpu.memory_space<vmem>>, vector<640x128xf32>
    %cst = arith.constant dense<0.000000e+00> : vector<256x128xf32>
    %2 = tpu.matmul %0, %1, %cst {dimension_numbers = #tpu.dot_dimension_numbers<[1], [0], [0], [1], [0, 0, 1, 1], [], []>} : vector<256x640xf32>, vector<640x128xf32>, vector<256x128xf32> -> vector<256x128xf32>
    %c0_3 = arith.constant 0 : index
    %c0_4 = arith.constant 0 : index
    %3 = vector.load %arg3[%c0_3, %c0_4] : memref<1x128xf32, #tpu.memory_space<vmem>>, vector<1x128xf32>
    %4 = vector.broadcast %3 : vector<1x128xf32> to vector<256x128xf32>
    %5 = arith.addf %2, %4 : vector<256x128xf32>
    %cst_5 = arith.constant 0.000000e+00 : f32
    %6 = vector.broadcast %cst_5 : f32 to vector<256x128xf32>
    %7 = arith.maximumf %5, %6 : vector<256x128xf32>
    %c0_6 = arith.constant 0 : index
    %c0_7 = arith.constant 0 : index
    %8 = vector.load %arg4[%c0_6, %c0_7] : memref<256x128xf32, #tpu.memory_space<vmem>>, vector<256x128xf32>
    tpu.vector_store %arg4[%c0_6, %c0_7], %7 {strides = array<i32>} : memref<256x128xf32, #tpu.memory_space<vmem>>, vector<256x128xf32>,
    return
  }
  func.func @transform_0(%arg0: i32) -> (i32, i32) {
    %c0_i32 = arith.constant 0 : i32
    %c0_i32_0 = arith.constant 0 : i32
    return %arg0, %c0_i32 : i32, i32
  }
  func.func @transform_1(%arg0: i32) -> (i32, i32) {
    %c0_i32 = arith.constant 0 : i32
    %c0_i32_0 = arith.constant 0 : i32
    %c0_i32_1 = arith.constant 0 : i32
    return %c0_i32, %c0_i32_0 : i32, i32
  }
  func.func @transform_2(%arg0: i32) -> (i32, i32) {
    %c0_i32 = arith.constant 0 : i32
    %c0_i32_0 = arith.constant 0 : i32
    %c0_i32_1 = arith.constant 0 : i32
    return %c0_i32, %c0_i32_0 : i32, i32
  }
  func.func @transform_3(%arg0: i32) -> (i32, i32) {
    %c0_i32 = arith.constant 0 : i32
    %c0_i32_0 = arith.constant 0 : i32
    return %arg0, %c0_i32 : i32, i32
  }
}

module attributes {stable_mosaic.version = 11 : i64} {
  func.func @_gemm_bias_act_kernel(%arg0: i32, %arg1: memref<256x1152xf32, #tpu.memory_space<vmem>>, %arg2: memref<1152x128xf32, #tpu.memory_space<vmem>>, %arg3: memref<1x128xf32, #tpu.memory_space<vmem>>, %arg4: memref<256x128xf32, #tpu.memory_space<vmem>>) attributes {dimension_semantics = [#tpu.dimension_semantics<parallel>], iteration_bounds = array<i64: 6>, scalar_prefetch = 0 : i64, scratch_operands = 0 : i64, tpu.core_type = #tpu.core_type<tc>, window_params = [{transform_indices = @transform_0, window_bounds = array<i64: 256, 1152>}, {pipeline_mode = #tpu.pipeline_mode<synchronous>, transform_indices = @transform_1, window_bounds = array<i64: 1152, 128>}, {pipeline_mode = #tpu.pipeline_mode<synchronous>, transform_indices = @transform_2, window_bounds = array<i64: 1, 128>}, {transform_indices = @transform_3, window_bounds = array<i64: 256, 128>}]} {
    %c0 = arith.constant 0 : index
    %c0_0 = arith.constant 0 : index
    %0 = vector.load %arg1[%c0, %c0_0] : memref<256x1152xf32, #tpu.memory_space<vmem>>, vector<256x1152xf32>
    %c0_1 = arith.constant 0 : index
    %c0_2 = arith.constant 0 : index
    %1 = vector.load %arg2[%c0_1, %c0_2] : memref<1152x128xf32, #tpu.memory_space<vmem>>, vector<1152x128xf32>
    %cst = arith.constant dense<0.000000e+00> : vector<256x128xf32>
    %2 = tpu.matmul %0, %1, %cst {dimension_numbers = #tpu.dot_dimension_numbers<[1], [0], [0], [1], [0, 0, 1, 1], [], []>} : vector<256x1152xf32>, vector<1152x128xf32>, vector<256x128xf32> -> vector<256x128xf32>
    %c0_3 = arith.constant 0 : index
    %c0_4 = arith.constant 0 : index
    %3 = vector.load %arg3[%c0_3, %c0_4] : memref<1x128xf32, #tpu.memory_space<vmem>>, vector<1x128xf32>
    %4 = vector.broadcast %3 : vector<1x128xf32> to vector<256x128xf32>
    %5 = arith.addf %2, %4 : vector<256x128xf32>
    %cst_5 = arith.constant 0.000000e+00 : f32
    %6 = vector.broadcast %cst_5 : f32 to vector<256x128xf32>
    %7 = arith.maximumf %5, %6 : vector<256x128xf32>
    %c0_6 = arith.constant 0 : index
    %c0_7 = arith.constant 0 : index
    %8 = vector.load %arg4[%c0_6, %c0_7] : memref<256x128xf32, #tpu.memory_space<vmem>>, vector<256x128xf32>
    tpu.vector_store %arg4[%c0_6, %c0_7], %7 {strides = array<i32>} : memref<256x128xf32, #tpu.memory_space<vmem>>, vector<256x128xf32>,
    return
  }
  func.func @transform_0(%arg0: i32) -> (i32, i32) {
    %c0_i32 = arith.constant 0 : i32
    %c0_i32_0 = arith.constant 0 : i32
    return %arg0, %c0_i32 : i32, i32
  }
  func.func @transform_1(%arg0: i32) -> (i32, i32) {
    %c0_i32 = arith.constant 0 : i32
    %c0_i32_0 = arith.constant 0 : i32
    %c0_i32_1 = arith.constant 0 : i32
    return %c0_i32, %c0_i32_0 : i32, i32
  }
  func.func @transform_2(%arg0: i32) -> (i32, i32) {
    %c0_i32 = arith.constant 0 : i32
    %c0_i32_0 = arith.constant 0 : i32
    %c0_i32_1 = arith.constant 0 : i32
    return %c0_i32, %c0_i32_0 : i32, i32
  }
  func.func @transform_3(%arg0: i32) -> (i32, i32) {
    %c0_i32 = arith.constant 0 : i32
    %c0_i32_0 = arith.constant 0 : i32
    return %arg0, %c0_i32 : i32, i32
  }
}

module attributes {stable_mosaic.version = 11 : i64} {
  func.func @_gemm_bias_act_kernel(%arg0: i32, %arg1: memref<256x1024xf32, #tpu.memory_space<vmem>>, %arg2: memref<1024x128xf32, #tpu.memory_space<vmem>>, %arg3: memref<1x128xf32, #tpu.memory_space<vmem>>, %arg4: memref<256x128xf32, #tpu.memory_space<vmem>>) attributes {dimension_semantics = [#tpu.dimension_semantics<parallel>], iteration_bounds = array<i64: 25>, scalar_prefetch = 0 : i64, scratch_operands = 0 : i64, tpu.core_type = #tpu.core_type<tc>, window_params = [{transform_indices = @transform_0, window_bounds = array<i64: 256, 1024>}, {pipeline_mode = #tpu.pipeline_mode<synchronous>, transform_indices = @transform_1, window_bounds = array<i64: 1024, 128>}, {pipeline_mode = #tpu.pipeline_mode<synchronous>, transform_indices = @transform_2, window_bounds = array<i64: 1, 128>}, {transform_indices = @transform_3, window_bounds = array<i64: 256, 128>}]} {
    %c0 = arith.constant 0 : index
    %c0_0 = arith.constant 0 : index
    %0 = vector.load %arg1[%c0, %c0_0] : memref<256x1024xf32, #tpu.memory_space<vmem>>, vector<256x1024xf32>
    %c0_1 = arith.constant 0 : index
    %c0_2 = arith.constant 0 : index
    %1 = vector.load %arg2[%c0_1, %c0_2] : memref<1024x128xf32, #tpu.memory_space<vmem>>, vector<1024x128xf32>
    %cst = arith.constant dense<0.000000e+00> : vector<256x128xf32>
    %2 = tpu.matmul %0, %1, %cst {dimension_numbers = #tpu.dot_dimension_numbers<[1], [0], [0], [1], [0, 0, 1, 1], [], []>} : vector<256x1024xf32>, vector<1024x128xf32>, vector<256x128xf32> -> vector<256x128xf32>
    %c0_3 = arith.constant 0 : index
    %c0_4 = arith.constant 0 : index
    %3 = vector.load %arg3[%c0_3, %c0_4] : memref<1x128xf32, #tpu.memory_space<vmem>>, vector<1x128xf32>
    %4 = vector.broadcast %3 : vector<1x128xf32> to vector<256x128xf32>
    %5 = arith.addf %2, %4 : vector<256x128xf32>
    %c0_5 = arith.constant 0 : index
    %c0_6 = arith.constant 0 : index
    %6 = vector.load %arg4[%c0_5, %c0_6] : memref<256x128xf32, #tpu.memory_space<vmem>>, vector<256x128xf32>
    tpu.vector_store %arg4[%c0_5, %c0_6], %5 {strides = array<i32>} : memref<256x128xf32, #tpu.memory_space<vmem>>, vector<256x128xf32>,
    return
  }
  func.func @transform_0(%arg0: i32) -> (i32, i32) {
    %c0_i32 = arith.constant 0 : i32
    %c0_i32_0 = arith.constant 0 : i32
    return %arg0, %c0_i32 : i32, i32
  }
  func.func @transform_1(%arg0: i32) -> (i32, i32) {
    %c0_i32 = arith.constant 0 : i32
    %c0_i32_0 = arith.constant 0 : i32
    %c0_i32_1 = arith.constant 0 : i32
    return %c0_i32, %c0_i32_0 : i32, i32
  }
  func.func @transform_2(%arg0: i32) -> (i32, i32) {
    %c0_i32 = arith.constant 0 : i32
    %c0_i32_0 = arith.constant 0 : i32
    %c0_i32_1 = arith.constant 0 : i32
    return %c0_i32, %c0_i32_0 : i32, i32
  }
  func.func @transform_3(%arg0: i32) -> (i32, i32) {
    %c0_i32 = arith.constant 0 : i32
    %c0_i32_0 = arith.constant 0 : i32
    return %arg0, %c0_i32 : i32, i32
  }
}

</mosaic_0001>

<bundles_post_ra>
// kernel: autoencoder9_forward.12
= control target key start
LH: loop header
LB: loop body
LE: loop exit
PB: predicated region body
PF: predicated region fallthrough
CT: control target
= control target key end

     0   :  { %vm164_vm0 = vcmask 523264   ;;  %vm185_vm1 = vcmask 517120   ;;  %s551_s0 = inlined_call_operand.vmem [shape: f32[162,64], index: 0, kind: input, shape index: {}]   ;;  %s552_s1 = inlined_call_operand.vmem [shape: f32[162,64], index: 1, kind: input, shape index: {}]   ;;  %s553_s2 = inlined_call_operand.vmem [shape: f32[162,64], index: 2, kind: input, shape index: {}]   ;;  %s554_s3 = inlined_call_operand.vmem [shape: f32[162,64], index: 3, kind: input, shape index: {}]   ;;  %s555_s4 = inlined_call_operand.vmem [shape: f32[162,64], index: 4, kind: output, shape index: {}]  }
   0x1   :  { %v17_v0 = vld [vmem:[%s551_s0] sm:$0xff]  ;;  %v18_v5 = vld [vmem:[%s551_s0 + $0x8] sm:$0xff]  ;;  %v19_v11 = vld [vmem:[%s551_s0 + $0x10] sm:$0xff] }
   0x2   :  { %v38_v1 = vld [vmem:[%s552_s1] sm:$0xff]  ;;  %v39_v6 = vld [vmem:[%s552_s1 + $0x8] sm:$0xff]  ;;  %v40_v13 = vld [vmem:[%s552_s1 + $0x10] sm:$0xff] }
   0x3   :  { %v80_v2 = vld [vmem:[%s553_s2] sm:$0xff]  ;;  %v59_v3 = vmax.f32 %v17_v0, %v38_v1  ;;  %v60_v8 = vmax.f32 %v18_v5, %v39_v6  ;;  %v81_v9 = vld [vmem:[%s553_s2 + $0x8] sm:$0xff]  ;;  %v82_v14 = vld [vmem:[%s553_s2 + $0x10] sm:$0xff]  ;;  %v61_v17 = vmax.f32 %v19_v11, %v40_v13 }
   0x4   :  { %v101_v4 = vld [vmem:[%s554_s3] sm:$0xff]  ;;  %v102_v10 = vld [vmem:[%s554_s3 + $0x8] sm:$0xff]  ;;  %v103_v15 = vld [vmem:[%s554_s3 + $0x10] sm:$0xff] }
   0x5   :  { %v122_v7 = vmax.f32 %v80_v2, %v101_v4  ;;  %v123_v12 = vmax.f32 %v81_v9, %v102_v10  ;;  %v124_v18 = vmax.f32 %v82_v14, %v103_v15  ;;  %v20_v19 = vld [vmem:[%s551_s0 + $0x18] sm:$0xff]  ;;  %v21_v25 = vld [vmem:[%s551_s0 + $0x20] sm:$0xff]  ;;  %v22_v32 = vld [vmem:[%s551_s0 + $0x28] sm:$0xff] }
   0x6   :  { %v41_v20 = vld [vmem:[%s552_s1 + $0x18] sm:$0xff]  ;;  %v42_v26 = vld [vmem:[%s552_s1 + $0x20] sm:$0xff]  ;;  %v43_v34 = vld [vmem:[%s552_s1 + $0x28] sm:$0xff] }
   0x7   :  { %v143_v16 = vmax.f32 %v59_v3, %v122_v7  ;;  %v83_v21 = vld [vmem:[%s553_s2 + $0x18] sm:$0xff]  ;;  %v144_v22 = vmax.f32 %v60_v8, %v123_v12  ;;  %v62_v23 = vmax.f32 %v20_v19, %v41_v20  ;;  %v145_v27 = vmax.f32 %v61_v17, %v124_v18  ;;  %v84_v30 = vld [vmem:[%s553_s2 + $0x20] sm:$0xff]  ;;  %v85_v35 = vld [vmem:[%s553_s2 + $0x28] sm:$0xff] }
   0x8   :  { %v104_v24 = vld [vmem:[%s554_s3 + $0x18] sm:$0xff]  ;;  %v63_v29 = vmax.f32 %v21_v25, %v42_v26  ;;  %v105_v31 = vld [vmem:[%s554_s3 + $0x20] sm:$0xff]  ;;  %v106_v36 = vld [vmem:[%s554_s3 + $0x28] sm:$0xff]  ;;  %v64_v38 = vmax.f32 %v22_v32, %v43_v34 }
   0x9   :  { %165 = vst.msk [vmem:[%s555_s4] sm:$0xff] %vm164_vm0, %v143_v16  ;;  %v125_v28 = vmax.f32 %v83_v21, %v104_v24  ;;  %166 = vst.msk [vmem:[%s555_s4 + $0x8] sm:$0xff] %vm164_vm0, %v144_v22  ;;  %v126_v33 = vmax.f32 %v84_v30, %v105_v31  ;;  %v127_v39 = vmax.f32 %v85_v35, %v106_v36  ;;  %v23_v40 = vld [vmem:[%s551_s0 + $0x30] sm:$0xff]  ;;  %v24_v46 = vld [vmem:[%s551_s0 + $0x38] sm:$0xff] }
   0xa   :  { %167 = vst.msk [vmem:[%s555_s4 + $0x10] sm:$0xff] %vm164_vm0, %v145_v27  ;;  %v44_v41 = vld [vmem:[%s552_s1 + $0x30] sm:$0xff]  ;;  %v45_v47 = vld [vmem:[%s552_s1 + $0x38] sm:$0xff]  ;;  %v25_v53 = vld [vmem:[%s551_s0 + $0x40] sm:$0xff] }
   0xb   :  { %v146_v37 = vmax.f32 %v62_v23, %v125_v28  ;;  %v86_v42 = vld [vmem:[%s553_s2 + $0x30] sm:$0xff]  ;;  %v147_v43 = vmax.f32 %v63_v29, %v126_v33  ;;  %v65_v44 = vmax.f32 %v23_v40, %v44_v41  ;;  %v148_v48 = vmax.f32 %v64_v38, %v127_v39  ;;  %v87_v51 = vld [vmem:[%s553_s2 + $0x38] sm:$0xff]  ;;  %v46_v55 = vld [vmem:[%s552_s1 + $0x40] sm:$0xff] }
   0xc   :  { %v107_v45 = vld [vmem:[%s554_s3 + $0x30] sm:$0xff]  ;;  %v66_v50 = vmax.f32 %v24_v46, %v45_v47  ;;  %v108_v52 = vld [vmem:[%s554_s3 + $0x38] sm:$0xff]  ;;  %v88_v56 = vld [vmem:[%s553_s2 + $0x40] sm:$0xff]  ;;  %v67_v59 = vmax.f32 %v25_v53, %v46_v55 }
   0xd   :  { %168 = vst.msk [vmem:[%s555_s4 + $0x18] sm:$0xff] %vm164_vm0, %v146_v37  ;;  %v128_v49 = vmax.f32 %v86_v42, %v107_v45  ;;  %169 = vst.msk [vmem:[%s555_s4 + $0x20] sm:$0xff] %vm164_vm0, %v147_v43  ;;  %v129_v54 = vmax.f32 %v87_v51, %v108_v52  ;;  %v109_v57 = vld [vmem:[%s554_s3 + $0x40] sm:$0xff]  ;;  %v26_v61 = vld [vmem:[%s551_s0 + $0x48] sm:$0xff] }
   0xe   :  { %170 = vst.msk [vmem:[%s555_s4 + $0x28] sm:$0xff] %vm164_vm0, %v148_v48  ;;  %v130_v60 = vmax.f32 %v88_v56, %v109_v57  ;;  %v47_v62 = vld [vmem:[%s552_s1 + $0x48] sm:$0xff]  ;;  %v27_v3 = vld [vmem:[%s551_s0 + $0x50] sm:$0xff]  ;;  %v28_v10 = vld [vmem:[%s551_s0 + $0x58] sm:$0xff] }
   0xf   :  { %v149_v58 = vmax.f32 %v65_v44, %v128_v49  ;;  %v89_v63 = vld [vmem:[%s553_s2 + $0x48] sm:$0xff]  ;;  %v150_v0 = vmax.f32 %v66_v50, %v129_v54  ;;  %v68_v1 = vmax.f32 %v26_v61, %v47_v62  ;;  %v48_v4 = vld [vmem:[%s552_s1 + $0x50] sm:$0xff]  ;;  %v49_v12 = vld [vmem:[%s552_s1 + $0x58] sm:$0xff] }
  0x10   :  { %v110_v2 = vld [vmem:[%s554_s3 + $0x48] sm:$0xff]  ;;  %v151_v5 = vmax.f32 %v67_v59, %v130_v60  ;;  %v69_v7 = vmax.f32 %v27_v3, %v48_v4  ;;  %v90_v8 = vld [vmem:[%s553_s2 + $0x50] sm:$0xff]  ;;  %v91_v13 = vld [vmem:[%s553_s2 + $0x58] sm:$0xff]  ;;  %v70_v16 = vmax.f32 %v28_v10, %v49_v12 }
  0x11   :  { %171 = vst.msk [vmem:[%s555_s4 + $0x30] sm:$0xff] %vm164_vm0, %v149_v58  ;;  %v131_v6 = vmax.f32 %v89_v63, %v110_v2  ;;  %v111_v9 = vld [vmem:[%s554_s3 + $0x50] sm:$0xff]  ;;  %172 = vst.msk [vmem:[%s555_s4 + $0x38] sm:$0xff] %vm164_vm0, %v150_v0  ;;  %v112_v14 = vld [vmem:[%s554_s3 + $0x58] sm:$0xff] }
  0x12   :  { %v132_v11 = vmax.f32 %v90_v8, %v111_v9  ;;  %173 = vst.msk [vmem:[%s555_s4 + $0x40] sm:$0xff] %vm164_vm0, %v151_v5  ;;  %v133_v17 = vmax.f32 %v91_v13, %v112_v14  ;;  %v29_v18 = vld [vmem:[%s551_s0 + $0x60] sm:$0xff]  ;;  %v30_v24 = vld [vmem:[%s551_s0 + $0x68] sm:$0xff]  ;;  %v31_v31 = vld [vmem:[%s551_s0 + $0x70] sm:$0xff] }
  0x13   :  { %v152_v15 = vmax.f32 %v68_v1, %v131_v6  ;;  %v50_v19 = vld [vmem:[%s552_s1 + $0x60] sm:$0xff]  ;;  %v51_v25 = vld [vmem:[%s552_s1 + $0x68] sm:$0xff]  ;;  %v52_v33 = vld [vmem:[%s552_s1 + $0x70] sm:$0xff] }
  0x14   :  { %v92_v20 = vld [vmem:[%s553_s2 + $0x60] sm:$0xff]  ;;  %v153_v21 = vmax.f32 %v69_v7, %v132_v11  ;;  %v71_v22 = vmax.f32 %v29_v18, %v50_v19  ;;  %v154_v26 = vmax.f32 %v70_v16, %v133_v17  ;;  %v72_v28 = vmax.f32 %v30_v24, %v51_v25  ;;  %v93_v29 = vld [vmem:[%s553_s2 + $0x68] sm:$0xff]  ;;  %v94_v34 = vld [vmem:[%s553_s2 + $0x70] sm:$0xff] }
  0x15   :  { %v113_v23 = vld [vmem:[%s554_s3 + $0x60] sm:$0xff]  ;;  %174 = vst.msk [vmem:[%s555_s4 + $0x48] sm:$0xff] %vm164_vm0, %v152_v15  ;;  %v114_v30 = vld [vmem:[%s554_s3 + $0x68] sm:$0xff]  ;;  %v115_v35 = vld [vmem:[%s554_s3 + $0x70] sm:$0xff]  ;;  %v73_v37 = vmax.f32 %v31_v31, %v52_v33 }
  0x16   :  { %v134_v27 = vmax.f32 %v92_v20, %v113_v23  ;;  %175 = vst.msk [vmem:[%s555_s4 + $0x50] sm:$0xff] %vm164_vm0, %v153_v21  ;;  %v135_v32 = vmax.f32 %v93_v29, %v114_v30  ;;  %176 = vst.msk [vmem:[%s555_s4 + $0x58] sm:$0xff] %vm164_vm0, %v154_v26  ;;  %v136_v38 = vmax.f32 %v94_v34, %v115_v35  ;;  %v32_v39 = vld [vmem:[%s551_s0 + $0x78] sm:$0xff]  ;;  %v33_v45 = vld [vmem:[%s551_s0 + $0x80] sm:$0xff] }
  0x17   :  { %v53_v40 = vld [vmem:[%s552_s1 + $0x78] sm:$0xff]  ;;  %v54_v46 = vld [vmem:[%s552_s1 + $0x80] sm:$0xff]  ;;  %v34_v52 = vld [vmem:[%s551_s0 + $0x88] sm:$0xff] }
  0x18   :  { %v155_v36 = vmax.f32 %v71_v22, %v134_v27  ;;  %v95_v41 = vld [vmem:[%s553_s2 + $0x78] sm:$0xff]  ;;  %v156_v42 = vmax.f32 %v72_v28, %v135_v32  ;;  %v74_v43 = vmax.f32 %v32_v39, %v53_v40  ;;  %v157_v47 = vmax.f32 %v73_v37, %v136_v38  ;;  %v96_v50 = vld [vmem:[%s553_s2 + $0x80] sm:$0xff]  ;;  %v55_v54 = vld [vmem:[%s552_s1 + $0x88] sm:$0xff] }
  0x19   :  { %v116_v44 = vld [vmem:[%s554_s3 + $0x78] sm:$0xff]  ;;  %v75_v49 = vmax.f32 %v33_v45, %v54_v46  ;;  %v117_v51 = vld [vmem:[%s554_s3 + $0x80] sm:$0xff]  ;;  %v97_v55 = vld [vmem:[%s553_s2 + $0x88] sm:$0xff]  ;;  %v76_v58 = vmax.f32 %v34_v52, %v55_v54 }
  0x1a   :  { %177 = vst.msk [vmem:[%s555_s4 + $0x60] sm:$0xff] %vm164_vm0, %v155_v36  ;;  %v137_v48 = vmax.f32 %v95_v41, %v116_v44  ;;  %178 = vst.msk [vmem:[%s555_s4 + $0x68] sm:$0xff] %vm164_vm0, %v156_v42  ;;  %v138_v53 = vmax.f32 %v96_v50, %v117_v51  ;;  %v118_v56 = vld [vmem:[%s554_s3 + $0x88] sm:$0xff]  ;;  %v35_v60 = vld [vmem:[%s551_s0 + $0x90] sm:$0xff] }
  0x1b   :  { %179 = vst.msk [vmem:[%s555_s4 + $0x70] sm:$0xff] %vm164_vm0, %v157_v47  ;;  %v139_v59 = vmax.f32 %v97_v55, %v118_v56  ;;  %v56_v61 = vld [vmem:[%s552_s1 + $0x90] sm:$0xff]  ;;  %v36_v2 = vld [vmem:[%s551_s0 + $0x98] sm:$0xff]  ;;  %v37_v9 = vld [vmem:[%s551_s0 + $0xa0] sm:$0x3] }
  0x1c   :  { %v158_v57 = vmax.f32 %v74_v43, %v137_v48  ;;  %v98_v62 = vld [vmem:[%s553_s2 + $0x90] sm:$0xff]  ;;  %v159_v63 = vmax.f32 %v75_v49, %v138_v53  ;;  %v77_v0 = vmax.f32 %v35_v60, %v56_v61  ;;  %v57_v3 = vld [vmem:[%s552_s1 + $0x98] sm:$0xff]  ;;  %v58_v11 = vld [vmem:[%s552_s1 + $0xa0] sm:$0x3] }
  0x1d   :  { %v119_v1 = vld [vmem:[%s554_s3 + $0x90] sm:$0xff]  ;;  %v160_v4 = vmax.f32 %v76_v58, %v139_v59  ;;  %v78_v6 = vmax.f32 %v36_v2, %v57_v3  ;;  %v99_v7 = vld [vmem:[%s553_s2 + $0x98] sm:$0xff]  ;;  %v100_v12 = vld [vmem:[%s553_s2 + $0xa0] sm:$0x3]  ;;  %v79_v15 = vmax.f32 %v37_v9, %v58_v11 }
  0x1e   :  { %180 = vst.msk [vmem:[%s555_s4 + $0x78] sm:$0xff] %vm164_vm0, %v158_v57  ;;  %v140_v5 = vmax.f32 %v98_v62, %v119_v1  ;;  %v120_v8 = vld [vmem:[%s554_s3 + $0x98] sm:$0xff]  ;;  %181 = vst.msk [vmem:[%s555_s4 + $0x80] sm:$0xff] %vm164_vm0, %v159_v63  ;;  %v121_v13 = vld [vmem:[%s554_s3 + $0xa0] sm:$0x3] }
  0x1f   :  { %v141_v10 = vmax.f32 %v99_v7, %v120_v8  ;;  %182 = vst.msk [vmem:[%s555_s4 + $0x88] sm:$0xff] %vm164_vm0, %v160_v4  ;;  %v142_v16 = vmax.f32 %v100_v12, %v121_v13 }
  0x20   :  { %v161_v14 = vmax.f32 %v77_v0, %v140_v5 }
  0x21   :  { %v162_v17 = vmax.f32 %v78_v6, %v141_v10  ;;  %v163_v18 = vmax.f32 %v79_v15, %v142_v16 }
  0x22   :  { %183 = vst.msk [vmem:[%s555_s4 + $0x90] sm:$0xff] %vm164_vm0, %v161_v14 }
  0x23   :  { %184 = vst.msk [vmem:[%s555_s4 + $0x98] sm:$0xff] %vm164_vm0, %v162_v17 }
  0x24   :  { %186 = vst.msk [vmem:[%s555_s4 + $0xa0] sm:$0x3] %vm185_vm1, %v163_v18 }

// kernel: autoencoder9_forward.11
= control target key start
LH: loop header
LB: loop body
LE: loop exit
PB: predicated region body
PF: predicated region fallthrough
CT: control target
= control target key end

     0   :  { %s782_s12 = smov 0   ;;  %s961_s0 = inlined_call_operand.vmem [shape: f32[768,128], index: 0, kind: input, shape index: {}]   ;;  %s962_s1 = inlined_call_operand.vmem [shape: f32[128,128], index: 1, kind: input, shape index: {}]   ;;  %s963_s2 = inlined_call_operand.vmem [shape: f32[1,128], index: 2, kind: input, shape index: {}]   ;;  %s964_s3 = inlined_call_operand.vmem [shape: f32[768,128], index: 3, kind: output, shape index: {}]  }
   0x1 LB: > { %s574_s13 = sadd.s32 4294967295, %s760_s12   ;;  %p578_p0 = scmp.ge.s32.totalorder %s760_s12, 1  ;;  %s760_s12 = sphi %s782_s12, %s13_s12  }
   0x2   : > { %p138_p1 = scmp.lt.s32.totalorder %s760_s12, 4 }
   0x4   : > { %p139_p2 = pnand %p578_p0, %p138_p1 }
   0x5   : > { %s579_s30 = sshll.u32 (!%p139_p2), %s574_s13, 5 }
   0x6   : > { %142 = sbr.rel (%p139_p2) target bundleno = 273 (0x111), region = 32  ;;  %p163_p3 = scmp.lt.s32.totalorder (!%p139_p2), %s579_s30, 95 }
   0xb   : > { %v221_v0 = vld [vmem:[%s962_s1 + $0x78] sm:$0xff]  ;;  %v220_v1 = vld [vmem:[%s962_s1 + $0x70] sm:$0xff]  ;;  %v219_v2 = vld [vmem:[%s962_s1 + $0x68] sm:$0xff]  ;;  %s966_s30 = smov (!%p163_p3, %s579_s30), 95 }
   0xc   : > { %634 = vmatprep.subr.mxu0 %v221_v0  ;;  %714 = vmatprep.subr.mxu1 %v221_v0  ;;  %v218_v3 = vld [vmem:[%s962_s1 + $0x60] sm:$0xff]  ;;  %v217_v4 = vld [vmem:[%s962_s1 + $0x58] sm:$0xff]  ;;  %v216_v5 = vld [vmem:[%s962_s1 + $0x50] sm:$0xff]  ;;  %s580_s17 = sshll.u32 %s966_s30, 3 }
   0xd   : > { %635 = vmatpush3.msra.mxu0 %v221_v0  ;;  %730 = vmatpush3.msra.mxu1 %v221_v0  ;;  %v215_v6 = vld [vmem:[%s962_s1 + $0x48] sm:$0xff]  ;;  %v214_v7 = vld [vmem:[%s962_s1 + $0x40] sm:$0xff]  ;;  %v213_v8 = vld [vmem:[%s962_s1 + $0x38] sm:$0xff]  ;;  %s845_s22 = scalar_lea.vmem %s961_s0, %s580_s17  ;;  %s894_s29 = scalar_lea.vmem %s964_s3, %s580_s17 }
   0xe   : > { %636 = vmatprep.subr.mxu0 %v220_v1  ;;  %715 = vmatprep.subr.mxu1 %v220_v1  ;;  %v212_v9 = vld [vmem:[%s962_s1 + $0x30] sm:$0xff]  ;;  %v211_v10 = vld [vmem:[%s962_s1 + $0x28] sm:$0xff]  ;;  %v210_v11 = vld [vmem:[%s962_s1 + $0x20] sm:$0xff] }
   0xf   : > { %637 = vmatpush3.msra.mxu0 %v220_v1  ;;  %731 = vmatpush3.msra.mxu1 %v220_v1  ;;  %v209_v12 = vld [vmem:[%s962_s1 + $0x18] sm:$0xff]  ;;  %v208_v13 = vld [vmem:[%s962_s1 + $0x10] sm:$0xff]  ;;  %v207_v14 = vld [vmem:[%s962_s1 + $0x8] sm:$0xff] }
  0x10   : > { %638 = vmatprep.subr.mxu0 %v219_v2  ;;  %716 = vmatprep.subr.mxu1 %v219_v2  ;;  %v206_v15 = vld [vmem:[%s962_s1] sm:$0xff]  ;;  %v175_v18 = vld [vmem:[%s845_s22 + $0x8] sm:$0xff]  ;;  %v176_v20 = vld [vmem:[%s845_s22 + $0x10] sm:$0xff] }
  0x11   : > { %639 = vmatpush3.msra.mxu0 %v219_v2  ;;  %732 = vmatpush3.msra.mxu1 %v219_v2  ;;  %v174_v16 = vld [vmem:[%s845_s22] sm:$0xff]  ;;  %v191_v19 = vld [vmem:[%s845_s22 + $0x88] sm:$0xff]  ;;  %v192_v21 = vld [vmem:[%s845_s22 + $0x90] sm:$0xff] }
  0x12   : > { %640 = vmatprep.subr.mxu0 %v218_v3  ;;  %717 = vmatprep.subr.mxu1 %v218_v3  ;;  %v190_v17 = vld [vmem:[%s845_s22 + $0x80] sm:$0xff]  ;;  %v177_v22 = vld [vmem:[%s845_s22 + $0x18] sm:$0xff]  ;;  %v179_v26 = vld [vmem:[%s845_s22 + $0x28] sm:$0xff] }
  0x13   : > { %641 = vmatpush3.msra.mxu0 %v218_v3  ;;  %733 = vmatpush3.msra.mxu1 %v218_v3  ;;  %v193_v23 = vld [vmem:[%s845_s22 + $0x98] sm:$0xff]  ;;  %v178_v24 = vld [vmem:[%s845_s22 + $0x20] sm:$0xff]  ;;  %v195_v27 = vld [vmem:[%s845_s22 + $0xa8] sm:$0xff] }
  0x14   : > { %642 = vmatprep.subr.mxu0 %v217_v4  ;;  %718 = vmatprep.subr.mxu1 %v217_v4  ;;  %v194_v25 = vld [vmem:[%s845_s22 + $0xa0] sm:$0xff]  ;;  %v180_v28 = vld [vmem:[%s845_s22 + $0x30] sm:$0xff]  ;;  %v181_v30 = vld [vmem:[%s845_s22 + $0x38] sm:$0xff] }
  0x15   : > { %643 = vmatpush3.msra.mxu0 %v217_v4  ;;  %734 = vmatpush3.msra.mxu1 %v217_v4  ;;  %v196_v29 = vld [vmem:[%s845_s22 + $0xb0] sm:$0xff]  ;;  %v197_v31 = vld [vmem:[%s845_s22 + $0xb8] sm:$0xff]  ;;  %v182_v32 = vld [vmem:[%s845_s22 + $0x40] sm:$0xff] }
  0x16   : > { %644 = vmatprep.subr.mxu0 %v216_v5  ;;  %719 = vmatprep.subr.mxu1 %v216_v5  ;;  %v198_v33 = vld [vmem:[%s845_s22 + $0xc0] sm:$0xff]  ;;  %v183_v34 = vld [vmem:[%s845_s22 + $0x48] sm:$0xff]  ;;  %v184_v36 = vld [vmem:[%s845_s22 + $0x50] sm:$0xff] }
  0x17   : > { %645 = vmatpush3.msra.mxu0 %v216_v5  ;;  %735 = vmatpush3.msra.mxu1 %v216_v5  ;;  %v199_v35 = vld [vmem:[%s845_s22 + $0xc8] sm:$0xff]  ;;  %v200_v37 = vld [vmem:[%s845_s22 + $0xd0] sm:$0xff]  ;;  %v185_v38 = vld [vmem:[%s845_s22 + $0x58] sm:$0xff] }
  0x18   : > { %646 = vmatprep.subr.mxu0 %v215_v6  ;;  %720 = vmatprep.subr.mxu1 %v215_v6  ;;  %v201_v39 = vld [vmem:[%s845_s22 + $0xd8] sm:$0xff]  ;;  %v186_v40 = vld [vmem:[%s845_s22 + $0x60] sm:$0xff]  ;;  %v187_v42 = vld [vmem:[%s845_s22 + $0x68] sm:$0xff] }
  0x19   : > { %647 = vmatpush3.msra.mxu0 %v215_v6  ;;  %736 = vmatpush3.msra.mxu1 %v215_v6  ;;  %v202_v41 = vld [vmem:[%s845_s22 + $0xe0] sm:$0xff]  ;;  %v203_v43 = vld [vmem:[%s845_s22 + $0xe8] sm:$0xff]  ;;  %v188_v44 = vld [vmem:[%s845_s22 + $0x70] sm:$0xff] }
  0x1a   : > { %648 = vmatprep.subr.mxu0 %v214_v7  ;;  %721 = vmatprep.subr.mxu1 %v214_v7  ;;  %v204_v45 = vld [vmem:[%s845_s22 + $0xf0] sm:$0xff]  ;;  %v189_v46 = vld [vmem:[%s845_s22 + $0x78] sm:$0xff]  ;;  %v885_v48 = vld [vmem:[%s963_s2] ss:$0 sm:$0xff] }
  0x1b   : > { %649 = vmatpush3.msra.mxu0 %v214_v7  ;;  %737 = vmatpush3.msra.mxu1 %v214_v7  ;;  %v205_v47 = vld [vmem:[%s845_s22 + $0xf8] sm:$0xff] }
  0x1c   : > { %650 = vmatprep.subr.mxu0 %v213_v8  ;;  %722 = vmatprep.subr.mxu1 %v213_v8 }
  0x1d   : > { %651 = vmatpush3.msra.mxu0 %v213_v8  ;;  %738 = vmatpush3.msra.mxu1 %v213_v8 }
  0x1e   : > { %652 = vmatprep.subr.mxu0 %v212_v9  ;;  %723 = vmatprep.subr.mxu1 %v212_v9 }
  0x1f   : > { %653 = vmatpush3.msra.mxu0 %v212_v9  ;;  %739 = vmatpush3.msra.mxu1 %v212_v9 }
  0x20   : > { %654 = vmatprep.subr.mxu0 %v211_v10  ;;  %724 = vmatprep.subr.mxu1 %v211_v10 }
  0x21   : > { %655 = vmatpush3.msra.mxu0 %v211_v10  ;;  %740 = vmatpush3.msra.mxu1 %v211_v10 }
  0x22   : > { %656 = vmatprep.subr.mxu0 %v210_v11  ;;  %725 = vmatprep.subr.mxu1 %v210_v11 }
  0x23   : > { %657 = vmatpush3.msra.mxu0 %v210_v11  ;;  %741 = vmatpush3.msra.mxu1 %v210_v11 }
  0x24   : > { %658 = vmatprep.subr.mxu0 %v209_v12  ;;  %726 = vmatprep.subr.mxu1 %v209_v12 }
  0x25   : > { %659 = vmatpush3.msra.mxu0 %v209_v12  ;;  %742 = vmatpush3.msra.mxu1 %v209_v12 }
  0x26   : > { %660 = vmatprep.subr.mxu0 %v208_v13  ;;  %727 = vmatprep.subr.mxu1 %v208_v13 }
  0x27   : > { %661 = vmatpush3.msra.mxu0 %v208_v13  ;;  %743 = vmatpush3.msra.mxu1 %v208_v13 }
  0x28   : > { %662 = vmatprep.subr.mxu0 %v207_v14  ;;  %728 = vmatprep.subr.mxu1 %v207_v14 }
  0x29   : > { %663 = vmatpush3.msra.mxu0 %v207_v14  ;;  %744 = vmatpush3.msra.mxu1 %v207_v14 }
  0x2a   : > { %664 = vmatprep.subr.mxu0 %v206_v15  ;;  %729 = vmatprep.subr.mxu1 %v206_v15 }
  0x2b   : > { %665 = vmatpush3.msra.mxu0 %v206_v15  ;;  %745 = vmatpush3.msra.mxu1 %v206_v15 }
  0x2c   : > { %666 = vmatprep.mubr.f32.mxu0 %v174_v16  ;;  %690 = vmatprep.mubr.f32.mxu1 %v190_v17 }
  0x2d   : > { %667 = vmatmul.mubr.f32.vlgmr.msra.gmra.mxu0 %v175_v18  ;;  %691 = vmatmul.mubr.f32.vlgmr.msra.gmra.mxu1 %v191_v19 }
  0x2e   : > { %669 = vmatprep.mubr.f32.mxu0 %v176_v20  ;;  %693 = vmatprep.mubr.f32.mxu1 %v192_v21 }
  0x31   : > { %670 = vmatmul.mubr.f32.gmra.mxu0 %v177_v22  ;;  %694 = vmatmul.mubr.f32.gmra.mxu1 %v193_v23 }
  0x32   : > { %672 = vmatprep.mubr.f32.mxu0 %v178_v24  ;;  %696 = vmatprep.mubr.f32.mxu1 %v194_v25 }
  0x35   : > { %673 = vmatmul.mubr.f32.gmra.mxu0 %v179_v26  ;;  %697 = vmatmul.mubr.f32.gmra.mxu1 %v195_v27 }
  0x36   : > { %675 = vmatprep.mubr.f32.mxu0 %v180_v28  ;;  %699 = vmatprep.mubr.f32.mxu1 %v196_v29 }
  0x39   : > { %676 = vmatmul.mubr.f32.gmra.mxu0 %v181_v30  ;;  %700 = vmatmul.mubr.f32.gmra.mxu1 %v197_v31 }
  0x3a   : > { %678 = vmatprep.mubr.f32.mxu0 %v182_v32  ;;  %702 = vmatprep.mubr.f32.mxu1 %v198_v33 }
  0x3d   : > { %679 = vmatmul.mubr.f32.gmra.mxu0 %v183_v34  ;;  %703 = vmatmul.mubr.f32.gmra.mxu1 %v199_v35 }
  0x3e   : > { %681 = vmatprep.mubr.f32.mxu0 %v184_v36  ;;  %705 = vmatprep.mubr.f32.mxu1 %v200_v37 }
  0x41   : > { %682 = vmatmul.mubr.f32.gmra.mxu0 %v185_v38  ;;  %706 = vmatmul.mubr.f32.gmra.mxu1 %v201_v39 }
  0x42   : > { %684 = vmatprep.mubr.f32.mxu0 %v186_v40  ;;  %708 = vmatprep.mubr.f32.mxu1 %v202_v41 }
  0x45   : > { %685 = vmatmul.mubr.f32.gmra.mxu0 %v187_v42  ;;  %709 = vmatmul.mubr.f32.gmra.mxu1 %v203_v43 }
  0x46   : > { %687 = vmatprep.mubr.f32.mxu0 %v188_v44  ;;  %711 = vmatprep.mubr.f32.mxu1 %v204_v45 }
  0x49   : > { %688 = vmatmul.mubr.f32.gmra.mxu0 %v189_v46  ;;  %712 = vmatmul.mubr.f32.gmra.mxu1 %v205_v47 }
  0xed   : > { %v668_v49 = vpop.f32.mrf.mxu0  ;;  %v692_v50 = vpop.f32.mrf.mxu1 }
  0xee   : > { %v301_v51 = vadd.f32 %v668_v49, %v885_v48  ;;  %v381_v52 = vadd.f32 %v692_v50, %v885_v48 }
  0xef   : > { %v295_v53 = vpop.f32.mrf.mxu0  ;;  %v375_v54 = vpop.f32.mrf.mxu1 }
  0xf0   : > { %v455_v55 = vmax.f32 %v301_v51, 0.0  ;;  %v471_v56 = vmax.f32 %v381_v52, 0.0  ;;  %v296_v57 = vadd.f32 %v885_v48, %v295_v53  ;;  %v376_v58 = vadd.f32 %v885_v48, %v375_v54 }
  0xf1   : > { %v671_v59 = vpop.f32.mrf.mxu0  ;;  %v695_v60 = vpop.f32.mrf.mxu1 }
  0xf2   : > { %487 = vst [vmem:[%s894_s29 + $0x8] sm:$0xff] %v455_v55  ;;  %503 = vst [vmem:[%s894_s29 + $0x88] sm:$0xff] %v471_v56  ;;  %v454_v61 = vmax.f32 %v296_v57, 0.0  ;;  %v470_v62 = vmax.f32 %v376_v58, 0.0  ;;  %v311_v63 = vadd.f32 %v671_v59, %v885_v48  ;;  %v391_v0 = vadd.f32 %v695_v60, %v885_v48 }
  0xf3   : > { %v305_v1 = vpop.f32.mrf.mxu0  ;;  %v385_v2 = vpop.f32.mrf.mxu1 }
  0xf4   : > { %486 = vst [vmem:[%s894_s29] sm:$0xff] %v454_v61  ;;  %502 = vst [vmem:[%s894_s29 + $0x80] sm:$0xff] %v470_v62  ;;  %v457_v3 = vmax.f32 %v311_v63, 0.0  ;;  %v473_v4 = vmax.f32 %v391_v0, 0.0  ;;  %v306_v5 = vadd.f32 %v885_v48, %v305_v1  ;;  %v386_v6 = vadd.f32 %v885_v48, %v385_v2 }
  0xf5   : > { %v674_v7 = vpop.f32.mrf.mxu0  ;;  %v698_v8 = vpop.f32.mrf.mxu1 }
  0xf6   : > { %489 = vst [vmem:[%s894_s29 + $0x18] sm:$0xff] %v457_v3  ;;  %505 = vst [vmem:[%s894_s29 + $0x98] sm:$0xff] %v473_v4  ;;  %v456_v9 = vmax.f32 %v306_v5, 0.0  ;;  %v472_v10 = vmax.f32 %v386_v6, 0.0  ;;  %v321_v11 = vadd.f32 %v674_v7, %v885_v48  ;;  %v401_v12 = vadd.f32 %v698_v8, %v885_v48 }
  0xf7   : > { %v315_v13 = vpop.f32.mrf.mxu0  ;;  %v395_v14 = vpop.f32.mrf.mxu1 }
  0xf8   : > { %488 = vst [vmem:[%s894_s29 + $0x10] sm:$0xff] %v456_v9  ;;  %504 = vst [vmem:[%s894_s29 + $0x90] sm:$0xff] %v472_v10  ;;  %v459_v15 = vmax.f32 %v321_v11, 0.0  ;;  %v475_v16 = vmax.f32 %v401_v12, 0.0  ;;  %v316_v17 = vadd.f32 %v885_v48, %v315_v13  ;;  %v396_v18 = vadd.f32 %v885_v48, %v395_v14 }
  0xf9   : > { %v677_v19 = vpop.f32.mrf.mxu0  ;;  %v701_v20 = vpop.f32.mrf.mxu1 }
  0xfa   : > { %491 = vst [vmem:[%s894_s29 + $0x28] sm:$0xff] %v459_v15  ;;  %507 = vst [vmem:[%s894_s29 + $0xa8] sm:$0xff] %v475_v16  ;;  %v458_v21 = vmax.f32 %v316_v17, 0.0  ;;  %v474_v22 = vmax.f32 %v396_v18, 0.0  ;;  %v331_v23 = vadd.f32 %v677_v19, %v885_v48  ;;  %v411_v24 = vadd.f32 %v701_v20, %v885_v48 }
  0xfb   : > { %v325_v25 = vpop.f32.mrf.mxu0  ;;  %v405_v26 = vpop.f32.mrf.mxu1 }
  0xfc   : > { %490 = vst [vmem:[%s894_s29 + $0x20] sm:$0xff] %v458_v21  ;;  %506 = vst [vmem:[%s894_s29 + $0xa0] sm:$0xff] %v474_v22  ;;  %v461_v27 = vmax.f32 %v331_v23, 0.0  ;;  %v477_v28 = vmax.f32 %v411_v24, 0.0  ;;  %v326_v29 = vadd.f32 %v885_v48, %v325_v25  ;;  %v406_v30 = vadd.f32 %v885_v48, %v405_v26 }
  0xfd   : > { %v680_v31 = vpop.f32.mrf.mxu0  ;;  %v704_v32 = vpop.f32.mrf.mxu1 }
  0xfe   : > { %493 = vst [vmem:[%s894_s29 + $0x38] sm:$0xff] %v461_v27  ;;  %509 = vst [vmem:[%s894_s29 + $0xb8] sm:$0xff] %v477_v28  ;;  %v460_v33 = vmax.f32 %v326_v29, 0.0  ;;  %v476_v34 = vmax.f32 %v406_v30, 0.0  ;;  %v341_v35 = vadd.f32 %v680_v31, %v885_v48  ;;  %v421_v36 = vadd.f32 %v704_v32, %v885_v48 }
  0xff   : > { %v335_v37 = vpop.f32.mrf.mxu0  ;;  %v415_v38 = vpop.f32.mrf.mxu1 }
 0x100   : > { %492 = vst [vmem:[%s894_s29 + $0x30] sm:$0xff] %v460_v33  ;;  %508 = vst [vmem:[%s894_s29 + $0xb0] sm:$0xff] %v476_v34  ;;  %v463_v39 = vmax.f32 %v341_v35, 0.0  ;;  %v479_v40 = vmax.f32 %v421_v36, 0.0  ;;  %v336_v41 = vadd.f32 %v885_v48, %v335_v37  ;;  %v416_v42 = vadd.f32 %v885_v48, %v415_v38 }
 0x101   : > { %v683_v43 = vpop.f32.mrf.mxu0  ;;  %v707_v44 = vpop.f32.mrf.mxu1 }
 0x102   : > { %495 = vst [vmem:[%s894_s29 + $0x48] sm:$0xff] %v463_v39  ;;  %511 = vst [vmem:[%s894_s29 + $0xc8] sm:$0xff] %v479_v40  ;;  %v462_v45 = vmax.f32 %v336_v41, 0.0  ;;  %v478_v46 = vmax.f32 %v416_v42, 0.0  ;;  %v351_v47 = vadd.f32 %v683_v43, %v885_v48  ;;  %v431_v49 = vadd.f32 %v707_v44, %v885_v48 }
 0x103   : > { %v345_v50 = vpop.f32.mrf.mxu0  ;;  %v425_v51 = vpop.f32.mrf.mxu1 }
 0x104   : > { %494 = vst [vmem:[%s894_s29 + $0x40] sm:$0xff] %v462_v45  ;;  %510 = vst [vmem:[%s894_s29 + $0xc0] sm:$0xff] %v478_v46  ;;  %v465_v52 = vmax.f32 %v351_v47, 0.0  ;;  %v481_v53 = vmax.f32 %v431_v49, 0.0  ;;  %v346_v54 = vadd.f32 %v885_v48, %v345_v50  ;;  %v426_v55 = vadd.f32 %v885_v48, %v425_v51 }
 0x105   : > { %v686_v56 = vpop.f32.mrf.mxu0  ;;  %v710_v57 = vpop.f32.mrf.mxu1 }
 0x106   : > { %497 = vst [vmem:[%s894_s29 + $0x58] sm:$0xff] %v465_v52  ;;  %513 = vst [vmem:[%s894_s29 + $0xd8] sm:$0xff] %v481_v53  ;;  %v464_v58 = vmax.f32 %v346_v54, 0.0  ;;  %v480_v59 = vmax.f32 %v426_v55, 0.0  ;;  %v361_v60 = vadd.f32 %v686_v56, %v885_v48  ;;  %v441_v61 = vadd.f32 %v710_v57, %v885_v48 }
 0x107   : > { %v355_v62 = vpop.f32.mrf.mxu0  ;;  %v435_v63 = vpop.f32.mrf.mxu1 }
 0x108   : > { %496 = vst [vmem:[%s894_s29 + $0x50] sm:$0xff] %v464_v58  ;;  %512 = vst [vmem:[%s894_s29 + $0xd0] sm:$0xff] %v480_v59  ;;  %v467_v0 = vmax.f32 %v361_v60, 0.0  ;;  %v483_v1 = vmax.f32 %v441_v61, 0.0  ;;  %v356_v2 = vadd.f32 %v885_v48, %v355_v62  ;;  %v436_v3 = vadd.f32 %v885_v48, %v435_v63 }
 0x109   : > { %v689_v4 = vpop.f32.mrf.mxu0  ;;  %v713_v5 = vpop.f32.mrf.mxu1 }
 0x10a   : > { %499 = vst [vmem:[%s894_s29 + $0x68] sm:$0xff] %v467_v0  ;;  %515 = vst [vmem:[%s894_s29 + $0xe8] sm:$0xff] %v483_v1  ;;  %v466_v6 = vmax.f32 %v356_v2, 0.0  ;;  %v482_v7 = vmax.f32 %v436_v3, 0.0  ;;  %v371_v8 = vadd.f32 %v689_v4, %v885_v48  ;;  %v451_v9 = vadd.f32 %v713_v5, %v885_v48 }
 0x10b   : > { %v365_v10 = vpop.f32.mrf.mxu0  ;;  %v445_v11 = vpop.f32.mrf.mxu1 }
 0x10c   : > { %498 = vst [vmem:[%s894_s29 + $0x60] sm:$0xff] %v466_v6  ;;  %514 = vst [vmem:[%s894_s29 + $0xe0] sm:$0xff] %v482_v7  ;;  %v469_v12 = vmax.f32 %v371_v8, 0.0  ;;  %v485_v13 = vmax.f32 %v451_v9, 0.0  ;;  %v366_v14 = vadd.f32 %v885_v48, %v365_v10  ;;  %v446_v15 = vadd.f32 %v885_v48, %v445_v11 }
 0x10e   : > { %501 = vst [vmem:[%s894_s29 + $0x78] sm:$0xff] %v469_v12  ;;  %517 = vst [vmem:[%s894_s29 + $0xf8] sm:$0xff] %v485_v13  ;;  %v468_v16 = vmax.f32 %v366_v14, 0.0  ;;  %v484_v17 = vmax.f32 %v446_v15, 0.0 }
 0x110   : > { %500 = vst [vmem:[%s894_s29 + $0x70] sm:$0xff] %v468_v16  ;;  %516 = vst [vmem:[%s894_s29 + $0xf0] sm:$0xff] %v484_v17 }
 0x111 PF: > { %s13_s12 = sadd.s32 1, %s760_s12  }
 0x112   : > { %p10_p4 = scmp.ge.s32.totalorder %s13_s12, 5  }
 0x114   :  { %12 = sbr.rel (!%p10_p4) target bundleno = 1 (0x1), region = 62 }

// kernel: autoencoder9_forward.14
= control target key start
LH: loop header
LB: loop body
LE: loop exit
PB: predicated region body
PF: predicated region fallthrough
CT: control target
= control target key end

     0   :  { %s138_s0 = inlined_call_operand.vmem [shape: f32[32,128], index: 0, kind: input, shape index: {}]   ;;  %s139_s1 = inlined_call_operand.vmem [shape: f32[32,128], index: 1, kind: input, shape index: {}]   ;;  %s140_s2 = inlined_call_operand.vmem [shape: f32[32,128], index: 2, kind: input, shape index: {}]   ;;  %s141_s3 = inlined_call_operand.vmem [shape: f32[32,128], index: 3, kind: input, shape index: {}]   ;;  %s142_s4 = inlined_call_operand.vmem [shape: f32[32,128], index: 4, kind: output, shape index: {}]  }
   0x1   :  { %v17_v0 = vld [vmem:[%s138_s0] sm:$0xff]  ;;  %v18_v5 = vld [vmem:[%s138_s0 + $0x8] sm:$0xff]  ;;  %v19_v11 = vld [vmem:[%s138_s0 + $0x10] sm:$0xff] }
   0x2   :  { %v21_v1 = vld [vmem:[%s139_s1] sm:$0xff]  ;;  %v22_v6 = vld [vmem:[%s139_s1 + $0x8] sm:$0xff]  ;;  %v23_v13 = vld [vmem:[%s139_s1 + $0x10] sm:$0xff] }
   0x3   :  { %v29_v2 = vld [vmem:[%s140_s2] sm:$0xff]  ;;  %v25_v3 = vmax.f32 %v17_v0, %v21_v1  ;;  %v26_v8 = vmax.f32 %v18_v5, %v22_v6  ;;  %v30_v9 = vld [vmem:[%s140_s2 + $0x8] sm:$0xff]  ;;  %v31_v14 = vld [vmem:[%s140_s2 + $0x10] sm:$0xff]  ;;  %v27_v17 = vmax.f32 %v19_v11, %v23_v13 }
   0x4   :  { %v33_v4 = vld [vmem:[%s141_s3] sm:$0xff]  ;;  %v34_v10 = vld [vmem:[%s141_s3 + $0x8] sm:$0xff]  ;;  %v35_v15 = vld [vmem:[%s141_s3 + $0x10] sm:$0xff] }
   0x5   :  { %v37_v7 = vmax.f32 %v29_v2, %v33_v4  ;;  %v38_v12 = vmax.f32 %v30_v9, %v34_v10  ;;  %v39_v18 = vmax.f32 %v31_v14, %v35_v15  ;;  %v20_v19 = vld [vmem:[%s138_s0 + $0x18] sm:$0xff] }
   0x6   :  { %v24_v20 = vld [vmem:[%s139_s1 + $0x18] sm:$0xff] }
   0x7   :  { %v41_v16 = vmax.f32 %v25_v3, %v37_v7  ;;  %v32_v21 = vld [vmem:[%s140_s2 + $0x18] sm:$0xff]  ;;  %v42_v22 = vmax.f32 %v26_v8, %v38_v12  ;;  %v28_v23 = vmax.f32 %v20_v19, %v24_v20  ;;  %v43_v25 = vmax.f32 %v27_v17, %v39_v18 }
   0x8   :  { %v36_v24 = vld [vmem:[%s141_s3 + $0x18] sm:$0xff] }
   0x9   :  { %45 = vst [vmem:[%s142_s4] sm:$0xff] %v41_v16  ;;  %v40_v26 = vmax.f32 %v32_v21, %v36_v24  ;;  %46 = vst [vmem:[%s142_s4 + $0x8] sm:$0xff] %v42_v22 }
   0xa   :  { %47 = vst [vmem:[%s142_s4 + $0x10] sm:$0xff] %v43_v25 }
   0xb   :  { %v44_v27 = vmax.f32 %v28_v23, %v40_v26 }
   0xd   :  { %48 = vst [vmem:[%s142_s4 + $0x18] sm:$0xff] %v44_v27 }

// kernel: autoencoder9_forward.13
= control target key start
LH: loop header
LB: loop body
LE: loop exit
PB: predicated region body
PF: predicated region fallthrough
CT: control target
= control target key end

     0   :  { %v1166_v0 = vmov 0.0   ;;  %s2230_s1 = inlined_call_operand.vmem [shape: f32[640,128], index: 1, kind: input, shape index: {}]   ;;  %s2231_s0 = inlined_call_operand.vmem [shape: f32[256,640], index: 0, kind: input, shape index: {}]   ;;  %s2232_s2 = inlined_call_operand.vmem [shape: f32[1,128], index: 2, kind: input, shape index: {}]   ;;  %s2233_s3 = inlined_call_operand.vmem [shape: f32[256,128], index: 3, kind: output, shape index: {}]  }
   0x1   :  { %261 = vmatprep.subr.mxu0 %v1166_v0  ;;  %486 = vmatprep.subr.mxu1 %v1166_v0  ;;  %v189_v1 = vld [vmem:[%s2230_s1 + $0x78] sm:$0xff]  ;;  %v188_v3 = vld [vmem:[%s2230_s1 + $0x70] sm:$0xff]  ;;  %v187_v5 = vld [vmem:[%s2230_s1 + $0x68] sm:$0xff] }
   0x2   :  { %v221_v2 = vld [vmem:[%s2230_s1 + $0x178] sm:$0xff]  ;;  %262 = vmatpush1.msra.mxu0 %v189_v1  ;;  %v220_v4 = vld [vmem:[%s2230_s1 + $0x170] sm:$0xff]  ;;  %v219_v6 = vld [vmem:[%s2230_s1 + $0x168] sm:$0xff] }
   0x3   :  { %487 = vmatpush1.msra.mxu1 %v221_v2  ;;  %263 = vmatprep.subr.mxu0 %v1166_v0  ;;  %v186_v7 = vld [vmem:[%s2230_s1 + $0x60] sm:$0xff]  ;;  %v185_v9 = vld [vmem:[%s2230_s1 + $0x58] sm:$0xff]  ;;  %v184_v11 = vld [vmem:[%s2230_s1 + $0x50] sm:$0xff] }
   0x4   :  { %488 = vmatprep.subr.mxu1 %v1166_v0  ;;  %264 = vmatpush1.msra.mxu0 %v188_v3  ;;  %v218_v8 = vld [vmem:[%s2230_s1 + $0x160] sm:$0xff]  ;;  %v217_v10 = vld [vmem:[%s2230_s1 + $0x158] sm:$0xff]  ;;  %v216_v12 = vld [vmem:[%s2230_s1 + $0x150] sm:$0xff] }
   0x5   :  { %489 = vmatpush1.msra.mxu1 %v220_v4  ;;  %265 = vmatprep.subr.mxu0 %v1166_v0  ;;  %v183_v13 = vld [vmem:[%s2230_s1 + $0x48] sm:$0xff]  ;;  %v182_v15 = vld [vmem:[%s2230_s1 + $0x40] sm:$0xff]  ;;  %v181_v17 = vld [vmem:[%s2230_s1 + $0x38] sm:$0xff] }
   0x6   :  { %490 = vmatprep.subr.mxu1 %v1166_v0  ;;  %266 = vmatpush1.msra.mxu0 %v187_v5  ;;  %v215_v14 = vld [vmem:[%s2230_s1 + $0x148] sm:$0xff]  ;;  %v214_v16 = vld [vmem:[%s2230_s1 + $0x140] sm:$0xff]  ;;  %v213_v18 = vld [vmem:[%s2230_s1 + $0x138] sm:$0xff] }
   0x7   :  { %491 = vmatpush1.msra.mxu1 %v219_v6  ;;  %267 = vmatprep.subr.mxu0 %v1166_v0  ;;  %v180_v19 = vld [vmem:[%s2230_s1 + $0x30] sm:$0xff]  ;;  %v179_v21 = vld [vmem:[%s2230_s1 + $0x28] sm:$0xff]  ;;  %v178_v23 = vld [vmem:[%s2230_s1 + $0x20] sm:$0xff] }
   0x8   :  { %492 = vmatprep.subr.mxu1 %v1166_v0  ;;  %268 = vmatpush1.msra.mxu0 %v186_v7  ;;  %v212_v20 = vld [vmem:[%s2230_s1 + $0x130] sm:$0xff]  ;;  %v211_v22 = vld [vmem:[%s2230_s1 + $0x128] sm:$0xff]  ;;  %v210_v24 = vld [vmem:[%s2230_s1 + $0x120] sm:$0xff] }
   0x9   :  { %493 = vmatpush1.msra.mxu1 %v218_v8  ;;  %269 = vmatprep.subr.mxu0 %v1166_v0  ;;  %v177_v25 = vld [vmem:[%s2230_s1 + $0x18] sm:$0xff]  ;;  %v176_v27 = vld [vmem:[%s2230_s1 + $0x10] sm:$0xff]  ;;  %v175_v29 = vld [vmem:[%s2230_s1 + $0x8] sm:$0xff] }
   0xa   :  { %494 = vmatprep.subr.mxu1 %v1166_v0  ;;  %270 = vmatpush1.msra.mxu0 %v185_v9  ;;  %v209_v26 = vld [vmem:[%s2230_s1 + $0x118] sm:$0xff]  ;;  %v208_v28 = vld [vmem:[%s2230_s1 + $0x110] sm:$0xff]  ;;  %v207_v30 = vld [vmem:[%s2230_s1 + $0x108] sm:$0xff] }
   0xb   :  { %495 = vmatpush1.msra.mxu1 %v217_v10  ;;  %271 = vmatprep.subr.mxu0 %v1166_v0  ;;  %v174_v31 = vld [vmem:[%s2230_s1] sm:$0xff]  ;;  %v205_v33 = vld [vmem:[%s2230_s1 + $0xf8] sm:$0xff]  ;;  %v204_v35 = vld [vmem:[%s2230_s1 + $0xf0] sm:$0xff] }
   0xc   :  { %496 = vmatprep.subr.mxu1 %v1166_v0  ;;  %272 = vmatpush1.msra.mxu0 %v184_v11  ;;  %v206_v32 = vld [vmem:[%s2230_s1 + $0x100] sm:$0xff]  ;;  %v237_v34 = vld [vmem:[%s2230_s1 + $0x1f8] sm:$0xff]  ;;  %v236_v36 = vld [vmem:[%s2230_s1 + $0x1f0] sm:$0xff] }
   0xd   :  { %497 = vmatpush1.msra.mxu1 %v216_v12  ;;  %273 = vmatprep.subr.mxu0 %v1166_v0  ;;  %v203_v37 = vld [vmem:[%s2230_s1 + $0xe8] sm:$0xff]  ;;  %v202_v39 = vld [vmem:[%s2230_s1 + $0xe0] sm:$0xff]  ;;  %v201_v41 = vld [vmem:[%s2230_s1 + $0xd8] sm:$0xff] }
   0xe   :  { %498 = vmatprep.subr.mxu1 %v1166_v0  ;;  %274 = vmatpush1.msra.mxu0 %v183_v13  ;;  %v235_v38 = vld [vmem:[%s2230_s1 + $0x1e8] sm:$0xff]  ;;  %v234_v40 = vld [vmem:[%s2230_s1 + $0x1e0] sm:$0xff]  ;;  %v233_v42 = vld [vmem:[%s2230_s1 + $0x1d8] sm:$0xff] }
   0xf   :  { %499 = vmatpush1.msra.mxu1 %v215_v14  ;;  %275 = vmatprep.subr.mxu0 %v1166_v0  ;;  %v200_v43 = vld [vmem:[%s2230_s1 + $0xd0] sm:$0xff]  ;;  %v199_v45 = vld [vmem:[%s2230_s1 + $0xc8] sm:$0xff]  ;;  %v198_v47 = vld [vmem:[%s2230_s1 + $0xc0] sm:$0xff] }
  0x10   :  { %500 = vmatprep.subr.mxu1 %v1166_v0  ;;  %276 = vmatpush1.msra.mxu0 %v182_v15  ;;  %v232_v44 = vld [vmem:[%s2230_s1 + $0x1d0] sm:$0xff]  ;;  %v231_v46 = vld [vmem:[%s2230_s1 + $0x1c8] sm:$0xff]  ;;  %v230_v48 = vld [vmem:[%s2230_s1 + $0x1c0] sm:$0xff] }
  0x11   :  { %501 = vmatpush1.msra.mxu1 %v214_v16  ;;  %277 = vmatprep.subr.mxu0 %v1166_v0  ;;  %v197_v49 = vld [vmem:[%s2230_s1 + $0xb8] sm:$0xff]  ;;  %v196_v51 = vld [vmem:[%s2230_s1 + $0xb0] sm:$0xff]  ;;  %v195_v53 = vld [vmem:[%s2230_s1 + $0xa8] sm:$0xff] }
  0x12   :  { %502 = vmatprep.subr.mxu1 %v1166_v0  ;;  %278 = vmatpush1.msra.mxu0 %v181_v17  ;;  %v229_v50 = vld [vmem:[%s2230_s1 + $0x1b8] sm:$0xff]  ;;  %v228_v52 = vld [vmem:[%s2230_s1 + $0x1b0] sm:$0xff]  ;;  %v227_v54 = vld [vmem:[%s2230_s1 + $0x1a8] sm:$0xff] }
  0x13   :  { %503 = vmatpush1.msra.mxu1 %v213_v18  ;;  %279 = vmatprep.subr.mxu0 %v1166_v0  ;;  %v194_v55 = vld [vmem:[%s2230_s1 + $0xa0] sm:$0xff]  ;;  %v193_v57 = vld [vmem:[%s2230_s1 + $0x98] sm:$0xff]  ;;  %v192_v59 = vld [vmem:[%s2230_s1 + $0x90] sm:$0xff] }
  0x14   :  { %504 = vmatprep.subr.mxu1 %v1166_v0  ;;  %280 = vmatpush1.msra.mxu0 %v180_v19  ;;  %v226_v56 = vld [vmem:[%s2230_s1 + $0x1a0] sm:$0xff]  ;;  %v225_v58 = vld [vmem:[%s2230_s1 + $0x198] sm:$0xff]  ;;  %v224_v60 = vld [vmem:[%s2230_s1 + $0x190] sm:$0xff] }
  0x15   :  { %505 = vmatpush1.msra.mxu1 %v212_v20  ;;  %281 = vmatprep.subr.mxu0 %v1166_v0  ;;  %v191_v61 = vld [vmem:[%s2230_s1 + $0x88] sm:$0xff]  ;;  %v190_v63 = vld [vmem:[%s2230_s1 + $0x80] sm:$0xff]  ;;  %v17_v3 = vld [vmem:[%s2231_s0 + $0x18] sm:$0xff] }
  0x16   :  { %506 = vmatprep.subr.mxu1 %v1166_v0  ;;  %282 = vmatpush1.msra.mxu0 %v179_v21  ;;  %v223_v62 = vld [vmem:[%s2230_s1 + $0x188] sm:$0xff]  ;;  %v222_v2 = vld [vmem:[%s2230_s1 + $0x180] sm:$0xff]  ;;  %v16_v5 = vld [vmem:[%s2231_s0 + $0x10] sm:$0xff] }
  0x17   :  { %507 = vmatpush1.msra.mxu1 %v211_v22  ;;  %283 = vmatprep.subr.mxu0 %v1166_v0  ;;  %v15_v1 = vld [vmem:[%s2231_s0 + $0x8] sm:$0xff]  ;;  %v14_v4 = vld [vmem:[%s2231_s0] sm:$0xff]  ;;  %v253_v6 = vld [vmem:[%s2230_s1 + $0x278] sm:$0xff] }
  0x18   :  { %508 = vmatprep.subr.mxu1 %v1166_v0  ;;  %284 = vmatpush1.msra.mxu0 %v178_v23  ;;  %v22_v7 = vld [vmem:[%s2231_s0 + $0x40] sm:$0xff]  ;;  %v19_v8 = vld [vmem:[%s2231_s0 + $0x28] sm:$0xff]  ;;  %v21_v9 = vld [vmem:[%s2231_s0 + $0x38] sm:$0xff] }
  0x19   :  { %509 = vmatpush1.msra.mxu1 %v210_v24  ;;  %285 = vmatprep.subr.mxu0 %v1166_v0  ;;  %v25_v10 = vld [vmem:[%s2231_s0 + $0x58] sm:$0xff]  ;;  %v27_v11 = vld [vmem:[%s2231_s0 + $0x68] sm:$0xff]  ;;  %v252_v12 = vld [vmem:[%s2230_s1 + $0x270] sm:$0xff] }
  0x1a   :  { %510 = vmatprep.subr.mxu1 %v1166_v0  ;;  %286 = vmatpush1.msra.mxu0 %v177_v25  ;;  %v24_v13 = vld [vmem:[%s2231_s0 + $0x50] sm:$0xff]  ;;  %v26_v14 = vld [vmem:[%s2231_s0 + $0x60] sm:$0xff]  ;;  %v251_v17 = vld [vmem:[%s2230_s1 + $0x268] sm:$0xff] }
  0x1b   :  { %511 = vmatpush1.msra.mxu1 %v209_v26  ;;  %287 = vmatprep.subr.mxu0 %v1166_v0  ;;  %v30_v15 = vld [vmem:[%s2231_s0 + $0x80] sm:$0xff]  ;;  %v32_v16 = vld [vmem:[%s2231_s0 + $0x90] sm:$0xff]  ;;  %v29_v18 = vld [vmem:[%s2231_s0 + $0x78] sm:$0xff] }
  0x1c   :  { %512 = vmatprep.subr.mxu1 %v1166_v0  ;;  %288 = vmatpush1.msra.mxu0 %v176_v27  ;;  %v31_v19 = vld [vmem:[%s2231_s0 + $0x88] sm:$0xff]  ;;  %v37_v21 = vld [vmem:[%s2231_s0 + $0xb8] sm:$0xff]  ;;  %v250_v22 = vld [vmem:[%s2230_s1 + $0x260] sm:$0xff] }
  0x1d   :  { %513 = vmatpush1.msra.mxu1 %v208_v28  ;;  %289 = vmatprep.subr.mxu0 %v1166_v0  ;;  %v35_v20 = vld [vmem:[%s2231_s0 + $0xa8] sm:$0xff]  ;;  %v34_v23 = vld [vmem:[%s2231_s0 + $0xa0] sm:$0xff]  ;;  %v36_v24 = vld [vmem:[%s2231_s0 + $0xb0] sm:$0xff] }
  0x1e   :  { %514 = vmatprep.subr.mxu1 %v1166_v0  ;;  %290 = vmatpush1.msra.mxu0 %v175_v29  ;;  %v40_v25 = vld [vmem:[%s2231_s0 + $0xd0] sm:$0xff]  ;;  %v42_v26 = vld [vmem:[%s2231_s0 + $0xe0] sm:$0xff]  ;;  %v249_v27 = vld [vmem:[%s2230_s1 + $0x258] sm:$0xff] }
  0x1f   :  { %515 = vmatpush1.msra.mxu1 %v207_v30  ;;  %291 = vmatprep.subr.mxu0 %v1166_v0  ;;  %v39_v28 = vld [vmem:[%s2231_s0 + $0xc8] sm:$0xff]  ;;  %v41_v29 = vld [vmem:[%s2231_s0 + $0xd8] sm:$0xff] }
  0x20   :  { %516 = vmatprep.subr.mxu1 %v1166_v0  ;;  %292 = vmatpush1.msra.mxu0 %v174_v31  ;;  %v45_v30 = vld [vmem:[%s2231_s0 + $0xf8] sm:$0xff]  ;;  %v47_v31 = vld [vmem:[%s2231_s0 + $0x108] sm:$0xff] }
  0x21   :  { %517 = vmatpush1.msra.mxu1 %v206_v32  ;;  %293 = vmatprep.subr.mxu0 %v1166_v0  ;;  %v248_v32 = vld [vmem:[%s2230_s1 + $0x250] sm:$0xff] }
  0x22   :  { %518 = vmatprep.subr.mxu1 %v1166_v0  ;;  %294 = vmatpush2.msra.mxu0 %v205_v33  ;;  %v44_v33 = vld [vmem:[%s2231_s0 + $0xf0] sm:$0xff] }
  0x23   :  { %519 = vmatpush2.msra.mxu1 %v237_v34  ;;  %295 = vmatprep.subr.mxu0 %v1166_v0  ;;  %v46_v34 = vld [vmem:[%s2231_s0 + $0x100] sm:$0xff] }
  0x24   :  { %520 = vmatprep.subr.mxu1 %v1166_v0  ;;  %296 = vmatpush2.msra.mxu0 %v204_v35  ;;  %v50_v35 = vld [vmem:[%s2231_s0 + $0x120] sm:$0xff] }
  0x25   :  { %521 = vmatpush2.msra.mxu1 %v236_v36  ;;  %297 = vmatprep.subr.mxu0 %v1166_v0  ;;  %v52_v36 = vld [vmem:[%s2231_s0 + $0x130] sm:$0xff] }
  0x26   :  { %522 = vmatprep.subr.mxu1 %v1166_v0  ;;  %298 = vmatpush2.msra.mxu0 %v203_v37  ;;  %v247_v37 = vld [vmem:[%s2230_s1 + $0x248] sm:$0xff] }
  0x27   :  { %523 = vmatpush2.msra.mxu1 %v235_v38  ;;  %299 = vmatprep.subr.mxu0 %v1166_v0  ;;  %v49_v38 = vld [vmem:[%s2231_s0 + $0x118] sm:$0xff] }
  0x28   :  { %524 = vmatprep.subr.mxu1 %v1166_v0  ;;  %300 = vmatpush2.msra.mxu0 %v202_v39  ;;  %v51_v39 = vld [vmem:[%s2231_s0 + $0x128] sm:$0xff] }
  0x29   :  { %525 = vmatpush2.msra.mxu1 %v234_v40  ;;  %301 = vmatprep.subr.mxu0 %v1166_v0  ;;  %v55_v40 = vld [vmem:[%s2231_s0 + $0x148] sm:$0xff] }
  0x2a   :  { %526 = vmatprep.subr.mxu1 %v1166_v0  ;;  %302 = vmatpush2.msra.mxu0 %v201_v41  ;;  %v57_v41 = vld [vmem:[%s2231_s0 + $0x158] sm:$0xff] }
  0x2b   :  { %527 = vmatpush2.msra.mxu1 %v233_v42  ;;  %303 = vmatprep.subr.mxu0 %v1166_v0  ;;  %v246_v42 = vld [vmem:[%s2230_s1 + $0x240] sm:$0xff] }
  0x2c   :  { %528 = vmatprep.subr.mxu1 %v1166_v0  ;;  %304 = vmatpush2.msra.mxu0 %v200_v43  ;;  %v54_v43 = vld [vmem:[%s2231_s0 + $0x140] sm:$0xff] }
  0x2d   :  { %529 = vmatpush2.msra.mxu1 %v232_v44  ;;  %305 = vmatprep.subr.mxu0 %v1166_v0  ;;  %v56_v44 = vld [vmem:[%s2231_s0 + $0x150] sm:$0xff] }
  0x2e   :  { %530 = vmatprep.subr.mxu1 %v1166_v0  ;;  %306 = vmatpush2.msra.mxu0 %v199_v45  ;;  %v60_v45 = vld [vmem:[%s2231_s0 + $0x170] sm:$0xff] }
  0x2f   :  { %531 = vmatpush2.msra.mxu1 %v231_v46  ;;  %307 = vmatprep.subr.mxu0 %v1166_v0  ;;  %v62_v46 = vld [vmem:[%s2231_s0 + $0x180] sm:$0xff] }
  0x30   :  { %532 = vmatprep.subr.mxu1 %v1166_v0  ;;  %308 = vmatpush2.msra.mxu0 %v198_v47  ;;  %v245_v47 = vld [vmem:[%s2230_s1 + $0x238] sm:$0xff] }
  0x31   :  { %533 = vmatpush2.msra.mxu1 %v230_v48  ;;  %309 = vmatprep.subr.mxu0 %v1166_v0  ;;  %v59_v48 = vld [vmem:[%s2231_s0 + $0x168] sm:$0xff] }
  0x32   :  { %534 = vmatprep.subr.mxu1 %v1166_v0  ;;  %310 = vmatpush2.msra.mxu0 %v197_v49  ;;  %v61_v49 = vld [vmem:[%s2231_s0 + $0x178] sm:$0xff] }
  0x33   :  { %535 = vmatpush2.msra.mxu1 %v229_v50  ;;  %311 = vmatprep.subr.mxu0 %v1166_v0  ;;  %v65_v50 = vld [vmem:[%s2231_s0 + $0x198] sm:$0xff] }
  0x34   :  { %536 = vmatprep.subr.mxu1 %v1166_v0  ;;  %312 = vmatpush2.msra.mxu0 %v196_v51  ;;  %v67_v51 = vld [vmem:[%s2231_s0 + $0x1a8] sm:$0xff] }
  0x35   :  { %537 = vmatpush2.msra.mxu1 %v228_v52  ;;  %313 = vmatprep.subr.mxu0 %v1166_v0  ;;  %v244_v52 = vld [vmem:[%s2230_s1 + $0x230] sm:$0xff] }
  0x36   :  { %538 = vmatprep.subr.mxu1 %v1166_v0  ;;  %314 = vmatpush2.msra.mxu0 %v195_v53  ;;  %v64_v53 = vld [vmem:[%s2231_s0 + $0x190] sm:$0xff] }
  0x37   :  { %539 = vmatpush2.msra.mxu1 %v227_v54  ;;  %315 = vmatprep.subr.mxu0 %v1166_v0  ;;  %v66_v54 = vld [vmem:[%s2231_s0 + $0x1a0] sm:$0xff] }
  0x38   :  { %540 = vmatprep.subr.mxu1 %v1166_v0  ;;  %316 = vmatpush2.msra.mxu0 %v194_v55  ;;  %v70_v55 = vld [vmem:[%s2231_s0 + $0x1c0] sm:$0xff] }
  0x39   :  { %541 = vmatpush2.msra.mxu1 %v226_v56  ;;  %317 = vmatprep.subr.mxu0 %v1166_v0  ;;  %v72_v56 = vld [vmem:[%s2231_s0 + $0x1d0] sm:$0xff] }
  0x3a   :  { %542 = vmatprep.subr.mxu1 %v1166_v0  ;;  %318 = vmatpush2.msra.mxu0 %v193_v57  ;;  %v243_v57 = vld [vmem:[%s2230_s1 + $0x228] sm:$0xff] }
  0x3b   :  { %543 = vmatpush2.msra.mxu1 %v225_v58  ;;  %319 = vmatprep.subr.mxu0 %v1166_v0  ;;  %v69_v58 = vld [vmem:[%s2231_s0 + $0x1b8] sm:$0xff] }
  0x3c   :  { %544 = vmatprep.subr.mxu1 %v1166_v0  ;;  %320 = vmatpush2.msra.mxu0 %v192_v59  ;;  %v71_v59 = vld [vmem:[%s2231_s0 + $0x1c8] sm:$0xff] }
  0x3d   :  { %545 = vmatpush2.msra.mxu1 %v224_v60  ;;  %321 = vmatprep.subr.mxu0 %v1166_v0  ;;  %v75_v60 = vld [vmem:[%s2231_s0 + $0x1e8] sm:$0xff] }
  0x3e   :  { %546 = vmatprep.subr.mxu1 %v1166_v0  ;;  %322 = vmatpush2.msra.mxu0 %v191_v61  ;;  %v77_v61 = vld [vmem:[%s2231_s0 + $0x1f8] sm:$0xff] }
  0x3f   :  { %547 = vmatpush2.msra.mxu1 %v223_v62  ;;  %323 = vmatprep.subr.mxu0 %v1166_v0  ;;  %v242_v62 = vld [vmem:[%s2230_s1 + $0x220] sm:$0xff] }
  0x40   :  { %548 = vmatprep.subr.mxu1 %v1166_v0  ;;  %324 = vmatpush2.msra.mxu0 %v190_v63  ;;  %v20_v0 = vld [vmem:[%s2231_s0 + $0x30] sm:$0xff]  ;;  %v74_v63 = vld [vmem:[%s2231_s0 + $0x1e0] sm:$0xff] }
  0x41   :  { %325 = vmatprep.mubr.f32.mxu0 %v15_v1  ;;  %549 = vmatpush2.msra.mxu1 %v222_v2  ;;  %v76_v1 = vld [vmem:[%s2231_s0 + $0x1f0] sm:$0xff] }
  0x42   :  { %550 = vmatprep.mubr.f32.mxu1 %v17_v3  ;;  %326 = vmatmul.mubr.f32.vlgmr.msra.gmra.mxu0 %v14_v4  ;;  %v80_v2 = vld [vmem:[%s2231_s0 + $0x210] sm:$0xff]  ;;  %v82_v3 = vld [vmem:[%s2231_s0 + $0x220] sm:$0xff]  ;;  %v241_v4 = vld [vmem:[%s2230_s1 + $0x218] sm:$0xff] }
  0x43   :  { %551 = vmatmul.mubr.f32.vlgmr.msra.gmra.mxu1 %v16_v5  ;;  %1053 = vmatprep.subr.mxu0 %v253_v6  ;;  %v79_v5 = vld [vmem:[%s2231_s0 + $0x208] sm:$0xff] }
  0x44   :  { %1133 = vmatprep.subr.mxu1 %v253_v6  ;;  %1054 = vmatpush3.msra.mxu0 %v253_v6 }
  0x45   :  { %1149 = vmatpush3.msra.mxu1 %v253_v6  ;;  %330 = vmatprep.mubr.f32.mxu0 %v20_v0  ;;  %v81_v6 = vld [vmem:[%s2231_s0 + $0x218] sm:$0xff] }
  0x46   :  { %555 = vmatprep.mubr.f32.mxu1 %v22_v7  ;;  %331 = vmatmul.mubr.f32.gmra.mxu0 %v19_v8  ;;  %v85_v0 = vld [vmem:[%s2231_s0 + $0x238] sm:$0xff]  ;;  %v87_v7 = vld [vmem:[%s2231_s0 + $0x248] sm:$0xff]  ;;  %v240_v8 = vld [vmem:[%s2230_s1 + $0x210] sm:$0xff] }
  0x47   :  { %556 = vmatmul.mubr.f32.gmra.mxu1 %v21_v9  ;;  %335 = vmatprep.mubr.f32.mxu0 %v25_v10  ;;  %v84_v9 = vld [vmem:[%s2231_s0 + $0x230] sm:$0xff]  ;;  %v86_v10 = vld [vmem:[%s2231_s0 + $0x240] sm:$0xff] }
  0x48   :  { %560 = vmatprep.mubr.f32.mxu1 %v27_v11  ;;  %1055 = vmatprep.subr.mxu0 %v252_v12  ;;  %v90_v11 = vld [vmem:[%s2231_s0 + $0x260] sm:$0xff] }
  0x49   :  { %1134 = vmatprep.subr.mxu1 %v252_v12  ;;  %1056 = vmatpush3.msra.mxu0 %v252_v12 }
  0x4a   :  { %1150 = vmatpush3.msra.mxu1 %v252_v12  ;;  %336 = vmatmul.mubr.f32.gmra.mxu0 %v24_v13  ;;  %v92_v12 = vld [vmem:[%s2231_s0 + $0x270] sm:$0xff]  ;;  %v239_v13 = vld [vmem:[%s2230_s1 + $0x208] sm:$0xff] }
  0x4b   :  { %561 = vmatmul.mubr.f32.gmra.mxu1 %v26_v14  ;;  %340 = vmatprep.mubr.f32.mxu0 %v30_v15  ;;  %v89_v14 = vld [vmem:[%s2231_s0 + $0x258] sm:$0xff]  ;;  %v91_v15 = vld [vmem:[%s2231_s0 + $0x268] sm:$0xff] }
  0x4c   :  { %565 = vmatprep.mubr.f32.mxu1 %v32_v16  ;;  %1057 = vmatprep.subr.mxu0 %v251_v17  ;;  %v95_v16 = vld [vmem:[%s2231_s0 + $0x288] sm:$0xff] }
  0x4d   :  { %1135 = vmatprep.subr.mxu1 %v251_v17  ;;  %1058 = vmatpush3.msra.mxu0 %v251_v17 }
  0x4e   :  { %1151 = vmatpush3.msra.mxu1 %v251_v17  ;;  %341 = vmatmul.mubr.f32.gmra.mxu0 %v29_v18  ;;  %v97_v17 = vld [vmem:[%s2231_s0 + $0x298] sm:$0xff]  ;;  %v238_v18 = vld [vmem:[%s2230_s1 + $0x200] sm:$0xff] }
  0x4f   :  { %566 = vmatmul.mubr.f32.gmra.mxu1 %v31_v19  ;;  %345 = vmatprep.mubr.f32.mxu0 %v35_v20  ;;  %v94_v19 = vld [vmem:[%s2231_s0 + $0x280] sm:$0xff]  ;;  %v96_v20 = vld [vmem:[%s2231_s0 + $0x290] sm:$0xff] }
  0x50   :  { %570 = vmatprep.mubr.f32.mxu1 %v37_v21  ;;  %1059 = vmatprep.subr.mxu0 %v250_v22  ;;  %v100_v21 = vld [vmem:[%s2231_s0 + $0x2b0] sm:$0xff] }
  0x51   :  { %1136 = vmatprep.subr.mxu1 %v250_v22  ;;  %1060 = vmatpush3.msra.mxu0 %v250_v22 }
  0x52   :  { %1152 = vmatpush3.msra.mxu1 %v250_v22  ;;  %346 = vmatmul.mubr.f32.gmra.mxu0 %v34_v23  ;;  %v102_v22 = vld [vmem:[%s2231_s0 + $0x2c0] sm:$0xff]  ;;  %v99_v23 = vld [vmem:[%s2231_s0 + $0x2a8] sm:$0xff] }
  0x53   :  { %571 = vmatmul.mubr.f32.gmra.mxu1 %v36_v24  ;;  %350 = vmatprep.mubr.f32.mxu0 %v40_v25  ;;  %v101_v24 = vld [vmem:[%s2231_s0 + $0x2b8] sm:$0xff] }
  0x54   :  { %575 = vmatprep.mubr.f32.mxu1 %v42_v26  ;;  %1061 = vmatprep.subr.mxu0 %v249_v27  ;;  %v105_v25 = vld [vmem:[%s2231_s0 + $0x2d8] sm:$0xff]  ;;  %v107_v26 = vld [vmem:[%s2231_s0 + $0x2e8] sm:$0xff] }
  0x55   :  { %1137 = vmatprep.subr.mxu1 %v249_v27  ;;  %1062 = vmatpush3.msra.mxu0 %v249_v27 }
  0x56   :  { %1153 = vmatpush3.msra.mxu1 %v249_v27  ;;  %351 = vmatmul.mubr.f32.gmra.mxu0 %v39_v28  ;;  %v104_v27 = vld [vmem:[%s2231_s0 + $0x2d0] sm:$0xff]  ;;  %v106_v28 = vld [vmem:[%s2231_s0 + $0x2e0] sm:$0xff] }
  0x57   :  { %576 = vmatmul.mubr.f32.gmra.mxu1 %v41_v29  ;;  %355 = vmatprep.mubr.f32.mxu0 %v45_v30  ;;  %v110_v29 = vld [vmem:[%s2231_s0 + $0x300] sm:$0xff]  ;;  %v112_v30 = vld [vmem:[%s2231_s0 + $0x310] sm:$0xff] }
  0x58   :  { %580 = vmatprep.mubr.f32.mxu1 %v47_v31  ;;  %1063 = vmatprep.subr.mxu0 %v248_v32  ;;  %v109_v31 = vld [vmem:[%s2231_s0 + $0x2f8] sm:$0xff] }
  0x59   :  { %1138 = vmatprep.subr.mxu1 %v248_v32  ;;  %1064 = vmatpush3.msra.mxu0 %v248_v32 }
  0x5a   :  { %1154 = vmatpush3.msra.mxu1 %v248_v32  ;;  %356 = vmatmul.mubr.f32.gmra.mxu0 %v44_v33  ;;  %v111_v32 = vld [vmem:[%s2231_s0 + $0x308] sm:$0xff] }
  0x5b   :  { %581 = vmatmul.mubr.f32.gmra.mxu1 %v46_v34  ;;  %360 = vmatprep.mubr.f32.mxu0 %v50_v35  ;;  %v115_v33 = vld [vmem:[%s2231_s0 + $0x328] sm:$0xff]  ;;  %v117_v34 = vld [vmem:[%s2231_s0 + $0x338] sm:$0xff]  ;;  %v114_v35 = vld [vmem:[%s2231_s0 + $0x320] sm:$0xff] }
  0x5c   :  { %585 = vmatprep.mubr.f32.mxu1 %v52_v36  ;;  %1065 = vmatprep.subr.mxu0 %v247_v37  ;;  %v116_v36 = vld [vmem:[%s2231_s0 + $0x330] sm:$0xff] }
  0x5d   :  { %1139 = vmatprep.subr.mxu1 %v247_v37  ;;  %1066 = vmatpush3.msra.mxu0 %v247_v37 }
  0x5e   :  { %1155 = vmatpush3.msra.mxu1 %v247_v37  ;;  %361 = vmatmul.mubr.f32.gmra.mxu0 %v49_v38  ;;  %v120_v37 = vld [vmem:[%s2231_s0 + $0x350] sm:$0xff]  ;;  %v122_v38 = vld [vmem:[%s2231_s0 + $0x360] sm:$0xff] }
  0x5f   :  { %586 = vmatmul.mubr.f32.gmra.mxu1 %v51_v39  ;;  %365 = vmatprep.mubr.f32.mxu0 %v55_v40  ;;  %v119_v39 = vld [vmem:[%s2231_s0 + $0x348] sm:$0xff]  ;;  %v121_v40 = vld [vmem:[%s2231_s0 + $0x358] sm:$0xff] }
  0x60   :  { %590 = vmatprep.mubr.f32.mxu1 %v57_v41  ;;  %1067 = vmatprep.subr.mxu0 %v246_v42  ;;  %v125_v41 = vld [vmem:[%s2231_s0 + $0x378] sm:$0xff] }
  0x61   :  { %1140 = vmatprep.subr.mxu1 %v246_v42  ;;  %1068 = vmatpush3.msra.mxu0 %v246_v42 }
  0x62   :  { %1156 = vmatpush3.msra.mxu1 %v246_v42  ;;  %366 = vmatmul.mubr.f32.gmra.mxu0 %v54_v43  ;;  %v127_v42 = vld [vmem:[%s2231_s0 + $0x388] sm:$0xff]  ;;  %v124_v43 = vld [vmem:[%s2231_s0 + $0x370] sm:$0xff] }
  0x63   :  { %591 = vmatmul.mubr.f32.gmra.mxu1 %v56_v44  ;;  %370 = vmatprep.mubr.f32.mxu0 %v60_v45  ;;  %v126_v44 = vld [vmem:[%s2231_s0 + $0x380] sm:$0xff] }
  0x64   :  { %595 = vmatprep.mubr.f32.mxu1 %v62_v46  ;;  %1069 = vmatprep.subr.mxu0 %v245_v47  ;;  %v130_v45 = vld [vmem:[%s2231_s0 + $0x3a0] sm:$0xff]  ;;  %v132_v46 = vld [vmem:[%s2231_s0 + $0x3b0] sm:$0xff] }
  0x65   :  { %1141 = vmatprep.subr.mxu1 %v245_v47  ;;  %1070 = vmatpush3.msra.mxu0 %v245_v47 }
  0x66   :  { %1157 = vmatpush3.msra.mxu1 %v245_v47  ;;  %371 = vmatmul.mubr.f32.gmra.mxu0 %v59_v48  ;;  %v129_v47 = vld [vmem:[%s2231_s0 + $0x398] sm:$0xff]  ;;  %v131_v48 = vld [vmem:[%s2231_s0 + $0x3a8] sm:$0xff] }
  0x67   :  { %596 = vmatmul.mubr.f32.gmra.mxu1 %v61_v49  ;;  %375 = vmatprep.mubr.f32.mxu0 %v65_v50  ;;  %v135_v49 = vld [vmem:[%s2231_s0 + $0x3c8] sm:$0xff]  ;;  %v137_v50 = vld [vmem:[%s2231_s0 + $0x3d8] sm:$0xff] }
  0x68   :  { %600 = vmatprep.mubr.f32.mxu1 %v67_v51  ;;  %1071 = vmatprep.subr.mxu0 %v244_v52  ;;  %v134_v51 = vld [vmem:[%s2231_s0 + $0x3c0] sm:$0xff] }
  0x69   :  { %1142 = vmatprep.subr.mxu1 %v244_v52  ;;  %1072 = vmatpush3.msra.mxu0 %v244_v52 }
  0x6a   :  { %1158 = vmatpush3.msra.mxu1 %v244_v52  ;;  %376 = vmatmul.mubr.f32.gmra.mxu0 %v64_v53  ;;  %v136_v52 = vld [vmem:[%s2231_s0 + $0x3d0] sm:$0xff] }
  0x6b   :  { %601 = vmatmul.mubr.f32.gmra.mxu1 %v66_v54  ;;  %380 = vmatprep.mubr.f32.mxu0 %v70_v55  ;;  %v140_v53 = vld [vmem:[%s2231_s0 + $0x3f0] sm:$0xff]  ;;  %v142_v54 = vld [vmem:[%s2231_s0 + $0x400] sm:$0xff]  ;;  %v139_v55 = vld [vmem:[%s2231_s0 + $0x3e8] sm:$0xff] }
  0x6c   :  { %605 = vmatprep.mubr.f32.mxu1 %v72_v56  ;;  %1073 = vmatprep.subr.mxu0 %v243_v57  ;;  %v141_v56 = vld [vmem:[%s2231_s0 + $0x3f8] sm:$0xff] }
  0x6d   :  { %1143 = vmatprep.subr.mxu1 %v243_v57  ;;  %1074 = vmatpush3.msra.mxu0 %v243_v57 }
  0x6e   :  { %1159 = vmatpush3.msra.mxu1 %v243_v57  ;;  %381 = vmatmul.mubr.f32.gmra.mxu0 %v69_v58  ;;  %v145_v57 = vld [vmem:[%s2231_s0 + $0x418] sm:$0xff]  ;;  %v147_v58 = vld [vmem:[%s2231_s0 + $0x428] sm:$0xff] }
  0x6f   :  { %606 = vmatmul.mubr.f32.gmra.mxu1 %v71_v59  ;;  %385 = vmatprep.mubr.f32.mxu0 %v75_v60  ;;  %v144_v59 = vld [vmem:[%s2231_s0 + $0x410] sm:$0xff]  ;;  %v146_v60 = vld [vmem:[%s2231_s0 + $0x420] sm:$0xff] }
  0x70   :  { %610 = vmatprep.mubr.f32.mxu1 %v77_v61  ;;  %1075 = vmatprep.subr.mxu0 %v242_v62  ;;  %v150_v61 = vld [vmem:[%s2231_s0 + $0x440] sm:$0xff] }
  0x71   :  { %1144 = vmatprep.subr.mxu1 %v242_v62  ;;  %1076 = vmatpush3.msra.mxu0 %v242_v62 }
  0x72   :  { %1160 = vmatpush3.msra.mxu1 %v242_v62  ;;  %386 = vmatmul.mubr.f32.gmra.mxu0 %v74_v63  ;;  %v152_v62 = vld [vmem:[%s2231_s0 + $0x450] sm:$0xff]  ;;  %v149_v63 = vld [vmem:[%s2231_s0 + $0x438] sm:$0xff] }
  0x73   :  { %611 = vmatmul.mubr.f32.gmra.mxu1 %v76_v1  ;;  %390 = vmatprep.mubr.f32.mxu0 %v80_v2  ;;  %v151_v1 = vld [vmem:[%s2231_s0 + $0x448] sm:$0xff] }
  0x74   :  { %615 = vmatprep.mubr.f32.mxu1 %v82_v3  ;;  %1077 = vmatprep.subr.mxu0 %v241_v4  ;;  %v155_v2 = vld [vmem:[%s2231_s0 + $0x468] sm:$0xff]  ;;  %v157_v3 = vld [vmem:[%s2231_s0 + $0x478] sm:$0xff] }
  0x75   :  { %1145 = vmatprep.subr.mxu1 %v241_v4  ;;  %1078 = vmatpush3.msra.mxu0 %v241_v4 }
  0x76   :  { %1161 = vmatpush3.msra.mxu1 %v241_v4  ;;  %391 = vmatmul.mubr.f32.gmra.mxu0 %v79_v5  ;;  %v154_v4 = vld [vmem:[%s2231_s0 + $0x460] sm:$0xff]  ;;  %v156_v5 = vld [vmem:[%s2231_s0 + $0x470] sm:$0xff] }
  0x77   :  { %616 = vmatmul.mubr.f32.gmra.mxu1 %v81_v6  ;;  %395 = vmatprep.mubr.f32.mxu0 %v85_v0  ;;  %v160_v6 = vld [vmem:[%s2231_s0 + $0x490] sm:$0xff]  ;;  %v162_v0 = vld [vmem:[%s2231_s0 + $0x4a0] sm:$0xff] }
  0x78   :  { %620 = vmatprep.mubr.f32.mxu1 %v87_v7  ;;  %1079 = vmatprep.subr.mxu0 %v240_v8  ;;  %v159_v7 = vld [vmem:[%s2231_s0 + $0x488] sm:$0xff] }
  0x79   :  { %1146 = vmatprep.subr.mxu1 %v240_v8  ;;  %1080 = vmatpush3.msra.mxu0 %v240_v8 }
  0x7a   :  { %1162 = vmatpush3.msra.mxu1 %v240_v8  ;;  %396 = vmatmul.mubr.f32.gmra.mxu0 %v84_v9  ;;  %v161_v8 = vld [vmem:[%s2231_s0 + $0x498] sm:$0xff] }
  0x7b   :  { %621 = vmatmul.mubr.f32.gmra.mxu1 %v86_v10  ;;  %400 = vmatprep.mubr.f32.mxu0 %v90_v11  ;;  %v165_v9 = vld [vmem:[%s2231_s0 + $0x4b8] sm:$0xff]  ;;  %v167_v10 = vld [vmem:[%s2231_s0 + $0x4c8] sm:$0xff]  ;;  %v164_v11 = vld [vmem:[%s2231_s0 + $0x4b0] sm:$0xff] }
  0x7c   :  { %625 = vmatprep.mubr.f32.mxu1 %v92_v12  ;;  %1081 = vmatprep.subr.mxu0 %v239_v13  ;;  %v166_v12 = vld [vmem:[%s2231_s0 + $0x4c0] sm:$0xff] }
  0x7d   :  { %1147 = vmatprep.subr.mxu1 %v239_v13  ;;  %1082 = vmatpush3.msra.mxu0 %v239_v13 }
  0x7e   :  { %1163 = vmatpush3.msra.mxu1 %v239_v13  ;;  %401 = vmatmul.mubr.f32.gmra.mxu0 %v89_v14  ;;  %v170_v13 = vld [vmem:[%s2231_s0 + $0x4e0] sm:$0xff]  ;;  %v172_v14 = vld [vmem:[%s2231_s0 + $0x4f0] sm:$0xff] }
  0x7f   :  { %626 = vmatmul.mubr.f32.gmra.mxu1 %v91_v15  ;;  %405 = vmatprep.mubr.f32.mxu0 %v95_v16  ;;  %v169_v15 = vld [vmem:[%s2231_s0 + $0x4d8] sm:$0xff]  ;;  %v171_v16 = vld [vmem:[%s2231_s0 + $0x4e8] sm:$0xff] }
  0x80   :  { %630 = vmatprep.mubr.f32.mxu1 %v97_v17  ;;  %1083 = vmatprep.subr.mxu0 %v238_v18  ;;  %v18_v17 = vld [vmem:[%s2231_s0 + $0x20] sm:$0xff] }
  0x81   :  { %1148 = vmatprep.subr.mxu1 %v238_v18  ;;  %1084 = vmatpush3.msra.mxu0 %v238_v18 }
  0x82   :  { %1164 = vmatpush3.msra.mxu1 %v238_v18  ;;  %406 = vmatmul.mubr.f32.gmra.mxu0 %v94_v19  ;;  %v98_v18 = vld [vmem:[%s2231_s0 + $0x2a0] sm:$0xff]  ;;  %v23_v19 = vld [vmem:[%s2231_s0 + $0x48] sm:$0xff] }
  0x83   :  { %631 = vmatmul.mubr.f32.gmra.mxu1 %v96_v20  ;;  %410 = vmatprep.mubr.f32.mxu0 %v100_v21  ;;  %v103_v20 = vld [vmem:[%s2231_s0 + $0x2c8] sm:$0xff]  ;;  %v28_v21 = vld [vmem:[%s2231_s0 + $0x70] sm:$0xff] }
  0x84   :  { %635 = vmatprep.mubr.f32.mxu1 %v102_v22  ;;  %v108_v22 = vld [vmem:[%s2231_s0 + $0x2f0] sm:$0xff] }
  0x86   :  { %411 = vmatmul.mubr.f32.gmra.mxu0 %v99_v23  ;;  %v33_v23 = vld [vmem:[%s2231_s0 + $0x98] sm:$0xff] }
  0x87   :  { %636 = vmatmul.mubr.f32.gmra.mxu1 %v101_v24  ;;  %415 = vmatprep.mubr.f32.mxu0 %v105_v25  ;;  %v113_v24 = vld [vmem:[%s2231_s0 + $0x318] sm:$0xff]  ;;  %v38_v25 = vld [vmem:[%s2231_s0 + $0xc0] sm:$0xff] }
  0x88   :  { %640 = vmatprep.mubr.f32.mxu1 %v107_v26  ;;  %v118_v26 = vld [vmem:[%s2231_s0 + $0x340] sm:$0xff] }
  0x8a   :  { %416 = vmatmul.mubr.f32.gmra.mxu0 %v104_v27  ;;  %v43_v27 = vld [vmem:[%s2231_s0 + $0xe8] sm:$0xff] }
  0x8b   :  { %641 = vmatmul.mubr.f32.gmra.mxu1 %v106_v28  ;;  %420 = vmatprep.mubr.f32.mxu0 %v110_v29  ;;  %v123_v28 = vld [vmem:[%s2231_s0 + $0x368] sm:$0xff]  ;;  %v48_v29 = vld [vmem:[%s2231_s0 + $0x110] sm:$0xff] }
  0x8c   :  { %645 = vmatprep.mubr.f32.mxu1 %v112_v30  ;;  %v128_v30 = vld [vmem:[%s2231_s0 + $0x390] sm:$0xff] }
  0x8e   :  { %421 = vmatmul.mubr.f32.gmra.mxu0 %v109_v31  ;;  %v53_v31 = vld [vmem:[%s2231_s0 + $0x138] sm:$0xff] }
  0x8f   :  { %646 = vmatmul.mubr.f32.gmra.mxu1 %v111_v32  ;;  %425 = vmatprep.mubr.f32.mxu0 %v115_v33  ;;  %v133_v32 = vld [vmem:[%s2231_s0 + $0x3b8] sm:$0xff]  ;;  %v58_v33 = vld [vmem:[%s2231_s0 + $0x160] sm:$0xff] }
  0x90   :  { %650 = vmatprep.mubr.f32.mxu1 %v117_v34  ;;  %v138_v34 = vld [vmem:[%s2231_s0 + $0x3e0] sm:$0xff] }
  0x92   :  { %426 = vmatmul.mubr.f32.gmra.mxu0 %v114_v35  ;;  %v63_v35 = vld [vmem:[%s2231_s0 + $0x188] sm:$0xff] }
  0x93   :  { %651 = vmatmul.mubr.f32.gmra.mxu1 %v116_v36  ;;  %430 = vmatprep.mubr.f32.mxu0 %v120_v37  ;;  %v143_v36 = vld [vmem:[%s2231_s0 + $0x408] sm:$0xff]  ;;  %v68_v37 = vld [vmem:[%s2231_s0 + $0x1b0] sm:$0xff] }
  0x94   :  { %655 = vmatprep.mubr.f32.mxu1 %v122_v38  ;;  %v148_v38 = vld [vmem:[%s2231_s0 + $0x430] sm:$0xff] }
  0x96   :  { %431 = vmatmul.mubr.f32.gmra.mxu0 %v119_v39  ;;  %v73_v39 = vld [vmem:[%s2231_s0 + $0x1d8] sm:$0xff] }
  0x97   :  { %656 = vmatmul.mubr.f32.gmra.mxu1 %v121_v40  ;;  %435 = vmatprep.mubr.f32.mxu0 %v125_v41  ;;  %v153_v40 = vld [vmem:[%s2231_s0 + $0x458] sm:$0xff]  ;;  %v78_v41 = vld [vmem:[%s2231_s0 + $0x200] sm:$0xff] }
  0x98   :  { %660 = vmatprep.mubr.f32.mxu1 %v127_v42  ;;  %v158_v42 = vld [vmem:[%s2231_s0 + $0x480] sm:$0xff] }
  0x9a   :  { %436 = vmatmul.mubr.f32.gmra.mxu0 %v124_v43  ;;  %v83_v43 = vld [vmem:[%s2231_s0 + $0x228] sm:$0xff] }
  0x9b   :  { %661 = vmatmul.mubr.f32.gmra.mxu1 %v126_v44  ;;  %440 = vmatprep.mubr.f32.mxu0 %v130_v45  ;;  %v163_v44 = vld [vmem:[%s2231_s0 + $0x4a8] sm:$0xff]  ;;  %v88_v45 = vld [vmem:[%s2231_s0 + $0x250] sm:$0xff] }
  0x9c   :  { %665 = vmatprep.mubr.f32.mxu1 %v132_v46  ;;  %v168_v46 = vld [vmem:[%s2231_s0 + $0x4d0] sm:$0xff] }
  0x9e   :  { %441 = vmatmul.mubr.f32.gmra.mxu0 %v129_v47  ;;  %v93_v47 = vld [vmem:[%s2231_s0 + $0x278] sm:$0xff] }
  0x9f   :  { %666 = vmatmul.mubr.f32.gmra.mxu1 %v131_v48  ;;  %445 = vmatprep.mubr.f32.mxu0 %v135_v49  ;;  %v173_v48 = vld [vmem:[%s2231_s0 + $0x4f8] sm:$0xff]  ;;  %v1974_v49 = vld [vmem:[%s2232_s2] ss:$0 sm:$0xff] }
  0xa0   :  { %670 = vmatprep.mubr.f32.mxu1 %v137_v50 }
  0xa2   :  { %446 = vmatmul.mubr.f32.gmra.mxu0 %v134_v51 }
  0xa3   :  { %671 = vmatmul.mubr.f32.gmra.mxu1 %v136_v52  ;;  %450 = vmatprep.mubr.f32.mxu0 %v140_v53 }
  0xa4   :  { %675 = vmatprep.mubr.f32.mxu1 %v142_v54 }
  0xa6   :  { %451 = vmatmul.mubr.f32.gmra.mxu0 %v139_v55 }
  0xa7   :  { %676 = vmatmul.mubr.f32.gmra.mxu1 %v141_v56  ;;  %455 = vmatprep.mubr.f32.mxu0 %v145_v57 }
  0xa8   :  { %680 = vmatprep.mubr.f32.mxu1 %v147_v58 }
  0xaa   :  { %456 = vmatmul.mubr.f32.gmra.mxu0 %v144_v59 }
  0xab   :  { %681 = vmatmul.mubr.f32.gmra.mxu1 %v146_v60  ;;  %460 = vmatprep.mubr.f32.mxu0 %v150_v61 }
  0xac   :  { %685 = vmatprep.mubr.f32.mxu1 %v152_v62 }
  0xae   :  { %461 = vmatmul.mubr.f32.gmra.mxu0 %v149_v63 }
  0xaf   :  { %686 = vmatmul.mubr.f32.gmra.mxu1 %v151_v1  ;;  %465 = vmatprep.mubr.f32.mxu0 %v155_v2 }
  0xb0   :  { %690 = vmatprep.mubr.f32.mxu1 %v157_v3 }
  0xb2   :  { %466 = vmatmul.mubr.f32.gmra.mxu0 %v154_v4 }
  0xb3   :  { %691 = vmatmul.mubr.f32.gmra.mxu1 %v156_v5  ;;  %470 = vmatprep.mubr.f32.mxu0 %v160_v6 }
  0xb4   :  { %695 = vmatprep.mubr.f32.mxu1 %v162_v0 }
  0xb6   :  { %471 = vmatmul.mubr.f32.gmra.mxu0 %v159_v7 }
  0xb7   :  { %696 = vmatmul.mubr.f32.gmra.mxu1 %v161_v8  ;;  %475 = vmatprep.mubr.f32.mxu0 %v165_v9 }
  0xb8   :  { %700 = vmatprep.mubr.f32.mxu1 %v167_v10 }
  0xba   :  { %476 = vmatmul.mubr.f32.gmra.mxu0 %v164_v11 }
  0xbb   :  { %701 = vmatmul.mubr.f32.gmra.mxu1 %v166_v12  ;;  %480 = vmatprep.mubr.f32.mxu0 %v170_v13 }
  0xbc   :  { %705 = vmatprep.mubr.f32.mxu1 %v172_v14 }
  0xbe   :  { %481 = vmatmul.mubr.f32.gmra.mxu0 %v169_v15 }
  0xbf   :  { %706 = vmatmul.mubr.f32.gmra.mxu1 %v171_v16  ;;  %1085 = vmatprep.mubr.f32.mxu0 %v18_v17 }
  0xc0   :  { %1109 = vmatprep.mubr.f32.mxu1 %v98_v18 }
  0xc2   :  { %1086 = vmatmul.mubr.f32.vlgmr.msra.gmra.mxu0 %v23_v19 }
  0xc3   :  { %1110 = vmatmul.mubr.f32.vlgmr.msra.gmra.mxu1 %v103_v20  ;;  %1088 = vmatprep.mubr.f32.mxu0 %v28_v21 }
  0xc4   :  { %1112 = vmatprep.mubr.f32.mxu1 %v108_v22 }
  0xc6   :  { %1089 = vmatmul.mubr.f32.gmra.mxu0 %v33_v23 }
  0xc7   :  { %1113 = vmatmul.mubr.f32.gmra.mxu1 %v113_v24  ;;  %1091 = vmatprep.mubr.f32.mxu0 %v38_v25 }
  0xc8   :  { %1115 = vmatprep.mubr.f32.mxu1 %v118_v26 }
  0xca   :  { %1092 = vmatmul.mubr.f32.gmra.mxu0 %v43_v27 }
  0xcb   :  { %1116 = vmatmul.mubr.f32.gmra.mxu1 %v123_v28  ;;  %1094 = vmatprep.mubr.f32.mxu0 %v48_v29 }
  0xcc   :  { %1118 = vmatprep.mubr.f32.mxu1 %v128_v30 }
  0xce   :  { %1095 = vmatmul.mubr.f32.gmra.mxu0 %v53_v31 }
  0xcf   :  { %1119 = vmatmul.mubr.f32.gmra.mxu1 %v133_v32  ;;  %1097 = vmatprep.mubr.f32.mxu0 %v58_v33 }
  0xd0   :  { %1121 = vmatprep.mubr.f32.mxu1 %v138_v34 }
  0xd2   :  { %1098 = vmatmul.mubr.f32.gmra.mxu0 %v63_v35 }
  0xd3   :  { %1122 = vmatmul.mubr.f32.gmra.mxu1 %v143_v36  ;;  %1100 = vmatprep.mubr.f32.mxu0 %v68_v37 }
  0xd4   :  { %1124 = vmatprep.mubr.f32.mxu1 %v148_v38 }
  0xd6   :  { %1101 = vmatmul.mubr.f32.gmra.mxu0 %v73_v39 }
  0xd7   :  { %1125 = vmatmul.mubr.f32.gmra.mxu1 %v153_v40  ;;  %1103 = vmatprep.mubr.f32.mxu0 %v78_v41 }
  0xd8   :  { %1127 = vmatprep.mubr.f32.mxu1 %v158_v42 }
  0xda   :  { %1104 = vmatmul.mubr.f32.gmra.mxu0 %v83_v43 }
  0xdb   :  { %1128 = vmatmul.mubr.f32.gmra.mxu1 %v163_v44  ;;  %1106 = vmatprep.mubr.f32.mxu0 %v88_v45 }
  0xdc   :  { %1130 = vmatprep.mubr.f32.mxu1 %v168_v46 }
  0xde   :  { %1107 = vmatmul.mubr.f32.gmra.mxu0 %v93_v47 }
  0xdf   :  { %1131 = vmatmul.mubr.f32.gmra.mxu1 %v173_v48 }
 0x102   :  { %v327_v50 = vpop.f32.mrf.mxu0 }
 0x103   :  { %v552_v51 = vpop.f32.mrf.mxu1  ;;  %v328_v52 = vadd.f32 %v1974_v49, %v327_v50 }
 0x104   :  { %v329_v53 = vpop.f32.mrf.mxu0 }
 0x105   :  { %v554_v54 = vpop.f32.mrf.mxu1  ;;  %v1977_v55 = vadd.f32 %v552_v51, %v328_v52 }
 0x106   :  { %v332_v56 = vpop.f32.mrf.mxu0 }
 0x107   :  { %v557_v57 = vpop.f32.mrf.mxu1  ;;  %v333_v58 = vadd.f32 %v1974_v49, %v332_v56 }
 0x108   :  { %v334_v59 = vpop.f32.mrf.mxu0 }
 0x109   :  { %v559_v60 = vpop.f32.mrf.mxu1  ;;  %v1980_v61 = vadd.f32 %v557_v57, %v333_v58 }
 0x10a   :  { %v337_v62 = vpop.f32.mrf.mxu0 }
 0x10b   :  { %v562_v63 = vpop.f32.mrf.mxu1  ;;  %v338_v1 = vadd.f32 %v1974_v49, %v337_v62 }
 0x10c   :  { %v339_v2 = vpop.f32.mrf.mxu0 }
 0x10d   :  { %v564_v3 = vpop.f32.mrf.mxu1  ;;  %v1983_v4 = vadd.f32 %v562_v63, %v338_v1 }
 0x10e   :  { %v342_v5 = vpop.f32.mrf.mxu0 }
 0x10f   :  { %v567_v6 = vpop.f32.mrf.mxu1  ;;  %v343_v0 = vadd.f32 %v1974_v49, %v342_v5 }
 0x110   :  { %v344_v7 = vpop.f32.mrf.mxu0 }
 0x111   :  { %v569_v8 = vpop.f32.mrf.mxu1  ;;  %v1986_v9 = vadd.f32 %v567_v6, %v343_v0 }
 0x112   :  { %v347_v10 = vpop.f32.mrf.mxu0 }
 0x113   :  { %v572_v11 = vpop.f32.mrf.mxu1  ;;  %v348_v12 = vadd.f32 %v1974_v49, %v347_v10 }
 0x114   :  { %v349_v13 = vpop.f32.mrf.mxu0 }
 0x115   :  { %v574_v14 = vpop.f32.mrf.mxu1  ;;  %v1989_v15 = vadd.f32 %v572_v11, %v348_v12 }
 0x116   :  { %v352_v16 = vpop.f32.mrf.mxu0 }
 0x117   :  { %v577_v17 = vpop.f32.mrf.mxu1  ;;  %v353_v18 = vadd.f32 %v1974_v49, %v352_v16 }
 0x118   :  { %v354_v19 = vpop.f32.mrf.mxu0 }
 0x119   :  { %v579_v20 = vpop.f32.mrf.mxu1  ;;  %v1992_v21 = vadd.f32 %v577_v17, %v353_v18 }
 0x11a   :  { %v357_v22 = vpop.f32.mrf.mxu0 }
 0x11b   :  { %v582_v23 = vpop.f32.mrf.mxu1  ;;  %v358_v24 = vadd.f32 %v1974_v49, %v357_v22 }
 0x11c   :  { %v359_v25 = vpop.f32.mrf.mxu0 }
 0x11d   :  { %v584_v26 = vpop.f32.mrf.mxu1  ;;  %v1995_v27 = vadd.f32 %v582_v23, %v358_v24 }
 0x11e   :  { %v362_v28 = vpop.f32.mrf.mxu0 }
 0x11f   :  { %v587_v29 = vpop.f32.mrf.mxu1  ;;  %v363_v30 = vadd.f32 %v1974_v49, %v362_v28 }
 0x120   :  { %v364_v31 = vpop.f32.mrf.mxu0 }
 0x121   :  { %v589_v32 = vpop.f32.mrf.mxu1  ;;  %v1998_v33 = vadd.f32 %v587_v29, %v363_v30 }
 0x122   :  { %v367_v34 = vpop.f32.mrf.mxu0 }
 0x123   :  { %v592_v35 = vpop.f32.mrf.mxu1  ;;  %v368_v36 = vadd.f32 %v1974_v49, %v367_v34 }
 0x124   :  { %v369_v37 = vpop.f32.mrf.mxu0 }
 0x125   :  { %v594_v38 = vpop.f32.mrf.mxu1  ;;  %v2001_v39 = vadd.f32 %v592_v35, %v368_v36 }
 0x126   :  { %v372_v40 = vpop.f32.mrf.mxu0 }
 0x127   :  { %v597_v41 = vpop.f32.mrf.mxu1  ;;  %v373_v42 = vadd.f32 %v1974_v49, %v372_v40 }
 0x128   :  { %v374_v43 = vpop.f32.mrf.mxu0 }
 0x129   :  { %v599_v44 = vpop.f32.mrf.mxu1  ;;  %v2004_v45 = vadd.f32 %v597_v41, %v373_v42 }
 0x12a   :  { %v377_v46 = vpop.f32.mrf.mxu0 }
 0x12b   :  { %v602_v47 = vpop.f32.mrf.mxu1  ;;  %v378_v48 = vadd.f32 %v1974_v49, %v377_v46 }
 0x12c   :  { %v379_v50 = vpop.f32.mrf.mxu0 }
 0x12d   :  { %v604_v51 = vpop.f32.mrf.mxu1  ;;  %v2007_v52 = vadd.f32 %v602_v47, %v378_v48 }
 0x12e   :  { %v382_v53 = vpop.f32.mrf.mxu0 }
 0x12f   :  { %v607_v54 = vpop.f32.mrf.mxu1  ;;  %v383_v56 = vadd.f32 %v1974_v49, %v382_v53 }
 0x130   :  { %v384_v57 = vpop.f32.mrf.mxu0 }
 0x131   :  { %v609_v58 = vpop.f32.mrf.mxu1  ;;  %v2010_v59 = vadd.f32 %v607_v54, %v383_v56 }
 0x132   :  { %v387_v60 = vpop.f32.mrf.mxu0 }
 0x133   :  { %v612_v62 = vpop.f32.mrf.mxu1  ;;  %v388_v63 = vadd.f32 %v1974_v49, %v387_v60 }
 0x134   :  { %v389_v1 = vpop.f32.mrf.mxu0 }
 0x135   :  { %v614_v2 = vpop.f32.mrf.mxu1  ;;  %v2013_v3 = vadd.f32 %v612_v62, %v388_v63 }
 0x136   :  { %v392_v5 = vpop.f32.mrf.mxu0 }
 0x137   :  { %v617_v6 = vpop.f32.mrf.mxu1  ;;  %v393_v0 = vadd.f32 %v1974_v49, %v392_v5 }
 0x138   :  { %v394_v7 = vpop.f32.mrf.mxu0 }
 0x139   :  { %v619_v8 = vpop.f32.mrf.mxu1  ;;  %v2016_v10 = vadd.f32 %v617_v6, %v393_v0 }
 0x13a   :  { %v397_v11 = vpop.f32.mrf.mxu0 }
 0x13b   :  { %v622_v12 = vpop.f32.mrf.mxu1  ;;  %v398_v13 = vadd.f32 %v1974_v49, %v397_v11 }
 0x13c   :  { %v399_v14 = vpop.f32.mrf.mxu0 }
 0x13d   :  { %v624_v16 = vpop.f32.mrf.mxu1  ;;  %v2019_v17 = vadd.f32 %v622_v12, %v398_v13 }
 0x13e   :  { %v402_v18 = vpop.f32.mrf.mxu0 }
 0x13f   :  { %2234 = vst [vmem:[#allocation2_spill] sm:$0xff] %v2019_v17  ;;  %v627_v19 = vpop.f32.mrf.mxu1  ;;  %v403_v20 = vadd.f32 %v1974_v49, %v402_v18 }
 0x140   :  { %v404_v22 = vpop.f32.mrf.mxu0 }
 0x141   :  { %v629_v23 = vpop.f32.mrf.mxu1  ;;  %v2022_v24 = vadd.f32 %v627_v19, %v403_v20 }
 0x142   :  { %v2024_v25 = vpop.f32.mrf.mxu0 }
 0x143   :  { %v2026_v26 = vpop.f32.mrf.mxu1 }
 0x144   :  { %v409_v28 = vpop.f32.mrf.mxu0 }
 0x145   :  { %v634_v29 = vpop.f32.mrf.mxu1 }
 0x146   :  { %v412_v30 = vpop.f32.mrf.mxu0 }
 0x147   :  { %v637_v31 = vpop.f32.mrf.mxu1 }
 0x148   :  { %v414_v32 = vpop.f32.mrf.mxu0 }
 0x149   :  { %v639_v34 = vpop.f32.mrf.mxu1 }
 0x14a   :  { %v417_v35 = vpop.f32.mrf.mxu0 }
 0x14b   :  { %v2028_v36 = vpop.f32.mrf.mxu1 }
 0x14c   :  { %v419_v37 = vpop.f32.mrf.mxu0 }
 0x14d   :  { %v644_v38 = vpop.f32.mrf.mxu1 }
 0x14e   :  { %v422_v40 = vpop.f32.mrf.mxu0 }
 0x14f   :  { %v647_v41 = vpop.f32.mrf.mxu1 }
 0x150   :  { %v424_v42 = vpop.f32.mrf.mxu0 }
 0x151   :  { %v649_v43 = vpop.f32.mrf.mxu1 }
 0x152   :  { %v2030_v44 = vpop.f32.mrf.mxu0 }
 0x153   :  { %v2032_v46 = vpop.f32.mrf.mxu1 }
 0x154   :  { %v429_v47 = vpop.f32.mrf.mxu0 }
 0x155   :  { %v654_v48 = vpop.f32.mrf.mxu1 }
 0x156   :  { %v432_v50 = vpop.f32.mrf.mxu0 }
 0x157   :  { %v2034_v51 = vpop.f32.mrf.mxu1 }
 0x158   :  { %v434_v53 = vpop.f32.mrf.mxu0 }
 0x159   :  { %v659_v54 = vpop.f32.mrf.mxu1 }
 0x15a   :  { %v2036_v56 = vpop.f32.mrf.mxu0 }
 0x15b   :  { %v2038_v57 = vpop.f32.mrf.mxu1 }
 0x15c   :  { %v439_v58 = vpop.f32.mrf.mxu0 }
 0x15d   :  { %v664_v60 = vpop.f32.mrf.mxu1 }
 0x15e   :  { %v2040_v62 = vpop.f32.mrf.mxu0  ;;  %v413_v60 = vadd.f32 %v1974_v49, %v412_v30 }
 0x15f   :  { %v2042_v63 = vpop.f32.mrf.mxu1 }
 0x160   :  { %v444_v1 = vpop.f32.mrf.mxu0 }
 0x161   :  { %v669_v2 = vpop.f32.mrf.mxu1 }
 0x162   :  { %v2044_v5 = vpop.f32.mrf.mxu0 }
 0x163   :  { %v2046_v6 = vpop.f32.mrf.mxu1 }
 0x164   :  { %v449_v0 = vpop.f32.mrf.mxu0 }
 0x165   :  { %v674_v7 = vpop.f32.mrf.mxu1  ;;  %v408_v0 = vadd.f32 %v1974_v49, %v2024_v25 }
 0x166   :  { %v2048_v8 = vpop.f32.mrf.mxu0  ;;  %v423_v7 = vadd.f32 %v1974_v49, %v422_v40 }
 0x167   :  { %v2050_v11 = vpop.f32.mrf.mxu1 }
 0x168   :  { %v454_v12 = vpop.f32.mrf.mxu0 }
 0x169   :  { %v679_v13 = vpop.f32.mrf.mxu1 }
 0x16a   :  { %v2052_v14 = vpop.f32.mrf.mxu0 }
 0x16b   :  { %v2054_v16 = vpop.f32.mrf.mxu1 }
 0x16c   :  { %v459_v18 = vpop.f32.mrf.mxu0 }
 0x16d   :  { %v684_v19 = vpop.f32.mrf.mxu1  ;;  %v638_v18 = vadd.f32 %v637_v31, %v413_v60 }
 0x16e   :  { %v2056_v20 = vpop.f32.mrf.mxu0  ;;  %v418_v19 = vadd.f32 %v1974_v49, %v417_v35  ;;  %v428_v35 = vadd.f32 %v1974_v49, %v2030_v44  ;;  %v443_v44 = vadd.f32 %v1974_v49, %v2040_v62  ;;  %v438_v62 = vadd.f32 %v1974_v49, %v2036_v56 }
 0x16f   :  { %v2058_v22 = vpop.f32.mrf.mxu1  ;;  %v453_v56 = vadd.f32 %v1974_v49, %v2048_v8  ;;  %v448_v8 = vadd.f32 %v1974_v49, %v2044_v5  ;;  %v463_v5 = vadd.f32 %v1974_v49, %v2056_v20  ;;  %v458_v20 = vadd.f32 %v1974_v49, %v2052_v14 }
 0x170   :  { %v464_v23 = vpop.f32.mrf.mxu0  ;;  %v643_v31 = vadd.f32 %v2028_v36, %v418_v19 }
 0x171   :  { %v689_v28 = vpop.f32.mrf.mxu1 }
 0x172   :  { %v2060_v29 = vpop.f32.mrf.mxu0 }
 0x173   :  { %v2062_v32 = vpop.f32.mrf.mxu1 }
 0x174   :  { %v469_v34 = vpop.f32.mrf.mxu0 }
 0x175   :  { %v694_v37 = vpop.f32.mrf.mxu1  ;;  %v633_v34 = vadd.f32 %v2026_v26, %v408_v0 }
 0x176   :  { %v2064_v38 = vpop.f32.mrf.mxu0 }
 0x177   :  { %v2066_v42 = vpop.f32.mrf.mxu1  ;;  %v473_v14 = vadd.f32 %v1974_v49, %v2064_v38  ;;  %v468_v38 = vadd.f32 %v1974_v49, %v2060_v29 }
 0x178   :  { %v474_v43 = vpop.f32.mrf.mxu0 }
 0x179   :  { %v699_v47 = vpop.f32.mrf.mxu1  ;;  %v648_v43 = vadd.f32 %v647_v41, %v423_v7 }
 0x17a   :  { %v2068_v48 = vpop.f32.mrf.mxu0  ;;  %v433_v47 = vadd.f32 %v1974_v49, %v432_v50 }
 0x17b   :  { %v2070_v53 = vpop.f32.mrf.mxu1 }
 0x17c   :  { %v479_v54 = vpop.f32.mrf.mxu0  ;;  %v658_v36 = vadd.f32 %v2034_v51, %v433_v47  ;;  %v653_v51 = vadd.f32 %v2032_v46, %v428_v35  ;;  %v668_v46 = vadd.f32 %v2042_v63, %v443_v44  ;;  %v663_v63 = vadd.f32 %v2038_v57, %v438_v62 }
 0x17d   :  { %v704_v58 = vpop.f32.mrf.mxu1  ;;  %v678_v57 = vadd.f32 %v2050_v11, %v453_v56  ;;  %v673_v11 = vadd.f32 %v2046_v6, %v448_v8  ;;  %v688_v6 = vadd.f32 %v2058_v22, %v463_v5  ;;  %v683_v22 = vadd.f32 %v2054_v16, %v458_v20 }
 0x17e   :  { %v2073_v1 = vpop.f32.mrf.mxu0  ;;  %v698_v16 = vadd.f32 %v2066_v42, %v473_v14  ;;  %v693_v42 = vadd.f32 %v2062_v32, %v468_v38 }
 0x17f   :  { %v2075_v2 = vpop.f32.mrf.mxu1  ;;  %v483_v29 = vadd.f32 %v1974_v49, %v2073_v1  ;;  %v478_v1 = vadd.f32 %v1974_v49, %v2068_v48 }
 0x180   :  { %v484_v12 = vpop.f32.mrf.mxu0 }
 0x181   :  { %v709_v13 = vpop.f32.mrf.mxu1  ;;  %v708_v32 = vadd.f32 %v2075_v2, %v483_v29 }
 0x182   :  { %v1087_v23 = vpop.f32.mrf.mxu0 }
 0x183   :  { %v1111_v28 = vpop.f32.mrf.mxu1  ;;  %v783_v30 = vadd.f32 %v1087_v23, %v1980_v61 }
 0x184   :  { %v863_v37 = vadd.f32 %v1111_v28, %v638_v18  ;;  %v777_v54 = vpop.f32.mrf.mxu0 }
 0x185   :  { %v857_v58 = vpop.f32.mrf.mxu1  ;;  %v937_v25 = vmax.f32 %v783_v30, 0.0  ;;  %v778_v40 = vadd.f32 %v777_v54, %v1977_v55 }
 0x186   :  { %v953_v17 = vmax.f32 %v863_v37, 0.0  ;;  %v858_v12 = vadd.f32 %v857_v58, %v633_v34  ;;  %v1090_v60 = vpop.f32.mrf.mxu0 }
 0x187   :  { %v1114_v26 = vpop.f32.mrf.mxu1  ;;  %969 = vst [vmem:[%s2233_s3 + $0x8] sm:$0xff] %v937_v25  ;;  %v936_v61 = vmax.f32 %v778_v40, 0.0  ;;  %v793_v55 = vadd.f32 %v1090_v60, %v1986_v9 }
 0x188   :  { %985 = vst [vmem:[%s2233_s3 + $0x88] sm:$0xff] %v953_v17  ;;  %v952_v41 = vmax.f32 %v858_v12, 0.0  ;;  %v873_v50 = vadd.f32 %v1114_v26, %v648_v43  ;;  %v787_v0 = vpop.f32.mrf.mxu0 }
 0x189   :  { %v867_v7 = vpop.f32.mrf.mxu1  ;;  %968 = vst [vmem:[%s2233_s3] sm:$0xff] %v936_v61  ;;  %v939_v17 = vmax.f32 %v793_v55, 0.0  ;;  %v788_v9 = vadd.f32 %v787_v0, %v1983_v4 }
 0x18a   :  { %984 = vst [vmem:[%s2233_s3 + $0x80] sm:$0xff] %v952_v41  ;;  %v955_v13 = vmax.f32 %v873_v50, 0.0  ;;  %v868_v18 = vadd.f32 %v867_v7, %v643_v31  ;;  %v1093_v19 = vpop.f32.mrf.mxu0 }
 0x18b   :  { %v1117_v23 = vpop.f32.mrf.mxu1  ;;  %971 = vst [vmem:[%s2233_s3 + $0x18] sm:$0xff] %v939_v17  ;;  %v938_v28 = vmax.f32 %v788_v9, 0.0  ;;  %v803_v4 = vadd.f32 %v1093_v19, %v1992_v21 }
 0x18c   :  { %987 = vst [vmem:[%s2233_s3 + $0x98] sm:$0xff] %v955_v13  ;;  %v954_v34 = vmax.f32 %v868_v18, 0.0  ;;  %v883_v30 = vadd.f32 %v1117_v23, %v658_v36  ;;  %v797_v37 = vpop.f32.mrf.mxu0 }
 0x18d   :  { %v877_v43 = vpop.f32.mrf.mxu1  ;;  %970 = vst [vmem:[%s2233_s3 + $0x10] sm:$0xff] %v938_v28  ;;  %v941_v47 = vmax.f32 %v803_v4, 0.0  ;;  %v798_v21 = vadd.f32 %v797_v37, %v1989_v15 }
 0x18e   :  { %986 = vst [vmem:[%s2233_s3 + $0x90] sm:$0xff] %v954_v34  ;;  %v957_v54 = vmax.f32 %v883_v30, 0.0  ;;  %v878_v58 = vadd.f32 %v877_v43, %v653_v51  ;;  %v1096_v25 = vpop.f32.mrf.mxu0 }
 0x18f   :  { %v1120_v40 = vpop.f32.mrf.mxu1  ;;  %973 = vst [vmem:[%s2233_s3 + $0x28] sm:$0xff] %v941_v47  ;;  %v940_v12 = vmax.f32 %v798_v21, 0.0  ;;  %v813_v15 = vadd.f32 %v1096_v25, %v1998_v33 }
 0x190   :  { %989 = vst [vmem:[%s2233_s3 + $0xa8] sm:$0xff] %v957_v54  ;;  %v956_v31 = vmax.f32 %v878_v58, 0.0  ;;  %v893_v35 = vadd.f32 %v1120_v40, %v668_v46  ;;  %v807_v60 = vpop.f32.mrf.mxu0 }
 0x191   :  { %v887_v26 = vpop.f32.mrf.mxu1  ;;  %972 = vst [vmem:[%s2233_s3 + $0x20] sm:$0xff] %v940_v12  ;;  %v943_v61 = vmax.f32 %v813_v15, 0.0  ;;  %v808_v33 = vadd.f32 %v807_v60, %v1995_v27 }
 0x192   :  { %988 = vst [vmem:[%s2233_s3 + $0xa0] sm:$0xff] %v956_v31  ;;  %v959_v41 = vmax.f32 %v893_v35, 0.0  ;;  %v888_v55 = vadd.f32 %v887_v26, %v663_v63  ;;  %v1099_v50 = vpop.f32.mrf.mxu0  ;;  %v2235_v26 = vld [vmem:[#allocation2_spill] sm:$0xff] }
 0x193   :  { %v1123_v36 = vpop.f32.mrf.mxu1  ;;  %975 = vst [vmem:[%s2233_s3 + $0x38] sm:$0xff] %v943_v61  ;;  %v942_v44 = vmax.f32 %v808_v33, 0.0  ;;  %v823_v27 = vadd.f32 %v1099_v50, %v2004_v45 }
 0x194   :  { %991 = vst [vmem:[%s2233_s3 + $0xb8] sm:$0xff] %v959_v41  ;;  %v958_v0 = vmax.f32 %v888_v55, 0.0  ;;  %v903_v7 = vadd.f32 %v1123_v36, %v678_v57  ;;  %v817_v17 = vpop.f32.mrf.mxu0 }
 0x195   :  { %v897_v13 = vpop.f32.mrf.mxu1  ;;  %974 = vst [vmem:[%s2233_s3 + $0x30] sm:$0xff] %v942_v44  ;;  %v945_v9 = vmax.f32 %v823_v27, 0.0  ;;  %v818_v45 = vadd.f32 %v817_v17, %v2001_v39 }
 0x196   :  { %990 = vst [vmem:[%s2233_s3 + $0xb0] sm:$0xff] %v958_v0  ;;  %v961_v18 = vmax.f32 %v903_v7, 0.0  ;;  %v898_v51 = vadd.f32 %v897_v13, %v673_v11  ;;  %v1102_v62 = vpop.f32.mrf.mxu0 }
 0x197   :  { %v1126_v19 = vpop.f32.mrf.mxu1  ;;  %977 = vst [vmem:[%s2233_s3 + $0x48] sm:$0xff] %v945_v9  ;;  %v944_v23 = vmax.f32 %v818_v45, 0.0  ;;  %v833_v39 = vadd.f32 %v1102_v62, %v2010_v59 }
 0x198   :  { %993 = vst [vmem:[%s2233_s3 + $0xc8] sm:$0xff] %v961_v18  ;;  %v960_v28 = vmax.f32 %v898_v51, 0.0  ;;  %v913_v34 = vadd.f32 %v1126_v19, %v688_v6  ;;  %v827_v4 = vpop.f32.mrf.mxu0 }
 0x199   :  { %v907_v30 = vpop.f32.mrf.mxu1  ;;  %976 = vst [vmem:[%s2233_s3 + $0x40] sm:$0xff] %v944_v23  ;;  %v947_v46 = vmax.f32 %v833_v39, 0.0  ;;  %v828_v59 = vadd.f32 %v827_v4, %v2007_v52 }
 0x19a   :  { %992 = vst [vmem:[%s2233_s3 + $0xc0] sm:$0xff] %v960_v28  ;;  %v963_v56 = vmax.f32 %v913_v34, 0.0  ;;  %v908_v37 = vadd.f32 %v907_v30, %v683_v22  ;;  %v1105_v43 = vpop.f32.mrf.mxu0 }
 0x19b   :  { %v1129_v47 = vpop.f32.mrf.mxu1  ;;  %979 = vst [vmem:[%s2233_s3 + $0x58] sm:$0xff] %v947_v46  ;;  %v946_v54 = vmax.f32 %v828_v59, 0.0  ;;  %v843_v52 = vadd.f32 %v1105_v43, %v2016_v10  ;;  %v703_v10 = vadd.f32 %v2070_v53, %v478_v1 }
 0x19c   :  { %995 = vst [vmem:[%s2233_s3 + $0xd8] sm:$0xff] %v963_v56  ;;  %v962_v21 = vmax.f32 %v908_v37, 0.0  ;;  %v923_v58 = vadd.f32 %v1129_v47, %v698_v16  ;;  %v837_v63 = vpop.f32.mrf.mxu0 }
 0x19d   :  { %v917_v8 = vpop.f32.mrf.mxu1  ;;  %978 = vst [vmem:[%s2233_s3 + $0x50] sm:$0xff] %v946_v54  ;;  %v949_v49 = vmax.f32 %v843_v52, 0.0  ;;  %v838_v25 = vadd.f32 %v837_v63, %v2013_v3 }
 0x19e   :  { %994 = vst [vmem:[%s2233_s3 + $0xd0] sm:$0xff] %v962_v21  ;;  %v965_v48 = vmax.f32 %v923_v58, 0.0  ;;  %v918_v40 = vadd.f32 %v917_v8, %v693_v42  ;;  %v1108_v12 = vpop.f32.mrf.mxu0 }
 0x19f   :  { %v1132_v31 = vpop.f32.mrf.mxu1  ;;  %981 = vst [vmem:[%s2233_s3 + $0x68] sm:$0xff] %v949_v49  ;;  %v948_v2 = vmax.f32 %v838_v25, 0.0  ;;  %v853_v35 = vadd.f32 %v1108_v12, %v2022_v24 }
 0x1a0   :  { %997 = vst [vmem:[%s2233_s3 + $0xe8] sm:$0xff] %v965_v48  ;;  %v964_v15 = vmax.f32 %v918_v40, 0.0  ;;  %v933_v57 = vadd.f32 %v1132_v31, %v708_v32  ;;  %v847_v5 = vpop.f32.mrf.mxu0 }
 0x1a1   :  { %v927_v3 = vpop.f32.mrf.mxu1  ;;  %980 = vst [vmem:[%s2233_s3 + $0x60] sm:$0xff] %v948_v2  ;;  %v951_v53 = vmax.f32 %v853_v35, 0.0  ;;  %v848_v61 = vadd.f32 %v847_v5, %v2235_v26 }
 0x1a2   :  { %996 = vst [vmem:[%s2233_s3 + $0xe0] sm:$0xff] %v964_v15  ;;  %v967_v60 = vmax.f32 %v933_v57, 0.0  ;;  %v928_v41 = vadd.f32 %v927_v3, %v703_v10 }
 0x1a3   :  { %983 = vst [vmem:[%s2233_s3 + $0x78] sm:$0xff] %v951_v53  ;;  %v950_v24 = vmax.f32 %v848_v61, 0.0 }
 0x1a4   :  { %999 = vst [vmem:[%s2233_s3 + $0xf8] sm:$0xff] %v967_v60  ;;  %v966_v33 = vmax.f32 %v928_v41, 0.0 }
 0x1a5   :  { %982 = vst [vmem:[%s2233_s3 + $0x70] sm:$0xff] %v950_v24 }
 0x1a6   :  { %998 = vst [vmem:[%s2233_s3 + $0xf0] sm:$0xff] %v966_v33 }

// kernel: autoencoder9_forward.16
= control target key start
LH: loop header
LB: loop body
LE: loop exit
PB: predicated region body
PF: predicated region fallthrough
CT: control target
= control target key end

     0   :  { %vm66_vm0 = vcmask 523264   ;;  %vm73_vm1 = vcmask 517120   ;;  %s215_s0 = inlined_call_operand.vmem [shape: f32[50,64], index: 0, kind: input, shape index: {}]   ;;  %s216_s1 = inlined_call_operand.vmem [shape: f32[50,64], index: 1, kind: input, shape index: {}]   ;;  %s217_s2 = inlined_call_operand.vmem [shape: f32[50,64], index: 2, kind: input, shape index: {}]   ;;  %s218_s3 = inlined_call_operand.vmem [shape: f32[50,64], index: 3, kind: input, shape index: {}]   ;;  %s219_s4 = inlined_call_operand.vmem [shape: f32[50,64], index: 4, kind: output, shape index: {}]  }
   0x1   :  { %v17_v0 = vld [vmem:[%s215_s0] sm:$0xff]  ;;  %v18_v5 = vld [vmem:[%s215_s0 + $0x8] sm:$0xff]  ;;  %v19_v11 = vld [vmem:[%s215_s0 + $0x10] sm:$0xff] }
   0x2   :  { %v24_v1 = vld [vmem:[%s216_s1] sm:$0xff]  ;;  %v25_v6 = vld [vmem:[%s216_s1 + $0x8] sm:$0xff]  ;;  %v26_v13 = vld [vmem:[%s216_s1 + $0x10] sm:$0xff] }
   0x3   :  { %v38_v2 = vld [vmem:[%s217_s2] sm:$0xff]  ;;  %v31_v3 = vmax.f32 %v17_v0, %v24_v1  ;;  %v32_v8 = vmax.f32 %v18_v5, %v25_v6  ;;  %v39_v9 = vld [vmem:[%s217_s2 + $0x8] sm:$0xff]  ;;  %v40_v14 = vld [vmem:[%s217_s2 + $0x10] sm:$0xff]  ;;  %v33_v17 = vmax.f32 %v19_v11, %v26_v13 }
   0x4   :  { %v45_v4 = vld [vmem:[%s218_s3] sm:$0xff]  ;;  %v46_v10 = vld [vmem:[%s218_s3 + $0x8] sm:$0xff]  ;;  %v47_v15 = vld [vmem:[%s218_s3 + $0x10] sm:$0xff] }
   0x5   :  { %v52_v7 = vmax.f32 %v38_v2, %v45_v4  ;;  %v53_v12 = vmax.f32 %v39_v9, %v46_v10  ;;  %v54_v18 = vmax.f32 %v40_v14, %v47_v15  ;;  %v20_v19 = vld [vmem:[%s215_s0 + $0x18] sm:$0xff]  ;;  %v21_v25 = vld [vmem:[%s215_s0 + $0x20] sm:$0xff]  ;;  %v22_v32 = vld [vmem:[%s215_s0 + $0x28] sm:$0xff] }
   0x6   :  { %v27_v20 = vld [vmem:[%s216_s1 + $0x18] sm:$0xff]  ;;  %v28_v26 = vld [vmem:[%s216_s1 + $0x20] sm:$0xff]  ;;  %v29_v34 = vld [vmem:[%s216_s1 + $0x28] sm:$0xff] }
   0x7   :  { %v59_v16 = vmax.f32 %v31_v3, %v52_v7  ;;  %v41_v21 = vld [vmem:[%s217_s2 + $0x18] sm:$0xff]  ;;  %v60_v22 = vmax.f32 %v32_v8, %v53_v12  ;;  %v34_v23 = vmax.f32 %v20_v19, %v27_v20  ;;  %v61_v27 = vmax.f32 %v33_v17, %v54_v18  ;;  %v42_v30 = vld [vmem:[%s217_s2 + $0x20] sm:$0xff]  ;;  %v43_v35 = vld [vmem:[%s217_s2 + $0x28] sm:$0xff] }
   0x8   :  { %v48_v24 = vld [vmem:[%s218_s3 + $0x18] sm:$0xff]  ;;  %v35_v29 = vmax.f32 %v21_v25, %v28_v26  ;;  %v49_v31 = vld [vmem:[%s218_s3 + $0x20] sm:$0xff]  ;;  %v50_v36 = vld [vmem:[%s218_s3 + $0x28] sm:$0xff]  ;;  %v36_v38 = vmax.f32 %v22_v32, %v29_v34 }
   0x9   :  { %67 = vst.msk [vmem:[%s219_s4] sm:$0xff] %vm66_vm0, %v59_v16  ;;  %v55_v28 = vmax.f32 %v41_v21, %v48_v24  ;;  %68 = vst.msk [vmem:[%s219_s4 + $0x8] sm:$0xff] %vm66_vm0, %v60_v22  ;;  %v56_v33 = vmax.f32 %v42_v30, %v49_v31  ;;  %v57_v39 = vmax.f32 %v43_v35, %v50_v36  ;;  %v23_v40 = vld [vmem:[%s215_s0 + $0x30] sm:$0x3] }
   0xa   :  { %69 = vst.msk [vmem:[%s219_s4 + $0x10] sm:$0xff] %vm66_vm0, %v61_v27  ;;  %v30_v41 = vld [vmem:[%s216_s1 + $0x30] sm:$0x3] }
   0xb   :  { %v62_v37 = vmax.f32 %v34_v23, %v55_v28  ;;  %v44_v42 = vld [vmem:[%s217_s2 + $0x30] sm:$0x3]  ;;  %v63_v43 = vmax.f32 %v35_v29, %v56_v33  ;;  %v37_v44 = vmax.f32 %v23_v40, %v30_v41  ;;  %v64_v46 = vmax.f32 %v36_v38, %v57_v39 }
   0xc   :  { %v51_v45 = vld [vmem:[%s218_s3 + $0x30] sm:$0x3] }
   0xd   :  { %70 = vst.msk [vmem:[%s219_s4 + $0x18] sm:$0xff] %vm66_vm0, %v62_v37  ;;  %v58_v47 = vmax.f32 %v44_v42, %v51_v45  ;;  %71 = vst.msk [vmem:[%s219_s4 + $0x20] sm:$0xff] %vm66_vm0, %v63_v43 }
   0xe   :  { %72 = vst.msk [vmem:[%s219_s4 + $0x28] sm:$0xff] %vm66_vm0, %v64_v46 }
   0xf   :  { %v65_v48 = vmax.f32 %v37_v44, %v58_v47 }
  0x11   :  { %74 = vst.msk [vmem:[%s219_s4 + $0x30] sm:$0x3] %vm73_vm1, %v65_v48 }

// kernel: autoencoder9_forward.15
= control target key start
LH: loop header
LB: loop body
LE: loop exit
PB: predicated region body
PF: predicated region fallthrough
CT: control target
= control target key end

     0   :  { %v1808_v0 = vmov 0.0   ;;  %s3605_s1 = inlined_call_operand.vmem [shape: f32[1152,128], index: 1, kind: input, shape index: {}]   ;;  %s3606_s0 = inlined_call_operand.vmem [shape: f32[256,1152], index: 0, kind: input, shape index: {}]   ;;  %s3607_s2 = inlined_call_operand.vmem [shape: f32[1,128], index: 2, kind: input, shape index: {}]   ;;  %s3608_s3 = inlined_call_operand.vmem [shape: f32[256,128], index: 3, kind: output, shape index: {}]  }
   0x1   :  { %453 = vmatprep.subr.mxu0 %v1808_v0  ;;  %678 = vmatprep.subr.mxu1 %v1808_v0  ;;  %v317_v1 = vld [vmem:[%s3605_s1 + $0x78] sm:$0xff]  ;;  %v316_v3 = vld [vmem:[%s3605_s1 + $0x70] sm:$0xff]  ;;  %v315_v5 = vld [vmem:[%s3605_s1 + $0x68] sm:$0xff] }
   0x2   :  { %v349_v2 = vld [vmem:[%s3605_s1 + $0x178] sm:$0xff]  ;;  %454 = vmatpush1.msra.mxu0 %v317_v1  ;;  %v348_v4 = vld [vmem:[%s3605_s1 + $0x170] sm:$0xff]  ;;  %v347_v6 = vld [vmem:[%s3605_s1 + $0x168] sm:$0xff] }
   0x3   :  { %679 = vmatpush1.msra.mxu1 %v349_v2  ;;  %455 = vmatprep.subr.mxu0 %v1808_v0  ;;  %v314_v7 = vld [vmem:[%s3605_s1 + $0x60] sm:$0xff]  ;;  %v313_v9 = vld [vmem:[%s3605_s1 + $0x58] sm:$0xff]  ;;  %v312_v11 = vld [vmem:[%s3605_s1 + $0x50] sm:$0xff] }
   0x4   :  { %680 = vmatprep.subr.mxu1 %v1808_v0  ;;  %456 = vmatpush1.msra.mxu0 %v316_v3  ;;  %v346_v8 = vld [vmem:[%s3605_s1 + $0x160] sm:$0xff]  ;;  %v345_v10 = vld [vmem:[%s3605_s1 + $0x158] sm:$0xff]  ;;  %v344_v12 = vld [vmem:[%s3605_s1 + $0x150] sm:$0xff] }
   0x5   :  { %681 = vmatpush1.msra.mxu1 %v348_v4  ;;  %457 = vmatprep.subr.mxu0 %v1808_v0  ;;  %v311_v13 = vld [vmem:[%s3605_s1 + $0x48] sm:$0xff]  ;;  %v310_v15 = vld [vmem:[%s3605_s1 + $0x40] sm:$0xff]  ;;  %v309_v17 = vld [vmem:[%s3605_s1 + $0x38] sm:$0xff] }
   0x6   :  { %682 = vmatprep.subr.mxu1 %v1808_v0  ;;  %458 = vmatpush1.msra.mxu0 %v315_v5  ;;  %v343_v14 = vld [vmem:[%s3605_s1 + $0x148] sm:$0xff]  ;;  %v342_v16 = vld [vmem:[%s3605_s1 + $0x140] sm:$0xff]  ;;  %v341_v18 = vld [vmem:[%s3605_s1 + $0x138] sm:$0xff] }
   0x7   :  { %683 = vmatpush1.msra.mxu1 %v347_v6  ;;  %459 = vmatprep.subr.mxu0 %v1808_v0  ;;  %v308_v19 = vld [vmem:[%s3605_s1 + $0x30] sm:$0xff]  ;;  %v307_v21 = vld [vmem:[%s3605_s1 + $0x28] sm:$0xff]  ;;  %v306_v23 = vld [vmem:[%s3605_s1 + $0x20] sm:$0xff] }
   0x8   :  { %684 = vmatprep.subr.mxu1 %v1808_v0  ;;  %460 = vmatpush1.msra.mxu0 %v314_v7  ;;  %v340_v20 = vld [vmem:[%s3605_s1 + $0x130] sm:$0xff]  ;;  %v339_v22 = vld [vmem:[%s3605_s1 + $0x128] sm:$0xff]  ;;  %v338_v24 = vld [vmem:[%s3605_s1 + $0x120] sm:$0xff] }
   0x9   :  { %685 = vmatpush1.msra.mxu1 %v346_v8  ;;  %461 = vmatprep.subr.mxu0 %v1808_v0  ;;  %v305_v25 = vld [vmem:[%s3605_s1 + $0x18] sm:$0xff]  ;;  %v304_v27 = vld [vmem:[%s3605_s1 + $0x10] sm:$0xff]  ;;  %v303_v29 = vld [vmem:[%s3605_s1 + $0x8] sm:$0xff] }
   0xa   :  { %686 = vmatprep.subr.mxu1 %v1808_v0  ;;  %462 = vmatpush1.msra.mxu0 %v313_v9  ;;  %v337_v26 = vld [vmem:[%s3605_s1 + $0x118] sm:$0xff]  ;;  %v336_v28 = vld [vmem:[%s3605_s1 + $0x110] sm:$0xff]  ;;  %v335_v30 = vld [vmem:[%s3605_s1 + $0x108] sm:$0xff] }
   0xb   :  { %687 = vmatpush1.msra.mxu1 %v345_v10  ;;  %463 = vmatprep.subr.mxu0 %v1808_v0  ;;  %v302_v31 = vld [vmem:[%s3605_s1] sm:$0xff]  ;;  %v333_v33 = vld [vmem:[%s3605_s1 + $0xf8] sm:$0xff]  ;;  %v332_v35 = vld [vmem:[%s3605_s1 + $0xf0] sm:$0xff] }
   0xc   :  { %688 = vmatprep.subr.mxu1 %v1808_v0  ;;  %464 = vmatpush1.msra.mxu0 %v312_v11  ;;  %v334_v32 = vld [vmem:[%s3605_s1 + $0x100] sm:$0xff]  ;;  %v365_v34 = vld [vmem:[%s3605_s1 + $0x1f8] sm:$0xff]  ;;  %v364_v36 = vld [vmem:[%s3605_s1 + $0x1f0] sm:$0xff] }
   0xd   :  { %689 = vmatpush1.msra.mxu1 %v344_v12  ;;  %465 = vmatprep.subr.mxu0 %v1808_v0  ;;  %v331_v37 = vld [vmem:[%s3605_s1 + $0xe8] sm:$0xff]  ;;  %v330_v39 = vld [vmem:[%s3605_s1 + $0xe0] sm:$0xff]  ;;  %v329_v41 = vld [vmem:[%s3605_s1 + $0xd8] sm:$0xff] }
   0xe   :  { %690 = vmatprep.subr.mxu1 %v1808_v0  ;;  %466 = vmatpush1.msra.mxu0 %v311_v13  ;;  %v363_v38 = vld [vmem:[%s3605_s1 + $0x1e8] sm:$0xff]  ;;  %v362_v40 = vld [vmem:[%s3605_s1 + $0x1e0] sm:$0xff]  ;;  %v361_v42 = vld [vmem:[%s3605_s1 + $0x1d8] sm:$0xff] }
   0xf   :  { %691 = vmatpush1.msra.mxu1 %v343_v14  ;;  %467 = vmatprep.subr.mxu0 %v1808_v0  ;;  %v328_v43 = vld [vmem:[%s3605_s1 + $0xd0] sm:$0xff]  ;;  %v327_v45 = vld [vmem:[%s3605_s1 + $0xc8] sm:$0xff]  ;;  %v326_v47 = vld [vmem:[%s3605_s1 + $0xc0] sm:$0xff] }
  0x10   :  { %692 = vmatprep.subr.mxu1 %v1808_v0  ;;  %468 = vmatpush1.msra.mxu0 %v310_v15  ;;  %v360_v44 = vld [vmem:[%s3605_s1 + $0x1d0] sm:$0xff]  ;;  %v359_v46 = vld [vmem:[%s3605_s1 + $0x1c8] sm:$0xff]  ;;  %v358_v48 = vld [vmem:[%s3605_s1 + $0x1c0] sm:$0xff] }
  0x11   :  { %693 = vmatpush1.msra.mxu1 %v342_v16  ;;  %469 = vmatprep.subr.mxu0 %v1808_v0  ;;  %v325_v49 = vld [vmem:[%s3605_s1 + $0xb8] sm:$0xff]  ;;  %v324_v51 = vld [vmem:[%s3605_s1 + $0xb0] sm:$0xff]  ;;  %v323_v53 = vld [vmem:[%s3605_s1 + $0xa8] sm:$0xff] }
  0x12   :  { %694 = vmatprep.subr.mxu1 %v1808_v0  ;;  %470 = vmatpush1.msra.mxu0 %v309_v17  ;;  %v357_v50 = vld [vmem:[%s3605_s1 + $0x1b8] sm:$0xff]  ;;  %v356_v52 = vld [vmem:[%s3605_s1 + $0x1b0] sm:$0xff]  ;;  %v355_v54 = vld [vmem:[%s3605_s1 + $0x1a8] sm:$0xff] }
  0x13   :  { %695 = vmatpush1.msra.mxu1 %v341_v18  ;;  %471 = vmatprep.subr.mxu0 %v1808_v0  ;;  %v322_v55 = vld [vmem:[%s3605_s1 + $0xa0] sm:$0xff]  ;;  %v321_v57 = vld [vmem:[%s3605_s1 + $0x98] sm:$0xff]  ;;  %v320_v59 = vld [vmem:[%s3605_s1 + $0x90] sm:$0xff] }
  0x14   :  { %696 = vmatprep.subr.mxu1 %v1808_v0  ;;  %472 = vmatpush1.msra.mxu0 %v308_v19  ;;  %v354_v56 = vld [vmem:[%s3605_s1 + $0x1a0] sm:$0xff]  ;;  %v353_v58 = vld [vmem:[%s3605_s1 + $0x198] sm:$0xff]  ;;  %v352_v60 = vld [vmem:[%s3605_s1 + $0x190] sm:$0xff] }
  0x15   :  { %697 = vmatpush1.msra.mxu1 %v340_v20  ;;  %473 = vmatprep.subr.mxu0 %v1808_v0  ;;  %v319_v61 = vld [vmem:[%s3605_s1 + $0x88] sm:$0xff]  ;;  %v318_v63 = vld [vmem:[%s3605_s1 + $0x80] sm:$0xff]  ;;  %v17_v3 = vld [vmem:[%s3606_s0 + $0x18] sm:$0xff] }
  0x16   :  { %698 = vmatprep.subr.mxu1 %v1808_v0  ;;  %474 = vmatpush1.msra.mxu0 %v307_v21  ;;  %v351_v62 = vld [vmem:[%s3605_s1 + $0x188] sm:$0xff]  ;;  %v350_v2 = vld [vmem:[%s3605_s1 + $0x180] sm:$0xff]  ;;  %v16_v5 = vld [vmem:[%s3606_s0 + $0x10] sm:$0xff] }
  0x17   :  { %699 = vmatpush1.msra.mxu1 %v339_v22  ;;  %475 = vmatprep.subr.mxu0 %v1808_v0  ;;  %v15_v1 = vld [vmem:[%s3606_s0 + $0x8] sm:$0xff]  ;;  %v14_v4 = vld [vmem:[%s3606_s0] sm:$0xff]  ;;  %v381_v6 = vld [vmem:[%s3605_s1 + $0x278] sm:$0xff] }
  0x18   :  { %700 = vmatprep.subr.mxu1 %v1808_v0  ;;  %476 = vmatpush1.msra.mxu0 %v306_v23  ;;  %v413_v7 = vld [vmem:[%s3605_s1 + $0x378] sm:$0xff]  ;;  %v24_v8 = vld [vmem:[%s3606_s0 + $0x50] sm:$0xff]  ;;  %v26_v9 = vld [vmem:[%s3606_s0 + $0x60] sm:$0xff] }
  0x19   :  { %701 = vmatpush1.msra.mxu1 %v338_v24  ;;  %477 = vmatprep.subr.mxu0 %v1808_v0  ;;  %v23_v10 = vld [vmem:[%s3606_s0 + $0x48] sm:$0xff]  ;;  %v25_v11 = vld [vmem:[%s3606_s0 + $0x58] sm:$0xff]  ;;  %v380_v12 = vld [vmem:[%s3605_s1 + $0x270] sm:$0xff] }
  0x1a   :  { %702 = vmatprep.subr.mxu1 %v1808_v0  ;;  %478 = vmatpush1.msra.mxu0 %v305_v25  ;;  %v412_v13 = vld [vmem:[%s3605_s1 + $0x370] sm:$0xff]  ;;  %v33_v14 = vld [vmem:[%s3606_s0 + $0x98] sm:$0xff]  ;;  %v35_v15 = vld [vmem:[%s3606_s0 + $0xa8] sm:$0xff] }
  0x1b   :  { %703 = vmatpush1.msra.mxu1 %v337_v26  ;;  %479 = vmatprep.subr.mxu0 %v1808_v0  ;;  %v32_v16 = vld [vmem:[%s3606_s0 + $0x90] sm:$0xff]  ;;  %v34_v17 = vld [vmem:[%s3606_s0 + $0xa0] sm:$0xff]  ;;  %v379_v18 = vld [vmem:[%s3605_s1 + $0x268] sm:$0xff] }
  0x1c   :  { %704 = vmatprep.subr.mxu1 %v1808_v0  ;;  %480 = vmatpush1.msra.mxu0 %v304_v27  ;;  %v411_v19 = vld [vmem:[%s3605_s1 + $0x368] sm:$0xff]  ;;  %v42_v20 = vld [vmem:[%s3606_s0 + $0xe0] sm:$0xff]  ;;  %v44_v21 = vld [vmem:[%s3606_s0 + $0xf0] sm:$0xff] }
  0x1d   :  { %705 = vmatpush1.msra.mxu1 %v336_v28  ;;  %481 = vmatprep.subr.mxu0 %v1808_v0  ;;  %v41_v22 = vld [vmem:[%s3606_s0 + $0xd8] sm:$0xff]  ;;  %v43_v23 = vld [vmem:[%s3606_s0 + $0xe8] sm:$0xff]  ;;  %v378_v24 = vld [vmem:[%s3605_s1 + $0x260] sm:$0xff] }
  0x1e   :  { %706 = vmatprep.subr.mxu1 %v1808_v0  ;;  %482 = vmatpush1.msra.mxu0 %v303_v29  ;;  %v410_v25 = vld [vmem:[%s3605_s1 + $0x360] sm:$0xff]  ;;  %v51_v26 = vld [vmem:[%s3606_s0 + $0x128] sm:$0xff]  ;;  %v53_v27 = vld [vmem:[%s3606_s0 + $0x138] sm:$0xff] }
  0x1f   :  { %707 = vmatpush1.msra.mxu1 %v335_v30  ;;  %483 = vmatprep.subr.mxu0 %v1808_v0  ;;  %v50_v28 = vld [vmem:[%s3606_s0 + $0x120] sm:$0xff]  ;;  %v52_v29 = vld [vmem:[%s3606_s0 + $0x130] sm:$0xff]  ;;  %v377_v30 = vld [vmem:[%s3605_s1 + $0x258] sm:$0xff] }
  0x20   :  { %708 = vmatprep.subr.mxu1 %v1808_v0  ;;  %484 = vmatpush1.msra.mxu0 %v302_v31  ;;  %v409_v31 = vld [vmem:[%s3605_s1 + $0x358] sm:$0xff] }
  0x21   :  { %709 = vmatpush1.msra.mxu1 %v334_v32  ;;  %485 = vmatprep.subr.mxu0 %v1808_v0  ;;  %v60_v32 = vld [vmem:[%s3606_s0 + $0x170] sm:$0xff] }
  0x22   :  { %710 = vmatprep.subr.mxu1 %v1808_v0  ;;  %486 = vmatpush2.msra.mxu0 %v333_v33  ;;  %v62_v33 = vld [vmem:[%s3606_s0 + $0x180] sm:$0xff] }
  0x23   :  { %711 = vmatpush2.msra.mxu1 %v365_v34  ;;  %487 = vmatprep.subr.mxu0 %v1808_v0  ;;  %v59_v34 = vld [vmem:[%s3606_s0 + $0x168] sm:$0xff] }
  0x24   :  { %712 = vmatprep.subr.mxu1 %v1808_v0  ;;  %488 = vmatpush2.msra.mxu0 %v332_v35  ;;  %v61_v35 = vld [vmem:[%s3606_s0 + $0x178] sm:$0xff] }
  0x25   :  { %713 = vmatpush2.msra.mxu1 %v364_v36  ;;  %489 = vmatprep.subr.mxu0 %v1808_v0  ;;  %v376_v36 = vld [vmem:[%s3605_s1 + $0x250] sm:$0xff] }
  0x26   :  { %714 = vmatprep.subr.mxu1 %v1808_v0  ;;  %490 = vmatpush2.msra.mxu0 %v331_v37  ;;  %v408_v37 = vld [vmem:[%s3605_s1 + $0x350] sm:$0xff] }
  0x27   :  { %715 = vmatpush2.msra.mxu1 %v363_v38  ;;  %491 = vmatprep.subr.mxu0 %v1808_v0  ;;  %v69_v38 = vld [vmem:[%s3606_s0 + $0x1b8] sm:$0xff] }
  0x28   :  { %716 = vmatprep.subr.mxu1 %v1808_v0  ;;  %492 = vmatpush2.msra.mxu0 %v330_v39  ;;  %v71_v39 = vld [vmem:[%s3606_s0 + $0x1c8] sm:$0xff] }
  0x29   :  { %717 = vmatpush2.msra.mxu1 %v362_v40  ;;  %493 = vmatprep.subr.mxu0 %v1808_v0  ;;  %v68_v40 = vld [vmem:[%s3606_s0 + $0x1b0] sm:$0xff] }
  0x2a   :  { %718 = vmatprep.subr.mxu1 %v1808_v0  ;;  %494 = vmatpush2.msra.mxu0 %v329_v41  ;;  %v70_v41 = vld [vmem:[%s3606_s0 + $0x1c0] sm:$0xff] }
  0x2b   :  { %719 = vmatpush2.msra.mxu1 %v361_v42  ;;  %495 = vmatprep.subr.mxu0 %v1808_v0  ;;  %v375_v42 = vld [vmem:[%s3605_s1 + $0x248] sm:$0xff] }
  0x2c   :  { %720 = vmatprep.subr.mxu1 %v1808_v0  ;;  %496 = vmatpush2.msra.mxu0 %v328_v43  ;;  %v407_v43 = vld [vmem:[%s3605_s1 + $0x348] sm:$0xff] }
  0x2d   :  { %721 = vmatpush2.msra.mxu1 %v360_v44  ;;  %497 = vmatprep.subr.mxu0 %v1808_v0  ;;  %v78_v44 = vld [vmem:[%s3606_s0 + $0x200] sm:$0xff] }
  0x2e   :  { %722 = vmatprep.subr.mxu1 %v1808_v0  ;;  %498 = vmatpush2.msra.mxu0 %v327_v45  ;;  %v80_v45 = vld [vmem:[%s3606_s0 + $0x210] sm:$0xff] }
  0x2f   :  { %723 = vmatpush2.msra.mxu1 %v359_v46  ;;  %499 = vmatprep.subr.mxu0 %v1808_v0  ;;  %v77_v46 = vld [vmem:[%s3606_s0 + $0x1f8] sm:$0xff] }
  0x30   :  { %724 = vmatprep.subr.mxu1 %v1808_v0  ;;  %500 = vmatpush2.msra.mxu0 %v326_v47  ;;  %v79_v47 = vld [vmem:[%s3606_s0 + $0x208] sm:$0xff] }
  0x31   :  { %725 = vmatpush2.msra.mxu1 %v358_v48  ;;  %501 = vmatprep.subr.mxu0 %v1808_v0  ;;  %v374_v48 = vld [vmem:[%s3605_s1 + $0x240] sm:$0xff] }
  0x32   :  { %726 = vmatprep.subr.mxu1 %v1808_v0  ;;  %502 = vmatpush2.msra.mxu0 %v325_v49  ;;  %v406_v49 = vld [vmem:[%s3605_s1 + $0x340] sm:$0xff] }
  0x33   :  { %727 = vmatpush2.msra.mxu1 %v357_v50  ;;  %503 = vmatprep.subr.mxu0 %v1808_v0  ;;  %v87_v50 = vld [vmem:[%s3606_s0 + $0x248] sm:$0xff] }
  0x34   :  { %728 = vmatprep.subr.mxu1 %v1808_v0  ;;  %504 = vmatpush2.msra.mxu0 %v324_v51  ;;  %v89_v51 = vld [vmem:[%s3606_s0 + $0x258] sm:$0xff] }
  0x35   :  { %729 = vmatpush2.msra.mxu1 %v356_v52  ;;  %505 = vmatprep.subr.mxu0 %v1808_v0  ;;  %v86_v52 = vld [vmem:[%s3606_s0 + $0x240] sm:$0xff] }
  0x36   :  { %730 = vmatprep.subr.mxu1 %v1808_v0  ;;  %506 = vmatpush2.msra.mxu0 %v323_v53  ;;  %v88_v53 = vld [vmem:[%s3606_s0 + $0x250] sm:$0xff] }
  0x37   :  { %731 = vmatpush2.msra.mxu1 %v355_v54  ;;  %507 = vmatprep.subr.mxu0 %v1808_v0  ;;  %v373_v54 = vld [vmem:[%s3605_s1 + $0x238] sm:$0xff] }
  0x38   :  { %732 = vmatprep.subr.mxu1 %v1808_v0  ;;  %508 = vmatpush2.msra.mxu0 %v322_v55  ;;  %v405_v55 = vld [vmem:[%s3605_s1 + $0x338] sm:$0xff] }
  0x39   :  { %733 = vmatpush2.msra.mxu1 %v354_v56  ;;  %509 = vmatprep.subr.mxu0 %v1808_v0  ;;  %v96_v56 = vld [vmem:[%s3606_s0 + $0x290] sm:$0xff] }
  0x3a   :  { %734 = vmatprep.subr.mxu1 %v1808_v0  ;;  %510 = vmatpush2.msra.mxu0 %v321_v57  ;;  %v98_v57 = vld [vmem:[%s3606_s0 + $0x2a0] sm:$0xff] }
  0x3b   :  { %735 = vmatpush2.msra.mxu1 %v353_v58  ;;  %511 = vmatprep.subr.mxu0 %v1808_v0  ;;  %v95_v58 = vld [vmem:[%s3606_s0 + $0x288] sm:$0xff] }
  0x3c   :  { %736 = vmatprep.subr.mxu1 %v1808_v0  ;;  %512 = vmatpush2.msra.mxu0 %v320_v59  ;;  %v97_v59 = vld [vmem:[%s3606_s0 + $0x298] sm:$0xff] }
  0x3d   :  { %737 = vmatpush2.msra.mxu1 %v352_v60  ;;  %513 = vmatprep.subr.mxu0 %v1808_v0  ;;  %v372_v60 = vld [vmem:[%s3605_s1 + $0x230] sm:$0xff] }
  0x3e   :  { %738 = vmatprep.subr.mxu1 %v1808_v0  ;;  %514 = vmatpush2.msra.mxu0 %v319_v61  ;;  %v404_v61 = vld [vmem:[%s3605_s1 + $0x330] sm:$0xff] }
  0x3f   :  { %739 = vmatpush2.msra.mxu1 %v351_v62  ;;  %515 = vmatprep.subr.mxu0 %v1808_v0  ;;  %v105_v62 = vld [vmem:[%s3606_s0 + $0x2d8] sm:$0xff] }
  0x40   :  { %740 = vmatprep.subr.mxu1 %v1808_v0  ;;  %516 = vmatpush2.msra.mxu0 %v318_v63  ;;  %v107_v63 = vld [vmem:[%s3606_s0 + $0x2e8] sm:$0xff] }
  0x41   :  { %517 = vmatprep.mubr.f32.mxu0 %v15_v1  ;;  %741 = vmatpush2.msra.mxu1 %v350_v2  ;;  %v104_v1 = vld [vmem:[%s3606_s0 + $0x2d0] sm:$0xff]  ;;  %v106_v2 = vld [vmem:[%s3606_s0 + $0x2e0] sm:$0xff] }
  0x42   :  { %742 = vmatprep.mubr.f32.mxu1 %v17_v3  ;;  %518 = vmatmul.mubr.f32.vlgmr.msra.gmra.mxu0 %v14_v4  ;;  %v371_v3 = vld [vmem:[%s3605_s1 + $0x228] sm:$0xff] }
  0x43   :  { %743 = vmatmul.mubr.f32.vlgmr.msra.gmra.mxu1 %v16_v5  ;;  %903 = vmatprep.subr.mxu0 %v1808_v0  ;;  %v403_v4 = vld [vmem:[%s3605_s1 + $0x328] sm:$0xff]  ;;  %v114_v5 = vld [vmem:[%s3606_s0 + $0x320] sm:$0xff] }
  0x44   :  { %1128 = vmatprep.subr.mxu1 %v1808_v0  ;;  %904 = vmatpush1.msra.mxu0 %v381_v6  ;;  %v116_v6 = vld [vmem:[%s3606_s0 + $0x330] sm:$0xff] }
  0x45   :  { %1129 = vmatpush1.msra.mxu1 %v413_v7  ;;  %522 = vmatprep.mubr.f32.mxu0 %v24_v8  ;;  %v113_v7 = vld [vmem:[%s3606_s0 + $0x318] sm:$0xff]  ;;  %v115_v8 = vld [vmem:[%s3606_s0 + $0x328] sm:$0xff] }
  0x46   :  { %747 = vmatprep.mubr.f32.mxu1 %v26_v9  ;;  %523 = vmatmul.mubr.f32.gmra.mxu0 %v23_v10  ;;  %v370_v9 = vld [vmem:[%s3605_s1 + $0x220] sm:$0xff] }
  0x47   :  { %748 = vmatmul.mubr.f32.gmra.mxu1 %v25_v11  ;;  %905 = vmatprep.subr.mxu0 %v1808_v0  ;;  %v402_v10 = vld [vmem:[%s3605_s1 + $0x320] sm:$0xff]  ;;  %v123_v11 = vld [vmem:[%s3606_s0 + $0x368] sm:$0xff] }
  0x48   :  { %1130 = vmatprep.subr.mxu1 %v1808_v0  ;;  %906 = vmatpush1.msra.mxu0 %v380_v12  ;;  %v125_v12 = vld [vmem:[%s3606_s0 + $0x378] sm:$0xff] }
  0x49   :  { %1131 = vmatpush1.msra.mxu1 %v412_v13  ;;  %527 = vmatprep.mubr.f32.mxu0 %v33_v14  ;;  %v122_v13 = vld [vmem:[%s3606_s0 + $0x360] sm:$0xff]  ;;  %v124_v14 = vld [vmem:[%s3606_s0 + $0x370] sm:$0xff] }
  0x4a   :  { %752 = vmatprep.mubr.f32.mxu1 %v35_v15  ;;  %528 = vmatmul.mubr.f32.gmra.mxu0 %v32_v16  ;;  %v369_v15 = vld [vmem:[%s3605_s1 + $0x218] sm:$0xff] }
  0x4b   :  { %753 = vmatmul.mubr.f32.gmra.mxu1 %v34_v17  ;;  %907 = vmatprep.subr.mxu0 %v1808_v0  ;;  %v401_v16 = vld [vmem:[%s3605_s1 + $0x318] sm:$0xff]  ;;  %v132_v17 = vld [vmem:[%s3606_s0 + $0x3b0] sm:$0xff] }
  0x4c   :  { %1132 = vmatprep.subr.mxu1 %v1808_v0  ;;  %908 = vmatpush1.msra.mxu0 %v379_v18  ;;  %v134_v18 = vld [vmem:[%s3606_s0 + $0x3c0] sm:$0xff] }
  0x4d   :  { %1133 = vmatpush1.msra.mxu1 %v411_v19  ;;  %532 = vmatprep.mubr.f32.mxu0 %v42_v20  ;;  %v131_v19 = vld [vmem:[%s3606_s0 + $0x3a8] sm:$0xff]  ;;  %v133_v20 = vld [vmem:[%s3606_s0 + $0x3b8] sm:$0xff] }
  0x4e   :  { %757 = vmatprep.mubr.f32.mxu1 %v44_v21  ;;  %533 = vmatmul.mubr.f32.gmra.mxu0 %v41_v22  ;;  %v368_v21 = vld [vmem:[%s3605_s1 + $0x210] sm:$0xff] }
  0x4f   :  { %758 = vmatmul.mubr.f32.gmra.mxu1 %v43_v23  ;;  %909 = vmatprep.subr.mxu0 %v1808_v0  ;;  %v400_v22 = vld [vmem:[%s3605_s1 + $0x310] sm:$0xff]  ;;  %v141_v23 = vld [vmem:[%s3606_s0 + $0x3f8] sm:$0xff] }
  0x50   :  { %1134 = vmatprep.subr.mxu1 %v1808_v0  ;;  %910 = vmatpush1.msra.mxu0 %v378_v24  ;;  %v143_v24 = vld [vmem:[%s3606_s0 + $0x408] sm:$0xff] }
  0x51   :  { %1135 = vmatpush1.msra.mxu1 %v410_v25  ;;  %537 = vmatprep.mubr.f32.mxu0 %v51_v26  ;;  %v140_v25 = vld [vmem:[%s3606_s0 + $0x3f0] sm:$0xff]  ;;  %v142_v26 = vld [vmem:[%s3606_s0 + $0x400] sm:$0xff] }
  0x52   :  { %762 = vmatprep.mubr.f32.mxu1 %v53_v27  ;;  %538 = vmatmul.mubr.f32.gmra.mxu0 %v50_v28  ;;  %v367_v27 = vld [vmem:[%s3605_s1 + $0x208] sm:$0xff] }
  0x53   :  { %763 = vmatmul.mubr.f32.gmra.mxu1 %v52_v29  ;;  %911 = vmatprep.subr.mxu0 %v1808_v0  ;;  %v399_v28 = vld [vmem:[%s3605_s1 + $0x308] sm:$0xff]  ;;  %v150_v29 = vld [vmem:[%s3606_s0 + $0x440] sm:$0xff] }
  0x54   :  { %1136 = vmatprep.subr.mxu1 %v1808_v0  ;;  %912 = vmatpush1.msra.mxu0 %v377_v30  ;;  %v152_v30 = vld [vmem:[%s3606_s0 + $0x450] sm:$0xff] }
  0x55   :  { %1137 = vmatpush1.msra.mxu1 %v409_v31  ;;  %542 = vmatprep.mubr.f32.mxu0 %v60_v32  ;;  %v149_v31 = vld [vmem:[%s3606_s0 + $0x438] sm:$0xff]  ;;  %v151_v32 = vld [vmem:[%s3606_s0 + $0x448] sm:$0xff] }
  0x56   :  { %767 = vmatprep.mubr.f32.mxu1 %v62_v33  ;;  %543 = vmatmul.mubr.f32.gmra.mxu0 %v59_v34  ;;  %v366_v33 = vld [vmem:[%s3605_s1 + $0x200] sm:$0xff] }
  0x57   :  { %768 = vmatmul.mubr.f32.gmra.mxu1 %v61_v35  ;;  %913 = vmatprep.subr.mxu0 %v1808_v0  ;;  %v398_v34 = vld [vmem:[%s3605_s1 + $0x300] sm:$0xff]  ;;  %v159_v35 = vld [vmem:[%s3606_s0 + $0x488] sm:$0xff] }
  0x58   :  { %1138 = vmatprep.subr.mxu1 %v1808_v0  ;;  %914 = vmatpush1.msra.mxu0 %v376_v36  ;;  %v161_v36 = vld [vmem:[%s3606_s0 + $0x498] sm:$0xff] }
  0x59   :  { %1139 = vmatpush1.msra.mxu1 %v408_v37  ;;  %547 = vmatprep.mubr.f32.mxu0 %v69_v38  ;;  %v158_v37 = vld [vmem:[%s3606_s0 + $0x480] sm:$0xff]  ;;  %v160_v38 = vld [vmem:[%s3606_s0 + $0x490] sm:$0xff] }
  0x5a   :  { %772 = vmatprep.mubr.f32.mxu1 %v71_v39  ;;  %548 = vmatmul.mubr.f32.gmra.mxu0 %v68_v40  ;;  %v397_v39 = vld [vmem:[%s3605_s1 + $0x2f8] sm:$0xff] }
  0x5b   :  { %773 = vmatmul.mubr.f32.gmra.mxu1 %v70_v41  ;;  %915 = vmatprep.subr.mxu0 %v1808_v0  ;;  %v429_v40 = vld [vmem:[%s3605_s1 + $0x3f8] sm:$0xff]  ;;  %v168_v41 = vld [vmem:[%s3606_s0 + $0x4d0] sm:$0xff] }
  0x5c   :  { %1140 = vmatprep.subr.mxu1 %v1808_v0  ;;  %916 = vmatpush1.msra.mxu0 %v375_v42  ;;  %v170_v42 = vld [vmem:[%s3606_s0 + $0x4e0] sm:$0xff] }
  0x5d   :  { %1141 = vmatpush1.msra.mxu1 %v407_v43  ;;  %552 = vmatprep.mubr.f32.mxu0 %v78_v44  ;;  %v167_v43 = vld [vmem:[%s3606_s0 + $0x4c8] sm:$0xff]  ;;  %v169_v44 = vld [vmem:[%s3606_s0 + $0x4d8] sm:$0xff] }
  0x5e   :  { %777 = vmatprep.mubr.f32.mxu1 %v80_v45  ;;  %553 = vmatmul.mubr.f32.gmra.mxu0 %v77_v46  ;;  %v396_v45 = vld [vmem:[%s3605_s1 + $0x2f0] sm:$0xff] }
  0x5f   :  { %778 = vmatmul.mubr.f32.gmra.mxu1 %v79_v47  ;;  %917 = vmatprep.subr.mxu0 %v1808_v0  ;;  %v428_v46 = vld [vmem:[%s3605_s1 + $0x3f0] sm:$0xff]  ;;  %v177_v47 = vld [vmem:[%s3606_s0 + $0x518] sm:$0xff] }
  0x60   :  { %1142 = vmatprep.subr.mxu1 %v1808_v0  ;;  %918 = vmatpush1.msra.mxu0 %v374_v48  ;;  %v179_v48 = vld [vmem:[%s3606_s0 + $0x528] sm:$0xff] }
  0x61   :  { %1143 = vmatpush1.msra.mxu1 %v406_v49  ;;  %557 = vmatprep.mubr.f32.mxu0 %v87_v50  ;;  %v176_v49 = vld [vmem:[%s3606_s0 + $0x510] sm:$0xff]  ;;  %v178_v50 = vld [vmem:[%s3606_s0 + $0x520] sm:$0xff] }
  0x62   :  { %782 = vmatprep.mubr.f32.mxu1 %v89_v51  ;;  %558 = vmatmul.mubr.f32.gmra.mxu0 %v86_v52  ;;  %v395_v51 = vld [vmem:[%s3605_s1 + $0x2e8] sm:$0xff] }
  0x63   :  { %783 = vmatmul.mubr.f32.gmra.mxu1 %v88_v53  ;;  %919 = vmatprep.subr.mxu0 %v1808_v0  ;;  %v427_v52 = vld [vmem:[%s3605_s1 + $0x3e8] sm:$0xff]  ;;  %v186_v53 = vld [vmem:[%s3606_s0 + $0x560] sm:$0xff] }
  0x64   :  { %1144 = vmatprep.subr.mxu1 %v1808_v0  ;;  %920 = vmatpush1.msra.mxu0 %v373_v54  ;;  %v188_v54 = vld [vmem:[%s3606_s0 + $0x570] sm:$0xff] }
  0x65   :  { %1145 = vmatpush1.msra.mxu1 %v405_v55  ;;  %562 = vmatprep.mubr.f32.mxu0 %v96_v56  ;;  %v185_v55 = vld [vmem:[%s3606_s0 + $0x558] sm:$0xff]  ;;  %v187_v56 = vld [vmem:[%s3606_s0 + $0x568] sm:$0xff] }
  0x66   :  { %787 = vmatprep.mubr.f32.mxu1 %v98_v57  ;;  %563 = vmatmul.mubr.f32.gmra.mxu0 %v95_v58  ;;  %v394_v57 = vld [vmem:[%s3605_s1 + $0x2e0] sm:$0xff] }
  0x67   :  { %788 = vmatmul.mubr.f32.gmra.mxu1 %v97_v59  ;;  %921 = vmatprep.subr.mxu0 %v1808_v0  ;;  %v426_v58 = vld [vmem:[%s3605_s1 + $0x3e0] sm:$0xff]  ;;  %v195_v59 = vld [vmem:[%s3606_s0 + $0x5a8] sm:$0xff] }
  0x68   :  { %1146 = vmatprep.subr.mxu1 %v1808_v0  ;;  %922 = vmatpush1.msra.mxu0 %v372_v60  ;;  %v197_v60 = vld [vmem:[%s3606_s0 + $0x5b8] sm:$0xff] }
  0x69   :  { %1147 = vmatpush1.msra.mxu1 %v404_v61  ;;  %567 = vmatprep.mubr.f32.mxu0 %v105_v62  ;;  %v194_v61 = vld [vmem:[%s3606_s0 + $0x5a0] sm:$0xff]  ;;  %v196_v62 = vld [vmem:[%s3606_s0 + $0x5b0] sm:$0xff] }
  0x6a   :  { %792 = vmatprep.mubr.f32.mxu1 %v107_v63  ;;  %568 = vmatmul.mubr.f32.gmra.mxu0 %v104_v1  ;;  %v393_v63 = vld [vmem:[%s3605_s1 + $0x2d8] sm:$0xff] }
  0x6b   :  { %793 = vmatmul.mubr.f32.gmra.mxu1 %v106_v2  ;;  %923 = vmatprep.subr.mxu0 %v1808_v0  ;;  %v425_v1 = vld [vmem:[%s3605_s1 + $0x3d8] sm:$0xff]  ;;  %v204_v2 = vld [vmem:[%s3606_s0 + $0x5f0] sm:$0xff] }
  0x6c   :  { %1148 = vmatprep.subr.mxu1 %v1808_v0  ;;  %924 = vmatpush1.msra.mxu0 %v371_v3  ;;  %v206_v3 = vld [vmem:[%s3606_s0 + $0x600] sm:$0xff] }
  0x6d   :  { %1149 = vmatpush1.msra.mxu1 %v403_v4  ;;  %572 = vmatprep.mubr.f32.mxu0 %v114_v5  ;;  %v203_v4 = vld [vmem:[%s3606_s0 + $0x5e8] sm:$0xff]  ;;  %v205_v5 = vld [vmem:[%s3606_s0 + $0x5f8] sm:$0xff] }
  0x6e   :  { %797 = vmatprep.mubr.f32.mxu1 %v116_v6  ;;  %573 = vmatmul.mubr.f32.gmra.mxu0 %v113_v7  ;;  %v392_v6 = vld [vmem:[%s3605_s1 + $0x2d0] sm:$0xff] }
  0x6f   :  { %798 = vmatmul.mubr.f32.gmra.mxu1 %v115_v8  ;;  %925 = vmatprep.subr.mxu0 %v1808_v0  ;;  %v424_v7 = vld [vmem:[%s3605_s1 + $0x3d0] sm:$0xff]  ;;  %v213_v8 = vld [vmem:[%s3606_s0 + $0x638] sm:$0xff] }
  0x70   :  { %1150 = vmatprep.subr.mxu1 %v1808_v0  ;;  %926 = vmatpush1.msra.mxu0 %v370_v9  ;;  %v215_v9 = vld [vmem:[%s3606_s0 + $0x648] sm:$0xff] }
  0x71   :  { %1151 = vmatpush1.msra.mxu1 %v402_v10  ;;  %577 = vmatprep.mubr.f32.mxu0 %v123_v11  ;;  %v212_v10 = vld [vmem:[%s3606_s0 + $0x630] sm:$0xff]  ;;  %v214_v11 = vld [vmem:[%s3606_s0 + $0x640] sm:$0xff] }
  0x72   :  { %802 = vmatprep.mubr.f32.mxu1 %v125_v12  ;;  %578 = vmatmul.mubr.f32.gmra.mxu0 %v122_v13  ;;  %v391_v12 = vld [vmem:[%s3605_s1 + $0x2c8] sm:$0xff] }
  0x73   :  { %803 = vmatmul.mubr.f32.gmra.mxu1 %v124_v14  ;;  %927 = vmatprep.subr.mxu0 %v1808_v0  ;;  %v423_v13 = vld [vmem:[%s3605_s1 + $0x3c8] sm:$0xff]  ;;  %v222_v14 = vld [vmem:[%s3606_s0 + $0x680] sm:$0xff] }
  0x74   :  { %1152 = vmatprep.subr.mxu1 %v1808_v0  ;;  %928 = vmatpush1.msra.mxu0 %v369_v15  ;;  %v224_v15 = vld [vmem:[%s3606_s0 + $0x690] sm:$0xff] }
  0x75   :  { %1153 = vmatpush1.msra.mxu1 %v401_v16  ;;  %582 = vmatprep.mubr.f32.mxu0 %v132_v17  ;;  %v221_v16 = vld [vmem:[%s3606_s0 + $0x678] sm:$0xff]  ;;  %v223_v17 = vld [vmem:[%s3606_s0 + $0x688] sm:$0xff] }
  0x76   :  { %807 = vmatprep.mubr.f32.mxu1 %v134_v18  ;;  %583 = vmatmul.mubr.f32.gmra.mxu0 %v131_v19  ;;  %v390_v18 = vld [vmem:[%s3605_s1 + $0x2c0] sm:$0xff] }
  0x77   :  { %808 = vmatmul.mubr.f32.gmra.mxu1 %v133_v20  ;;  %929 = vmatprep.subr.mxu0 %v1808_v0  ;;  %v422_v19 = vld [vmem:[%s3605_s1 + $0x3c0] sm:$0xff]  ;;  %v231_v20 = vld [vmem:[%s3606_s0 + $0x6c8] sm:$0xff] }
  0x78   :  { %1154 = vmatprep.subr.mxu1 %v1808_v0  ;;  %930 = vmatpush1.msra.mxu0 %v368_v21  ;;  %v233_v21 = vld [vmem:[%s3606_s0 + $0x6d8] sm:$0xff] }
  0x79   :  { %1155 = vmatpush1.msra.mxu1 %v400_v22  ;;  %587 = vmatprep.mubr.f32.mxu0 %v141_v23  ;;  %v230_v22 = vld [vmem:[%s3606_s0 + $0x6c0] sm:$0xff]  ;;  %v232_v23 = vld [vmem:[%s3606_s0 + $0x6d0] sm:$0xff] }
  0x7a   :  { %812 = vmatprep.mubr.f32.mxu1 %v143_v24  ;;  %588 = vmatmul.mubr.f32.gmra.mxu0 %v140_v25  ;;  %v389_v24 = vld [vmem:[%s3605_s1 + $0x2b8] sm:$0xff] }
  0x7b   :  { %813 = vmatmul.mubr.f32.gmra.mxu1 %v142_v26  ;;  %931 = vmatprep.subr.mxu0 %v1808_v0  ;;  %v421_v25 = vld [vmem:[%s3605_s1 + $0x3b8] sm:$0xff]  ;;  %v240_v26 = vld [vmem:[%s3606_s0 + $0x710] sm:$0xff] }
  0x7c   :  { %1156 = vmatprep.subr.mxu1 %v1808_v0  ;;  %932 = vmatpush1.msra.mxu0 %v367_v27  ;;  %v242_v27 = vld [vmem:[%s3606_s0 + $0x720] sm:$0xff] }
  0x7d   :  { %1157 = vmatpush1.msra.mxu1 %v399_v28  ;;  %592 = vmatprep.mubr.f32.mxu0 %v150_v29  ;;  %v239_v28 = vld [vmem:[%s3606_s0 + $0x708] sm:$0xff]  ;;  %v241_v29 = vld [vmem:[%s3606_s0 + $0x718] sm:$0xff] }
  0x7e   :  { %817 = vmatprep.mubr.f32.mxu1 %v152_v30  ;;  %593 = vmatmul.mubr.f32.gmra.mxu0 %v149_v31  ;;  %v388_v30 = vld [vmem:[%s3605_s1 + $0x2b0] sm:$0xff] }
  0x7f   :  { %818 = vmatmul.mubr.f32.gmra.mxu1 %v151_v32  ;;  %933 = vmatprep.subr.mxu0 %v1808_v0  ;;  %v420_v31 = vld [vmem:[%s3605_s1 + $0x3b0] sm:$0xff]  ;;  %v249_v32 = vld [vmem:[%s3606_s0 + $0x758] sm:$0xff] }
  0x80   :  { %1158 = vmatprep.subr.mxu1 %v1808_v0  ;;  %934 = vmatpush1.msra.mxu0 %v366_v33  ;;  %v251_v33 = vld [vmem:[%s3606_s0 + $0x768] sm:$0xff] }
  0x81   :  { %1159 = vmatpush1.msra.mxu1 %v398_v34  ;;  %597 = vmatprep.mubr.f32.mxu0 %v159_v35  ;;  %v248_v34 = vld [vmem:[%s3606_s0 + $0x750] sm:$0xff]  ;;  %v250_v35 = vld [vmem:[%s3606_s0 + $0x760] sm:$0xff] }
  0x82   :  { %822 = vmatprep.mubr.f32.mxu1 %v161_v36  ;;  %598 = vmatmul.mubr.f32.gmra.mxu0 %v158_v37  ;;  %v387_v36 = vld [vmem:[%s3605_s1 + $0x2a8] sm:$0xff] }
  0x83   :  { %823 = vmatmul.mubr.f32.gmra.mxu1 %v160_v38  ;;  %935 = vmatprep.subr.mxu0 %v1808_v0  ;;  %v419_v37 = vld [vmem:[%s3605_s1 + $0x3a8] sm:$0xff]  ;;  %v258_v38 = vld [vmem:[%s3606_s0 + $0x7a0] sm:$0xff] }
  0x84   :  { %1160 = vmatprep.subr.mxu1 %v1808_v0  ;;  %936 = vmatpush2.msra.mxu0 %v397_v39  ;;  %v260_v39 = vld [vmem:[%s3606_s0 + $0x7b0] sm:$0xff] }
  0x85   :  { %1161 = vmatpush2.msra.mxu1 %v429_v40  ;;  %602 = vmatprep.mubr.f32.mxu0 %v168_v41  ;;  %v257_v40 = vld [vmem:[%s3606_s0 + $0x798] sm:$0xff]  ;;  %v259_v41 = vld [vmem:[%s3606_s0 + $0x7a8] sm:$0xff] }
  0x86   :  { %827 = vmatprep.mubr.f32.mxu1 %v170_v42  ;;  %603 = vmatmul.mubr.f32.gmra.mxu0 %v167_v43  ;;  %v386_v42 = vld [vmem:[%s3605_s1 + $0x2a0] sm:$0xff] }
  0x87   :  { %828 = vmatmul.mubr.f32.gmra.mxu1 %v169_v44  ;;  %937 = vmatprep.subr.mxu0 %v1808_v0  ;;  %v418_v43 = vld [vmem:[%s3605_s1 + $0x3a0] sm:$0xff]  ;;  %v267_v44 = vld [vmem:[%s3606_s0 + $0x7e8] sm:$0xff] }
  0x88   :  { %1162 = vmatprep.subr.mxu1 %v1808_v0  ;;  %938 = vmatpush2.msra.mxu0 %v396_v45  ;;  %v269_v45 = vld [vmem:[%s3606_s0 + $0x7f8] sm:$0xff] }
  0x89   :  { %1163 = vmatpush2.msra.mxu1 %v428_v46  ;;  %607 = vmatprep.mubr.f32.mxu0 %v177_v47  ;;  %v266_v46 = vld [vmem:[%s3606_s0 + $0x7e0] sm:$0xff]  ;;  %v268_v47 = vld [vmem:[%s3606_s0 + $0x7f0] sm:$0xff] }
  0x8a   :  { %832 = vmatprep.mubr.f32.mxu1 %v179_v48  ;;  %608 = vmatmul.mubr.f32.gmra.mxu0 %v176_v49  ;;  %v385_v48 = vld [vmem:[%s3605_s1 + $0x298] sm:$0xff] }
  0x8b   :  { %833 = vmatmul.mubr.f32.gmra.mxu1 %v178_v50  ;;  %939 = vmatprep.subr.mxu0 %v1808_v0  ;;  %v417_v49 = vld [vmem:[%s3605_s1 + $0x398] sm:$0xff]  ;;  %v276_v50 = vld [vmem:[%s3606_s0 + $0x830] sm:$0xff] }
  0x8c   :  { %1164 = vmatprep.subr.mxu1 %v1808_v0  ;;  %940 = vmatpush2.msra.mxu0 %v395_v51  ;;  %v278_v51 = vld [vmem:[%s3606_s0 + $0x840] sm:$0xff] }
  0x8d   :  { %1165 = vmatpush2.msra.mxu1 %v427_v52  ;;  %612 = vmatprep.mubr.f32.mxu0 %v186_v53  ;;  %v275_v52 = vld [vmem:[%s3606_s0 + $0x828] sm:$0xff]  ;;  %v277_v53 = vld [vmem:[%s3606_s0 + $0x838] sm:$0xff] }
  0x8e   :  { %837 = vmatprep.mubr.f32.mxu1 %v188_v54  ;;  %613 = vmatmul.mubr.f32.gmra.mxu0 %v185_v55  ;;  %v384_v54 = vld [vmem:[%s3605_s1 + $0x290] sm:$0xff] }
  0x8f   :  { %838 = vmatmul.mubr.f32.gmra.mxu1 %v187_v56  ;;  %941 = vmatprep.subr.mxu0 %v1808_v0  ;;  %v416_v55 = vld [vmem:[%s3605_s1 + $0x390] sm:$0xff]  ;;  %v285_v56 = vld [vmem:[%s3606_s0 + $0x878] sm:$0xff] }
  0x90   :  { %1166 = vmatprep.subr.mxu1 %v1808_v0  ;;  %942 = vmatpush2.msra.mxu0 %v394_v57  ;;  %v287_v57 = vld [vmem:[%s3606_s0 + $0x888] sm:$0xff] }
  0x91   :  { %1167 = vmatpush2.msra.mxu1 %v426_v58  ;;  %617 = vmatprep.mubr.f32.mxu0 %v195_v59  ;;  %v284_v58 = vld [vmem:[%s3606_s0 + $0x870] sm:$0xff]  ;;  %v286_v59 = vld [vmem:[%s3606_s0 + $0x880] sm:$0xff] }
  0x92   :  { %842 = vmatprep.mubr.f32.mxu1 %v197_v60  ;;  %618 = vmatmul.mubr.f32.gmra.mxu0 %v194_v61  ;;  %v383_v60 = vld [vmem:[%s3605_s1 + $0x288] sm:$0xff] }
  0x93   :  { %843 = vmatmul.mubr.f32.gmra.mxu1 %v196_v62  ;;  %943 = vmatprep.subr.mxu0 %v1808_v0  ;;  %v415_v61 = vld [vmem:[%s3605_s1 + $0x388] sm:$0xff]  ;;  %v294_v62 = vld [vmem:[%s3606_s0 + $0x8c0] sm:$0xff] }
  0x94   :  { %1168 = vmatprep.subr.mxu1 %v1808_v0  ;;  %944 = vmatpush2.msra.mxu0 %v393_v63  ;;  %v296_v63 = vld [vmem:[%s3606_s0 + $0x8d0] sm:$0xff] }
  0x95   :  { %1169 = vmatpush2.msra.mxu1 %v425_v1  ;;  %622 = vmatprep.mubr.f32.mxu0 %v204_v2  ;;  %v293_v1 = vld [vmem:[%s3606_s0 + $0x8b8] sm:$0xff]  ;;  %v295_v2 = vld [vmem:[%s3606_s0 + $0x8c8] sm:$0xff] }
  0x96   :  { %847 = vmatprep.mubr.f32.mxu1 %v206_v3  ;;  %623 = vmatmul.mubr.f32.gmra.mxu0 %v203_v4  ;;  %v382_v3 = vld [vmem:[%s3605_s1 + $0x280] sm:$0xff] }
  0x97   :  { %848 = vmatmul.mubr.f32.gmra.mxu1 %v205_v5  ;;  %945 = vmatprep.subr.mxu0 %v1808_v0  ;;  %v414_v4 = vld [vmem:[%s3605_s1 + $0x380] sm:$0xff]  ;;  %v19_v5 = vld [vmem:[%s3606_s0 + $0x28] sm:$0xff] }
  0x98   :  { %1170 = vmatprep.subr.mxu1 %v1808_v0  ;;  %946 = vmatpush2.msra.mxu0 %v392_v6  ;;  %v21_v6 = vld [vmem:[%s3606_s0 + $0x38] sm:$0xff] }
  0x99   :  { %1171 = vmatpush2.msra.mxu1 %v424_v7  ;;  %627 = vmatprep.mubr.f32.mxu0 %v213_v8  ;;  %v18_v7 = vld [vmem:[%s3606_s0 + $0x20] sm:$0xff]  ;;  %v20_v8 = vld [vmem:[%s3606_s0 + $0x30] sm:$0xff] }
  0x9a   :  { %852 = vmatprep.mubr.f32.mxu1 %v215_v9  ;;  %628 = vmatmul.mubr.f32.gmra.mxu0 %v212_v10  ;;  %v445_v9 = vld [vmem:[%s3605_s1 + $0x478] sm:$0xff]  ;;  %v30_v10 = vld [vmem:[%s3606_s0 + $0x80] sm:$0xff] }
  0x9b   :  { %853 = vmatmul.mubr.f32.gmra.mxu1 %v214_v11  ;;  %947 = vmatprep.subr.mxu0 %v1808_v0  ;;  %v27_v11 = vld [vmem:[%s3606_s0 + $0x68] sm:$0xff] }
  0x9c   :  { %1172 = vmatprep.subr.mxu1 %v1808_v0  ;;  %948 = vmatpush2.msra.mxu0 %v391_v12  ;;  %v29_v12 = vld [vmem:[%s3606_s0 + $0x78] sm:$0xff] }
  0x9d   :  { %1173 = vmatpush2.msra.mxu1 %v423_v13  ;;  %632 = vmatprep.mubr.f32.mxu0 %v222_v14  ;;  %v37_v13 = vld [vmem:[%s3606_s0 + $0xb8] sm:$0xff]  ;;  %v39_v14 = vld [vmem:[%s3606_s0 + $0xc8] sm:$0xff] }
  0x9e   :  { %857 = vmatprep.mubr.f32.mxu1 %v224_v15  ;;  %633 = vmatmul.mubr.f32.gmra.mxu0 %v221_v16  ;;  %v444_v15 = vld [vmem:[%s3605_s1 + $0x470] sm:$0xff] }
  0x9f   :  { %858 = vmatmul.mubr.f32.gmra.mxu1 %v223_v17  ;;  %949 = vmatprep.subr.mxu0 %v1808_v0  ;;  %v36_v16 = vld [vmem:[%s3606_s0 + $0xb0] sm:$0xff]  ;;  %v38_v17 = vld [vmem:[%s3606_s0 + $0xc0] sm:$0xff] }
  0xa0   :  { %1174 = vmatprep.subr.mxu1 %v1808_v0  ;;  %950 = vmatpush2.msra.mxu0 %v390_v18  ;;  %v46_v18 = vld [vmem:[%s3606_s0 + $0x100] sm:$0xff] }
  0xa1   :  { %1175 = vmatpush2.msra.mxu1 %v422_v19  ;;  %637 = vmatprep.mubr.f32.mxu0 %v231_v20  ;;  %v48_v19 = vld [vmem:[%s3606_s0 + $0x110] sm:$0xff]  ;;  %v443_v20 = vld [vmem:[%s3605_s1 + $0x468] sm:$0xff] }
  0xa2   :  { %862 = vmatprep.mubr.f32.mxu1 %v233_v21  ;;  %638 = vmatmul.mubr.f32.gmra.mxu0 %v230_v22  ;;  %v45_v21 = vld [vmem:[%s3606_s0 + $0xf8] sm:$0xff]  ;;  %v47_v22 = vld [vmem:[%s3606_s0 + $0x108] sm:$0xff] }
  0xa3   :  { %863 = vmatmul.mubr.f32.gmra.mxu1 %v232_v23  ;;  %951 = vmatprep.subr.mxu0 %v1808_v0  ;;  %v55_v23 = vld [vmem:[%s3606_s0 + $0x148] sm:$0xff] }
  0xa4   :  { %1176 = vmatprep.subr.mxu1 %v1808_v0  ;;  %952 = vmatpush2.msra.mxu0 %v389_v24  ;;  %v57_v24 = vld [vmem:[%s3606_s0 + $0x158] sm:$0xff] }
  0xa5   :  { %1177 = vmatpush2.msra.mxu1 %v421_v25  ;;  %642 = vmatprep.mubr.f32.mxu0 %v240_v26  ;;  %v442_v25 = vld [vmem:[%s3605_s1 + $0x460] sm:$0xff] }
  0xa6   :  { %867 = vmatprep.mubr.f32.mxu1 %v242_v27  ;;  %643 = vmatmul.mubr.f32.gmra.mxu0 %v239_v28  ;;  %v54_v26 = vld [vmem:[%s3606_s0 + $0x140] sm:$0xff]  ;;  %v56_v27 = vld [vmem:[%s3606_s0 + $0x150] sm:$0xff] }
  0xa7   :  { %868 = vmatmul.mubr.f32.gmra.mxu1 %v241_v29  ;;  %953 = vmatprep.subr.mxu0 %v1808_v0  ;;  %v64_v28 = vld [vmem:[%s3606_s0 + $0x190] sm:$0xff]  ;;  %v66_v29 = vld [vmem:[%s3606_s0 + $0x1a0] sm:$0xff] }
  0xa8   :  { %1178 = vmatprep.subr.mxu1 %v1808_v0  ;;  %954 = vmatpush2.msra.mxu0 %v388_v30  ;;  %v441_v30 = vld [vmem:[%s3605_s1 + $0x458] sm:$0xff] }
  0xa9   :  { %1179 = vmatpush2.msra.mxu1 %v420_v31  ;;  %647 = vmatprep.mubr.f32.mxu0 %v249_v32  ;;  %v63_v31 = vld [vmem:[%s3606_s0 + $0x188] sm:$0xff]  ;;  %v65_v32 = vld [vmem:[%s3606_s0 + $0x198] sm:$0xff] }
  0xaa   :  { %872 = vmatprep.mubr.f32.mxu1 %v251_v33  ;;  %648 = vmatmul.mubr.f32.gmra.mxu0 %v248_v34  ;;  %v73_v33 = vld [vmem:[%s3606_s0 + $0x1d8] sm:$0xff]  ;;  %v75_v34 = vld [vmem:[%s3606_s0 + $0x1e8] sm:$0xff] }
  0xab   :  { %873 = vmatmul.mubr.f32.gmra.mxu1 %v250_v35  ;;  %955 = vmatprep.subr.mxu0 %v1808_v0  ;;  %v440_v35 = vld [vmem:[%s3605_s1 + $0x450] sm:$0xff] }
  0xac   :  { %1180 = vmatprep.subr.mxu1 %v1808_v0  ;;  %956 = vmatpush2.msra.mxu0 %v387_v36  ;;  %v72_v36 = vld [vmem:[%s3606_s0 + $0x1d0] sm:$0xff] }
  0xad   :  { %1181 = vmatpush2.msra.mxu1 %v419_v37  ;;  %652 = vmatprep.mubr.f32.mxu0 %v258_v38  ;;  %v74_v37 = vld [vmem:[%s3606_s0 + $0x1e0] sm:$0xff] }
  0xae   :  { %877 = vmatprep.mubr.f32.mxu1 %v260_v39  ;;  %653 = vmatmul.mubr.f32.gmra.mxu0 %v257_v40  ;;  %v82_v38 = vld [vmem:[%s3606_s0 + $0x220] sm:$0xff]  ;;  %v84_v39 = vld [vmem:[%s3606_s0 + $0x230] sm:$0xff]  ;;  %v439_v40 = vld [vmem:[%s3605_s1 + $0x448] sm:$0xff] }
  0xaf   :  { %878 = vmatmul.mubr.f32.gmra.mxu1 %v259_v41  ;;  %957 = vmatprep.subr.mxu0 %v1808_v0  ;;  %v81_v41 = vld [vmem:[%s3606_s0 + $0x218] sm:$0xff] }
  0xb0   :  { %1182 = vmatprep.subr.mxu1 %v1808_v0  ;;  %958 = vmatpush2.msra.mxu0 %v386_v42  ;;  %v83_v42 = vld [vmem:[%s3606_s0 + $0x228] sm:$0xff] }
  0xb1   :  { %1183 = vmatpush2.msra.mxu1 %v418_v43  ;;  %657 = vmatprep.mubr.f32.mxu0 %v267_v44  ;;  %v91_v43 = vld [vmem:[%s3606_s0 + $0x268] sm:$0xff]  ;;  %v93_v44 = vld [vmem:[%s3606_s0 + $0x278] sm:$0xff] }
  0xb2   :  { %882 = vmatprep.mubr.f32.mxu1 %v269_v45  ;;  %658 = vmatmul.mubr.f32.gmra.mxu0 %v266_v46  ;;  %v438_v45 = vld [vmem:[%s3605_s1 + $0x440] sm:$0xff] }
  0xb3   :  { %883 = vmatmul.mubr.f32.gmra.mxu1 %v268_v47  ;;  %959 = vmatprep.subr.mxu0 %v1808_v0  ;;  %v90_v46 = vld [vmem:[%s3606_s0 + $0x260] sm:$0xff]  ;;  %v92_v47 = vld [vmem:[%s3606_s0 + $0x270] sm:$0xff] }
  0xb4   :  { %1184 = vmatprep.subr.mxu1 %v1808_v0  ;;  %960 = vmatpush2.msra.mxu0 %v385_v48  ;;  %v100_v48 = vld [vmem:[%s3606_s0 + $0x2b0] sm:$0xff] }
  0xb5   :  { %1185 = vmatpush2.msra.mxu1 %v417_v49  ;;  %662 = vmatprep.mubr.f32.mxu0 %v276_v50  ;;  %v102_v49 = vld [vmem:[%s3606_s0 + $0x2c0] sm:$0xff]  ;;  %v437_v50 = vld [vmem:[%s3605_s1 + $0x438] sm:$0xff] }
  0xb6   :  { %887 = vmatprep.mubr.f32.mxu1 %v278_v51  ;;  %663 = vmatmul.mubr.f32.gmra.mxu0 %v275_v52  ;;  %v99_v51 = vld [vmem:[%s3606_s0 + $0x2a8] sm:$0xff]  ;;  %v101_v52 = vld [vmem:[%s3606_s0 + $0x2b8] sm:$0xff] }
  0xb7   :  { %888 = vmatmul.mubr.f32.gmra.mxu1 %v277_v53  ;;  %961 = vmatprep.subr.mxu0 %v1808_v0  ;;  %v109_v53 = vld [vmem:[%s3606_s0 + $0x2f8] sm:$0xff] }
  0xb8   :  { %1186 = vmatprep.subr.mxu1 %v1808_v0  ;;  %962 = vmatpush2.msra.mxu0 %v384_v54  ;;  %v111_v54 = vld [vmem:[%s3606_s0 + $0x308] sm:$0xff] }
  0xb9   :  { %1187 = vmatpush2.msra.mxu1 %v416_v55  ;;  %667 = vmatprep.mubr.f32.mxu0 %v285_v56  ;;  %v436_v55 = vld [vmem:[%s3605_s1 + $0x430] sm:$0xff] }
  0xba   :  { %892 = vmatprep.mubr.f32.mxu1 %v287_v57  ;;  %668 = vmatmul.mubr.f32.gmra.mxu0 %v284_v58  ;;  %v108_v56 = vld [vmem:[%s3606_s0 + $0x2f0] sm:$0xff]  ;;  %v110_v57 = vld [vmem:[%s3606_s0 + $0x300] sm:$0xff] }
  0xbb   :  { %893 = vmatmul.mubr.f32.gmra.mxu1 %v286_v59  ;;  %963 = vmatprep.subr.mxu0 %v1808_v0  ;;  %v118_v58 = vld [vmem:[%s3606_s0 + $0x340] sm:$0xff]  ;;  %v120_v59 = vld [vmem:[%s3606_s0 + $0x350] sm:$0xff] }
  0xbc   :  { %1188 = vmatprep.subr.mxu1 %v1808_v0  ;;  %964 = vmatpush2.msra.mxu0 %v383_v60  ;;  %v435_v60 = vld [vmem:[%s3605_s1 + $0x428] sm:$0xff] }
  0xbd   :  { %1189 = vmatpush2.msra.mxu1 %v415_v61  ;;  %672 = vmatprep.mubr.f32.mxu0 %v294_v62  ;;  %v117_v61 = vld [vmem:[%s3606_s0 + $0x338] sm:$0xff]  ;;  %v119_v62 = vld [vmem:[%s3606_s0 + $0x348] sm:$0xff] }
  0xbe   :  { %897 = vmatprep.mubr.f32.mxu1 %v296_v63  ;;  %673 = vmatmul.mubr.f32.gmra.mxu0 %v293_v1  ;;  %v127_v63 = vld [vmem:[%s3606_s0 + $0x388] sm:$0xff]  ;;  %v129_v1 = vld [vmem:[%s3606_s0 + $0x398] sm:$0xff] }
  0xbf   :  { %898 = vmatmul.mubr.f32.gmra.mxu1 %v295_v2  ;;  %965 = vmatprep.subr.mxu0 %v1808_v0  ;;  %v434_v2 = vld [vmem:[%s3605_s1 + $0x420] sm:$0xff] }
  0xc0   :  { %1190 = vmatprep.subr.mxu1 %v1808_v0  ;;  %966 = vmatpush2.msra.mxu0 %v382_v3  ;;  %v28_v0 = vld [vmem:[%s3606_s0 + $0x70] sm:$0xff]  ;;  %v126_v3 = vld [vmem:[%s3606_s0 + $0x380] sm:$0xff] }
  0xc1   :  { %1191 = vmatpush2.msra.mxu1 %v414_v4  ;;  %967 = vmatprep.mubr.f32.mxu0 %v19_v5  ;;  %v128_v4 = vld [vmem:[%s3606_s0 + $0x390] sm:$0xff] }
  0xc2   :  { %1192 = vmatprep.mubr.f32.mxu1 %v21_v6  ;;  %968 = vmatmul.mubr.f32.vlgmr.msra.gmra.mxu0 %v18_v7  ;;  %v136_v5 = vld [vmem:[%s3606_s0 + $0x3d0] sm:$0xff]  ;;  %v138_v6 = vld [vmem:[%s3606_s0 + $0x3e0] sm:$0xff]  ;;  %v433_v7 = vld [vmem:[%s3605_s1 + $0x418] sm:$0xff] }
  0xc3   :  { %1193 = vmatmul.mubr.f32.vlgmr.msra.gmra.mxu1 %v20_v8  ;;  %1695 = vmatprep.subr.mxu0 %v445_v9  ;;  %v135_v8 = vld [vmem:[%s3606_s0 + $0x3c8] sm:$0xff] }
  0xc4   :  { %1775 = vmatprep.subr.mxu1 %v445_v9  ;;  %1696 = vmatpush3.msra.mxu0 %v445_v9 }
  0xc5   :  { %1791 = vmatpush3.msra.mxu1 %v445_v9  ;;  %972 = vmatprep.mubr.f32.mxu0 %v28_v0  ;;  %v137_v9 = vld [vmem:[%s3606_s0 + $0x3d8] sm:$0xff] }
  0xc6   :  { %1197 = vmatprep.mubr.f32.mxu1 %v30_v10  ;;  %973 = vmatmul.mubr.f32.gmra.mxu0 %v27_v11  ;;  %v145_v0 = vld [vmem:[%s3606_s0 + $0x418] sm:$0xff]  ;;  %v147_v10 = vld [vmem:[%s3606_s0 + $0x428] sm:$0xff]  ;;  %v432_v11 = vld [vmem:[%s3605_s1 + $0x410] sm:$0xff] }
  0xc7   :  { %1198 = vmatmul.mubr.f32.gmra.mxu1 %v29_v12  ;;  %977 = vmatprep.mubr.f32.mxu0 %v37_v13  ;;  %v144_v12 = vld [vmem:[%s3606_s0 + $0x410] sm:$0xff]  ;;  %v146_v13 = vld [vmem:[%s3606_s0 + $0x420] sm:$0xff] }
  0xc8   :  { %1202 = vmatprep.mubr.f32.mxu1 %v39_v14  ;;  %1697 = vmatprep.subr.mxu0 %v444_v15  ;;  %v154_v14 = vld [vmem:[%s3606_s0 + $0x460] sm:$0xff] }
  0xc9   :  { %1776 = vmatprep.subr.mxu1 %v444_v15  ;;  %1698 = vmatpush3.msra.mxu0 %v444_v15 }
  0xca   :  { %1792 = vmatpush3.msra.mxu1 %v444_v15  ;;  %978 = vmatmul.mubr.f32.gmra.mxu0 %v36_v16  ;;  %v156_v15 = vld [vmem:[%s3606_s0 + $0x470] sm:$0xff]  ;;  %v431_v16 = vld [vmem:[%s3605_s1 + $0x408] sm:$0xff] }
  0xcb   :  { %1203 = vmatmul.mubr.f32.gmra.mxu1 %v38_v17  ;;  %982 = vmatprep.mubr.f32.mxu0 %v46_v18  ;;  %v153_v17 = vld [vmem:[%s3606_s0 + $0x458] sm:$0xff]  ;;  %v155_v18 = vld [vmem:[%s3606_s0 + $0x468] sm:$0xff] }
  0xcc   :  { %1207 = vmatprep.mubr.f32.mxu1 %v48_v19  ;;  %1699 = vmatprep.subr.mxu0 %v443_v20  ;;  %v163_v19 = vld [vmem:[%s3606_s0 + $0x4a8] sm:$0xff] }
  0xcd   :  { %1777 = vmatprep.subr.mxu1 %v443_v20  ;;  %1700 = vmatpush3.msra.mxu0 %v443_v20 }
  0xce   :  { %1793 = vmatpush3.msra.mxu1 %v443_v20  ;;  %983 = vmatmul.mubr.f32.gmra.mxu0 %v45_v21  ;;  %v165_v20 = vld [vmem:[%s3606_s0 + $0x4b8] sm:$0xff]  ;;  %v430_v21 = vld [vmem:[%s3605_s1 + $0x400] sm:$0xff] }
  0xcf   :  { %1208 = vmatmul.mubr.f32.gmra.mxu1 %v47_v22  ;;  %987 = vmatprep.mubr.f32.mxu0 %v55_v23  ;;  %v162_v22 = vld [vmem:[%s3606_s0 + $0x4a0] sm:$0xff]  ;;  %v164_v23 = vld [vmem:[%s3606_s0 + $0x4b0] sm:$0xff] }
  0xd0   :  { %1212 = vmatprep.mubr.f32.mxu1 %v57_v24  ;;  %1701 = vmatprep.subr.mxu0 %v442_v25  ;;  %v2980_v24 = vld [vmem:[%s3607_s2] ss:$0 sm:$0xff] }
  0xd1   :  { %1778 = vmatprep.subr.mxu1 %v442_v25  ;;  %1702 = vmatpush3.msra.mxu0 %v442_v25 }
  0xd2   :  { %1794 = vmatpush3.msra.mxu1 %v442_v25  ;;  %988 = vmatmul.mubr.f32.gmra.mxu0 %v54_v26  ;;  %v172_v25 = vld [vmem:[%s3606_s0 + $0x4f0] sm:$0xff]  ;;  %v174_v26 = vld [vmem:[%s3606_s0 + $0x500] sm:$0xff] }
  0xd3   :  { %1213 = vmatmul.mubr.f32.gmra.mxu1 %v56_v27  ;;  %992 = vmatprep.mubr.f32.mxu0 %v64_v28 }
  0xd4   :  { %1217 = vmatprep.mubr.f32.mxu1 %v66_v29  ;;  %1703 = vmatprep.subr.mxu0 %v441_v30 }
  0xd5   :  { %1779 = vmatprep.subr.mxu1 %v441_v30  ;;  %1704 = vmatpush3.msra.mxu0 %v441_v30 }
  0xd6   :  { %1795 = vmatpush3.msra.mxu1 %v441_v30  ;;  %993 = vmatmul.mubr.f32.gmra.mxu0 %v63_v31  ;;  %v171_v30 = vld [vmem:[%s3606_s0 + $0x4e8] sm:$0xff]  ;;  %v173_v31 = vld [vmem:[%s3606_s0 + $0x4f8] sm:$0xff] }
  0xd7   :  { %1218 = vmatmul.mubr.f32.gmra.mxu1 %v65_v32  ;;  %997 = vmatprep.mubr.f32.mxu0 %v73_v33 }
  0xd8   :  { %1222 = vmatprep.mubr.f32.mxu1 %v75_v34  ;;  %1705 = vmatprep.subr.mxu0 %v440_v35  ;;  %v181_v34 = vld [vmem:[%s3606_s0 + $0x538] sm:$0xff] }
  0xd9   :  { %1780 = vmatprep.subr.mxu1 %v440_v35  ;;  %1706 = vmatpush3.msra.mxu0 %v440_v35 }
  0xda   :  { %1796 = vmatpush3.msra.mxu1 %v440_v35  ;;  %998 = vmatmul.mubr.f32.gmra.mxu0 %v72_v36  ;;  %v183_v35 = vld [vmem:[%s3606_s0 + $0x548] sm:$0xff] }
  0xdb   :  { %1223 = vmatmul.mubr.f32.gmra.mxu1 %v74_v37  ;;  %1002 = vmatprep.mubr.f32.mxu0 %v82_v38 }
  0xdc   :  { %1227 = vmatprep.mubr.f32.mxu1 %v84_v39  ;;  %1707 = vmatprep.subr.mxu0 %v439_v40 }
  0xdd   :  { %1781 = vmatprep.subr.mxu1 %v439_v40  ;;  %1708 = vmatpush3.msra.mxu0 %v439_v40 }
  0xde   :  { %1797 = vmatpush3.msra.mxu1 %v439_v40  ;;  %1003 = vmatmul.mubr.f32.gmra.mxu0 %v81_v41  ;;  %v180_v40 = vld [vmem:[%s3606_s0 + $0x530] sm:$0xff]  ;;  %v182_v41 = vld [vmem:[%s3606_s0 + $0x540] sm:$0xff] }
  0xdf   :  { %1228 = vmatmul.mubr.f32.gmra.mxu1 %v83_v42  ;;  %1007 = vmatprep.mubr.f32.mxu0 %v91_v43 }
  0xe0   :  { %1232 = vmatprep.mubr.f32.mxu1 %v93_v44  ;;  %1709 = vmatprep.subr.mxu0 %v438_v45  ;;  %v190_v44 = vld [vmem:[%s3606_s0 + $0x580] sm:$0xff] }
  0xe1   :  { %1782 = vmatprep.subr.mxu1 %v438_v45  ;;  %1710 = vmatpush3.msra.mxu0 %v438_v45 }
  0xe2   :  { %1798 = vmatpush3.msra.mxu1 %v438_v45  ;;  %1008 = vmatmul.mubr.f32.gmra.mxu0 %v90_v46  ;;  %v192_v45 = vld [vmem:[%s3606_s0 + $0x590] sm:$0xff] }
  0xe3   :  { %1233 = vmatmul.mubr.f32.gmra.mxu1 %v92_v47  ;;  %1012 = vmatprep.mubr.f32.mxu0 %v100_v48 }
  0xe4   :  { %1237 = vmatprep.mubr.f32.mxu1 %v102_v49  ;;  %1711 = vmatprep.subr.mxu0 %v437_v50 }
  0xe5   :  { %1783 = vmatprep.subr.mxu1 %v437_v50  ;;  %1712 = vmatpush3.msra.mxu0 %v437_v50 }
  0xe6   :  { %1799 = vmatpush3.msra.mxu1 %v437_v50  ;;  %1013 = vmatmul.mubr.f32.gmra.mxu0 %v99_v51  ;;  %v189_v50 = vld [vmem:[%s3606_s0 + $0x578] sm:$0xff]  ;;  %v191_v51 = vld [vmem:[%s3606_s0 + $0x588] sm:$0xff] }
  0xe7   :  { %1238 = vmatmul.mubr.f32.gmra.mxu1 %v101_v52  ;;  %1017 = vmatprep.mubr.f32.mxu0 %v109_v53 }
  0xe8   :  { %1242 = vmatprep.mubr.f32.mxu1 %v111_v54  ;;  %1713 = vmatprep.subr.mxu0 %v436_v55  ;;  %v199_v54 = vld [vmem:[%s3606_s0 + $0x5c8] sm:$0xff] }
  0xe9   :  { %1784 = vmatprep.subr.mxu1 %v436_v55  ;;  %1714 = vmatpush3.msra.mxu0 %v436_v55 }
  0xea   :  { %1800 = vmatpush3.msra.mxu1 %v436_v55  ;;  %1018 = vmatmul.mubr.f32.gmra.mxu0 %v108_v56  ;;  %v201_v55 = vld [vmem:[%s3606_s0 + $0x5d8] sm:$0xff] }
  0xeb   :  { %1243 = vmatmul.mubr.f32.gmra.mxu1 %v110_v57  ;;  %1022 = vmatprep.mubr.f32.mxu0 %v118_v58 }
  0xec   :  { %1247 = vmatprep.mubr.f32.mxu1 %v120_v59  ;;  %1715 = vmatprep.subr.mxu0 %v435_v60 }
  0xed   :  { %1785 = vmatprep.subr.mxu1 %v435_v60  ;;  %1716 = vmatpush3.msra.mxu0 %v435_v60 }
  0xee   :  { %1801 = vmatpush3.msra.mxu1 %v435_v60  ;;  %1023 = vmatmul.mubr.f32.gmra.mxu0 %v117_v61  ;;  %v198_v60 = vld [vmem:[%s3606_s0 + $0x5c0] sm:$0xff]  ;;  %v200_v61 = vld [vmem:[%s3606_s0 + $0x5d0] sm:$0xff] }
  0xef   :  { %1248 = vmatmul.mubr.f32.gmra.mxu1 %v119_v62  ;;  %1027 = vmatprep.mubr.f32.mxu0 %v127_v63 }
  0xf0   :  { %1252 = vmatprep.mubr.f32.mxu1 %v129_v1  ;;  %1717 = vmatprep.subr.mxu0 %v434_v2  ;;  %v208_v1 = vld [vmem:[%s3606_s0 + $0x610] sm:$0xff] }
  0xf1   :  { %1786 = vmatprep.subr.mxu1 %v434_v2  ;;  %1718 = vmatpush3.msra.mxu0 %v434_v2 }
  0xf2   :  { %1802 = vmatpush3.msra.mxu1 %v434_v2  ;;  %1028 = vmatmul.mubr.f32.gmra.mxu0 %v126_v3  ;;  %v210_v2 = vld [vmem:[%s3606_s0 + $0x620] sm:$0xff] }
  0xf3   :  { %1253 = vmatmul.mubr.f32.gmra.mxu1 %v128_v4  ;;  %1032 = vmatprep.mubr.f32.mxu0 %v136_v5 }
  0xf4   :  { %1257 = vmatprep.mubr.f32.mxu1 %v138_v6  ;;  %1719 = vmatprep.subr.mxu0 %v433_v7 }
  0xf5   :  { %1787 = vmatprep.subr.mxu1 %v433_v7  ;;  %1720 = vmatpush3.msra.mxu0 %v433_v7 }
  0xf6   :  { %1803 = vmatpush3.msra.mxu1 %v433_v7  ;;  %1033 = vmatmul.mubr.f32.gmra.mxu0 %v135_v8  ;;  %v207_v7 = vld [vmem:[%s3606_s0 + $0x608] sm:$0xff]  ;;  %v209_v8 = vld [vmem:[%s3606_s0 + $0x618] sm:$0xff] }
  0xf7   :  { %1258 = vmatmul.mubr.f32.gmra.mxu1 %v137_v9  ;;  %1037 = vmatprep.mubr.f32.mxu0 %v145_v0 }
  0xf8   :  { %1262 = vmatprep.mubr.f32.mxu1 %v147_v10  ;;  %1721 = vmatprep.subr.mxu0 %v432_v11  ;;  %v217_v10 = vld [vmem:[%s3606_s0 + $0x658] sm:$0xff] }
  0xf9   :  { %1788 = vmatprep.subr.mxu1 %v432_v11  ;;  %1722 = vmatpush3.msra.mxu0 %v432_v11 }
  0xfa   :  { %1804 = vmatpush3.msra.mxu1 %v432_v11  ;;  %1038 = vmatmul.mubr.f32.gmra.mxu0 %v144_v12  ;;  %v219_v11 = vld [vmem:[%s3606_s0 + $0x668] sm:$0xff] }
  0xfb   :  { %1263 = vmatmul.mubr.f32.gmra.mxu1 %v146_v13  ;;  %1042 = vmatprep.mubr.f32.mxu0 %v154_v14 }
  0xfc   :  { %1267 = vmatprep.mubr.f32.mxu1 %v156_v15  ;;  %1723 = vmatprep.subr.mxu0 %v431_v16 }
  0xfd   :  { %1789 = vmatprep.subr.mxu1 %v431_v16  ;;  %1724 = vmatpush3.msra.mxu0 %v431_v16 }
  0xfe   :  { %1805 = vmatpush3.msra.mxu1 %v431_v16  ;;  %1043 = vmatmul.mubr.f32.gmra.mxu0 %v153_v17  ;;  %v216_v16 = vld [vmem:[%s3606_s0 + $0x650] sm:$0xff]  ;;  %v218_v17 = vld [vmem:[%s3606_s0 + $0x660] sm:$0xff] }
  0xff   :  { %1268 = vmatmul.mubr.f32.gmra.mxu1 %v155_v18  ;;  %1047 = vmatprep.mubr.f32.mxu0 %v163_v19 }
 0x100   :  { %1272 = vmatprep.mubr.f32.mxu1 %v165_v20  ;;  %1725 = vmatprep.subr.mxu0 %v430_v21  ;;  %v226_v20 = vld [vmem:[%s3606_s0 + $0x6a0] sm:$0xff] }
 0x101   :  { %1790 = vmatprep.subr.mxu1 %v430_v21  ;;  %1726 = vmatpush3.msra.mxu0 %v430_v21 }
 0x102   :  { %1806 = vmatpush3.msra.mxu1 %v430_v21  ;;  %v519_v27 = vpop.f32.mrf.mxu0  ;;  %1048 = vmatmul.mubr.f32.gmra.mxu0 %v162_v22  ;;  %v228_v21 = vld [vmem:[%s3606_s0 + $0x6b0] sm:$0xff] }
 0x103   :  { %v744_v28 = vpop.f32.mrf.mxu1  ;;  %1273 = vmatmul.mubr.f32.gmra.mxu1 %v164_v23  ;;  %v520_v29 = vadd.f32 %v2980_v24, %v519_v27  ;;  %1052 = vmatprep.mubr.f32.mxu0 %v172_v25  ;;  %v225_v27 = vld [vmem:[%s3606_s0 + $0x698] sm:$0xff] }
 0x104   :  { %1277 = vmatprep.mubr.f32.mxu1 %v174_v26  ;;  %v521_v32 = vpop.f32.mrf.mxu0 }
 0x105   :  { %v746_v33 = vpop.f32.mrf.mxu1  ;;  %v3001_v36 = vadd.f32 %v744_v28, %v520_v29  ;;  %v227_v28 = vld [vmem:[%s3606_s0 + $0x6a8] sm:$0xff]  ;;  %v237_v32 = vld [vmem:[%s3606_s0 + $0x6f8] sm:$0xff] }
 0x106   :  { %v524_v37 = vpop.f32.mrf.mxu0  ;;  %1053 = vmatmul.mubr.f32.gmra.mxu0 %v171_v30 }
 0x107   :  { %v749_v38 = vpop.f32.mrf.mxu1  ;;  %1278 = vmatmul.mubr.f32.gmra.mxu1 %v173_v31  ;;  %v525_v39 = vadd.f32 %v2980_v24, %v524_v37  ;;  %1057 = vmatprep.mubr.f32.mxu0 %v181_v34  ;;  %v235_v31 = vld [vmem:[%s3606_s0 + $0x6e8] sm:$0xff] }
 0x108   :  { %1282 = vmatprep.mubr.f32.mxu1 %v183_v35  ;;  %v526_v42 = vpop.f32.mrf.mxu0 }
 0x109   :  { %v751_v43 = vpop.f32.mrf.mxu1  ;;  %v3016_v46 = vadd.f32 %v749_v38, %v525_v39  ;;  %v234_v38 = vld [vmem:[%s3606_s0 + $0x6e0] sm:$0xff]  ;;  %v236_v39 = vld [vmem:[%s3606_s0 + $0x6f0] sm:$0xff] }
 0x10a   :  { %v529_v47 = vpop.f32.mrf.mxu0  ;;  %1058 = vmatmul.mubr.f32.gmra.mxu0 %v180_v40  ;;  %v244_v42 = vld [vmem:[%s3606_s0 + $0x730] sm:$0xff]  ;;  %v246_v43 = vld [vmem:[%s3606_s0 + $0x740] sm:$0xff] }
 0x10b   :  { %v754_v48 = vpop.f32.mrf.mxu1  ;;  %1283 = vmatmul.mubr.f32.gmra.mxu1 %v182_v41  ;;  %v530_v49 = vadd.f32 %v2980_v24, %v529_v47  ;;  %1062 = vmatprep.mubr.f32.mxu0 %v190_v44 }
 0x10c   :  { %1287 = vmatprep.mubr.f32.mxu1 %v192_v45  ;;  %v531_v52 = vpop.f32.mrf.mxu0 }
 0x10d   :  { %v756_v53 = vpop.f32.mrf.mxu1  ;;  %v3031_v56 = vadd.f32 %v754_v48, %v530_v49  ;;  %v243_v49 = vld [vmem:[%s3606_s0 + $0x728] sm:$0xff] }
 0x10e   :  { %v534_v57 = vpop.f32.mrf.mxu0  ;;  %1063 = vmatmul.mubr.f32.gmra.mxu0 %v189_v50  ;;  %v245_v50 = vld [vmem:[%s3606_s0 + $0x738] sm:$0xff] }
 0x10f   :  { %v759_v58 = vpop.f32.mrf.mxu1  ;;  %1288 = vmatmul.mubr.f32.gmra.mxu1 %v191_v51  ;;  %v535_v59 = vadd.f32 %v2980_v24, %v534_v57  ;;  %1067 = vmatprep.mubr.f32.mxu0 %v199_v54  ;;  %v253_v53 = vld [vmem:[%s3606_s0 + $0x778] sm:$0xff]  ;;  %v255_v54 = vld [vmem:[%s3606_s0 + $0x788] sm:$0xff] }
 0x110   :  { %1292 = vmatprep.mubr.f32.mxu1 %v201_v55  ;;  %v536_v62 = vpop.f32.mrf.mxu0 }
 0x111   :  { %v761_v63 = vpop.f32.mrf.mxu1  ;;  %v3046_v3 = vadd.f32 %v759_v58, %v535_v59 }
 0x112   :  { %v539_v4 = vpop.f32.mrf.mxu0  ;;  %1068 = vmatmul.mubr.f32.gmra.mxu0 %v198_v60  ;;  %v252_v60 = vld [vmem:[%s3606_s0 + $0x770] sm:$0xff] }
 0x113   :  { %v764_v5 = vpop.f32.mrf.mxu1  ;;  %1293 = vmatmul.mubr.f32.gmra.mxu1 %v200_v61  ;;  %v540_v6 = vadd.f32 %v2980_v24, %v539_v4  ;;  %1072 = vmatprep.mubr.f32.mxu0 %v208_v1  ;;  %v254_v61 = vld [vmem:[%s3606_s0 + $0x780] sm:$0xff] }
 0x114   :  { %1297 = vmatprep.mubr.f32.mxu1 %v210_v2  ;;  %v541_v9 = vpop.f32.mrf.mxu0  ;;  %v262_v1 = vld [vmem:[%s3606_s0 + $0x7c0] sm:$0xff]  ;;  %v264_v2 = vld [vmem:[%s3606_s0 + $0x7d0] sm:$0xff] }
 0x115   :  { %v766_v0 = vpop.f32.mrf.mxu1  ;;  %v3061_v12 = vadd.f32 %v764_v5, %v540_v6  ;;  %v263_v9 = vld [vmem:[%s3606_s0 + $0x7c8] sm:$0xff] }
 0x116   :  { %v544_v13 = vpop.f32.mrf.mxu0  ;;  %1073 = vmatmul.mubr.f32.gmra.mxu0 %v207_v7 }
 0x117   :  { %v769_v14 = vpop.f32.mrf.mxu1  ;;  %1298 = vmatmul.mubr.f32.gmra.mxu1 %v209_v8  ;;  %v545_v15 = vadd.f32 %v2980_v24, %v544_v13  ;;  %1077 = vmatprep.mubr.f32.mxu0 %v217_v10  ;;  %v261_v8 = vld [vmem:[%s3606_s0 + $0x7b8] sm:$0xff] }
 0x118   :  { %1302 = vmatprep.mubr.f32.mxu1 %v219_v11  ;;  %v546_v18 = vpop.f32.mrf.mxu0  ;;  %v271_v11 = vld [vmem:[%s3606_s0 + $0x808] sm:$0xff]  ;;  %v273_v13 = vld [vmem:[%s3606_s0 + $0x818] sm:$0xff] }
 0x119   :  { %v771_v19 = vpop.f32.mrf.mxu1  ;;  %v3076_v22 = vadd.f32 %v769_v14, %v545_v15  ;;  %v270_v18 = vld [vmem:[%s3606_s0 + $0x800] sm:$0xff] }
 0x11a   :  { %v549_v23 = vpop.f32.mrf.mxu0  ;;  %1078 = vmatmul.mubr.f32.gmra.mxu0 %v216_v16  ;;  %v272_v19 = vld [vmem:[%s3606_s0 + $0x810] sm:$0xff] }
 0x11b   :  { %v774_v25 = vpop.f32.mrf.mxu1  ;;  %1303 = vmatmul.mubr.f32.gmra.mxu1 %v218_v17  ;;  %v550_v26 = vadd.f32 %v2980_v24, %v549_v23  ;;  %1082 = vmatprep.mubr.f32.mxu0 %v226_v20  ;;  %v280_v23 = vld [vmem:[%s3606_s0 + $0x850] sm:$0xff] }
 0x11c   :  { %1307 = vmatprep.mubr.f32.mxu1 %v228_v21  ;;  %v551_v29 = vpop.f32.mrf.mxu0 }
 0x11d   :  { %v776_v30 = vpop.f32.mrf.mxu1  ;;  %v3091_v33 = vadd.f32 %v774_v25, %v550_v26  ;;  %v282_v25 = vld [vmem:[%s3606_s0 + $0x860] sm:$0xff] }
 0x11e   :  { %v554_v34 = vpop.f32.mrf.mxu0  ;;  %1083 = vmatmul.mubr.f32.gmra.mxu0 %v225_v27  ;;  %v279_v30 = vld [vmem:[%s3606_s0 + $0x848] sm:$0xff] }
 0x11f   :  { %v779_v35 = vpop.f32.mrf.mxu1  ;;  %1308 = vmatmul.mubr.f32.gmra.mxu1 %v227_v28  ;;  %v555_v37 = vadd.f32 %v2980_v24, %v554_v34  ;;  %1087 = vmatprep.mubr.f32.mxu0 %v235_v31  ;;  %v281_v31 = vld [vmem:[%s3606_s0 + $0x858] sm:$0xff] }
 0x120   :  { %1312 = vmatprep.mubr.f32.mxu1 %v237_v32  ;;  %v556_v40 = vpop.f32.mrf.mxu0 }
 0x121   :  { %v781_v41 = vpop.f32.mrf.mxu1  ;;  %v3106_v44 = vadd.f32 %v779_v35, %v555_v37  ;;  %v289_v35 = vld [vmem:[%s3606_s0 + $0x898] sm:$0xff]  ;;  %v291_v37 = vld [vmem:[%s3606_s0 + $0x8a8] sm:$0xff] }
 0x122   :  { %v559_v45 = vpop.f32.mrf.mxu0  ;;  %1088 = vmatmul.mubr.f32.gmra.mxu0 %v234_v38 }
 0x123   :  { %v784_v47 = vpop.f32.mrf.mxu1  ;;  %1313 = vmatmul.mubr.f32.gmra.mxu1 %v236_v39  ;;  %v560_v48 = vadd.f32 %v2980_v24, %v559_v45  ;;  %1092 = vmatprep.mubr.f32.mxu0 %v244_v42  ;;  %v288_v42 = vld [vmem:[%s3606_s0 + $0x890] sm:$0xff] }
 0x124   :  { %1317 = vmatprep.mubr.f32.mxu1 %v246_v43  ;;  %v561_v51 = vpop.f32.mrf.mxu0  ;;  %v290_v43 = vld [vmem:[%s3606_s0 + $0x8a0] sm:$0xff] }
 0x125   :  { %v786_v52 = vpop.f32.mrf.mxu1  ;;  %v3121_v55 = vadd.f32 %v784_v47, %v560_v48  ;;  %v298_v48 = vld [vmem:[%s3606_s0 + $0x8e0] sm:$0xff] }
 0x126   :  { %v564_v57 = vpop.f32.mrf.mxu0  ;;  %1093 = vmatmul.mubr.f32.gmra.mxu0 %v243_v49  ;;  %v300_v49 = vld [vmem:[%s3606_s0 + $0x8f0] sm:$0xff] }
 0x127   :  { %v789_v58 = vpop.f32.mrf.mxu1  ;;  %1318 = vmatmul.mubr.f32.gmra.mxu1 %v245_v50  ;;  %v565_v59 = vadd.f32 %v2980_v24, %v564_v57  ;;  %1097 = vmatprep.mubr.f32.mxu0 %v253_v53  ;;  %v299_v57 = vld [vmem:[%s3606_s0 + $0x8e8] sm:$0xff] }
 0x128   :  { %1322 = vmatprep.mubr.f32.mxu1 %v255_v54  ;;  %v566_v62 = vpop.f32.mrf.mxu0  ;;  %v297_v54 = vld [vmem:[%s3606_s0 + $0x8d8] sm:$0xff] }
 0x129   :  { %v791_v63 = vpop.f32.mrf.mxu1  ;;  %v3136_v4 = vadd.f32 %v789_v58, %v565_v59 }
 0x12a   :  { %v569_v5 = vpop.f32.mrf.mxu0  ;;  %1098 = vmatmul.mubr.f32.gmra.mxu0 %v252_v60  ;;  %v22_v60 = vld [vmem:[%s3606_s0 + $0x40] sm:$0xff] }
 0x12b   :  { %v794_v6 = vpop.f32.mrf.mxu1  ;;  %1323 = vmatmul.mubr.f32.gmra.mxu1 %v254_v61  ;;  %v570_v7 = vadd.f32 %v2980_v24, %v569_v5  ;;  %1102 = vmatprep.mubr.f32.mxu0 %v262_v1  ;;  %v166_v61 = vld [vmem:[%s3606_s0 + $0x4c0] sm:$0xff]  ;;  %v31_v5 = vld [vmem:[%s3606_s0 + $0x88] sm:$0xff] }
 0x12c   :  { %1327 = vmatprep.mubr.f32.mxu1 %v264_v2  ;;  %v571_v0 = vpop.f32.mrf.mxu0 }
 0x12d   :  { %v796_v10 = vpop.f32.mrf.mxu1  ;;  %v3151_v14 = vadd.f32 %v794_v6, %v570_v7  ;;  %v175_v6 = vld [vmem:[%s3606_s0 + $0x508] sm:$0xff]  ;;  %v184_v0 = vld [vmem:[%s3606_s0 + $0x550] sm:$0xff] }
 0x12e   :  { %v574_v15 = vpop.f32.mrf.mxu0  ;;  %1103 = vmatmul.mubr.f32.gmra.mxu0 %v261_v8 }
 0x12f   :  { %v799_v16 = vpop.f32.mrf.mxu1  ;;  %1328 = vmatmul.mubr.f32.gmra.mxu1 %v263_v9  ;;  %v575_v17 = vadd.f32 %v2980_v24, %v574_v15  ;;  %1107 = vmatprep.mubr.f32.mxu0 %v271_v11  ;;  %v40_v9 = vld [vmem:[%s3606_s0 + $0xd0] sm:$0xff] }
 0x130   :  { %1332 = vmatprep.mubr.f32.mxu1 %v273_v13  ;;  %v576_v20 = vpop.f32.mrf.mxu0 }
 0x131   :  { %v801_v21 = vpop.f32.mrf.mxu1  ;;  %v3166_v26 = vadd.f32 %v799_v16, %v575_v17  ;;  %v49_v16 = vld [vmem:[%s3606_s0 + $0x118] sm:$0xff]  ;;  %v58_v20 = vld [vmem:[%s3606_s0 + $0x160] sm:$0xff] }
 0x132   :  { %v579_v27 = vpop.f32.mrf.mxu0  ;;  %1108 = vmatmul.mubr.f32.gmra.mxu0 %v270_v18  ;;  %v193_v17 = vld [vmem:[%s3606_s0 + $0x598] sm:$0xff]  ;;  %v202_v21 = vld [vmem:[%s3606_s0 + $0x5e0] sm:$0xff] }
 0x133   :  { %v804_v28 = vpop.f32.mrf.mxu1  ;;  %1333 = vmatmul.mubr.f32.gmra.mxu1 %v272_v19  ;;  %v580_v29 = vadd.f32 %v2980_v24, %v579_v27  ;;  %1112 = vmatprep.mubr.f32.mxu0 %v280_v23 }
 0x134   :  { %1337 = vmatprep.mubr.f32.mxu1 %v282_v25  ;;  %v581_v32 = vpop.f32.mrf.mxu0 }
 0x135   :  { %v806_v34 = vpop.f32.mrf.mxu1  ;;  %v3181_v38 = vadd.f32 %v804_v28, %v580_v29  ;;  %v67_v29 = vld [vmem:[%s3606_s0 + $0x1a8] sm:$0xff] }
 0x136   :  { %v584_v39 = vpop.f32.mrf.mxu0  ;;  %1113 = vmatmul.mubr.f32.gmra.mxu0 %v279_v30  ;;  %v211_v30 = vld [vmem:[%s3606_s0 + $0x628] sm:$0xff]  ;;  %v76_v34 = vld [vmem:[%s3606_s0 + $0x1f0] sm:$0xff] }
 0x137   :  { %v809_v40 = vpop.f32.mrf.mxu1  ;;  %1338 = vmatmul.mubr.f32.gmra.mxu1 %v281_v31  ;;  %v585_v41 = vadd.f32 %v2980_v24, %v584_v39  ;;  %1117 = vmatprep.mubr.f32.mxu0 %v289_v35  ;;  %v220_v35 = vld [vmem:[%s3606_s0 + $0x670] sm:$0xff] }
 0x138   :  { %1342 = vmatprep.mubr.f32.mxu1 %v291_v37  ;;  %v586_v45 = vpop.f32.mrf.mxu0 }
 0x139   :  { %v811_v47 = vpop.f32.mrf.mxu1  ;;  %v3196_v50 = vadd.f32 %v809_v40, %v585_v41 }
 0x13a   :  { %v589_v51 = vpop.f32.mrf.mxu0  ;;  %1118 = vmatmul.mubr.f32.gmra.mxu0 %v288_v42  ;;  %v85_v42 = vld [vmem:[%s3606_s0 + $0x238] sm:$0xff] }
 0x13b   :  { %v814_v52 = vpop.f32.mrf.mxu1  ;;  %1343 = vmatmul.mubr.f32.gmra.mxu1 %v290_v43  ;;  %v590_v53 = vadd.f32 %v2980_v24, %v589_v51  ;;  %1122 = vmatprep.mubr.f32.mxu0 %v298_v48  ;;  %v229_v43 = vld [vmem:[%s3606_s0 + $0x6b8] sm:$0xff]  ;;  %v94_v48 = vld [vmem:[%s3606_s0 + $0x280] sm:$0xff] }
 0x13c   :  { %1347 = vmatprep.mubr.f32.mxu1 %v300_v49  ;;  %v591_v58 = vpop.f32.mrf.mxu0  ;;  %v238_v49 = vld [vmem:[%s3606_s0 + $0x700] sm:$0xff] }
 0x13d   :  { %v816_v59 = vpop.f32.mrf.mxu1  ;;  %v3211_v62 = vadd.f32 %v814_v52, %v590_v53  ;;  %v247_v58 = vld [vmem:[%s3606_s0 + $0x748] sm:$0xff] }
 0x13e   :  { %v594_v63 = vpop.f32.mrf.mxu0  ;;  %1123 = vmatmul.mubr.f32.gmra.mxu0 %v297_v54 }
 0x13f   :  { %v819_v1 = vpop.f32.mrf.mxu1  ;;  %1348 = vmatmul.mubr.f32.gmra.mxu1 %v299_v57  ;;  %v595_v2 = vadd.f32 %v2980_v24, %v594_v63  ;;  %1727 = vmatprep.mubr.f32.mxu0 %v22_v60  ;;  %v103_v57 = vld [vmem:[%s3606_s0 + $0x2c8] sm:$0xff]  ;;  %v256_v63 = vld [vmem:[%s3606_s0 + $0x790] sm:$0xff] }
 0x140   :  { %1751 = vmatprep.mubr.f32.mxu1 %v166_v61  ;;  %v596_v7 = vpop.f32.mrf.mxu0  ;;  %v112_v61 = vld [vmem:[%s3606_s0 + $0x310] sm:$0xff] }
 0x141   :  { %v821_v8 = vpop.f32.mrf.mxu1  ;;  %v3226_v10 = vadd.f32 %v819_v1, %v595_v2  ;;  %v121_v7 = vld [vmem:[%s3606_s0 + $0x358] sm:$0xff] }
 0x142   :  { %v599_v11 = vpop.f32.mrf.mxu0  ;;  %1728 = vmatmul.mubr.f32.vlgmr.msra.gmra.mxu0 %v31_v5  ;;  %v265_v8 = vld [vmem:[%s3606_s0 + $0x7d8] sm:$0xff] }
 0x143   :  { %v824_v13 = vpop.f32.mrf.mxu1  ;;  %1752 = vmatmul.mubr.f32.vlgmr.msra.gmra.mxu1 %v175_v6  ;;  %v600_v15 = vadd.f32 %v2980_v24, %v599_v11  ;;  %1730 = vmatprep.mubr.f32.mxu0 %v40_v9  ;;  %v130_v11 = vld [vmem:[%s3606_s0 + $0x3a0] sm:$0xff] }
 0x144   :  { %1754 = vmatprep.mubr.f32.mxu1 %v184_v0  ;;  %v601_v18 = vpop.f32.mrf.mxu0 }
 0x145   :  { %v826_v19 = vpop.f32.mrf.mxu1  ;;  %v3241_v23 = vadd.f32 %v824_v13, %v600_v15  ;;  %v274_v13 = vld [vmem:[%s3606_s0 + $0x820] sm:$0xff] }
 0x146   :  { %v604_v25 = vpop.f32.mrf.mxu0  ;;  %1731 = vmatmul.mubr.f32.gmra.mxu0 %v49_v16  ;;  %v139_v19 = vld [vmem:[%s3606_s0 + $0x3e8] sm:$0xff] }
 0x147   :  { %v829_v27 = vpop.f32.mrf.mxu1  ;;  %1755 = vmatmul.mubr.f32.gmra.mxu1 %v193_v17  ;;  %v605_v28 = vadd.f32 %v2980_v24, %v604_v25  ;;  %1733 = vmatprep.mubr.f32.mxu0 %v58_v20  ;;  %v283_v20 = vld [vmem:[%s3606_s0 + $0x868] sm:$0xff] }
 0x148   :  { %1757 = vmatprep.mubr.f32.mxu1 %v202_v21  ;;  %v606_v31 = vpop.f32.mrf.mxu0 }
 0x149   :  { %v831_v32 = vpop.f32.mrf.mxu1  ;;  %v3256_v37 = vadd.f32 %v829_v27, %v605_v28  ;;  %v148_v27 = vld [vmem:[%s3606_s0 + $0x430] sm:$0xff] }
 0x14a   :  { %v609_v39 = vpop.f32.mrf.mxu0  ;;  %1734 = vmatmul.mubr.f32.gmra.mxu0 %v67_v29  ;;  %v292_v28 = vld [vmem:[%s3606_s0 + $0x8b0] sm:$0xff] }
 0x14b   :  { %v834_v40 = vpop.f32.mrf.mxu1  ;;  %1758 = vmatmul.mubr.f32.gmra.mxu1 %v211_v30  ;;  %v610_v41 = vadd.f32 %v2980_v24, %v609_v39  ;;  %1736 = vmatprep.mubr.f32.mxu0 %v76_v34  ;;  %v157_v34 = vld [vmem:[%s3606_s0 + $0x478] sm:$0xff] }
 0x14c   :  { %1760 = vmatprep.mubr.f32.mxu1 %v220_v35  ;;  %v611_v45 = vpop.f32.mrf.mxu0  ;;  %v301_v35 = vld [vmem:[%s3606_s0 + $0x8f8] sm:$0xff] }
 0x14d   :  { %v836_v47 = vpop.f32.mrf.mxu1  ;;  %v3271_v51 = vadd.f32 %v834_v40, %v610_v41 }
 0x14e   :  { %v614_v52 = vpop.f32.mrf.mxu0  ;;  %1737 = vmatmul.mubr.f32.gmra.mxu0 %v85_v42 }
 0x14f   :  { %v839_v53 = vpop.f32.mrf.mxu1  ;;  %1761 = vmatmul.mubr.f32.gmra.mxu1 %v229_v43  ;;  %v615_v54 = vadd.f32 %v2980_v24, %v614_v52  ;;  %1739 = vmatprep.mubr.f32.mxu0 %v94_v48 }
 0x150   :  { %1763 = vmatprep.mubr.f32.mxu1 %v238_v49  ;;  %v616_v59 = vpop.f32.mrf.mxu0 }
 0x151   :  { %v841_v60 = vpop.f32.mrf.mxu1  ;;  %v3286_v1 = vadd.f32 %v839_v53, %v615_v54 }
 0x152   :  { %v619_v2 = vpop.f32.mrf.mxu0  ;;  %1740 = vmatmul.mubr.f32.gmra.mxu0 %v103_v57 }
 0x153   :  { %v844_v5 = vpop.f32.mrf.mxu1  ;;  %1764 = vmatmul.mubr.f32.gmra.mxu1 %v247_v58  ;;  %v620_v6 = vadd.f32 %v2980_v24, %v619_v2  ;;  %1742 = vmatprep.mubr.f32.mxu0 %v112_v61 }
 0x154   :  { %1766 = vmatprep.mubr.f32.mxu1 %v256_v63  ;;  %v621_v9 = vpop.f32.mrf.mxu0 }
 0x155   :  { %v846_v0 = vpop.f32.mrf.mxu1  ;;  %v3301_v15 = vadd.f32 %v844_v5, %v620_v6 }
 0x156   :  { %v624_v16 = vpop.f32.mrf.mxu0  ;;  %1743 = vmatmul.mubr.f32.gmra.mxu0 %v121_v7 }
 0x157   :  { %v849_v17 = vpop.f32.mrf.mxu1  ;;  %1767 = vmatmul.mubr.f32.gmra.mxu1 %v265_v8  ;;  %v625_v18 = vadd.f32 %v2980_v24, %v624_v16  ;;  %1745 = vmatprep.mubr.f32.mxu0 %v130_v11 }
 0x158   :  { %1769 = vmatprep.mubr.f32.mxu1 %v274_v13  ;;  %v626_v21 = vpop.f32.mrf.mxu0 }
 0x159   :  { %v851_v25 = vpop.f32.mrf.mxu1  ;;  %v3316_v29 = vadd.f32 %v849_v17, %v625_v18 }
 0x15a   :  { %v629_v30 = vpop.f32.mrf.mxu0  ;;  %1746 = vmatmul.mubr.f32.gmra.mxu0 %v139_v19 }
 0x15b   :  { %v854_v31 = vpop.f32.mrf.mxu1  ;;  %1770 = vmatmul.mubr.f32.gmra.mxu1 %v283_v20  ;;  %v630_v32 = vadd.f32 %v2980_v24, %v629_v30  ;;  %1748 = vmatprep.mubr.f32.mxu0 %v148_v27 }
 0x15c   :  { %1772 = vmatprep.mubr.f32.mxu1 %v292_v28  ;;  %v631_v39 = vpop.f32.mrf.mxu0 }
 0x15d   :  { %v856_v40 = vpop.f32.mrf.mxu1  ;;  %v3325_v41 = vadd.f32 %v854_v31, %v630_v32 }
 0x15e   :  { %v634_v42 = vpop.f32.mrf.mxu0  ;;  %1749 = vmatmul.mubr.f32.gmra.mxu0 %v157_v34 }
 0x15f   :  { %v859_v43 = vpop.f32.mrf.mxu1  ;;  %1773 = vmatmul.mubr.f32.gmra.mxu1 %v301_v35  ;;  %v635_v45 = vadd.f32 %v2980_v24, %v634_v42 }
 0x160   :  { %v636_v47 = vpop.f32.mrf.mxu0 }
 0x161   :  { %v861_v48 = vpop.f32.mrf.mxu1  ;;  %v3328_v49 = vadd.f32 %v859_v43, %v635_v45 }
 0x162   :  { %v639_v52 = vpop.f32.mrf.mxu0 }
 0x163   :  { %v864_v53 = vpop.f32.mrf.mxu1  ;;  %v640_v54 = vadd.f32 %v2980_v24, %v639_v52 }
 0x164   :  { %v641_v57 = vpop.f32.mrf.mxu0 }
 0x165   :  { %v866_v58 = vpop.f32.mrf.mxu1  ;;  %v3331_v59 = vadd.f32 %v864_v53, %v640_v54 }
 0x166   :  { %v644_v60 = vpop.f32.mrf.mxu0 }
 0x167   :  { %v869_v61 = vpop.f32.mrf.mxu1  ;;  %v645_v63 = vadd.f32 %v2980_v24, %v644_v60 }
 0x168   :  { %v646_v2 = vpop.f32.mrf.mxu0 }
 0x169   :  { %v871_v5 = vpop.f32.mrf.mxu1  ;;  %v3334_v6 = vadd.f32 %v869_v61, %v645_v63 }
 0x16a   :  { %v649_v7 = vpop.f32.mrf.mxu0 }
 0x16b   :  { %v874_v8 = vpop.f32.mrf.mxu1  ;;  %v650_v9 = vadd.f32 %v2980_v24, %v649_v7 }
 0x16c   :  { %v651_v0 = vpop.f32.mrf.mxu0 }
 0x16d   :  { %v876_v11 = vpop.f32.mrf.mxu1  ;;  %v3337_v13 = vadd.f32 %v874_v8, %v650_v9 }
 0x16e   :  { %v654_v16 = vpop.f32.mrf.mxu0 }
 0x16f   :  { %v879_v17 = vpop.f32.mrf.mxu1  ;;  %v655_v18 = vadd.f32 %v2980_v24, %v654_v16 }
 0x170   :  { %v656_v19 = vpop.f32.mrf.mxu0 }
 0x171   :  { %v881_v20 = vpop.f32.mrf.mxu1  ;;  %v3340_v21 = vadd.f32 %v879_v17, %v655_v18 }
 0x172   :  { %v659_v25 = vpop.f32.mrf.mxu0 }
 0x173   :  { %v884_v27 = vpop.f32.mrf.mxu1  ;;  %v660_v28 = vadd.f32 %v2980_v24, %v659_v25 }
 0x174   :  { %v661_v30 = vpop.f32.mrf.mxu0 }
 0x175   :  { %v886_v31 = vpop.f32.mrf.mxu1  ;;  %v3343_v32 = vadd.f32 %v884_v27, %v660_v28 }
 0x176   :  { %v664_v34 = vpop.f32.mrf.mxu0 }
 0x177   :  { %v889_v35 = vpop.f32.mrf.mxu1  ;;  %v665_v39 = vadd.f32 %v2980_v24, %v664_v34 }
 0x178   :  { %v666_v40 = vpop.f32.mrf.mxu0 }
 0x179   :  { %v891_v42 = vpop.f32.mrf.mxu1  ;;  %v3346_v43 = vadd.f32 %v889_v35, %v665_v39 }
 0x17a   :  { %v669_v45 = vpop.f32.mrf.mxu0 }
 0x17b   :  { %v894_v47 = vpop.f32.mrf.mxu1  ;;  %v670_v48 = vadd.f32 %v2980_v24, %v669_v45 }
 0x17c   :  { %v671_v52 = vpop.f32.mrf.mxu0 }
 0x17d   :  { %v896_v53 = vpop.f32.mrf.mxu1  ;;  %v3349_v54 = vadd.f32 %v894_v47, %v670_v48 }
 0x17e   :  { %v674_v57 = vpop.f32.mrf.mxu0 }
 0x17f   :  { %3609 = vst [vmem:[#allocation2_spill] sm:$0xff] %v3349_v54  ;;  %v899_v58 = vpop.f32.mrf.mxu1  ;;  %v675_v60 = vadd.f32 %v2980_v24, %v674_v57 }
 0x180   :  { %v676_v61 = vpop.f32.mrf.mxu0 }
 0x181   :  { %v901_v63 = vpop.f32.mrf.mxu1  ;;  %v3352_v2 = vadd.f32 %v899_v58, %v675_v60 }
 0x182   :  { %v969_v5 = vpop.f32.mrf.mxu0 }
 0x183   :  { %3610 = vst [vmem:[#allocation3_spill] sm:$0xff] %v3352_v2  ;;  %v1194_v7 = vpop.f32.mrf.mxu1  ;;  %v970_v8 = vadd.f32 %v969_v5, %v3001_v36 }
 0x184   :  { %v971_v9 = vpop.f32.mrf.mxu0 }
 0x185   :  { %v1196_v0 = vpop.f32.mrf.mxu1  ;;  %v3355_v11 = vadd.f32 %v1194_v7, %v970_v8 }
 0x186   :  { %v974_v16 = vpop.f32.mrf.mxu0 }
 0x187   :  { %v1199_v17 = vpop.f32.mrf.mxu1  ;;  %v975_v18 = vadd.f32 %v974_v16, %v3016_v46 }
 0x188   :  { %v976_v19 = vpop.f32.mrf.mxu0 }
 0x189   :  { %v1201_v20 = vpop.f32.mrf.mxu1  ;;  %v3358_v25 = vadd.f32 %v1199_v17, %v975_v18 }
 0x18a   :  { %v979_v24 = vpop.f32.mrf.mxu0 }
 0x18b   :  { %v1204_v27 = vpop.f32.mrf.mxu1  ;;  %v980_v28 = vadd.f32 %v979_v24, %v3031_v56 }
 0x18c   :  { %v981_v30 = vpop.f32.mrf.mxu0 }
 0x18d   :  { %v1206_v31 = vpop.f32.mrf.mxu1  ;;  %v3361_v34 = vadd.f32 %v1204_v27, %v980_v28 }
 0x18e   :  { %v984_v36 = vpop.f32.mrf.mxu0 }
 0x18f   :  { %v1209_v35 = vpop.f32.mrf.mxu1  ;;  %v985_v39 = vadd.f32 %v984_v36, %v3046_v3 }
 0x190   :  { %v986_v40 = vpop.f32.mrf.mxu0 }
 0x191   :  { %v1211_v42 = vpop.f32.mrf.mxu1  ;;  %v3364_v45 = vadd.f32 %v1209_v35, %v985_v39 }
 0x192   :  { %v989_v46 = vpop.f32.mrf.mxu0 }
 0x193   :  { %v1214_v47 = vpop.f32.mrf.mxu1  ;;  %v990_v48 = vadd.f32 %v989_v46, %v3061_v12 }
 0x194   :  { %v991_v52 = vpop.f32.mrf.mxu0 }
 0x195   :  { %v1216_v53 = vpop.f32.mrf.mxu1  ;;  %v3367_v57 = vadd.f32 %v1214_v47, %v990_v48 }
 0x196   :  { %v994_v56 = vpop.f32.mrf.mxu0 }
 0x197   :  { %v1219_v58 = vpop.f32.mrf.mxu1  ;;  %v995_v60 = vadd.f32 %v994_v56, %v3076_v22 }
 0x198   :  { %v996_v61 = vpop.f32.mrf.mxu0 }
 0x199   :  { %v1221_v63 = vpop.f32.mrf.mxu1  ;;  %v3370_v5 = vadd.f32 %v1219_v58, %v995_v60 }
 0x19a   :  { %v999_v3 = vpop.f32.mrf.mxu0 }
 0x19b   :  { %v1224_v7 = vpop.f32.mrf.mxu1  ;;  %v1000_v8 = vadd.f32 %v999_v3, %v3091_v33 }
 0x19c   :  { %v1001_v9 = vpop.f32.mrf.mxu0 }
 0x19d   :  { %v1226_v0 = vpop.f32.mrf.mxu1  ;;  %v3373_v16 = vadd.f32 %v1224_v7, %v1000_v8 }
 0x19e   :  { %v1004_v12 = vpop.f32.mrf.mxu0 }
 0x19f   :  { %v1229_v17 = vpop.f32.mrf.mxu1  ;;  %v1005_v18 = vadd.f32 %v1004_v12, %v3106_v44 }
 0x1a0   :  { %v1006_v19 = vpop.f32.mrf.mxu0 }
 0x1a1   :  { %v1231_v20 = vpop.f32.mrf.mxu1  ;;  %v3376_v24 = vadd.f32 %v1229_v17, %v1005_v18 }
 0x1a2   :  { %v1009_v22 = vpop.f32.mrf.mxu0 }
 0x1a3   :  { %v1234_v27 = vpop.f32.mrf.mxu1  ;;  %v1010_v28 = vadd.f32 %v1009_v22, %v3121_v55 }
 0x1a4   :  { %v1011_v30 = vpop.f32.mrf.mxu0 }
 0x1a5   :  { %v1236_v31 = vpop.f32.mrf.mxu1  ;;  %v3379_v36 = vadd.f32 %v1234_v27, %v1010_v28 }
 0x1a6   :  { %v1014_v33 = vpop.f32.mrf.mxu0 }
 0x1a7   :  { %v1239_v35 = vpop.f32.mrf.mxu1  ;;  %v1015_v39 = vadd.f32 %v1014_v33, %v3136_v4 }
 0x1a8   :  { %v1016_v40 = vpop.f32.mrf.mxu0 }
 0x1a9   :  { %v1241_v42 = vpop.f32.mrf.mxu1  ;;  %v3382_v46 = vadd.f32 %v1239_v35, %v1015_v39 }
 0x1aa   :  { %v1019_v44 = vpop.f32.mrf.mxu0 }
 0x1ab   :  { %v1244_v47 = vpop.f32.mrf.mxu1  ;;  %v1020_v48 = vadd.f32 %v1019_v44, %v3151_v14 }
 0x1ac   :  { %v1021_v52 = vpop.f32.mrf.mxu0 }
 0x1ad   :  { %v1246_v53 = vpop.f32.mrf.mxu1  ;;  %v3385_v56 = vadd.f32 %v1244_v47, %v1020_v48 }
 0x1ae   :  { %v1024_v55 = vpop.f32.mrf.mxu0 }
 0x1af   :  { %3611 = vst [vmem:[#allocation4_spill] sm:$0xff] %v3385_v56  ;;  %v1249_v58 = vpop.f32.mrf.mxu1  ;;  %v1025_v60 = vadd.f32 %v1024_v55, %v3166_v26 }
 0x1b0   :  { %v1026_v61 = vpop.f32.mrf.mxu0 }
 0x1b1   :  { %v1251_v63 = vpop.f32.mrf.mxu1  ;;  %v3388_v3 = vadd.f32 %v1249_v58, %v1025_v60 }
 0x1b2   :  { %v1029_v4 = vpop.f32.mrf.mxu0 }
 0x1b3   :  { %v1254_v7 = vpop.f32.mrf.mxu1  ;;  %v1030_v8 = vadd.f32 %v1029_v4, %v3181_v38 }
 0x1b4   :  { %v1031_v9 = vpop.f32.mrf.mxu0 }
 0x1b5   :  { %v1256_v0 = vpop.f32.mrf.mxu1  ;;  %v3391_v12 = vadd.f32 %v1254_v7, %v1030_v8 }
 0x1b6   :  { %v1034_v14 = vpop.f32.mrf.mxu0 }
 0x1b7   :  { %3612 = vst [vmem:[#allocation5_spill] sm:$0xff] %v3391_v12  ;;  %v1259_v17 = vpop.f32.mrf.mxu1  ;;  %v1035_v18 = vadd.f32 %v1034_v14, %v3196_v50 }
 0x1b8   :  { %v1036_v19 = vpop.f32.mrf.mxu0 }
 0x1b9   :  { %v1261_v20 = vpop.f32.mrf.mxu1  ;;  %v3394_v22 = vadd.f32 %v1259_v17, %v1035_v18 }
 0x1ba   :  { %v1039_v26 = vpop.f32.mrf.mxu0 }
 0x1bb   :  { %3613 = vst [vmem:[#allocation6_spill] sm:$0xff] %v3394_v22  ;;  %v1264_v27 = vpop.f32.mrf.mxu1  ;;  %v1040_v28 = vadd.f32 %v1039_v26, %v3211_v62 }
 0x1bc   :  { %v1041_v30 = vpop.f32.mrf.mxu0 }
 0x1bd   :  { %v1266_v31 = vpop.f32.mrf.mxu1  ;;  %v3397_v33 = vadd.f32 %v1264_v27, %v1040_v28 }
 0x1be   :  { %v1044_v38 = vpop.f32.mrf.mxu0 }
 0x1bf   :  { %3614 = vst [vmem:[#allocation7_spill] sm:$0xff] %v3397_v33  ;;  %v1269_v35 = vpop.f32.mrf.mxu1  ;;  %v1045_v39 = vadd.f32 %v1044_v38, %v3226_v10 }
 0x1c0   :  { %v1046_v40 = vpop.f32.mrf.mxu0 }
 0x1c1   :  { %v1271_v42 = vpop.f32.mrf.mxu1  ;;  %v3400_v44 = vadd.f32 %v1269_v35, %v1045_v39 }
 0x1c2   :  { %v1049_v50 = vpop.f32.mrf.mxu0 }
 0x1c3   :  { %3615 = vst [vmem:[#allocation8_spill] sm:$0xff] %v3400_v44  ;;  %v1274_v47 = vpop.f32.mrf.mxu1  ;;  %v1050_v48 = vadd.f32 %v1049_v50, %v3241_v23 }
 0x1c4   :  { %v1051_v52 = vpop.f32.mrf.mxu0 }
 0x1c5   :  { %v1276_v53 = vpop.f32.mrf.mxu1  ;;  %v3403_v55 = vadd.f32 %v1274_v47, %v1050_v48 }
 0x1c6   :  { %v1054_v62 = vpop.f32.mrf.mxu0 }
 0x1c7   :  { %v1279_v58 = vpop.f32.mrf.mxu1 }
 0x1c8   :  { %v1056_v60 = vpop.f32.mrf.mxu0 }
 0x1c9   :  { %v1281_v61 = vpop.f32.mrf.mxu1 }
 0x1ca   :  { %v1059_v63 = vpop.f32.mrf.mxu0 }
 0x1cb   :  { %v3405_v4 = vpop.f32.mrf.mxu1 }
 0x1cc   :  { %v1061_v10 = vpop.f32.mrf.mxu0 }
 0x1cd   :  { %v1286_v7 = vpop.f32.mrf.mxu1 }
 0x1ce   :  { %v1064_v8 = vpop.f32.mrf.mxu0 }
 0x1cf   :  { %v1289_v9 = vpop.f32.mrf.mxu1 }
 0x1d0   :  { %v1066_v0 = vpop.f32.mrf.mxu0 }
 0x1d1   :  { %v1291_v14 = vpop.f32.mrf.mxu1 }
 0x1d2   :  { %v3407_v17 = vpop.f32.mrf.mxu0 }
 0x1d3   :  { %v3409_v23 = vpop.f32.mrf.mxu1 }
 0x1d4   :  { %v1071_v18 = vpop.f32.mrf.mxu0 }
 0x1d5   :  { %v1296_v19 = vpop.f32.mrf.mxu1 }
 0x1d6   :  { %v1074_v20 = vpop.f32.mrf.mxu0 }
 0x1d7   :  { %v3411_v26 = vpop.f32.mrf.mxu1 }
 0x1d8   :  { %v1076_v27 = vpop.f32.mrf.mxu0 }
 0x1d9   :  { %v1301_v28 = vpop.f32.mrf.mxu1 }
 0x1da   :  { %v3413_v30 = vpop.f32.mrf.mxu0 }
 0x1db   :  { %v3415_v31 = vpop.f32.mrf.mxu1 }
 0x1dc   :  { %v1081_v38 = vpop.f32.mrf.mxu0 }
 0x1dd   :  { %v1306_v35 = vpop.f32.mrf.mxu1 }
 0x1de   :  { %v3417_v39 = vpop.f32.mrf.mxu0 }
 0x1df   :  { %v3419_v40 = vpop.f32.mrf.mxu1 }
 0x1e0   :  { %v1086_v42 = vpop.f32.mrf.mxu0 }
 0x1e1   :  { %v1311_v50 = vpop.f32.mrf.mxu1 }
 0x1e2   :  { %v3421_v47 = vpop.f32.mrf.mxu0 }
 0x1e3   :  { %v3423_v48 = vpop.f32.mrf.mxu1 }
 0x1e4   :  { %v1091_v52 = vpop.f32.mrf.mxu0 }
 0x1e5   :  { %v1316_v53 = vpop.f32.mrf.mxu1 }
 0x1e6   :  { %v3425_v60 = vpop.f32.mrf.mxu0 }
 0x1e7   :  { %v3427_v61 = vpop.f32.mrf.mxu1 }
 0x1e8   :  { %v1096_v10 = vpop.f32.mrf.mxu0 }
 0x1e9   :  { %v1321_v7 = vpop.f32.mrf.mxu1 }
 0x1ea   :  { %v3429_v0 = vpop.f32.mrf.mxu0 }
 0x1eb   :  { %v3431_v14 = vpop.f32.mrf.mxu1 }
 0x1ec   :  { %v1101_v18 = vpop.f32.mrf.mxu0 }
 0x1ed   :  { %v1326_v19 = vpop.f32.mrf.mxu1 }
 0x1ee   :  { %v3433_v27 = vpop.f32.mrf.mxu0 }
 0x1ef   :  { %v3435_v28 = vpop.f32.mrf.mxu1 }
 0x1f0   :  { %v1106_v38 = vpop.f32.mrf.mxu0 }
 0x1f1   :  { %v1331_v35 = vpop.f32.mrf.mxu1  ;;  %v1055_v38 = vadd.f32 %v1054_v62, %v3256_v37 }
 0x1f2   :  { %v3437_v42 = vpop.f32.mrf.mxu0 }
 0x1f3   :  { %v3439_v50 = vpop.f32.mrf.mxu1  ;;  %v1280_v56 = vadd.f32 %v1279_v58, %v1055_v38 }
 0x1f4   :  { %3616 = vst [vmem:[#allocation9_spill] sm:$0xff] %v3439_v50  ;;  %v1111_v52 = vpop.f32.mrf.mxu0 }
 0x1f5   :  { %v1336_v53 = vpop.f32.mrf.mxu1  ;;  %v1065_v52 = vadd.f32 %v1064_v8, %v3286_v1 }
 0x1f6   :  { %v3441_v10 = vpop.f32.mrf.mxu0 }
 0x1f7   :  { %v3443_v7 = vpop.f32.mrf.mxu1 }
 0x1f8   :  { %3617 = vst [vmem:[#allocation10_spill] sm:$0xff] %v3443_v7  ;;  %v1116_v33 = vpop.f32.mrf.mxu0 }
 0x1f9   :  { %v1341_v44 = vpop.f32.mrf.mxu1  ;;  %v1060_v33 = vadd.f32 %v1059_v63, %v3271_v51  ;;  %v1070_v51 = vadd.f32 %v3407_v17, %v3301_v15  ;;  %v1085_v15 = vadd.f32 %v3417_v39, %v3328_v49  ;;  %v1080_v49 = vadd.f32 %v3413_v30, %v3325_v41 }
 0x1fa   :  { %v3445_v18 = vpop.f32.mrf.mxu0  ;;  %v1095_v41 = vadd.f32 %v3425_v60, %v3334_v6  ;;  %v1090_v6 = vadd.f32 %v3421_v47, %v3331_v59  ;;  %v1105_v59 = vadd.f32 %v3433_v27, %v3340_v21  ;;  %v1100_v21 = vadd.f32 %v3429_v0, %v3337_v13 }
 0x1fb   :  { %3618 = vst [vmem:[#allocation11_spill] sm:$0xff] %v3445_v18  ;;  %v3447_v19 = vpop.f32.mrf.mxu1  ;;  %v1285_v58 = vadd.f32 %v3405_v4, %v1060_v33  ;;  %v1115_v13 = vadd.f32 %v3441_v10, %v3346_v43  ;;  %v1110_v43 = vadd.f32 %v3437_v42, %v3343_v32 }
 0x1fc   :  { %3619 = vst [vmem:[#allocation12_spill] sm:$0xff] %v3447_v19  ;;  %v1121_v12 = vpop.f32.mrf.mxu0 }
 0x1fd   :  { %v1346_v22 = vpop.f32.mrf.mxu1  ;;  %v1290_v12 = vadd.f32 %v1289_v9, %v1065_v52 }
 0x1fe   :  { %v3450_v35 = vpop.f32.mrf.mxu0  ;;  %v1075_v22 = vadd.f32 %v1074_v20, %v3316_v29  ;;  %v1295_v20 = vadd.f32 %v3409_v23, %v1070_v51  ;;  %v1310_v23 = vadd.f32 %v3419_v40, %v1085_v15  ;;  %v1305_v40 = vadd.f32 %v3415_v31, %v1080_v49 }
 0x1ff   :  { %3620 = vst [vmem:[#allocation13_spill] sm:$0xff] %v3450_v35  ;;  %v3452_v54 = vpop.f32.mrf.mxu1  ;;  %v1320_v31 = vadd.f32 %v3427_v61, %v1095_v41  ;;  %v1315_v61 = vadd.f32 %v3423_v48, %v1090_v6  ;;  %v1330_v48 = vadd.f32 %v3435_v28, %v1105_v59  ;;  %v1325_v28 = vadd.f32 %v3431_v14, %v1100_v21 }
 0x200   :  { %3621 = vst [vmem:[#allocation14_spill] sm:$0xff] %v3452_v54  ;;  %v1126_v53 = vpop.f32.mrf.mxu0 }
 0x201   :  { %v1351_v50 = vpop.f32.mrf.mxu1 }
 0x202   :  { %v1729_v44 = vpop.f32.mrf.mxu0 }
 0x203   :  { %v1753_v2 = vpop.f32.mrf.mxu1  ;;  %v1425_v18 = vadd.f32 %v1729_v44, %v3358_v25  ;;  %v3632_v59 = vld [vmem:[#allocation12_spill] sm:$0xff] }
 0x204   :  { %v1505_v19 = vadd.f32 %v1753_v2, %v1280_v56  ;;  %v1419_v37 = vpop.f32.mrf.mxu0  ;;  %v1300_v56 = vadd.f32 %v3411_v26, %v1075_v22 }
 0x205   :  { %v1499_v62 = vpop.f32.mrf.mxu1  ;;  %v1579_v35 = vmax.f32 %v1425_v18, 0.0  ;;  %v1420_v54 = vadd.f32 %v1419_v37, %v3355_v11 }
 0x206   :  { %v1595_v7 = vmax.f32 %v1505_v19, 0.0  ;;  %v1500_v1 = vadd.f32 %v1499_v62, %v3403_v55  ;;  %v1732_v63 = vpop.f32.mrf.mxu0 }
 0x207   :  { %v1756_v8 = vpop.f32.mrf.mxu1  ;;  %1611 = vst [vmem:[%s3608_s3 + $0x8] sm:$0xff] %v1579_v35  ;;  %v1578_v29 = vmax.f32 %v1420_v54, 0.0  ;;  %v1435_v11 = vadd.f32 %v1732_v63, %v3364_v45 }
 0x208   :  { %1627 = vst [vmem:[%s3608_s3 + $0x88] sm:$0xff] %v1595_v7  ;;  %v1594_v2 = vmax.f32 %v1500_v1, 0.0  ;;  %v1515_v25 = vadd.f32 %v1756_v8, %v1290_v12  ;;  %v1429_v55 = vpop.f32.mrf.mxu0 }
 0x209   :  { %v1509_v4 = vpop.f32.mrf.mxu1  ;;  %1610 = vst [vmem:[%s3608_s3] sm:$0xff] %v1578_v29  ;;  %v1581_v54 = vmax.f32 %v1435_v11, 0.0  ;;  %v1430_v45 = vadd.f32 %v1429_v55, %v3361_v34 }
 0x20a   :  { %1626 = vst [vmem:[%s3608_s3 + $0x80] sm:$0xff] %v1594_v2  ;;  %v1597_v9 = vmax.f32 %v1515_v25, 0.0  ;;  %v1510_v17 = vadd.f32 %v1509_v4, %v1285_v58  ;;  %v1735_v26 = vpop.f32.mrf.mxu0 }
 0x20b   :  { %v1759_v39 = vpop.f32.mrf.mxu1  ;;  %1613 = vst [vmem:[%s3608_s3 + $0x18] sm:$0xff] %v1581_v54  ;;  %v1580_v50 = vmax.f32 %v1430_v45, 0.0  ;;  %v1445_v34 = vadd.f32 %v1735_v26, %v3370_v5  ;;  %v3622_v54 = vld [vmem:[#allocation10_spill] sm:$0xff]  ;;  %v3624_v45 = vld [vmem:[#allocation13_spill] sm:$0xff]  ;;  %v3625_v26 = vld [vmem:[#allocation4_spill] sm:$0xff] }
 0x20c   :  { %1629 = vst [vmem:[%s3608_s3 + $0x98] sm:$0xff] %v1597_v9  ;;  %v1596_v7 = vmax.f32 %v1510_v17, 0.0  ;;  %v1525_v18 = vadd.f32 %v1759_v39, %v1300_v56  ;;  %v1439_v30 = vpop.f32.mrf.mxu0  ;;  %v1340_v14 = vadd.f32 %v3622_v54, %v1115_v13  ;;  %v3623_v9 = vld [vmem:[#allocation3_spill] sm:$0xff] }
 0x20d   :  { %v1519_v19 = vpop.f32.mrf.mxu1  ;;  %1612 = vst [vmem:[%s3608_s3 + $0x10] sm:$0xff] %v1580_v50  ;;  %v1583_v38 = vmax.f32 %v1445_v34, 0.0  ;;  %v1440_v5 = vadd.f32 %v1439_v30, %v3367_v57  ;;  %v1125_v32 = vadd.f32 %v3624_v45, %v3623_v9  ;;  %v3626_v50 = vld [vmem:[#allocation9_spill] sm:$0xff]  ;;  %v3627_v34 = vld [vmem:[#allocation2_spill] sm:$0xff] }
 0x20e   :  { %1628 = vst [vmem:[%s3608_s3 + $0x90] sm:$0xff] %v1596_v7  ;;  %v1599_v35 = vmax.f32 %v1525_v18, 0.0  ;;  %v1520_v52 = vadd.f32 %v1519_v19, %v1295_v20  ;;  %v1738_v60 = vpop.f32.mrf.mxu0  ;;  %v1335_v7 = vadd.f32 %v3626_v50, %v1110_v43  ;;  %v3628_v18 = vld [vmem:[#allocation11_spill] sm:$0xff] }
 0x20f   :  { %v1762_v53 = vpop.f32.mrf.mxu1  ;;  %1615 = vst [vmem:[%s3608_s3 + $0x28] sm:$0xff] %v1583_v38  ;;  %v1582_v33 = vmax.f32 %v1440_v5, 0.0  ;;  %v1455_v57 = vadd.f32 %v1738_v60, %v3376_v24 }
 0x210   :  { %1631 = vst [vmem:[%s3608_s3 + $0xa8] sm:$0xff] %v1599_v35  ;;  %v1598_v44 = vmax.f32 %v1520_v52, 0.0  ;;  %v1535_v12 = vadd.f32 %v1762_v53, %v1310_v23  ;;  %v1449_v47 = vpop.f32.mrf.mxu0  ;;  %v1120_v23 = vadd.f32 %v3628_v18, %v3627_v34  ;;  %v3629_v35 = vld [vmem:[#allocation6_spill] sm:$0xff] }
 0x211   :  { %v1529_v22 = vpop.f32.mrf.mxu1  ;;  %1614 = vst [vmem:[%s3608_s3 + $0x20] sm:$0xff] %v1582_v33  ;;  %v1585_v37 = vmax.f32 %v1455_v57, 0.0  ;;  %v1450_v24 = vadd.f32 %v1449_v47, %v3373_v16  ;;  %v3631_v57 = vld [vmem:[#allocation5_spill] sm:$0xff] }
 0x212   :  { %1630 = vst [vmem:[%s3608_s3 + $0xa0] sm:$0xff] %v1598_v44  ;;  %v1601_v62 = vmax.f32 %v1535_v12, 0.0  ;;  %v1530_v1 = vadd.f32 %v1529_v22, %v1305_v40  ;;  %v1741_v27 = vpop.f32.mrf.mxu0  ;;  %v3630_v40 = vld [vmem:[#allocation14_spill] sm:$0xff]  ;;  %v1345_v47 = vadd.f32 %v3632_v59, %v1120_v23 }
 0x213   :  { %v1765_v58 = vpop.f32.mrf.mxu1  ;;  %1617 = vst [vmem:[%s3608_s3 + $0x38] sm:$0xff] %v1585_v37  ;;  %v1584_v51 = vmax.f32 %v1450_v24, 0.0  ;;  %v1465_v16 = vadd.f32 %v1741_v27, %v3382_v46  ;;  %v1350_v6 = vadd.f32 %v3630_v40, %v1125_v32 }
 0x214   :  { %1633 = vst [vmem:[%s3608_s3 + $0xb8] sm:$0xff] %v1601_v62  ;;  %v1600_v63 = vmax.f32 %v1530_v1, 0.0  ;;  %v1545_v8 = vadd.f32 %v1765_v58, %v1320_v31  ;;  %v1459_v0 = vpop.f32.mrf.mxu0  ;;  %v3633_v1 = vld [vmem:[#allocation8_spill] sm:$0xff] }
 0x215   :  { %v1539_v29 = vpop.f32.mrf.mxu1  ;;  %1616 = vst [vmem:[%s3608_s3 + $0x30] sm:$0xff] %v1584_v51  ;;  %v1587_v2 = vmax.f32 %v1465_v16, 0.0  ;;  %v1460_v46 = vadd.f32 %v1459_v0, %v3379_v36  ;;  %v3634_v16 = vld [vmem:[#allocation7_spill] sm:$0xff] }
 0x216   :  { %1632 = vst [vmem:[%s3608_s3 + $0xb0] sm:$0xff] %v1600_v63  ;;  %v1603_v11 = vmax.f32 %v1545_v8, 0.0  ;;  %v1540_v25 = vadd.f32 %v1539_v29, %v1315_v61  ;;  %v1744_v10 = vpop.f32.mrf.mxu0 }
 0x217   :  { %v1768_v56 = vpop.f32.mrf.mxu1  ;;  %1619 = vst [vmem:[%s3608_s3 + $0x48] sm:$0xff] %v1587_v2  ;;  %v1586_v15 = vmax.f32 %v1460_v46, 0.0  ;;  %v1475_v36 = vadd.f32 %v1744_v10, %v3388_v3 }
 0x218   :  { %1635 = vst [vmem:[%s3608_s3 + $0xc8] sm:$0xff] %v1603_v11  ;;  %v1602_v55 = vmax.f32 %v1540_v25, 0.0  ;;  %v1555_v4 = vadd.f32 %v1768_v56, %v1330_v48  ;;  %v1469_v42 = vpop.f32.mrf.mxu0 }
 0x219   :  { %v1549_v17 = vpop.f32.mrf.mxu1  ;;  %1618 = vst [vmem:[%s3608_s3 + $0x40] sm:$0xff] %v1586_v15  ;;  %v1589_v20 = vmax.f32 %v1475_v36, 0.0  ;;  %v1470_v3 = vadd.f32 %v1469_v42, %v3625_v26 }
 0x21a   :  { %1634 = vst [vmem:[%s3608_s3 + $0xc0] sm:$0xff] %v1602_v55  ;;  %v1605_v49 = vmax.f32 %v1555_v4, 0.0  ;;  %v1550_v39 = vadd.f32 %v1549_v17, %v1325_v28  ;;  %v1747_v41 = vpop.f32.mrf.mxu0 }
 0x21b   :  { %v1771_v30 = vpop.f32.mrf.mxu1  ;;  %1621 = vst [vmem:[%s3608_s3 + $0x58] sm:$0xff] %v1589_v20  ;;  %v1588_v19 = vmax.f32 %v1470_v3, 0.0  ;;  %v1485_v5 = vadd.f32 %v1747_v41, %v3629_v35 }
 0x21c   :  { %1637 = vst [vmem:[%s3608_s3 + $0xd8] sm:$0xff] %v1605_v49  ;;  %v1604_v38 = vmax.f32 %v1550_v39, 0.0  ;;  %v1565_v52 = vadd.f32 %v1771_v30, %v1340_v14  ;;  %v1479_v60 = vpop.f32.mrf.mxu0 }
 0x21d   :  { %v1559_v53 = vpop.f32.mrf.mxu1  ;;  %1620 = vst [vmem:[%s3608_s3 + $0x50] sm:$0xff] %v1588_v19  ;;  %v1591_v33 = vmax.f32 %v1485_v5, 0.0  ;;  %v1480_v12 = vadd.f32 %v1479_v60, %v3631_v57 }
 0x21e   :  { %1636 = vst [vmem:[%s3608_s3 + $0xd0] sm:$0xff] %v1604_v38  ;;  %v1607_v44 = vmax.f32 %v1565_v52, 0.0  ;;  %v1560_v31 = vadd.f32 %v1559_v53, %v1335_v7  ;;  %v1750_v22 = vpop.f32.mrf.mxu0 }
 0x21f   :  { %v1774_v37 = vpop.f32.mrf.mxu1  ;;  %1623 = vst [vmem:[%s3608_s3 + $0x68] sm:$0xff] %v1591_v33  ;;  %v1590_v62 = vmax.f32 %v1480_v12, 0.0  ;;  %v1495_v61 = vadd.f32 %v1750_v22, %v3633_v1 }
 0x220   :  { %1639 = vst [vmem:[%s3608_s3 + $0xe8] sm:$0xff] %v1607_v44  ;;  %v1606_v24 = vmax.f32 %v1560_v31, 0.0  ;;  %v1575_v21 = vadd.f32 %v1774_v37, %v1350_v6  ;;  %v1489_v27 = vpop.f32.mrf.mxu0 }
 0x221   :  { %v1569_v58 = vpop.f32.mrf.mxu1  ;;  %1622 = vst [vmem:[%s3608_s3 + $0x60] sm:$0xff] %v1590_v62  ;;  %v1593_v51 = vmax.f32 %v1495_v61, 0.0  ;;  %v1490_v8 = vadd.f32 %v1489_v27, %v3634_v16 }
 0x222   :  { %1638 = vst [vmem:[%s3608_s3 + $0xe0] sm:$0xff] %v1606_v24  ;;  %v1609_v63 = vmax.f32 %v1575_v21, 0.0  ;;  %v1570_v48 = vadd.f32 %v1569_v58, %v1345_v47 }
 0x223   :  { %1625 = vst [vmem:[%s3608_s3 + $0x78] sm:$0xff] %v1593_v51  ;;  %v1592_v13 = vmax.f32 %v1490_v8, 0.0 }
 0x224   :  { %1641 = vst [vmem:[%s3608_s3 + $0xf8] sm:$0xff] %v1609_v63  ;;  %v1608_v0 = vmax.f32 %v1570_v48, 0.0 }
 0x225   :  { %1624 = vst [vmem:[%s3608_s3 + $0x70] sm:$0xff] %v1592_v13 }
 0x226   :  { %1640 = vst [vmem:[%s3608_s3 + $0xf0] sm:$0xff] %v1608_v0 }

// kernel: autoencoder9_forward.18
= control target key start
LH: loop header
LB: loop body
LE: loop exit
PB: predicated region body
PF: predicated region fallthrough
CT: control target
= control target key end

     0   :  { %v877_v0 = vmov 0.0   ;;  %s1551_s1 = inlined_call_operand.vmem [shape: f32[384,128], index: 1, kind: input, shape index: {}]   ;;  %s1552_s0 = inlined_call_operand.vmem [shape: f32[256,384], index: 0, kind: input, shape index: {}]   ;;  %s1553_s2 = inlined_call_operand.vmem [shape: f32[1,128], index: 2, kind: input, shape index: {}]   ;;  %s1554_s3 = inlined_call_operand.vmem [shape: f32[256,128], index: 3, kind: output, shape index: {}]  }
   0x1   :  { %165 = vmatprep.subr.mxu0 %v877_v0  ;;  %812 = vmatprep.subr.mxu1 %v877_v0  ;;  %v125_v1 = vld [vmem:[%s1551_s1 + $0x78] sm:$0xff]  ;;  %v124_v2 = vld [vmem:[%s1551_s1 + $0x70] sm:$0xff]  ;;  %v123_v3 = vld [vmem:[%s1551_s1 + $0x68] sm:$0xff] }
   0x2   :  { %166 = vmatpush1.msra.mxu0 %v125_v1  ;;  %844 = vmatpush1.msra.mxu1 %v125_v1  ;;  %v122_v4 = vld [vmem:[%s1551_s1 + $0x60] sm:$0xff]  ;;  %v121_v5 = vld [vmem:[%s1551_s1 + $0x58] sm:$0xff]  ;;  %v120_v6 = vld [vmem:[%s1551_s1 + $0x50] sm:$0xff] }
   0x3   :  { %167 = vmatprep.subr.mxu0 %v877_v0  ;;  %813 = vmatprep.subr.mxu1 %v877_v0  ;;  %v119_v7 = vld [vmem:[%s1551_s1 + $0x48] sm:$0xff]  ;;  %v118_v8 = vld [vmem:[%s1551_s1 + $0x40] sm:$0xff]  ;;  %v117_v9 = vld [vmem:[%s1551_s1 + $0x38] sm:$0xff] }
   0x4   :  { %168 = vmatpush1.msra.mxu0 %v124_v2  ;;  %845 = vmatpush1.msra.mxu1 %v124_v2  ;;  %v116_v10 = vld [vmem:[%s1551_s1 + $0x30] sm:$0xff]  ;;  %v115_v11 = vld [vmem:[%s1551_s1 + $0x28] sm:$0xff]  ;;  %v114_v12 = vld [vmem:[%s1551_s1 + $0x20] sm:$0xff] }
   0x5   :  { %169 = vmatprep.subr.mxu0 %v877_v0  ;;  %814 = vmatprep.subr.mxu1 %v877_v0  ;;  %v113_v13 = vld [vmem:[%s1551_s1 + $0x18] sm:$0xff]  ;;  %v112_v14 = vld [vmem:[%s1551_s1 + $0x10] sm:$0xff]  ;;  %v111_v15 = vld [vmem:[%s1551_s1 + $0x8] sm:$0xff] }
   0x6   :  { %170 = vmatpush1.msra.mxu0 %v123_v3  ;;  %846 = vmatpush1.msra.mxu1 %v123_v3  ;;  %v110_v16 = vld [vmem:[%s1551_s1] sm:$0xff]  ;;  %v141_v17 = vld [vmem:[%s1551_s1 + $0xf8] sm:$0xff]  ;;  %v140_v18 = vld [vmem:[%s1551_s1 + $0xf0] sm:$0xff] }
   0x7   :  { %171 = vmatprep.subr.mxu0 %v877_v0  ;;  %815 = vmatprep.subr.mxu1 %v877_v0  ;;  %v139_v19 = vld [vmem:[%s1551_s1 + $0xe8] sm:$0xff]  ;;  %v138_v20 = vld [vmem:[%s1551_s1 + $0xe0] sm:$0xff]  ;;  %v137_v21 = vld [vmem:[%s1551_s1 + $0xd8] sm:$0xff] }
   0x8   :  { %172 = vmatpush1.msra.mxu0 %v122_v4  ;;  %847 = vmatpush1.msra.mxu1 %v122_v4  ;;  %v136_v22 = vld [vmem:[%s1551_s1 + $0xd0] sm:$0xff]  ;;  %v135_v23 = vld [vmem:[%s1551_s1 + $0xc8] sm:$0xff]  ;;  %v134_v24 = vld [vmem:[%s1551_s1 + $0xc0] sm:$0xff] }
   0x9   :  { %173 = vmatprep.subr.mxu0 %v877_v0  ;;  %816 = vmatprep.subr.mxu1 %v877_v0  ;;  %v133_v25 = vld [vmem:[%s1551_s1 + $0xb8] sm:$0xff]  ;;  %v132_v26 = vld [vmem:[%s1551_s1 + $0xb0] sm:$0xff]  ;;  %v131_v27 = vld [vmem:[%s1551_s1 + $0xa8] sm:$0xff] }
   0xa   :  { %174 = vmatpush1.msra.mxu0 %v121_v5  ;;  %848 = vmatpush1.msra.mxu1 %v121_v5  ;;  %v130_v28 = vld [vmem:[%s1551_s1 + $0xa0] sm:$0xff]  ;;  %v129_v29 = vld [vmem:[%s1551_s1 + $0x98] sm:$0xff]  ;;  %v128_v30 = vld [vmem:[%s1551_s1 + $0x90] sm:$0xff] }
   0xb   :  { %175 = vmatprep.subr.mxu0 %v877_v0  ;;  %817 = vmatprep.subr.mxu1 %v877_v0  ;;  %v127_v31 = vld [vmem:[%s1551_s1 + $0x88] sm:$0xff]  ;;  %v126_v32 = vld [vmem:[%s1551_s1 + $0x80] sm:$0xff]  ;;  %v157_v37 = vld [vmem:[%s1551_s1 + $0x178] sm:$0xff] }
   0xc   :  { %176 = vmatpush1.msra.mxu0 %v120_v6  ;;  %849 = vmatpush1.msra.mxu1 %v120_v6  ;;  %v15_v33 = vld [vmem:[%s1552_s0 + $0x8] sm:$0xff]  ;;  %v14_v35 = vld [vmem:[%s1552_s0] sm:$0xff]  ;;  %v156_v40 = vld [vmem:[%s1551_s1 + $0x170] sm:$0xff] }
   0xd   :  { %177 = vmatprep.subr.mxu0 %v877_v0  ;;  %818 = vmatprep.subr.mxu1 %v877_v0  ;;  %v87_v34 = vld [vmem:[%s1552_s0 + $0x248] sm:$0xff]  ;;  %v86_v36 = vld [vmem:[%s1552_s0 + $0x240] sm:$0xff]  ;;  %v17_v41 = vld [vmem:[%s1552_s0 + $0x18] sm:$0xff] }
   0xe   :  { %178 = vmatpush1.msra.mxu0 %v119_v7  ;;  %850 = vmatpush1.msra.mxu1 %v119_v7  ;;  %v18_v38 = vld [vmem:[%s1552_s0 + $0x20] sm:$0xff]  ;;  %v89_v42 = vld [vmem:[%s1552_s0 + $0x258] sm:$0xff]  ;;  %v155_v43 = vld [vmem:[%s1551_s1 + $0x168] sm:$0xff] }
   0xf   :  { %179 = vmatprep.subr.mxu0 %v877_v0  ;;  %819 = vmatprep.subr.mxu1 %v877_v0  ;;  %v90_v39 = vld [vmem:[%s1552_s0 + $0x260] sm:$0xff]  ;;  %v21_v44 = vld [vmem:[%s1552_s0 + $0x38] sm:$0xff]  ;;  %v20_v47 = vld [vmem:[%s1552_s0 + $0x30] sm:$0xff] }
  0x10   :  { %180 = vmatpush1.msra.mxu0 %v118_v8  ;;  %851 = vmatpush1.msra.mxu1 %v118_v8  ;;  %v154_v45 = vld [vmem:[%s1551_s1 + $0x160] sm:$0xff]  ;;  %v93_v46 = vld [vmem:[%s1552_s0 + $0x278] sm:$0xff]  ;;  %v92_v48 = vld [vmem:[%s1552_s0 + $0x270] sm:$0xff] }
  0x11   :  { %181 = vmatprep.subr.mxu0 %v877_v0  ;;  %820 = vmatprep.subr.mxu1 %v877_v0  ;;  %v153_v49 = vld [vmem:[%s1551_s1 + $0x158] sm:$0xff]  ;;  %v24_v50 = vld [vmem:[%s1552_s0 + $0x50] sm:$0xff]  ;;  %v23_v53 = vld [vmem:[%s1552_s0 + $0x48] sm:$0xff] }
  0x12   :  { %182 = vmatpush1.msra.mxu0 %v117_v9  ;;  %852 = vmatpush1.msra.mxu1 %v117_v9  ;;  %v152_v51 = vld [vmem:[%s1551_s1 + $0x150] sm:$0xff]  ;;  %v95_v54 = vld [vmem:[%s1552_s0 + $0x288] sm:$0xff]  ;;  %v150_v57 = vld [vmem:[%s1551_s1 + $0x140] sm:$0xff] }
  0x13   :  { %183 = vmatprep.subr.mxu0 %v877_v0  ;;  %821 = vmatprep.subr.mxu1 %v877_v0  ;;  %v96_v52 = vld [vmem:[%s1552_s0 + $0x290] sm:$0xff]  ;;  %v151_v55 = vld [vmem:[%s1551_s1 + $0x148] sm:$0xff]  ;;  %v26_v59 = vld [vmem:[%s1552_s0 + $0x60] sm:$0xff] }
  0x14   :  { %184 = vmatpush1.msra.mxu0 %v116_v10  ;;  %853 = vmatpush1.msra.mxu1 %v116_v10  ;;  %v27_v56 = vld [vmem:[%s1552_s0 + $0x68] sm:$0xff]  ;;  %v98_v60 = vld [vmem:[%s1552_s0 + $0x2a0] sm:$0xff]  ;;  %v149_v61 = vld [vmem:[%s1551_s1 + $0x138] sm:$0xff] }
  0x15   :  { %185 = vmatprep.subr.mxu0 %v877_v0  ;;  %822 = vmatprep.subr.mxu1 %v877_v0  ;;  %v99_v58 = vld [vmem:[%s1552_s0 + $0x2a8] sm:$0xff]  ;;  %v30_v62 = vld [vmem:[%s1552_s0 + $0x80] sm:$0xff]  ;;  %v148_v63 = vld [vmem:[%s1551_s1 + $0x130] sm:$0xff] }
  0x16   :  { %186 = vmatpush1.msra.mxu0 %v115_v11  ;;  %854 = vmatpush1.msra.mxu1 %v115_v11  ;;  %v29_v1 = vld [vmem:[%s1552_s0 + $0x78] sm:$0xff]  ;;  %v147_v3 = vld [vmem:[%s1551_s1 + $0x128] sm:$0xff]  ;;  %v146_v5 = vld [vmem:[%s1551_s1 + $0x120] sm:$0xff] }
  0x17   :  { %187 = vmatprep.subr.mxu0 %v877_v0  ;;  %823 = vmatprep.subr.mxu1 %v877_v0  ;;  %v101_v2 = vld [vmem:[%s1552_s0 + $0x2b8] sm:$0xff]  ;;  %v32_v7 = vld [vmem:[%s1552_s0 + $0x90] sm:$0xff] }
  0x18   :  { %188 = vmatpush1.msra.mxu0 %v114_v12  ;;  %855 = vmatpush1.msra.mxu1 %v114_v12  ;;  %v33_v4 = vld [vmem:[%s1552_s0 + $0x98] sm:$0xff]  ;;  %v104_v8 = vld [vmem:[%s1552_s0 + $0x2d0] sm:$0xff] }
  0x19   :  { %189 = vmatprep.subr.mxu0 %v877_v0  ;;  %824 = vmatprep.subr.mxu1 %v877_v0  ;;  %v105_v6 = vld [vmem:[%s1552_s0 + $0x2d8] sm:$0xff]  ;;  %v36_v10 = vld [vmem:[%s1552_s0 + $0xb0] sm:$0xff] }
  0x1a   :  { %190 = vmatpush1.msra.mxu0 %v113_v13  ;;  %856 = vmatpush1.msra.mxu1 %v113_v13  ;;  %v145_v9 = vld [vmem:[%s1551_s1 + $0x118] sm:$0xff]  ;;  %v144_v11 = vld [vmem:[%s1551_s1 + $0x110] sm:$0xff]  ;;  %v35_v13 = vld [vmem:[%s1552_s0 + $0xa8] sm:$0xff] }
  0x1b   :  { %191 = vmatprep.subr.mxu0 %v877_v0  ;;  %825 = vmatprep.subr.mxu1 %v877_v0  ;;  %v108_v12 = vld [vmem:[%s1552_s0 + $0x2f0] sm:$0xff] }
  0x1c   :  { %192 = vmatpush1.msra.mxu0 %v112_v14  ;;  %857 = vmatpush1.msra.mxu1 %v112_v14  ;;  %v107_v14 = vld [vmem:[%s1552_s0 + $0x2e8] sm:$0xff] }
  0x1d   :  { %193 = vmatprep.subr.mxu0 %v877_v0  ;;  %826 = vmatprep.subr.mxu1 %v877_v0 }
  0x1e   :  { %194 = vmatpush1.msra.mxu0 %v111_v15  ;;  %858 = vmatpush1.msra.mxu1 %v111_v15  ;;  %v143_v15 = vld [vmem:[%s1551_s1 + $0x108] sm:$0xff] }
  0x1f   :  { %195 = vmatprep.subr.mxu0 %v877_v0  ;;  %827 = vmatprep.subr.mxu1 %v877_v0 }
  0x20   :  { %196 = vmatpush1.msra.mxu0 %v110_v16  ;;  %859 = vmatpush1.msra.mxu1 %v110_v16  ;;  %v39_v16 = vld [vmem:[%s1552_s0 + $0xc8] sm:$0xff] }
  0x21   :  { %197 = vmatprep.subr.mxu0 %v877_v0  ;;  %828 = vmatprep.subr.mxu1 %v877_v0 }
  0x22   :  { %198 = vmatpush2.msra.mxu0 %v141_v17  ;;  %860 = vmatpush2.msra.mxu1 %v141_v17  ;;  %v142_v17 = vld [vmem:[%s1551_s1 + $0x100] sm:$0xff] }
  0x23   :  { %199 = vmatprep.subr.mxu0 %v877_v0  ;;  %829 = vmatprep.subr.mxu1 %v877_v0 }
  0x24   :  { %200 = vmatpush2.msra.mxu0 %v140_v18  ;;  %861 = vmatpush2.msra.mxu1 %v140_v18  ;;  %v16_v18 = vld [vmem:[%s1552_s0 + $0x10] sm:$0xff] }
  0x25   :  { %201 = vmatprep.subr.mxu0 %v877_v0  ;;  %830 = vmatprep.subr.mxu1 %v877_v0 }
  0x26   :  { %202 = vmatpush2.msra.mxu0 %v139_v19  ;;  %862 = vmatpush2.msra.mxu1 %v139_v19  ;;  %v38_v19 = vld [vmem:[%s1552_s0 + $0xc0] sm:$0xff] }
  0x27   :  { %203 = vmatprep.subr.mxu0 %v877_v0  ;;  %831 = vmatprep.subr.mxu1 %v877_v0 }
  0x28   :  { %204 = vmatpush2.msra.mxu0 %v138_v20  ;;  %863 = vmatpush2.msra.mxu1 %v138_v20  ;;  %v19_v20 = vld [vmem:[%s1552_s0 + $0x28] sm:$0xff] }
  0x29   :  { %205 = vmatprep.subr.mxu0 %v877_v0  ;;  %832 = vmatprep.subr.mxu1 %v877_v0 }
  0x2a   :  { %206 = vmatpush2.msra.mxu0 %v137_v21  ;;  %864 = vmatpush2.msra.mxu1 %v137_v21  ;;  %v42_v21 = vld [vmem:[%s1552_s0 + $0xe0] sm:$0xff] }
  0x2b   :  { %207 = vmatprep.subr.mxu0 %v877_v0  ;;  %833 = vmatprep.subr.mxu1 %v877_v0 }
  0x2c   :  { %208 = vmatpush2.msra.mxu0 %v136_v22  ;;  %865 = vmatpush2.msra.mxu1 %v136_v22  ;;  %v22_v22 = vld [vmem:[%s1552_s0 + $0x40] sm:$0xff] }
  0x2d   :  { %209 = vmatprep.subr.mxu0 %v877_v0  ;;  %834 = vmatprep.subr.mxu1 %v877_v0 }
  0x2e   :  { %210 = vmatpush2.msra.mxu0 %v135_v23  ;;  %866 = vmatpush2.msra.mxu1 %v135_v23  ;;  %v41_v23 = vld [vmem:[%s1552_s0 + $0xd8] sm:$0xff] }
  0x2f   :  { %211 = vmatprep.subr.mxu0 %v877_v0  ;;  %835 = vmatprep.subr.mxu1 %v877_v0 }
  0x30   :  { %212 = vmatpush2.msra.mxu0 %v134_v24  ;;  %867 = vmatpush2.msra.mxu1 %v134_v24  ;;  %v25_v24 = vld [vmem:[%s1552_s0 + $0x58] sm:$0xff] }
  0x31   :  { %213 = vmatprep.subr.mxu0 %v877_v0  ;;  %836 = vmatprep.subr.mxu1 %v877_v0 }
  0x32   :  { %214 = vmatpush2.msra.mxu0 %v133_v25  ;;  %868 = vmatpush2.msra.mxu1 %v133_v25  ;;  %v45_v25 = vld [vmem:[%s1552_s0 + $0xf8] sm:$0xff] }
  0x33   :  { %215 = vmatprep.subr.mxu0 %v877_v0  ;;  %837 = vmatprep.subr.mxu1 %v877_v0 }
  0x34   :  { %216 = vmatpush2.msra.mxu0 %v132_v26  ;;  %869 = vmatpush2.msra.mxu1 %v132_v26  ;;  %v28_v26 = vld [vmem:[%s1552_s0 + $0x70] sm:$0xff] }
  0x35   :  { %217 = vmatprep.subr.mxu0 %v877_v0  ;;  %838 = vmatprep.subr.mxu1 %v877_v0 }
  0x36   :  { %218 = vmatpush2.msra.mxu0 %v131_v27  ;;  %870 = vmatpush2.msra.mxu1 %v131_v27  ;;  %v44_v27 = vld [vmem:[%s1552_s0 + $0xf0] sm:$0xff] }
  0x37   :  { %219 = vmatprep.subr.mxu0 %v877_v0  ;;  %839 = vmatprep.subr.mxu1 %v877_v0 }
  0x38   :  { %220 = vmatpush2.msra.mxu0 %v130_v28  ;;  %871 = vmatpush2.msra.mxu1 %v130_v28  ;;  %v31_v28 = vld [vmem:[%s1552_s0 + $0x88] sm:$0xff] }
  0x39   :  { %221 = vmatprep.subr.mxu0 %v877_v0  ;;  %840 = vmatprep.subr.mxu1 %v877_v0 }
  0x3a   :  { %222 = vmatpush2.msra.mxu0 %v129_v29  ;;  %872 = vmatpush2.msra.mxu1 %v129_v29  ;;  %v48_v29 = vld [vmem:[%s1552_s0 + $0x110] sm:$0xff] }
  0x3b   :  { %223 = vmatprep.subr.mxu0 %v877_v0  ;;  %841 = vmatprep.subr.mxu1 %v877_v0 }
  0x3c   :  { %224 = vmatpush2.msra.mxu0 %v128_v30  ;;  %873 = vmatpush2.msra.mxu1 %v128_v30  ;;  %v34_v30 = vld [vmem:[%s1552_s0 + $0xa0] sm:$0xff] }
  0x3d   :  { %225 = vmatprep.subr.mxu0 %v877_v0  ;;  %842 = vmatprep.subr.mxu1 %v877_v0 }
  0x3e   :  { %226 = vmatpush2.msra.mxu0 %v127_v31  ;;  %874 = vmatpush2.msra.mxu1 %v127_v31  ;;  %v47_v31 = vld [vmem:[%s1552_s0 + $0x108] sm:$0xff] }
  0x3f   :  { %227 = vmatprep.subr.mxu0 %v877_v0  ;;  %843 = vmatprep.subr.mxu1 %v877_v0  ;;  %v102_v0 = vld [vmem:[%s1552_s0 + $0x2c0] sm:$0xff] }
  0x40   :  { %228 = vmatpush2.msra.mxu0 %v126_v32  ;;  %875 = vmatpush2.msra.mxu1 %v126_v32  ;;  %v37_v32 = vld [vmem:[%s1552_s0 + $0xb8] sm:$0xff] }
  0x41   :  { %229 = vmatprep.mubr.f32.mxu0 %v15_v33  ;;  %349 = vmatprep.mubr.f32.mxu1 %v87_v34  ;;  %v51_v33 = vld [vmem:[%s1552_s0 + $0x128] sm:$0xff]  ;;  %v40_v34 = vld [vmem:[%s1552_s0 + $0xd0] sm:$0xff] }
  0x42   :  { %230 = vmatmul.mubr.f32.vlgmr.msra.gmra.mxu0 %v14_v35  ;;  %350 = vmatmul.mubr.f32.vlgmr.msra.gmra.mxu1 %v86_v36  ;;  %v50_v35 = vld [vmem:[%s1552_s0 + $0x120] sm:$0xff]  ;;  %v43_v36 = vld [vmem:[%s1552_s0 + $0xe8] sm:$0xff] }
  0x43   :  { %732 = vmatprep.subr.mxu1 %v157_v37  ;;  %234 = vmatprep.mubr.f32.mxu0 %v18_v38  ;;  %v46_v38 = vld [vmem:[%s1552_s0 + $0x100] sm:$0xff] }
  0x44   :  { %733 = vmatpush3.msra.mxu1 %v157_v37  ;;  %354 = vmatprep.mubr.f32.mxu1 %v90_v39  ;;  %v54_v37 = vld [vmem:[%s1552_s0 + $0x140] sm:$0xff]  ;;  %v53_v39 = vld [vmem:[%s1552_s0 + $0x138] sm:$0xff] }
  0x45   :  { %734 = vmatprep.subr.mxu1 %v156_v40 }
  0x46   :  { %735 = vmatpush3.msra.mxu1 %v156_v40  ;;  %235 = vmatmul.mubr.f32.gmra.mxu0 %v17_v41  ;;  %v49_v40 = vld [vmem:[%s1552_s0 + $0x118] sm:$0xff] }
  0x47   :  { %355 = vmatmul.mubr.f32.gmra.mxu1 %v89_v42  ;;  %736 = vmatprep.subr.mxu1 %v155_v43  ;;  %v57_v41 = vld [vmem:[%s1552_s0 + $0x158] sm:$0xff]  ;;  %v52_v42 = vld [vmem:[%s1552_s0 + $0x130] sm:$0xff] }
  0x48   :  { %737 = vmatpush3.msra.mxu1 %v155_v43  ;;  %239 = vmatprep.mubr.f32.mxu0 %v21_v44  ;;  %v56_v43 = vld [vmem:[%s1552_s0 + $0x150] sm:$0xff]  ;;  %v55_v44 = vld [vmem:[%s1552_s0 + $0x148] sm:$0xff] }
  0x49   :  { %738 = vmatprep.subr.mxu1 %v154_v45  ;;  %359 = vmatprep.mubr.f32.mxu1 %v93_v46  ;;  %v58_v46 = vld [vmem:[%s1552_s0 + $0x160] sm:$0xff] }
  0x4a   :  { %739 = vmatpush3.msra.mxu1 %v154_v45  ;;  %240 = vmatmul.mubr.f32.gmra.mxu0 %v20_v47  ;;  %v60_v45 = vld [vmem:[%s1552_s0 + $0x170] sm:$0xff]  ;;  %v59_v47 = vld [vmem:[%s1552_s0 + $0x168] sm:$0xff] }
  0x4b   :  { %360 = vmatmul.mubr.f32.gmra.mxu1 %v92_v48  ;;  %740 = vmatprep.subr.mxu1 %v153_v49  ;;  %v61_v48 = vld [vmem:[%s1552_s0 + $0x178] sm:$0xff] }
  0x4c   :  { %741 = vmatpush3.msra.mxu1 %v153_v49  ;;  %244 = vmatprep.mubr.f32.mxu0 %v24_v50  ;;  %v63_v49 = vld [vmem:[%s1552_s0 + $0x188] sm:$0xff]  ;;  %v64_v50 = vld [vmem:[%s1552_s0 + $0x190] sm:$0xff] }
  0x4d   :  { %742 = vmatprep.subr.mxu1 %v152_v51  ;;  %364 = vmatprep.mubr.f32.mxu1 %v96_v52  ;;  %v67_v52 = vld [vmem:[%s1552_s0 + $0x1a8] sm:$0xff] }
  0x4e   :  { %743 = vmatpush3.msra.mxu1 %v152_v51  ;;  %245 = vmatmul.mubr.f32.gmra.mxu0 %v23_v53  ;;  %v62_v51 = vld [vmem:[%s1552_s0 + $0x180] sm:$0xff] }
  0x4f   :  { %365 = vmatmul.mubr.f32.gmra.mxu1 %v95_v54  ;;  %744 = vmatprep.subr.mxu1 %v151_v55  ;;  %v66_v53 = vld [vmem:[%s1552_s0 + $0x1a0] sm:$0xff] }
  0x50   :  { %745 = vmatpush3.msra.mxu1 %v151_v55  ;;  %249 = vmatprep.mubr.f32.mxu0 %v27_v56  ;;  %v70_v54 = vld [vmem:[%s1552_s0 + $0x1c0] sm:$0xff]  ;;  %v65_v55 = vld [vmem:[%s1552_s0 + $0x198] sm:$0xff] }
  0x51   :  { %746 = vmatprep.subr.mxu1 %v150_v57  ;;  %369 = vmatprep.mubr.f32.mxu1 %v99_v58  ;;  %v73_v56 = vld [vmem:[%s1552_s0 + $0x1d8] sm:$0xff]  ;;  %v76_v58 = vld [vmem:[%s1552_s0 + $0x1f0] sm:$0xff] }
  0x52   :  { %747 = vmatpush3.msra.mxu1 %v150_v57  ;;  %250 = vmatmul.mubr.f32.gmra.mxu0 %v26_v59  ;;  %v69_v57 = vld [vmem:[%s1552_s0 + $0x1b8] sm:$0xff]  ;;  %v68_v59 = vld [vmem:[%s1552_s0 + $0x1b0] sm:$0xff] }
  0x53   :  { %370 = vmatmul.mubr.f32.gmra.mxu1 %v98_v60  ;;  %748 = vmatprep.subr.mxu1 %v149_v61  ;;  %v79_v60 = vld [vmem:[%s1552_s0 + $0x208] sm:$0xff] }
  0x54   :  { %749 = vmatpush3.msra.mxu1 %v149_v61  ;;  %254 = vmatprep.mubr.f32.mxu0 %v30_v62  ;;  %v72_v61 = vld [vmem:[%s1552_s0 + $0x1d0] sm:$0xff]  ;;  %v82_v62 = vld [vmem:[%s1552_s0 + $0x220] sm:$0xff] }
  0x55   :  { %750 = vmatprep.subr.mxu1 %v148_v63  ;;  %374 = vmatprep.mubr.f32.mxu1 %v102_v0  ;;  %v85_v0 = vld [vmem:[%s1552_s0 + $0x238] sm:$0xff] }
  0x56   :  { %751 = vmatpush3.msra.mxu1 %v148_v63  ;;  %255 = vmatmul.mubr.f32.gmra.mxu0 %v29_v1  ;;  %v71_v63 = vld [vmem:[%s1552_s0 + $0x1c8] sm:$0xff] }
  0x57   :  { %375 = vmatmul.mubr.f32.gmra.mxu1 %v101_v2  ;;  %752 = vmatprep.subr.mxu1 %v147_v3  ;;  %v75_v1 = vld [vmem:[%s1552_s0 + $0x1e8] sm:$0xff]  ;;  %v88_v2 = vld [vmem:[%s1552_s0 + $0x250] sm:$0xff] }
  0x58   :  { %753 = vmatpush3.msra.mxu1 %v147_v3  ;;  %259 = vmatprep.mubr.f32.mxu0 %v33_v4  ;;  %v74_v3 = vld [vmem:[%s1552_s0 + $0x1e0] sm:$0xff]  ;;  %v91_v4 = vld [vmem:[%s1552_s0 + $0x268] sm:$0xff] }
  0x59   :  { %754 = vmatprep.subr.mxu1 %v146_v5  ;;  %379 = vmatprep.mubr.f32.mxu1 %v105_v6  ;;  %v94_v6 = vld [vmem:[%s1552_s0 + $0x280] sm:$0xff] }
  0x5a   :  { %755 = vmatpush3.msra.mxu1 %v146_v5  ;;  %260 = vmatmul.mubr.f32.gmra.mxu0 %v32_v7  ;;  %v78_v5 = vld [vmem:[%s1552_s0 + $0x200] sm:$0xff]  ;;  %v77_v7 = vld [vmem:[%s1552_s0 + $0x1f8] sm:$0xff] }
  0x5b   :  { %380 = vmatmul.mubr.f32.gmra.mxu1 %v104_v8  ;;  %756 = vmatprep.subr.mxu1 %v145_v9  ;;  %v97_v8 = vld [vmem:[%s1552_s0 + $0x298] sm:$0xff] }
  0x5c   :  { %757 = vmatpush3.msra.mxu1 %v145_v9  ;;  %264 = vmatprep.mubr.f32.mxu0 %v36_v10  ;;  %v81_v9 = vld [vmem:[%s1552_s0 + $0x218] sm:$0xff]  ;;  %v100_v10 = vld [vmem:[%s1552_s0 + $0x2b0] sm:$0xff] }
  0x5d   :  { %758 = vmatprep.subr.mxu1 %v144_v11  ;;  %384 = vmatprep.mubr.f32.mxu1 %v108_v12  ;;  %v103_v12 = vld [vmem:[%s1552_s0 + $0x2c8] sm:$0xff] }
  0x5e   :  { %759 = vmatpush3.msra.mxu1 %v144_v11  ;;  %265 = vmatmul.mubr.f32.gmra.mxu0 %v35_v13  ;;  %v80_v11 = vld [vmem:[%s1552_s0 + $0x210] sm:$0xff] }
  0x5f   :  { %385 = vmatmul.mubr.f32.gmra.mxu1 %v107_v14  ;;  %760 = vmatprep.subr.mxu1 %v143_v15  ;;  %v84_v13 = vld [vmem:[%s1552_s0 + $0x230] sm:$0xff]  ;;  %v106_v14 = vld [vmem:[%s1552_s0 + $0x2e0] sm:$0xff] }
  0x60   :  { %761 = vmatpush3.msra.mxu1 %v143_v15  ;;  %269 = vmatprep.mubr.f32.mxu0 %v39_v16  ;;  %v83_v15 = vld [vmem:[%s1552_s0 + $0x228] sm:$0xff]  ;;  %v109_v16 = vld [vmem:[%s1552_s0 + $0x2f8] sm:$0xff] }
  0x61   :  { %762 = vmatprep.subr.mxu1 %v142_v17  ;;  %764 = vmatprep.mubr.f32.mxu1 %v16_v18 }
  0x62   :  { %763 = vmatpush3.msra.mxu1 %v142_v17  ;;  %270 = vmatmul.mubr.f32.gmra.mxu0 %v38_v19 }
  0x63   :  { %765 = vmatmul.mubr.f32.vlgmr.msra.gmra.mxu1 %v19_v20  ;;  %274 = vmatprep.mubr.f32.mxu0 %v42_v21 }
  0x64   :  { %767 = vmatprep.mubr.f32.mxu1 %v22_v22 }
  0x66   :  { %275 = vmatmul.mubr.f32.gmra.mxu0 %v41_v23 }
  0x67   :  { %768 = vmatmul.mubr.f32.gmra.mxu1 %v25_v24  ;;  %279 = vmatprep.mubr.f32.mxu0 %v45_v25 }
  0x68   :  { %770 = vmatprep.mubr.f32.mxu1 %v28_v26 }
  0x6a   :  { %280 = vmatmul.mubr.f32.gmra.mxu0 %v44_v27 }
  0x6b   :  { %771 = vmatmul.mubr.f32.gmra.mxu1 %v31_v28  ;;  %284 = vmatprep.mubr.f32.mxu0 %v48_v29 }
  0x6c   :  { %773 = vmatprep.mubr.f32.mxu1 %v34_v30 }
  0x6e   :  { %285 = vmatmul.mubr.f32.gmra.mxu0 %v47_v31 }
  0x6f   :  { %774 = vmatmul.mubr.f32.gmra.mxu1 %v37_v32  ;;  %289 = vmatprep.mubr.f32.mxu0 %v51_v33 }
  0x70   :  { %776 = vmatprep.mubr.f32.mxu1 %v40_v34 }
  0x72   :  { %290 = vmatmul.mubr.f32.gmra.mxu0 %v50_v35 }
  0x73   :  { %777 = vmatmul.mubr.f32.gmra.mxu1 %v43_v36  ;;  %294 = vmatprep.mubr.f32.mxu0 %v54_v37 }
  0x74   :  { %779 = vmatprep.mubr.f32.mxu1 %v46_v38 }
  0x76   :  { %295 = vmatmul.mubr.f32.gmra.mxu0 %v53_v39 }
  0x77   :  { %780 = vmatmul.mubr.f32.gmra.mxu1 %v49_v40  ;;  %299 = vmatprep.mubr.f32.mxu0 %v57_v41 }
  0x78   :  { %782 = vmatprep.mubr.f32.mxu1 %v52_v42 }
  0x7a   :  { %300 = vmatmul.mubr.f32.gmra.mxu0 %v56_v43 }
  0x7b   :  { %783 = vmatmul.mubr.f32.gmra.mxu1 %v55_v44  ;;  %304 = vmatprep.mubr.f32.mxu0 %v60_v45 }
  0x7c   :  { %785 = vmatprep.mubr.f32.mxu1 %v58_v46 }
  0x7e   :  { %305 = vmatmul.mubr.f32.gmra.mxu0 %v59_v47 }
  0x7f   :  { %786 = vmatmul.mubr.f32.gmra.mxu1 %v61_v48  ;;  %309 = vmatprep.mubr.f32.mxu0 %v63_v49  ;;  %v1413_v48 = vld [vmem:[%s1553_s2] ss:$0 sm:$0xff] }
  0x80   :  { %788 = vmatprep.mubr.f32.mxu1 %v64_v50 }
  0x82   :  { %310 = vmatmul.mubr.f32.gmra.mxu0 %v62_v51 }
  0x83   :  { %789 = vmatmul.mubr.f32.gmra.mxu1 %v67_v52  ;;  %314 = vmatprep.mubr.f32.mxu0 %v66_v53 }
  0x84   :  { %791 = vmatprep.mubr.f32.mxu1 %v70_v54 }
  0x86   :  { %315 = vmatmul.mubr.f32.gmra.mxu0 %v65_v55 }
  0x87   :  { %792 = vmatmul.mubr.f32.gmra.mxu1 %v73_v56  ;;  %319 = vmatprep.mubr.f32.mxu0 %v69_v57 }
  0x88   :  { %794 = vmatprep.mubr.f32.mxu1 %v76_v58 }
  0x8a   :  { %320 = vmatmul.mubr.f32.gmra.mxu0 %v68_v59 }
  0x8b   :  { %795 = vmatmul.mubr.f32.gmra.mxu1 %v79_v60  ;;  %324 = vmatprep.mubr.f32.mxu0 %v72_v61 }
  0x8c   :  { %797 = vmatprep.mubr.f32.mxu1 %v82_v62 }
  0x8e   :  { %325 = vmatmul.mubr.f32.gmra.mxu0 %v71_v63 }
  0x8f   :  { %798 = vmatmul.mubr.f32.gmra.mxu1 %v85_v0  ;;  %329 = vmatprep.mubr.f32.mxu0 %v75_v1 }
  0x90   :  { %800 = vmatprep.mubr.f32.mxu1 %v88_v2 }
  0x92   :  { %330 = vmatmul.mubr.f32.gmra.mxu0 %v74_v3 }
  0x93   :  { %801 = vmatmul.mubr.f32.gmra.mxu1 %v91_v4  ;;  %334 = vmatprep.mubr.f32.mxu0 %v78_v5 }
  0x94   :  { %803 = vmatprep.mubr.f32.mxu1 %v94_v6 }
  0x96   :  { %335 = vmatmul.mubr.f32.gmra.mxu0 %v77_v7 }
  0x97   :  { %804 = vmatmul.mubr.f32.gmra.mxu1 %v97_v8  ;;  %339 = vmatprep.mubr.f32.mxu0 %v81_v9 }
  0x98   :  { %806 = vmatprep.mubr.f32.mxu1 %v100_v10 }
  0x9a   :  { %340 = vmatmul.mubr.f32.gmra.mxu0 %v80_v11 }
  0x9b   :  { %807 = vmatmul.mubr.f32.gmra.mxu1 %v103_v12  ;;  %344 = vmatprep.mubr.f32.mxu0 %v84_v13 }
  0x9c   :  { %809 = vmatprep.mubr.f32.mxu1 %v106_v14 }
  0x9e   :  { %345 = vmatmul.mubr.f32.gmra.mxu0 %v83_v15 }
  0x9f   :  { %810 = vmatmul.mubr.f32.gmra.mxu1 %v109_v16 }
 0x102   :  { %v231_v17 = vpop.f32.mrf.mxu0  ;;  %v1394_v18 = vpop.f32.mrf.mxu1 }
 0x103   :  { %v232_v53 = vadd.f32 %v1413_v48, %v231_v17 }
 0x104   :  { %v233_v19 = vpop.f32.mrf.mxu0  ;;  %v353_v20 = vpop.f32.mrf.mxu1 }
 0x106   :  { %v236_v21 = vpop.f32.mrf.mxu0 }
 0x107   :  { %v1396_v22 = vpop.f32.mrf.mxu1  ;;  %v237_v50 = vadd.f32 %v1413_v48, %v236_v21 }
 0x108   :  { %v238_v23 = vpop.f32.mrf.mxu0 }
 0x109   :  { %v358_v24 = vpop.f32.mrf.mxu1 }
 0x10a   :  { %v241_v25 = vpop.f32.mrf.mxu0 }
 0x10b   :  { %v1398_v26 = vpop.f32.mrf.mxu1  ;;  %v242_v62 = vadd.f32 %v1413_v48, %v241_v25 }
 0x10c   :  { %v243_v27 = vpop.f32.mrf.mxu0 }
 0x10d   :  { %v363_v28 = vpop.f32.mrf.mxu1 }
 0x10e   :  { %v246_v29 = vpop.f32.mrf.mxu0 }
 0x10f   :  { %v1400_v30 = vpop.f32.mrf.mxu1  ;;  %v247_v57 = vadd.f32 %v1413_v48, %v246_v29 }
 0x110   :  { %v248_v31 = vpop.f32.mrf.mxu0 }
 0x111   :  { %v368_v32 = vpop.f32.mrf.mxu1 }
 0x112   :  { %v251_v33 = vpop.f32.mrf.mxu0 }
 0x113   :  { %v1402_v34 = vpop.f32.mrf.mxu1  ;;  %v252_v8 = vadd.f32 %v1413_v48, %v251_v33 }
 0x114   :  { %v253_v35 = vpop.f32.mrf.mxu0 }
 0x115   :  { %v373_v36 = vpop.f32.mrf.mxu1 }
 0x116   :  { %v256_v37 = vpop.f32.mrf.mxu0 }
 0x117   :  { %v1404_v38 = vpop.f32.mrf.mxu1  ;;  %v257_v3 = vadd.f32 %v1413_v48, %v256_v37 }
 0x118   :  { %v258_v39 = vpop.f32.mrf.mxu0 }
 0x119   :  { %v378_v40 = vpop.f32.mrf.mxu1 }
 0x11a   :  { %v261_v41 = vpop.f32.mrf.mxu0 }
 0x11b   :  { %v1406_v42 = vpop.f32.mrf.mxu1  ;;  %v262_v19 = vadd.f32 %v1413_v48, %v261_v41 }
 0x11c   :  { %v263_v43 = vpop.f32.mrf.mxu0 }
 0x11d   :  { %v383_v44 = vpop.f32.mrf.mxu1 }
 0x11e   :  { %v266_v45 = vpop.f32.mrf.mxu0 }
 0x11f   :  { %v1408_v46 = vpop.f32.mrf.mxu1  ;;  %v267_v13 = vadd.f32 %v1413_v48, %v266_v45 }
 0x120   :  { %v268_v47 = vpop.f32.mrf.mxu0 }
 0x121   :  { %v388_v49 = vpop.f32.mrf.mxu1 }
 0x122   :  { %v271_v51 = vpop.f32.mrf.mxu0 }
 0x123   :  { %v766_v52 = vpop.f32.mrf.mxu1  ;;  %v272_v32 = vadd.f32 %v1413_v48, %v271_v51 }
 0x124   :  { %v462_v54 = vadd.f32 %v766_v52, %v237_v50  ;;  %v273_v55 = vpop.f32.mrf.mxu0 }
 0x125   :  { %v456_v56 = vpop.f32.mrf.mxu1 }
 0x126   :  { %v616_v58 = vmax.f32 %v462_v54, 0.0  ;;  %v457_v59 = vadd.f32 %v456_v56, %v232_v53  ;;  %v276_v60 = vpop.f32.mrf.mxu0 }
 0x127   :  { %v769_v61 = vpop.f32.mrf.mxu1  ;;  %v277_v25 = vadd.f32 %v1413_v48, %v276_v60 }
 0x128   :  { %648 = vst [vmem:[%s1554_s3 + $0x8] sm:$0xff] %v616_v58  ;;  %v615_v63 = vmax.f32 %v457_v59, 0.0  ;;  %v472_v0 = vadd.f32 %v769_v61, %v247_v57  ;;  %v278_v1 = vpop.f32.mrf.mxu0 }
 0x129   :  { %v466_v2 = vpop.f32.mrf.mxu1 }
 0x12a   :  { %647 = vst [vmem:[%s1554_s3] sm:$0xff] %v615_v63  ;;  %v618_v4 = vmax.f32 %v472_v0, 0.0  ;;  %v467_v5 = vadd.f32 %v466_v2, %v242_v62  ;;  %v281_v6 = vpop.f32.mrf.mxu0 }
 0x12b   :  { %v772_v7 = vpop.f32.mrf.mxu1  ;;  %v282_v45 = vadd.f32 %v1413_v48, %v281_v6 }
 0x12c   :  { %650 = vst [vmem:[%s1554_s3 + $0x18] sm:$0xff] %v618_v4  ;;  %v617_v9 = vmax.f32 %v467_v5, 0.0  ;;  %v482_v10 = vadd.f32 %v772_v7, %v257_v3  ;;  %v283_v11 = vpop.f32.mrf.mxu0 }
 0x12d   :  { %v476_v12 = vpop.f32.mrf.mxu1 }
 0x12e   :  { %649 = vst [vmem:[%s1554_s3 + $0x10] sm:$0xff] %v617_v9  ;;  %v620_v14 = vmax.f32 %v482_v10, 0.0  ;;  %v477_v15 = vadd.f32 %v476_v12, %v252_v8  ;;  %v286_v16 = vpop.f32.mrf.mxu0 }
 0x12f   :  { %v775_v17 = vpop.f32.mrf.mxu1  ;;  %v287_v39 = vadd.f32 %v1413_v48, %v286_v16 }
 0x130   :  { %652 = vst [vmem:[%s1554_s3 + $0x28] sm:$0xff] %v620_v14  ;;  %v619_v20 = vmax.f32 %v477_v15, 0.0  ;;  %v492_v21 = vadd.f32 %v775_v17, %v267_v13  ;;  %v288_v23 = vpop.f32.mrf.mxu0 }
 0x131   :  { %v486_v24 = vpop.f32.mrf.mxu1 }
 0x132   :  { %651 = vst [vmem:[%s1554_s3 + $0x20] sm:$0xff] %v619_v20  ;;  %v622_v27 = vmax.f32 %v492_v21, 0.0  ;;  %v487_v28 = vadd.f32 %v486_v24, %v262_v19  ;;  %v291_v29 = vpop.f32.mrf.mxu0 }
 0x133   :  { %v778_v31 = vpop.f32.mrf.mxu1  ;;  %v292_v57 = vadd.f32 %v1413_v48, %v291_v29 }
 0x134   :  { %654 = vst [vmem:[%s1554_s3 + $0x38] sm:$0xff] %v622_v27  ;;  %v621_v33 = vmax.f32 %v487_v28, 0.0  ;;  %v502_v35 = vadd.f32 %v778_v31, %v277_v25  ;;  %v293_v36 = vpop.f32.mrf.mxu0 }
 0x135   :  { %v496_v37 = vpop.f32.mrf.mxu1 }
 0x136   :  { %653 = vst [vmem:[%s1554_s3 + $0x30] sm:$0xff] %v621_v33  ;;  %v624_v40 = vmax.f32 %v502_v35, 0.0  ;;  %v497_v41 = vadd.f32 %v496_v37, %v272_v32  ;;  %v296_v43 = vpop.f32.mrf.mxu0 }
 0x137   :  { %v781_v44 = vpop.f32.mrf.mxu1  ;;  %v297_v52 = vadd.f32 %v1413_v48, %v296_v43 }
 0x138   :  { %656 = vst [vmem:[%s1554_s3 + $0x48] sm:$0xff] %v624_v40  ;;  %v623_v47 = vmax.f32 %v497_v41, 0.0  ;;  %v512_v49 = vadd.f32 %v781_v44, %v287_v39  ;;  %v298_v50 = vpop.f32.mrf.mxu0 }
 0x139   :  { %v506_v51 = vpop.f32.mrf.mxu1 }
 0x13a   :  { %655 = vst [vmem:[%s1554_s3 + $0x40] sm:$0xff] %v623_v47  ;;  %v626_v53 = vmax.f32 %v512_v49, 0.0  ;;  %v507_v54 = vadd.f32 %v506_v51, %v282_v45  ;;  %v301_v55 = vpop.f32.mrf.mxu0  ;;  %v357_v45 = vadd.f32 %v1413_v48, %v1396_v22 }
 0x13b   :  { %v784_v56 = vpop.f32.mrf.mxu1  ;;  %v302_v3 = vadd.f32 %v1413_v48, %v301_v55 }
 0x13c   :  { %658 = vst [vmem:[%s1554_s3 + $0x58] sm:$0xff] %v626_v53  ;;  %v625_v58 = vmax.f32 %v507_v54, 0.0  ;;  %v522_v59 = vadd.f32 %v784_v56, %v297_v52  ;;  %v303_v60 = vpop.f32.mrf.mxu0  ;;  %v352_v52 = vadd.f32 %v1413_v48, %v1394_v18  ;;  %v362_v18 = vadd.f32 %v1413_v48, %v1398_v26 }
 0x13d   :  { %v516_v61 = vpop.f32.mrf.mxu1 }
 0x13e   :  { %657 = vst [vmem:[%s1554_s3 + $0x50] sm:$0xff] %v625_v58  ;;  %v628_v62 = vmax.f32 %v522_v59, 0.0  ;;  %v517_v63 = vadd.f32 %v516_v61, %v292_v57  ;;  %v306_v0 = vpop.f32.mrf.mxu0  ;;  %v367_v57 = vadd.f32 %v1413_v48, %v1400_v30 }
 0x13f   :  { %v307_v1 = vadd.f32 %v1413_v48, %v306_v0  ;;  %v787_v2 = vpop.f32.mrf.mxu1 }
 0x140   :  { %660 = vst [vmem:[%s1554_s3 + $0x68] sm:$0xff] %v628_v62  ;;  %v627_v4 = vmax.f32 %v517_v63, 0.0  ;;  %v308_v5 = vpop.f32.mrf.mxu0 }
 0x141   :  { %v532_v6 = vadd.f32 %v787_v2, %v307_v1  ;;  %v526_v7 = vpop.f32.mrf.mxu1 }
 0x142   :  { %659 = vst [vmem:[%s1554_s3 + $0x60] sm:$0xff] %v627_v4  ;;  %v527_v8 = vadd.f32 %v526_v7, %v302_v3  ;;  %v311_v9 = vpop.f32.mrf.mxu0  ;;  %v377_v3 = vadd.f32 %v1413_v48, %v1404_v38 }
 0x143   :  { %v630_v10 = vmax.f32 %v532_v6, 0.0  ;;  %v312_v11 = vadd.f32 %v1413_v48, %v311_v9  ;;  %v790_v12 = vpop.f32.mrf.mxu1  ;;  %v372_v9 = vadd.f32 %v1413_v48, %v1402_v34 }
 0x144   :  { %v629_v13 = vmax.f32 %v527_v8, 0.0  ;;  %v313_v14 = vpop.f32.mrf.mxu0 }
 0x145   :  { %662 = vst [vmem:[%s1554_s3 + $0x78] sm:$0xff] %v630_v10  ;;  %v536_v15 = vpop.f32.mrf.mxu1  ;;  %v387_v14 = vadd.f32 %v1413_v48, %v1408_v46 }
 0x146   :  { %661 = vst [vmem:[%s1554_s3 + $0x70] sm:$0xff] %v629_v13  ;;  %v537_v16 = vadd.f32 %v536_v15, %v312_v11  ;;  %v316_v17 = vpop.f32.mrf.mxu0 }
 0x147   :  { %v317_v19 = vadd.f32 %v1413_v48, %v316_v17  ;;  %v793_v20 = vpop.f32.mrf.mxu1 }
 0x148   :  { %v631_v21 = vmax.f32 %v537_v16, 0.0  ;;  %v318_v23 = vpop.f32.mrf.mxu0 }
 0x149   :  { %v542_v24 = vadd.f32 %v790_v12, %v317_v19  ;;  %v546_v25 = vpop.f32.mrf.mxu1 }
 0x14a   :  { %663 = vst [vmem:[%s1554_s3 + $0x80] sm:$0xff] %v631_v21  ;;  %v321_v27 = vpop.f32.mrf.mxu0  ;;  %v382_v21 = vadd.f32 %v1413_v48, %v1406_v42 }
 0x14b   :  { %v632_v28 = vmax.f32 %v542_v24, 0.0  ;;  %v322_v29 = vadd.f32 %v1413_v48, %v321_v27  ;;  %v796_v31 = vpop.f32.mrf.mxu1 }
 0x14c   :  { %v323_v32 = vpop.f32.mrf.mxu0 }
 0x14d   :  { %664 = vst [vmem:[%s1554_s3 + $0x88] sm:$0xff] %v632_v28  ;;  %v547_v33 = vadd.f32 %v546_v25, %v322_v29  ;;  %v556_v35 = vpop.f32.mrf.mxu1 }
 0x14e   :  { %v326_v36 = vpop.f32.mrf.mxu0 }
 0x14f   :  { %v633_v37 = vmax.f32 %v547_v33, 0.0  ;;  %v327_v39 = vadd.f32 %v1413_v48, %v326_v36  ;;  %v799_v40 = vpop.f32.mrf.mxu1 }
 0x150   :  { %v328_v41 = vpop.f32.mrf.mxu0 }
 0x151   :  { %665 = vst [vmem:[%s1554_s3 + $0x90] sm:$0xff] %v633_v37  ;;  %v552_v43 = vadd.f32 %v793_v20, %v327_v39  ;;  %v566_v44 = vpop.f32.mrf.mxu1 }
 0x152   :  { %v331_v47 = vpop.f32.mrf.mxu0 }
 0x153   :  { %v634_v49 = vmax.f32 %v552_v43, 0.0  ;;  %v332_v50 = vadd.f32 %v1413_v48, %v331_v47  ;;  %v802_v51 = vpop.f32.mrf.mxu1 }
 0x154   :  { %v582_v53 = vadd.f32 %v802_v51, %v357_v45  ;;  %v333_v54 = vpop.f32.mrf.mxu0 }
 0x155   :  { %666 = vst [vmem:[%s1554_s3 + $0x98] sm:$0xff] %v634_v49  ;;  %v557_v55 = vadd.f32 %v556_v35, %v332_v50  ;;  %v576_v56 = vpop.f32.mrf.mxu1 }
 0x156   :  { %v640_v22 = vmax.f32 %v582_v53, 0.0  ;;  %v577_v58 = vadd.f32 %v576_v56, %v352_v52  ;;  %v336_v59 = vpop.f32.mrf.mxu0 }
 0x157   :  { %v635_v60 = vmax.f32 %v557_v55, 0.0  ;;  %v337_v61 = vadd.f32 %v1413_v48, %v336_v59  ;;  %v805_v62 = vpop.f32.mrf.mxu1 }
 0x158   :  { %672 = vst [vmem:[%s1554_s3 + $0xc8] sm:$0xff] %v640_v22  ;;  %v639_v63 = vmax.f32 %v577_v58, 0.0  ;;  %v592_v0 = vadd.f32 %v805_v62, %v367_v57  ;;  %v338_v1 = vpop.f32.mrf.mxu0 }
 0x159   :  { %667 = vst [vmem:[%s1554_s3 + $0xa0] sm:$0xff] %v635_v60  ;;  %v562_v30 = vadd.f32 %v796_v31, %v337_v61  ;;  %v586_v2 = vpop.f32.mrf.mxu1 }
 0x15a   :  { %671 = vst [vmem:[%s1554_s3 + $0xc0] sm:$0xff] %v639_v63  ;;  %v642_v26 = vmax.f32 %v592_v0, 0.0  ;;  %v587_v4 = vadd.f32 %v586_v2, %v362_v18  ;;  %v341_v5 = vpop.f32.mrf.mxu0 }
 0x15b   :  { %v636_v6 = vmax.f32 %v562_v30, 0.0  ;;  %v342_v7 = vadd.f32 %v1413_v48, %v341_v5  ;;  %v808_v8 = vpop.f32.mrf.mxu1 }
 0x15c   :  { %674 = vst [vmem:[%s1554_s3 + $0xd8] sm:$0xff] %v642_v26  ;;  %v641_v10 = vmax.f32 %v587_v4, 0.0  ;;  %v602_v38 = vadd.f32 %v808_v8, %v377_v3  ;;  %v343_v11 = vpop.f32.mrf.mxu0 }
 0x15d   :  { %668 = vst [vmem:[%s1554_s3 + $0xa8] sm:$0xff] %v636_v6  ;;  %v567_v12 = vadd.f32 %v566_v44, %v342_v7  ;;  %v596_v13 = vpop.f32.mrf.mxu1 }
 0x15e   :  { %673 = vst [vmem:[%s1554_s3 + $0xd0] sm:$0xff] %v641_v10  ;;  %v644_v34 = vmax.f32 %v602_v38, 0.0  ;;  %v597_v15 = vadd.f32 %v596_v13, %v372_v9  ;;  %v346_v16 = vpop.f32.mrf.mxu0 }
 0x15f   :  { %v637_v17 = vmax.f32 %v567_v12, 0.0  ;;  %v347_v19 = vadd.f32 %v1413_v48, %v346_v16  ;;  %v811_v20 = vpop.f32.mrf.mxu1 }
 0x160   :  { %676 = vst [vmem:[%s1554_s3 + $0xe8] sm:$0xff] %v644_v34  ;;  %v643_v23 = vmax.f32 %v597_v15, 0.0  ;;  %v612_v46 = vadd.f32 %v811_v20, %v387_v14  ;;  %v348_v24 = vpop.f32.mrf.mxu0 }
 0x161   :  { %669 = vst [vmem:[%s1554_s3 + $0xb0] sm:$0xff] %v637_v17  ;;  %v572_v25 = vadd.f32 %v799_v40, %v347_v19  ;;  %v606_v27 = vpop.f32.mrf.mxu1 }
 0x162   :  { %675 = vst [vmem:[%s1554_s3 + $0xe0] sm:$0xff] %v643_v23  ;;  %v646_v28 = vmax.f32 %v612_v46, 0.0  ;;  %v607_v29 = vadd.f32 %v606_v27, %v382_v21 }
 0x163   :  { %v638_v42 = vmax.f32 %v572_v25, 0.0 }
 0x164   :  { %678 = vst [vmem:[%s1554_s3 + $0xf8] sm:$0xff] %v646_v28  ;;  %v645_v48 = vmax.f32 %v607_v29, 0.0 }
 0x165   :  { %670 = vst [vmem:[%s1554_s3 + $0xb8] sm:$0xff] %v638_v42 }
 0x166   :  { %677 = vst [vmem:[%s1554_s3 + $0xf0] sm:$0xff] %v645_v48 }

// kernel: autoencoder9_forward.19
= control target key start
LH: loop header
LB: loop body
LE: loop exit
PB: predicated region body
PF: predicated region fallthrough
CT: control target
= control target key end

     0   :  { %s1430_s12 = smov 0   ;;  %s2116_s0 = inlined_call_operand.vmem [shape: f32[512,640], index: 0, kind: input, shape index: {}]   ;;  %s2117_s1 = inlined_call_operand.vmem [shape: f32[640,128], index: 1, kind: input, shape index: {}]   ;;  %s2118_s2 = inlined_call_operand.vmem [shape: f32[1,128], index: 2, kind: input, shape index: {}]   ;;  %s2119_s3 = inlined_call_operand.vmem [shape: f32[512,128], index: 3, kind: output, shape index: {}]  }
   0x1 LB: > { %s1219_s13 = sadd.s32 4294967295, %s1407_s12   ;;  %p1223_p0 = scmp.ge.s32.totalorder %s1407_s12, 1  ;;  %s1407_s12 = sphi %s1430_s12, %s13_s12  }
   0x2   : > { %p139_p1 = scmp.lt.s32.totalorder %s1407_s12, 3 }
   0x4   : > { %p140_p2 = pnand %p1223_p0, %p139_p1 }
   0x5   : > { %s1224_s4 = sshll.u32 (!%p140_p2), %s1219_s13, 5 }
   0x6   : > { %143 = sbr.rel (%p140_p2) target bundleno = 433 (0x1b1), region = 32  ;;  %p165_p3 = scmp.lt.s32.totalorder (!%p140_p2), %s1224_s4, 63 }
   0xb   : > { %v352_v0 = vld [vmem:[%s2117_s1 + $0x78] sm:$0xff]  ;;  %v1409_v2 = vmov 0.0   ;;  %v351_v3 = vld [vmem:[%s2117_s1 + $0x70] sm:$0xff]  ;;  %v350_v5 = vld [vmem:[%s2117_s1 + $0x68] sm:$0xff]  ;;  %s2121_s4 = smov (!%p165_p3, %s1224_s4), 63 }
   0xc   : > { %v384_v1 = vld [vmem:[%s2117_s1 + $0x178] sm:$0xff]  ;;  %424 = vmatprep.subr.mxu0 %v1409_v2  ;;  %649 = vmatprep.subr.mxu1 %v1409_v2  ;;  %v383_v4 = vld [vmem:[%s2117_s1 + $0x170] sm:$0xff]  ;;  %v382_v6 = vld [vmem:[%s2117_s1 + $0x168] sm:$0xff]  ;;  %s1391_s26 = smul.u32 40, %s2121_s4 }
   0xd   : > { %425 = vmatpush1.msra.mxu0 %v352_v0  ;;  %650 = vmatpush1.msra.mxu1 %v384_v1  ;;  %v349_v7 = vld [vmem:[%s2117_s1 + $0x60] sm:$0xff]  ;;  %v348_v9 = vld [vmem:[%s2117_s1 + $0x58] sm:$0xff]  ;;  %v347_v11 = vld [vmem:[%s2117_s1 + $0x50] sm:$0xff] }
   0xe   : > { %426 = vmatprep.subr.mxu0 %v1409_v2  ;;  %651 = vmatprep.subr.mxu1 %v1409_v2  ;;  %v381_v8 = vld [vmem:[%s2117_s1 + $0x160] sm:$0xff]  ;;  %v380_v10 = vld [vmem:[%s2117_s1 + $0x158] sm:$0xff]  ;;  %v379_v12 = vld [vmem:[%s2117_s1 + $0x150] sm:$0xff]  ;;  %s1684_s10 = scalar_lea.vmem %s2116_s0, %s1391_s26 }
   0xf   : > { %427 = vmatpush1.msra.mxu0 %v351_v3  ;;  %652 = vmatpush1.msra.mxu1 %v383_v4  ;;  %v346_v13 = vld [vmem:[%s2117_s1 + $0x48] sm:$0xff]  ;;  %v345_v15 = vld [vmem:[%s2117_s1 + $0x40] sm:$0xff]  ;;  %v344_v17 = vld [vmem:[%s2117_s1 + $0x38] sm:$0xff] }
  0x10   : > { %428 = vmatprep.subr.mxu0 %v1409_v2  ;;  %653 = vmatprep.subr.mxu1 %v1409_v2  ;;  %v378_v14 = vld [vmem:[%s2117_s1 + $0x148] sm:$0xff]  ;;  %v377_v16 = vld [vmem:[%s2117_s1 + $0x140] sm:$0xff]  ;;  %v376_v18 = vld [vmem:[%s2117_s1 + $0x138] sm:$0xff] }
  0x11   : > { %429 = vmatpush1.msra.mxu0 %v350_v5  ;;  %654 = vmatpush1.msra.mxu1 %v382_v6  ;;  %v343_v19 = vld [vmem:[%s2117_s1 + $0x30] sm:$0xff]  ;;  %v342_v21 = vld [vmem:[%s2117_s1 + $0x28] sm:$0xff]  ;;  %v341_v23 = vld [vmem:[%s2117_s1 + $0x20] sm:$0xff] }
  0x12   : > { %430 = vmatprep.subr.mxu0 %v1409_v2  ;;  %655 = vmatprep.subr.mxu1 %v1409_v2  ;;  %v375_v20 = vld [vmem:[%s2117_s1 + $0x130] sm:$0xff]  ;;  %v374_v22 = vld [vmem:[%s2117_s1 + $0x128] sm:$0xff]  ;;  %v373_v24 = vld [vmem:[%s2117_s1 + $0x120] sm:$0xff] }
  0x13   : > { %431 = vmatpush1.msra.mxu0 %v349_v7  ;;  %656 = vmatpush1.msra.mxu1 %v381_v8  ;;  %v340_v25 = vld [vmem:[%s2117_s1 + $0x18] sm:$0xff]  ;;  %v339_v27 = vld [vmem:[%s2117_s1 + $0x10] sm:$0xff]  ;;  %v338_v29 = vld [vmem:[%s2117_s1 + $0x8] sm:$0xff] }
  0x14   : > { %432 = vmatprep.subr.mxu0 %v1409_v2  ;;  %657 = vmatprep.subr.mxu1 %v1409_v2  ;;  %v372_v26 = vld [vmem:[%s2117_s1 + $0x118] sm:$0xff]  ;;  %v371_v28 = vld [vmem:[%s2117_s1 + $0x110] sm:$0xff]  ;;  %v370_v30 = vld [vmem:[%s2117_s1 + $0x108] sm:$0xff] }
  0x15   : > { %433 = vmatpush1.msra.mxu0 %v348_v9  ;;  %658 = vmatpush1.msra.mxu1 %v380_v10  ;;  %v337_v31 = vld [vmem:[%s2117_s1] sm:$0xff]  ;;  %v368_v33 = vld [vmem:[%s2117_s1 + $0xf8] sm:$0xff]  ;;  %v367_v35 = vld [vmem:[%s2117_s1 + $0xf0] sm:$0xff] }
  0x16   : > { %434 = vmatprep.subr.mxu0 %v1409_v2  ;;  %659 = vmatprep.subr.mxu1 %v1409_v2  ;;  %v369_v32 = vld [vmem:[%s2117_s1 + $0x100] sm:$0xff]  ;;  %v400_v34 = vld [vmem:[%s2117_s1 + $0x1f8] sm:$0xff]  ;;  %v399_v36 = vld [vmem:[%s2117_s1 + $0x1f0] sm:$0xff] }
  0x17   : > { %435 = vmatpush1.msra.mxu0 %v347_v11  ;;  %660 = vmatpush1.msra.mxu1 %v379_v12  ;;  %v366_v37 = vld [vmem:[%s2117_s1 + $0xe8] sm:$0xff]  ;;  %v365_v39 = vld [vmem:[%s2117_s1 + $0xe0] sm:$0xff]  ;;  %v364_v41 = vld [vmem:[%s2117_s1 + $0xd8] sm:$0xff] }
  0x18   : > { %436 = vmatprep.subr.mxu0 %v1409_v2  ;;  %661 = vmatprep.subr.mxu1 %v1409_v2  ;;  %v398_v38 = vld [vmem:[%s2117_s1 + $0x1e8] sm:$0xff]  ;;  %v397_v40 = vld [vmem:[%s2117_s1 + $0x1e0] sm:$0xff]  ;;  %v396_v42 = vld [vmem:[%s2117_s1 + $0x1d8] sm:$0xff] }
  0x19   : > { %437 = vmatpush1.msra.mxu0 %v346_v13  ;;  %662 = vmatpush1.msra.mxu1 %v378_v14  ;;  %v363_v43 = vld [vmem:[%s2117_s1 + $0xd0] sm:$0xff]  ;;  %v362_v45 = vld [vmem:[%s2117_s1 + $0xc8] sm:$0xff]  ;;  %v361_v47 = vld [vmem:[%s2117_s1 + $0xc0] sm:$0xff] }
  0x1a   : > { %438 = vmatprep.subr.mxu0 %v1409_v2  ;;  %663 = vmatprep.subr.mxu1 %v1409_v2  ;;  %v395_v44 = vld [vmem:[%s2117_s1 + $0x1d0] sm:$0xff]  ;;  %v394_v46 = vld [vmem:[%s2117_s1 + $0x1c8] sm:$0xff]  ;;  %v393_v48 = vld [vmem:[%s2117_s1 + $0x1c0] sm:$0xff] }
  0x1b   : > { %439 = vmatpush1.msra.mxu0 %v345_v15  ;;  %664 = vmatpush1.msra.mxu1 %v377_v16  ;;  %v360_v49 = vld [vmem:[%s2117_s1 + $0xb8] sm:$0xff]  ;;  %v359_v51 = vld [vmem:[%s2117_s1 + $0xb0] sm:$0xff]  ;;  %v358_v53 = vld [vmem:[%s2117_s1 + $0xa8] sm:$0xff] }
  0x1c   : > { %440 = vmatprep.subr.mxu0 %v1409_v2  ;;  %665 = vmatprep.subr.mxu1 %v1409_v2  ;;  %v392_v50 = vld [vmem:[%s2117_s1 + $0x1b8] sm:$0xff]  ;;  %v391_v52 = vld [vmem:[%s2117_s1 + $0x1b0] sm:$0xff]  ;;  %v390_v54 = vld [vmem:[%s2117_s1 + $0x1a8] sm:$0xff] }
  0x1d   : > { %441 = vmatpush1.msra.mxu0 %v344_v17  ;;  %666 = vmatpush1.msra.mxu1 %v376_v18  ;;  %v357_v55 = vld [vmem:[%s2117_s1 + $0xa0] sm:$0xff]  ;;  %v356_v57 = vld [vmem:[%s2117_s1 + $0x98] sm:$0xff]  ;;  %v355_v59 = vld [vmem:[%s2117_s1 + $0x90] sm:$0xff] }
  0x1e   : > { %442 = vmatprep.subr.mxu0 %v1409_v2  ;;  %667 = vmatprep.subr.mxu1 %v1409_v2  ;;  %v389_v56 = vld [vmem:[%s2117_s1 + $0x1a0] sm:$0xff]  ;;  %v388_v58 = vld [vmem:[%s2117_s1 + $0x198] sm:$0xff]  ;;  %v387_v60 = vld [vmem:[%s2117_s1 + $0x190] sm:$0xff] }
  0x1f   : > { %443 = vmatpush1.msra.mxu0 %v343_v19  ;;  %668 = vmatpush1.msra.mxu1 %v375_v20  ;;  %v354_v61 = vld [vmem:[%s2117_s1 + $0x88] sm:$0xff]  ;;  %v353_v63 = vld [vmem:[%s2117_s1 + $0x80] sm:$0xff]  ;;  %v180_v3 = vld [vmem:[%s1684_s10 + $0x18] sm:$0xff] }
  0x20   : > { %444 = vmatprep.subr.mxu0 %v1409_v2  ;;  %669 = vmatprep.subr.mxu1 %v1409_v2  ;;  %v386_v62 = vld [vmem:[%s2117_s1 + $0x188] sm:$0xff]  ;;  %v385_v1 = vld [vmem:[%s2117_s1 + $0x180] sm:$0xff]  ;;  %v179_v5 = vld [vmem:[%s1684_s10 + $0x10] sm:$0xff] }
  0x21   : > { %445 = vmatpush1.msra.mxu0 %v342_v21  ;;  %670 = vmatpush1.msra.mxu1 %v374_v22  ;;  %v178_v0 = vld [vmem:[%s1684_s10 + $0x8] sm:$0xff]  ;;  %v177_v4 = vld [vmem:[%s1684_s10] sm:$0xff]  ;;  %v416_v6 = vld [vmem:[%s2117_s1 + $0x278] sm:$0xff] }
  0x22   : > { %446 = vmatprep.subr.mxu0 %v1409_v2  ;;  %671 = vmatprep.subr.mxu1 %v1409_v2  ;;  %v183_v7 = vld [vmem:[%s1684_s10 + $0x30] sm:$0xff]  ;;  %v185_v8 = vld [vmem:[%s1684_s10 + $0x40] sm:$0xff]  ;;  %v184_v9 = vld [vmem:[%s1684_s10 + $0x38] sm:$0xff] }
  0x23   : > { %447 = vmatpush1.msra.mxu0 %v341_v23  ;;  %672 = vmatpush1.msra.mxu1 %v373_v24  ;;  %v188_v10 = vld [vmem:[%s1684_s10 + $0x58] sm:$0xff]  ;;  %v190_v11 = vld [vmem:[%s1684_s10 + $0x68] sm:$0xff]  ;;  %v415_v12 = vld [vmem:[%s2117_s1 + $0x270] sm:$0xff] }
  0x24   : > { %448 = vmatprep.subr.mxu0 %v1409_v2  ;;  %673 = vmatprep.subr.mxu1 %v1409_v2  ;;  %v187_v13 = vld [vmem:[%s1684_s10 + $0x50] sm:$0xff]  ;;  %v189_v14 = vld [vmem:[%s1684_s10 + $0x60] sm:$0xff]  ;;  %v414_v17 = vld [vmem:[%s2117_s1 + $0x268] sm:$0xff] }
  0x25   : > { %449 = vmatpush1.msra.mxu0 %v340_v25  ;;  %674 = vmatpush1.msra.mxu1 %v372_v26  ;;  %v193_v15 = vld [vmem:[%s1684_s10 + $0x80] sm:$0xff]  ;;  %v195_v16 = vld [vmem:[%s1684_s10 + $0x90] sm:$0xff]  ;;  %v192_v18 = vld [vmem:[%s1684_s10 + $0x78] sm:$0xff] }
  0x26   : > { %450 = vmatprep.subr.mxu0 %v1409_v2  ;;  %675 = vmatprep.subr.mxu1 %v1409_v2  ;;  %v194_v19 = vld [vmem:[%s1684_s10 + $0x88] sm:$0xff]  ;;  %v200_v21 = vld [vmem:[%s1684_s10 + $0xb8] sm:$0xff]  ;;  %v413_v22 = vld [vmem:[%s2117_s1 + $0x260] sm:$0xff] }
  0x27   : > { %451 = vmatpush1.msra.mxu0 %v339_v27  ;;  %676 = vmatpush1.msra.mxu1 %v371_v28  ;;  %v198_v20 = vld [vmem:[%s1684_s10 + $0xa8] sm:$0xff]  ;;  %v197_v23 = vld [vmem:[%s1684_s10 + $0xa0] sm:$0xff]  ;;  %v199_v24 = vld [vmem:[%s1684_s10 + $0xb0] sm:$0xff] }
  0x28   : > { %452 = vmatprep.subr.mxu0 %v1409_v2  ;;  %677 = vmatprep.subr.mxu1 %v1409_v2  ;;  %v203_v25 = vld [vmem:[%s1684_s10 + $0xd0] sm:$0xff]  ;;  %v205_v26 = vld [vmem:[%s1684_s10 + $0xe0] sm:$0xff]  ;;  %v412_v27 = vld [vmem:[%s2117_s1 + $0x258] sm:$0xff] }
  0x29   : > { %453 = vmatpush1.msra.mxu0 %v338_v29  ;;  %678 = vmatpush1.msra.mxu1 %v370_v30  ;;  %v202_v28 = vld [vmem:[%s1684_s10 + $0xc8] sm:$0xff]  ;;  %v204_v29 = vld [vmem:[%s1684_s10 + $0xd8] sm:$0xff] }
  0x2a   : > { %454 = vmatprep.subr.mxu0 %v1409_v2  ;;  %679 = vmatprep.subr.mxu1 %v1409_v2  ;;  %v208_v30 = vld [vmem:[%s1684_s10 + $0xf8] sm:$0xff] }
  0x2b   : > { %455 = vmatpush1.msra.mxu0 %v337_v31  ;;  %680 = vmatpush1.msra.mxu1 %v369_v32  ;;  %v210_v31 = vld [vmem:[%s1684_s10 + $0x108] sm:$0xff]  ;;  %v411_v32 = vld [vmem:[%s2117_s1 + $0x250] sm:$0xff] }
  0x2c   : > { %456 = vmatprep.subr.mxu0 %v1409_v2  ;;  %681 = vmatprep.subr.mxu1 %v1409_v2 }
  0x2d   : > { %457 = vmatpush2.msra.mxu0 %v368_v33  ;;  %682 = vmatpush2.msra.mxu1 %v400_v34  ;;  %v207_v33 = vld [vmem:[%s1684_s10 + $0xf0] sm:$0xff]  ;;  %v209_v34 = vld [vmem:[%s1684_s10 + $0x100] sm:$0xff] }
  0x2e   : > { %458 = vmatprep.subr.mxu0 %v1409_v2  ;;  %683 = vmatprep.subr.mxu1 %v1409_v2 }
  0x2f   : > { %459 = vmatpush2.msra.mxu0 %v367_v35  ;;  %684 = vmatpush2.msra.mxu1 %v399_v36  ;;  %v213_v35 = vld [vmem:[%s1684_s10 + $0x120] sm:$0xff]  ;;  %v215_v36 = vld [vmem:[%s1684_s10 + $0x130] sm:$0xff] }
  0x30   : > { %460 = vmatprep.subr.mxu0 %v1409_v2  ;;  %685 = vmatprep.subr.mxu1 %v1409_v2 }
  0x31   : > { %461 = vmatpush2.msra.mxu0 %v366_v37  ;;  %686 = vmatpush2.msra.mxu1 %v398_v38  ;;  %v410_v37 = vld [vmem:[%s2117_s1 + $0x248] sm:$0xff]  ;;  %v212_v38 = vld [vmem:[%s1684_s10 + $0x118] sm:$0xff] }
  0x32   : > { %462 = vmatprep.subr.mxu0 %v1409_v2  ;;  %687 = vmatprep.subr.mxu1 %v1409_v2 }
  0x33   : > { %463 = vmatpush2.msra.mxu0 %v365_v39  ;;  %688 = vmatpush2.msra.mxu1 %v397_v40  ;;  %v214_v39 = vld [vmem:[%s1684_s10 + $0x128] sm:$0xff] }
  0x34   : > { %464 = vmatprep.subr.mxu0 %v1409_v2  ;;  %689 = vmatprep.subr.mxu1 %v1409_v2  ;;  %v218_v40 = vld [vmem:[%s1684_s10 + $0x148] sm:$0xff] }
  0x35   : > { %465 = vmatpush2.msra.mxu0 %v364_v41  ;;  %690 = vmatpush2.msra.mxu1 %v396_v42  ;;  %v220_v41 = vld [vmem:[%s1684_s10 + $0x158] sm:$0xff]  ;;  %v409_v42 = vld [vmem:[%s2117_s1 + $0x240] sm:$0xff] }
  0x36   : > { %466 = vmatprep.subr.mxu0 %v1409_v2  ;;  %691 = vmatprep.subr.mxu1 %v1409_v2 }
  0x37   : > { %467 = vmatpush2.msra.mxu0 %v363_v43  ;;  %692 = vmatpush2.msra.mxu1 %v395_v44  ;;  %v217_v43 = vld [vmem:[%s1684_s10 + $0x140] sm:$0xff]  ;;  %v219_v44 = vld [vmem:[%s1684_s10 + $0x150] sm:$0xff] }
  0x38   : > { %468 = vmatprep.subr.mxu0 %v1409_v2  ;;  %693 = vmatprep.subr.mxu1 %v1409_v2 }
  0x39   : > { %469 = vmatpush2.msra.mxu0 %v362_v45  ;;  %694 = vmatpush2.msra.mxu1 %v394_v46  ;;  %v223_v45 = vld [vmem:[%s1684_s10 + $0x170] sm:$0xff]  ;;  %v225_v46 = vld [vmem:[%s1684_s10 + $0x180] sm:$0xff] }
  0x3a   : > { %470 = vmatprep.subr.mxu0 %v1409_v2  ;;  %695 = vmatprep.subr.mxu1 %v1409_v2 }
  0x3b   : > { %471 = vmatpush2.msra.mxu0 %v361_v47  ;;  %696 = vmatpush2.msra.mxu1 %v393_v48  ;;  %v408_v47 = vld [vmem:[%s2117_s1 + $0x238] sm:$0xff]  ;;  %v222_v48 = vld [vmem:[%s1684_s10 + $0x168] sm:$0xff] }
  0x3c   : > { %472 = vmatprep.subr.mxu0 %v1409_v2  ;;  %697 = vmatprep.subr.mxu1 %v1409_v2 }
  0x3d   : > { %473 = vmatpush2.msra.mxu0 %v360_v49  ;;  %698 = vmatpush2.msra.mxu1 %v392_v50  ;;  %v224_v49 = vld [vmem:[%s1684_s10 + $0x178] sm:$0xff] }
  0x3e   : > { %474 = vmatprep.subr.mxu0 %v1409_v2  ;;  %699 = vmatprep.subr.mxu1 %v1409_v2  ;;  %v228_v50 = vld [vmem:[%s1684_s10 + $0x198] sm:$0xff] }
  0x3f   : > { %475 = vmatpush2.msra.mxu0 %v359_v51  ;;  %700 = vmatpush2.msra.mxu1 %v391_v52  ;;  %v230_v51 = vld [vmem:[%s1684_s10 + $0x1a8] sm:$0xff]  ;;  %v407_v52 = vld [vmem:[%s2117_s1 + $0x230] sm:$0xff] }
  0x40   : > { %476 = vmatprep.subr.mxu0 %v1409_v2  ;;  %701 = vmatprep.subr.mxu1 %v1409_v2 }
  0x41   : > { %477 = vmatpush2.msra.mxu0 %v358_v53  ;;  %702 = vmatpush2.msra.mxu1 %v390_v54  ;;  %v227_v53 = vld [vmem:[%s1684_s10 + $0x190] sm:$0xff]  ;;  %v229_v54 = vld [vmem:[%s1684_s10 + $0x1a0] sm:$0xff] }
  0x42   : > { %478 = vmatprep.subr.mxu0 %v1409_v2  ;;  %703 = vmatprep.subr.mxu1 %v1409_v2 }
  0x43   : > { %479 = vmatpush2.msra.mxu0 %v357_v55  ;;  %704 = vmatpush2.msra.mxu1 %v389_v56  ;;  %v233_v55 = vld [vmem:[%s1684_s10 + $0x1c0] sm:$0xff]  ;;  %v235_v56 = vld [vmem:[%s1684_s10 + $0x1d0] sm:$0xff] }
  0x44   : > { %480 = vmatprep.subr.mxu0 %v1409_v2  ;;  %705 = vmatprep.subr.mxu1 %v1409_v2 }
  0x45   : > { %481 = vmatpush2.msra.mxu0 %v356_v57  ;;  %706 = vmatpush2.msra.mxu1 %v388_v58  ;;  %v406_v57 = vld [vmem:[%s2117_s1 + $0x228] sm:$0xff]  ;;  %v232_v58 = vld [vmem:[%s1684_s10 + $0x1b8] sm:$0xff] }
  0x46   : > { %482 = vmatprep.subr.mxu0 %v1409_v2  ;;  %707 = vmatprep.subr.mxu1 %v1409_v2 }
  0x47   : > { %483 = vmatpush2.msra.mxu0 %v355_v59  ;;  %708 = vmatpush2.msra.mxu1 %v387_v60  ;;  %v234_v59 = vld [vmem:[%s1684_s10 + $0x1c8] sm:$0xff] }
  0x48   : > { %484 = vmatprep.subr.mxu0 %v1409_v2  ;;  %709 = vmatprep.subr.mxu1 %v1409_v2  ;;  %v238_v60 = vld [vmem:[%s1684_s10 + $0x1e8] sm:$0xff] }
  0x49   : > { %485 = vmatpush2.msra.mxu0 %v354_v61  ;;  %710 = vmatpush2.msra.mxu1 %v386_v62  ;;  %v240_v61 = vld [vmem:[%s1684_s10 + $0x1f8] sm:$0xff]  ;;  %v405_v62 = vld [vmem:[%s2117_s1 + $0x220] sm:$0xff] }
  0x4a   : > { %486 = vmatprep.subr.mxu0 %v1409_v2  ;;  %711 = vmatprep.subr.mxu1 %v1409_v2  ;;  %v182_v2 = vld [vmem:[%s1684_s10 + $0x28] sm:$0xff] }
  0x4b   : > { %487 = vmatpush2.msra.mxu0 %v353_v63  ;;  %488 = vmatprep.mubr.f32.mxu0 %v178_v0  ;;  %v237_v63 = vld [vmem:[%s1684_s10 + $0x1e0] sm:$0xff]  ;;  %v239_v0 = vld [vmem:[%s1684_s10 + $0x1f0] sm:$0xff] }
  0x4c   : > { %712 = vmatpush2.msra.mxu1 %v385_v1  ;;  %713 = vmatprep.mubr.f32.mxu1 %v180_v3  ;;  %v243_v1 = vld [vmem:[%s1684_s10 + $0x210] sm:$0xff]  ;;  %v245_v3 = vld [vmem:[%s1684_s10 + $0x220] sm:$0xff] }
  0x4d   : > { %489 = vmatmul.mubr.f32.vlgmr.msra.gmra.mxu0 %v177_v4  ;;  %714 = vmatmul.mubr.f32.vlgmr.msra.gmra.mxu1 %v179_v5  ;;  %v404_v4 = vld [vmem:[%s2117_s1 + $0x218] sm:$0xff]  ;;  %v242_v5 = vld [vmem:[%s1684_s10 + $0x208] sm:$0xff] }
  0x4e   : > { %1279 = vmatprep.subr.mxu0 %v416_v6  ;;  %1359 = vmatprep.subr.mxu1 %v416_v6 }
  0x4f   : > { %1280 = vmatpush3.msra.mxu0 %v416_v6  ;;  %1375 = vmatpush3.msra.mxu1 %v416_v6  ;;  %v244_v6 = vld [vmem:[%s1684_s10 + $0x218] sm:$0xff] }
  0x50   : > { %493 = vmatprep.mubr.f32.mxu0 %v183_v7  ;;  %718 = vmatprep.mubr.f32.mxu1 %v185_v8  ;;  %v248_v7 = vld [vmem:[%s1684_s10 + $0x238] sm:$0xff]  ;;  %v250_v8 = vld [vmem:[%s1684_s10 + $0x248] sm:$0xff] }
  0x51   : > { %494 = vmatmul.mubr.f32.gmra.mxu0 %v182_v2  ;;  %719 = vmatmul.mubr.f32.gmra.mxu1 %v184_v9  ;;  %v403_v2 = vld [vmem:[%s2117_s1 + $0x210] sm:$0xff] }
  0x52   : > { %498 = vmatprep.mubr.f32.mxu0 %v188_v10  ;;  %723 = vmatprep.mubr.f32.mxu1 %v190_v11  ;;  %v247_v9 = vld [vmem:[%s1684_s10 + $0x230] sm:$0xff]  ;;  %v249_v10 = vld [vmem:[%s1684_s10 + $0x240] sm:$0xff] }
  0x53   : > { %1281 = vmatprep.subr.mxu0 %v415_v12  ;;  %1360 = vmatprep.subr.mxu1 %v415_v12  ;;  %v253_v11 = vld [vmem:[%s1684_s10 + $0x260] sm:$0xff] }
  0x54   : > { %1282 = vmatpush3.msra.mxu0 %v415_v12  ;;  %1376 = vmatpush3.msra.mxu1 %v415_v12  ;;  %v255_v12 = vld [vmem:[%s1684_s10 + $0x270] sm:$0xff] }
  0x55   : > { %499 = vmatmul.mubr.f32.gmra.mxu0 %v187_v13  ;;  %724 = vmatmul.mubr.f32.gmra.mxu1 %v189_v14  ;;  %v402_v13 = vld [vmem:[%s2117_s1 + $0x208] sm:$0xff]  ;;  %v252_v14 = vld [vmem:[%s1684_s10 + $0x258] sm:$0xff] }
  0x56   : > { %503 = vmatprep.mubr.f32.mxu0 %v193_v15  ;;  %728 = vmatprep.mubr.f32.mxu1 %v195_v16  ;;  %v254_v15 = vld [vmem:[%s1684_s10 + $0x268] sm:$0xff] }
  0x57   : > { %1283 = vmatprep.subr.mxu0 %v414_v17  ;;  %1361 = vmatprep.subr.mxu1 %v414_v17  ;;  %v258_v16 = vld [vmem:[%s1684_s10 + $0x288] sm:$0xff] }
  0x58   : > { %1284 = vmatpush3.msra.mxu0 %v414_v17  ;;  %1377 = vmatpush3.msra.mxu1 %v414_v17  ;;  %v260_v17 = vld [vmem:[%s1684_s10 + $0x298] sm:$0xff] }
  0x59   : > { %504 = vmatmul.mubr.f32.gmra.mxu0 %v192_v18  ;;  %729 = vmatmul.mubr.f32.gmra.mxu1 %v194_v19  ;;  %v401_v18 = vld [vmem:[%s2117_s1 + $0x200] sm:$0xff] }
  0x5a   : > { %508 = vmatprep.mubr.f32.mxu0 %v198_v20  ;;  %733 = vmatprep.mubr.f32.mxu1 %v200_v21  ;;  %v257_v19 = vld [vmem:[%s1684_s10 + $0x280] sm:$0xff]  ;;  %v259_v20 = vld [vmem:[%s1684_s10 + $0x290] sm:$0xff] }
  0x5b   : > { %1285 = vmatprep.subr.mxu0 %v413_v22  ;;  %1362 = vmatprep.subr.mxu1 %v413_v22  ;;  %v263_v21 = vld [vmem:[%s1684_s10 + $0x2b0] sm:$0xff] }
  0x5c   : > { %1286 = vmatpush3.msra.mxu0 %v413_v22  ;;  %1378 = vmatpush3.msra.mxu1 %v413_v22  ;;  %v265_v22 = vld [vmem:[%s1684_s10 + $0x2c0] sm:$0xff] }
  0x5d   : > { %509 = vmatmul.mubr.f32.gmra.mxu0 %v197_v23  ;;  %734 = vmatmul.mubr.f32.gmra.mxu1 %v199_v24  ;;  %v262_v23 = vld [vmem:[%s1684_s10 + $0x2a8] sm:$0xff]  ;;  %v264_v24 = vld [vmem:[%s1684_s10 + $0x2b8] sm:$0xff] }
  0x5e   : > { %513 = vmatprep.mubr.f32.mxu0 %v203_v25  ;;  %738 = vmatprep.mubr.f32.mxu1 %v205_v26  ;;  %v268_v25 = vld [vmem:[%s1684_s10 + $0x2d8] sm:$0xff]  ;;  %v270_v26 = vld [vmem:[%s1684_s10 + $0x2e8] sm:$0xff] }
  0x5f   : > { %1287 = vmatprep.subr.mxu0 %v412_v27  ;;  %1363 = vmatprep.subr.mxu1 %v412_v27 }
  0x60   : > { %1288 = vmatpush3.msra.mxu0 %v412_v27  ;;  %1379 = vmatpush3.msra.mxu1 %v412_v27  ;;  %v267_v27 = vld [vmem:[%s1684_s10 + $0x2d0] sm:$0xff] }
  0x61   : > { %514 = vmatmul.mubr.f32.gmra.mxu0 %v202_v28  ;;  %739 = vmatmul.mubr.f32.gmra.mxu1 %v204_v29  ;;  %v269_v28 = vld [vmem:[%s1684_s10 + $0x2e0] sm:$0xff] }
  0x62   : > { %518 = vmatprep.mubr.f32.mxu0 %v208_v30  ;;  %743 = vmatprep.mubr.f32.mxu1 %v210_v31  ;;  %v273_v29 = vld [vmem:[%s1684_s10 + $0x300] sm:$0xff]  ;;  %v275_v30 = vld [vmem:[%s1684_s10 + $0x310] sm:$0xff]  ;;  %v272_v31 = vld [vmem:[%s1684_s10 + $0x2f8] sm:$0xff] }
  0x63   : > { %1289 = vmatprep.subr.mxu0 %v411_v32  ;;  %1364 = vmatprep.subr.mxu1 %v411_v32 }
  0x64   : > { %1290 = vmatpush3.msra.mxu0 %v411_v32  ;;  %1380 = vmatpush3.msra.mxu1 %v411_v32  ;;  %v274_v32 = vld [vmem:[%s1684_s10 + $0x308] sm:$0xff] }
  0x65   : > { %519 = vmatmul.mubr.f32.gmra.mxu0 %v207_v33  ;;  %744 = vmatmul.mubr.f32.gmra.mxu1 %v209_v34  ;;  %v278_v33 = vld [vmem:[%s1684_s10 + $0x328] sm:$0xff]  ;;  %v280_v34 = vld [vmem:[%s1684_s10 + $0x338] sm:$0xff] }
  0x66   : > { %523 = vmatprep.mubr.f32.mxu0 %v213_v35  ;;  %748 = vmatprep.mubr.f32.mxu1 %v215_v36  ;;  %v277_v35 = vld [vmem:[%s1684_s10 + $0x320] sm:$0xff]  ;;  %v279_v36 = vld [vmem:[%s1684_s10 + $0x330] sm:$0xff] }
  0x67   : > { %1291 = vmatprep.subr.mxu0 %v410_v37  ;;  %1365 = vmatprep.subr.mxu1 %v410_v37 }
  0x68   : > { %1292 = vmatpush3.msra.mxu0 %v410_v37  ;;  %1381 = vmatpush3.msra.mxu1 %v410_v37  ;;  %v283_v37 = vld [vmem:[%s1684_s10 + $0x350] sm:$0xff] }
  0x69   : > { %524 = vmatmul.mubr.f32.gmra.mxu0 %v212_v38  ;;  %749 = vmatmul.mubr.f32.gmra.mxu1 %v214_v39  ;;  %v285_v38 = vld [vmem:[%s1684_s10 + $0x360] sm:$0xff]  ;;  %v282_v39 = vld [vmem:[%s1684_s10 + $0x348] sm:$0xff] }
  0x6a   : > { %528 = vmatprep.mubr.f32.mxu0 %v218_v40  ;;  %753 = vmatprep.mubr.f32.mxu1 %v220_v41  ;;  %v284_v40 = vld [vmem:[%s1684_s10 + $0x358] sm:$0xff] }
  0x6b   : > { %1293 = vmatprep.subr.mxu0 %v409_v42  ;;  %1366 = vmatprep.subr.mxu1 %v409_v42  ;;  %v288_v41 = vld [vmem:[%s1684_s10 + $0x378] sm:$0xff] }
  0x6c   : > { %1294 = vmatpush3.msra.mxu0 %v409_v42  ;;  %1382 = vmatpush3.msra.mxu1 %v409_v42  ;;  %v290_v42 = vld [vmem:[%s1684_s10 + $0x388] sm:$0xff] }
  0x6d   : > { %529 = vmatmul.mubr.f32.gmra.mxu0 %v217_v43  ;;  %754 = vmatmul.mubr.f32.gmra.mxu1 %v219_v44  ;;  %v287_v43 = vld [vmem:[%s1684_s10 + $0x370] sm:$0xff]  ;;  %v289_v44 = vld [vmem:[%s1684_s10 + $0x380] sm:$0xff] }
  0x6e   : > { %533 = vmatprep.mubr.f32.mxu0 %v223_v45  ;;  %758 = vmatprep.mubr.f32.mxu1 %v225_v46  ;;  %v293_v45 = vld [vmem:[%s1684_s10 + $0x3a0] sm:$0xff]  ;;  %v295_v46 = vld [vmem:[%s1684_s10 + $0x3b0] sm:$0xff] }
  0x6f   : > { %1295 = vmatprep.subr.mxu0 %v408_v47  ;;  %1367 = vmatprep.subr.mxu1 %v408_v47 }
  0x70   : > { %1296 = vmatpush3.msra.mxu0 %v408_v47  ;;  %1383 = vmatpush3.msra.mxu1 %v408_v47  ;;  %v292_v47 = vld [vmem:[%s1684_s10 + $0x398] sm:$0xff] }
  0x71   : > { %534 = vmatmul.mubr.f32.gmra.mxu0 %v222_v48  ;;  %759 = vmatmul.mubr.f32.gmra.mxu1 %v224_v49  ;;  %v294_v48 = vld [vmem:[%s1684_s10 + $0x3a8] sm:$0xff] }
  0x72   : > { %538 = vmatprep.mubr.f32.mxu0 %v228_v50  ;;  %763 = vmatprep.mubr.f32.mxu1 %v230_v51  ;;  %v298_v49 = vld [vmem:[%s1684_s10 + $0x3c8] sm:$0xff]  ;;  %v300_v50 = vld [vmem:[%s1684_s10 + $0x3d8] sm:$0xff]  ;;  %v297_v51 = vld [vmem:[%s1684_s10 + $0x3c0] sm:$0xff] }
  0x73   : > { %1297 = vmatprep.subr.mxu0 %v407_v52  ;;  %1368 = vmatprep.subr.mxu1 %v407_v52 }
  0x74   : > { %1298 = vmatpush3.msra.mxu0 %v407_v52  ;;  %1384 = vmatpush3.msra.mxu1 %v407_v52  ;;  %v299_v52 = vld [vmem:[%s1684_s10 + $0x3d0] sm:$0xff] }
  0x75   : > { %539 = vmatmul.mubr.f32.gmra.mxu0 %v227_v53  ;;  %764 = vmatmul.mubr.f32.gmra.mxu1 %v229_v54  ;;  %v303_v53 = vld [vmem:[%s1684_s10 + $0x3f0] sm:$0xff]  ;;  %v305_v54 = vld [vmem:[%s1684_s10 + $0x400] sm:$0xff] }
  0x76   : > { %543 = vmatprep.mubr.f32.mxu0 %v233_v55  ;;  %768 = vmatprep.mubr.f32.mxu1 %v235_v56  ;;  %v302_v55 = vld [vmem:[%s1684_s10 + $0x3e8] sm:$0xff]  ;;  %v304_v56 = vld [vmem:[%s1684_s10 + $0x3f8] sm:$0xff] }
  0x77   : > { %1299 = vmatprep.subr.mxu0 %v406_v57  ;;  %1369 = vmatprep.subr.mxu1 %v406_v57 }
  0x78   : > { %1300 = vmatpush3.msra.mxu0 %v406_v57  ;;  %1385 = vmatpush3.msra.mxu1 %v406_v57  ;;  %v308_v57 = vld [vmem:[%s1684_s10 + $0x418] sm:$0xff] }
  0x79   : > { %544 = vmatmul.mubr.f32.gmra.mxu0 %v232_v58  ;;  %769 = vmatmul.mubr.f32.gmra.mxu1 %v234_v59  ;;  %v310_v58 = vld [vmem:[%s1684_s10 + $0x428] sm:$0xff]  ;;  %v307_v59 = vld [vmem:[%s1684_s10 + $0x410] sm:$0xff] }
  0x7a   : > { %548 = vmatprep.mubr.f32.mxu0 %v238_v60  ;;  %773 = vmatprep.mubr.f32.mxu1 %v240_v61  ;;  %v309_v60 = vld [vmem:[%s1684_s10 + $0x420] sm:$0xff] }
  0x7b   : > { %1301 = vmatprep.subr.mxu0 %v405_v62  ;;  %1370 = vmatprep.subr.mxu1 %v405_v62  ;;  %v313_v61 = vld [vmem:[%s1684_s10 + $0x440] sm:$0xff] }
  0x7c   : > { %1302 = vmatpush3.msra.mxu0 %v405_v62  ;;  %1386 = vmatpush3.msra.mxu1 %v405_v62  ;;  %v315_v62 = vld [vmem:[%s1684_s10 + $0x450] sm:$0xff] }
  0x7d   : > { %549 = vmatmul.mubr.f32.gmra.mxu0 %v237_v63  ;;  %774 = vmatmul.mubr.f32.gmra.mxu1 %v239_v0  ;;  %v312_v63 = vld [vmem:[%s1684_s10 + $0x438] sm:$0xff]  ;;  %v314_v0 = vld [vmem:[%s1684_s10 + $0x448] sm:$0xff] }
  0x7e   : > { %553 = vmatprep.mubr.f32.mxu0 %v243_v1  ;;  %778 = vmatprep.mubr.f32.mxu1 %v245_v3  ;;  %v318_v1 = vld [vmem:[%s1684_s10 + $0x468] sm:$0xff]  ;;  %v320_v3 = vld [vmem:[%s1684_s10 + $0x478] sm:$0xff] }
  0x7f   : > { %1303 = vmatprep.subr.mxu0 %v404_v4  ;;  %1371 = vmatprep.subr.mxu1 %v404_v4 }
  0x80   : > { %1304 = vmatpush3.msra.mxu0 %v404_v4  ;;  %1387 = vmatpush3.msra.mxu1 %v404_v4  ;;  %v317_v4 = vld [vmem:[%s1684_s10 + $0x460] sm:$0xff] }
  0x81   : > { %554 = vmatmul.mubr.f32.gmra.mxu0 %v242_v5  ;;  %779 = vmatmul.mubr.f32.gmra.mxu1 %v244_v6  ;;  %v319_v5 = vld [vmem:[%s1684_s10 + $0x470] sm:$0xff] }
  0x82   : > { %558 = vmatprep.mubr.f32.mxu0 %v248_v7  ;;  %783 = vmatprep.mubr.f32.mxu1 %v250_v8  ;;  %v323_v6 = vld [vmem:[%s1684_s10 + $0x490] sm:$0xff]  ;;  %v325_v7 = vld [vmem:[%s1684_s10 + $0x4a0] sm:$0xff]  ;;  %v322_v8 = vld [vmem:[%s1684_s10 + $0x488] sm:$0xff] }
  0x83   : > { %1305 = vmatprep.subr.mxu0 %v403_v2  ;;  %1372 = vmatprep.subr.mxu1 %v403_v2 }
  0x84   : > { %1306 = vmatpush3.msra.mxu0 %v403_v2  ;;  %1388 = vmatpush3.msra.mxu1 %v403_v2  ;;  %v324_v2 = vld [vmem:[%s1684_s10 + $0x498] sm:$0xff] }
  0x85   : > { %559 = vmatmul.mubr.f32.gmra.mxu0 %v247_v9  ;;  %784 = vmatmul.mubr.f32.gmra.mxu1 %v249_v10  ;;  %v328_v9 = vld [vmem:[%s1684_s10 + $0x4b8] sm:$0xff]  ;;  %v330_v10 = vld [vmem:[%s1684_s10 + $0x4c8] sm:$0xff] }
  0x86   : > { %563 = vmatprep.mubr.f32.mxu0 %v253_v11  ;;  %788 = vmatprep.mubr.f32.mxu1 %v255_v12  ;;  %v327_v11 = vld [vmem:[%s1684_s10 + $0x4b0] sm:$0xff]  ;;  %v329_v12 = vld [vmem:[%s1684_s10 + $0x4c0] sm:$0xff] }
  0x87   : > { %1307 = vmatprep.subr.mxu0 %v402_v13  ;;  %1373 = vmatprep.subr.mxu1 %v402_v13 }
  0x88   : > { %1308 = vmatpush3.msra.mxu0 %v402_v13  ;;  %1389 = vmatpush3.msra.mxu1 %v402_v13  ;;  %v333_v13 = vld [vmem:[%s1684_s10 + $0x4e0] sm:$0xff] }
  0x89   : > { %564 = vmatmul.mubr.f32.gmra.mxu0 %v252_v14  ;;  %789 = vmatmul.mubr.f32.gmra.mxu1 %v254_v15  ;;  %v335_v14 = vld [vmem:[%s1684_s10 + $0x4f0] sm:$0xff]  ;;  %v332_v15 = vld [vmem:[%s1684_s10 + $0x4d8] sm:$0xff] }
  0x8a   : > { %568 = vmatprep.mubr.f32.mxu0 %v258_v16  ;;  %793 = vmatprep.mubr.f32.mxu1 %v260_v17  ;;  %v334_v16 = vld [vmem:[%s1684_s10 + $0x4e8] sm:$0xff]  ;;  %v181_v17 = vld [vmem:[%s1684_s10 + $0x20] sm:$0xff] }
  0x8b   : > { %1309 = vmatprep.subr.mxu0 %v401_v18  ;;  %1374 = vmatprep.subr.mxu1 %v401_v18 }
  0x8c   : > { %1310 = vmatpush3.msra.mxu0 %v401_v18  ;;  %1390 = vmatpush3.msra.mxu1 %v401_v18  ;;  %v261_v18 = vld [vmem:[%s1684_s10 + $0x2a0] sm:$0xff] }
  0x8d   : > { %569 = vmatmul.mubr.f32.gmra.mxu0 %v257_v19  ;;  %794 = vmatmul.mubr.f32.gmra.mxu1 %v259_v20  ;;  %v186_v19 = vld [vmem:[%s1684_s10 + $0x48] sm:$0xff] }
  0x8e   : > { %573 = vmatprep.mubr.f32.mxu0 %v263_v21  ;;  %798 = vmatprep.mubr.f32.mxu1 %v265_v22  ;;  %v266_v20 = vld [vmem:[%s1684_s10 + $0x2c8] sm:$0xff]  ;;  %v191_v21 = vld [vmem:[%s1684_s10 + $0x70] sm:$0xff] }
  0x8f   : > { %v271_v22 = vld [vmem:[%s1684_s10 + $0x2f0] sm:$0xff] }
  0x91   : > { %574 = vmatmul.mubr.f32.gmra.mxu0 %v262_v23  ;;  %799 = vmatmul.mubr.f32.gmra.mxu1 %v264_v24  ;;  %v196_v23 = vld [vmem:[%s1684_s10 + $0x98] sm:$0xff] }
  0x92   : > { %578 = vmatprep.mubr.f32.mxu0 %v268_v25  ;;  %803 = vmatprep.mubr.f32.mxu1 %v270_v26  ;;  %v276_v24 = vld [vmem:[%s1684_s10 + $0x318] sm:$0xff]  ;;  %v201_v25 = vld [vmem:[%s1684_s10 + $0xc0] sm:$0xff] }
  0x93   : > { %v281_v26 = vld [vmem:[%s1684_s10 + $0x340] sm:$0xff] }
  0x95   : > { %579 = vmatmul.mubr.f32.gmra.mxu0 %v267_v27  ;;  %804 = vmatmul.mubr.f32.gmra.mxu1 %v269_v28  ;;  %v206_v27 = vld [vmem:[%s1684_s10 + $0xe8] sm:$0xff] }
  0x96   : > { %583 = vmatprep.mubr.f32.mxu0 %v273_v29  ;;  %808 = vmatprep.mubr.f32.mxu1 %v275_v30  ;;  %v286_v28 = vld [vmem:[%s1684_s10 + $0x368] sm:$0xff]  ;;  %v211_v29 = vld [vmem:[%s1684_s10 + $0x110] sm:$0xff] }
  0x97   : > { %v291_v30 = vld [vmem:[%s1684_s10 + $0x390] sm:$0xff] }
  0x99   : > { %584 = vmatmul.mubr.f32.gmra.mxu0 %v272_v31  ;;  %809 = vmatmul.mubr.f32.gmra.mxu1 %v274_v32  ;;  %v216_v31 = vld [vmem:[%s1684_s10 + $0x138] sm:$0xff] }
  0x9a   : > { %588 = vmatprep.mubr.f32.mxu0 %v278_v33  ;;  %813 = vmatprep.mubr.f32.mxu1 %v280_v34  ;;  %v296_v32 = vld [vmem:[%s1684_s10 + $0x3b8] sm:$0xff]  ;;  %v221_v33 = vld [vmem:[%s1684_s10 + $0x160] sm:$0xff] }
  0x9b   : > { %v301_v34 = vld [vmem:[%s1684_s10 + $0x3e0] sm:$0xff] }
  0x9d   : > { %589 = vmatmul.mubr.f32.gmra.mxu0 %v277_v35  ;;  %814 = vmatmul.mubr.f32.gmra.mxu1 %v279_v36  ;;  %v226_v35 = vld [vmem:[%s1684_s10 + $0x188] sm:$0xff] }
  0x9e   : > { %593 = vmatprep.mubr.f32.mxu0 %v283_v37  ;;  %818 = vmatprep.mubr.f32.mxu1 %v285_v38  ;;  %v306_v36 = vld [vmem:[%s1684_s10 + $0x408] sm:$0xff]  ;;  %v231_v37 = vld [vmem:[%s1684_s10 + $0x1b0] sm:$0xff] }
  0x9f   : > { %v311_v38 = vld [vmem:[%s1684_s10 + $0x430] sm:$0xff] }
  0xa1   : > { %594 = vmatmul.mubr.f32.gmra.mxu0 %v282_v39  ;;  %819 = vmatmul.mubr.f32.gmra.mxu1 %v284_v40  ;;  %v236_v39 = vld [vmem:[%s1684_s10 + $0x1d8] sm:$0xff] }
  0xa2   : > { %598 = vmatprep.mubr.f32.mxu0 %v288_v41  ;;  %823 = vmatprep.mubr.f32.mxu1 %v290_v42  ;;  %v316_v40 = vld [vmem:[%s1684_s10 + $0x458] sm:$0xff]  ;;  %v241_v41 = vld [vmem:[%s1684_s10 + $0x200] sm:$0xff] }
  0xa3   : > { %v321_v42 = vld [vmem:[%s1684_s10 + $0x480] sm:$0xff] }
  0xa5   : > { %599 = vmatmul.mubr.f32.gmra.mxu0 %v287_v43  ;;  %824 = vmatmul.mubr.f32.gmra.mxu1 %v289_v44  ;;  %v246_v43 = vld [vmem:[%s1684_s10 + $0x228] sm:$0xff] }
  0xa6   : > { %603 = vmatprep.mubr.f32.mxu0 %v293_v45  ;;  %828 = vmatprep.mubr.f32.mxu1 %v295_v46  ;;  %v326_v44 = vld [vmem:[%s1684_s10 + $0x4a8] sm:$0xff]  ;;  %v251_v45 = vld [vmem:[%s1684_s10 + $0x250] sm:$0xff] }
  0xa7   : > { %v331_v46 = vld [vmem:[%s1684_s10 + $0x4d0] sm:$0xff] }
  0xa9   : > { %604 = vmatmul.mubr.f32.gmra.mxu0 %v292_v47  ;;  %829 = vmatmul.mubr.f32.gmra.mxu1 %v294_v48  ;;  %v256_v47 = vld [vmem:[%s1684_s10 + $0x278] sm:$0xff] }
  0xaa   : > { %608 = vmatprep.mubr.f32.mxu0 %v298_v49  ;;  %833 = vmatprep.mubr.f32.mxu1 %v300_v50  ;;  %v336_v48 = vld [vmem:[%s1684_s10 + $0x4f8] sm:$0xff]  ;;  %v1915_v49 = vld [vmem:[%s2118_s2] ss:$0 sm:$0xff]  ;;  %s1227_s10 = sshll.u32 %s2121_s4, 3 }
  0xab   : > { %s2029_s7 = scalar_lea.vmem %s2119_s3, %s1227_s10 }
  0xad   : > { %609 = vmatmul.mubr.f32.gmra.mxu0 %v297_v51  ;;  %834 = vmatmul.mubr.f32.gmra.mxu1 %v299_v52 }
  0xae   : > { %613 = vmatprep.mubr.f32.mxu0 %v303_v53  ;;  %838 = vmatprep.mubr.f32.mxu1 %v305_v54 }
  0xb1   : > { %614 = vmatmul.mubr.f32.gmra.mxu0 %v302_v55  ;;  %839 = vmatmul.mubr.f32.gmra.mxu1 %v304_v56 }
  0xb2   : > { %618 = vmatprep.mubr.f32.mxu0 %v308_v57  ;;  %843 = vmatprep.mubr.f32.mxu1 %v310_v58 }
  0xb5   : > { %619 = vmatmul.mubr.f32.gmra.mxu0 %v307_v59  ;;  %844 = vmatmul.mubr.f32.gmra.mxu1 %v309_v60 }
  0xb6   : > { %623 = vmatprep.mubr.f32.mxu0 %v313_v61  ;;  %848 = vmatprep.mubr.f32.mxu1 %v315_v62 }
  0xb9   : > { %624 = vmatmul.mubr.f32.gmra.mxu0 %v312_v63  ;;  %849 = vmatmul.mubr.f32.gmra.mxu1 %v314_v0 }
  0xba   : > { %628 = vmatprep.mubr.f32.mxu0 %v318_v1  ;;  %853 = vmatprep.mubr.f32.mxu1 %v320_v3 }
  0xbd   : > { %629 = vmatmul.mubr.f32.gmra.mxu0 %v317_v4  ;;  %854 = vmatmul.mubr.f32.gmra.mxu1 %v319_v5 }
  0xbe   : > { %633 = vmatprep.mubr.f32.mxu0 %v323_v6  ;;  %858 = vmatprep.mubr.f32.mxu1 %v325_v7 }
  0xc1   : > { %634 = vmatmul.mubr.f32.gmra.mxu0 %v322_v8  ;;  %859 = vmatmul.mubr.f32.gmra.mxu1 %v324_v2 }
  0xc2   : > { %638 = vmatprep.mubr.f32.mxu0 %v328_v9  ;;  %863 = vmatprep.mubr.f32.mxu1 %v330_v10 }
  0xc5   : > { %639 = vmatmul.mubr.f32.gmra.mxu0 %v327_v11  ;;  %864 = vmatmul.mubr.f32.gmra.mxu1 %v329_v12 }
  0xc6   : > { %643 = vmatprep.mubr.f32.mxu0 %v333_v13  ;;  %868 = vmatprep.mubr.f32.mxu1 %v335_v14 }
  0xc9   : > { %644 = vmatmul.mubr.f32.gmra.mxu0 %v332_v15  ;;  %869 = vmatmul.mubr.f32.gmra.mxu1 %v334_v16 }
  0xca   : > { %1311 = vmatprep.mubr.f32.mxu0 %v181_v17  ;;  %1335 = vmatprep.mubr.f32.mxu1 %v261_v18 }
  0xcd   : > { %1312 = vmatmul.mubr.f32.vlgmr.msra.gmra.mxu0 %v186_v19  ;;  %1336 = vmatmul.mubr.f32.vlgmr.msra.gmra.mxu1 %v266_v20 }
  0xce   : > { %1314 = vmatprep.mubr.f32.mxu0 %v191_v21  ;;  %1338 = vmatprep.mubr.f32.mxu1 %v271_v22 }
  0xd1   : > { %1315 = vmatmul.mubr.f32.gmra.mxu0 %v196_v23  ;;  %1339 = vmatmul.mubr.f32.gmra.mxu1 %v276_v24 }
  0xd2   : > { %1317 = vmatprep.mubr.f32.mxu0 %v201_v25  ;;  %1341 = vmatprep.mubr.f32.mxu1 %v281_v26 }
  0xd5   : > { %1318 = vmatmul.mubr.f32.gmra.mxu0 %v206_v27  ;;  %1342 = vmatmul.mubr.f32.gmra.mxu1 %v286_v28 }
  0xd6   : > { %1320 = vmatprep.mubr.f32.mxu0 %v211_v29  ;;  %1344 = vmatprep.mubr.f32.mxu1 %v291_v30 }
  0xd9   : > { %1321 = vmatmul.mubr.f32.gmra.mxu0 %v216_v31  ;;  %1345 = vmatmul.mubr.f32.gmra.mxu1 %v296_v32 }
  0xda   : > { %1323 = vmatprep.mubr.f32.mxu0 %v221_v33  ;;  %1347 = vmatprep.mubr.f32.mxu1 %v301_v34 }
  0xdd   : > { %1324 = vmatmul.mubr.f32.gmra.mxu0 %v226_v35  ;;  %1348 = vmatmul.mubr.f32.gmra.mxu1 %v306_v36 }
  0xde   : > { %1326 = vmatprep.mubr.f32.mxu0 %v231_v37  ;;  %1350 = vmatprep.mubr.f32.mxu1 %v311_v38 }
  0xe1   : > { %1327 = vmatmul.mubr.f32.gmra.mxu0 %v236_v39  ;;  %1351 = vmatmul.mubr.f32.gmra.mxu1 %v316_v40 }
  0xe2   : > { %1329 = vmatprep.mubr.f32.mxu0 %v241_v41  ;;  %1353 = vmatprep.mubr.f32.mxu1 %v321_v42 }
  0xe5   : > { %1330 = vmatmul.mubr.f32.gmra.mxu0 %v246_v43  ;;  %1354 = vmatmul.mubr.f32.gmra.mxu1 %v326_v44 }
  0xe6   : > { %1332 = vmatprep.mubr.f32.mxu0 %v251_v45  ;;  %1356 = vmatprep.mubr.f32.mxu1 %v331_v46 }
  0xe9   : > { %1333 = vmatmul.mubr.f32.gmra.mxu0 %v256_v47  ;;  %1357 = vmatmul.mubr.f32.gmra.mxu1 %v336_v48 }
 0x10d   : > { %v490_v50 = vpop.f32.mrf.mxu0  ;;  %v715_v51 = vpop.f32.mrf.mxu1 }
 0x10e   : > { %v491_v52 = vadd.f32 %v1915_v49, %v490_v50 }
 0x10f   : > { %v492_v53 = vpop.f32.mrf.mxu0  ;;  %v717_v54 = vpop.f32.mrf.mxu1 }
 0x110   : > { %v1918_v55 = vadd.f32 %v715_v51, %v491_v52 }
 0x111   : > { %v495_v56 = vpop.f32.mrf.mxu0  ;;  %v720_v57 = vpop.f32.mrf.mxu1 }
 0x112   : > { %v496_v58 = vadd.f32 %v1915_v49, %v495_v56 }
 0x113   : > { %v497_v59 = vpop.f32.mrf.mxu0  ;;  %v722_v60 = vpop.f32.mrf.mxu1 }
 0x114   : > { %v1921_v61 = vadd.f32 %v720_v57, %v496_v58 }
 0x115   : > { %v500_v62 = vpop.f32.mrf.mxu0  ;;  %v725_v63 = vpop.f32.mrf.mxu1 }
 0x116   : > { %v501_v0 = vadd.f32 %v1915_v49, %v500_v62 }
 0x117   : > { %v502_v1 = vpop.f32.mrf.mxu0  ;;  %v727_v3 = vpop.f32.mrf.mxu1 }
 0x118   : > { %v1924_v4 = vadd.f32 %v725_v63, %v501_v0 }
 0x119   : > { %v505_v5 = vpop.f32.mrf.mxu0  ;;  %v730_v6 = vpop.f32.mrf.mxu1 }
 0x11a   : > { %v506_v7 = vadd.f32 %v1915_v49, %v505_v5 }
 0x11b   : > { %v507_v8 = vpop.f32.mrf.mxu0  ;;  %v732_v2 = vpop.f32.mrf.mxu1 }
 0x11c   : > { %v1927_v9 = vadd.f32 %v730_v6, %v506_v7 }
 0x11d   : > { %v510_v10 = vpop.f32.mrf.mxu0  ;;  %v735_v11 = vpop.f32.mrf.mxu1 }
 0x11e   : > { %v511_v12 = vadd.f32 %v1915_v49, %v510_v10 }
 0x11f   : > { %v512_v13 = vpop.f32.mrf.mxu0  ;;  %v737_v14 = vpop.f32.mrf.mxu1 }
 0x120   : > { %v1930_v15 = vadd.f32 %v735_v11, %v511_v12 }
 0x121   : > { %v515_v16 = vpop.f32.mrf.mxu0  ;;  %v740_v17 = vpop.f32.mrf.mxu1 }
 0x122   : > { %v516_v18 = vadd.f32 %v1915_v49, %v515_v16 }
 0x123   : > { %v517_v19 = vpop.f32.mrf.mxu0  ;;  %v742_v20 = vpop.f32.mrf.mxu1 }
 0x124   : > { %v1933_v21 = vadd.f32 %v740_v17, %v516_v18 }
 0x125   : > { %v520_v22 = vpop.f32.mrf.mxu0  ;;  %v745_v23 = vpop.f32.mrf.mxu1 }
 0x126   : > { %v521_v24 = vadd.f32 %v1915_v49, %v520_v22 }
 0x127   : > { %v522_v25 = vpop.f32.mrf.mxu0  ;;  %v747_v26 = vpop.f32.mrf.mxu1 }
 0x128   : > { %v1936_v27 = vadd.f32 %v745_v23, %v521_v24 }
 0x129   : > { %v525_v28 = vpop.f32.mrf.mxu0  ;;  %v750_v29 = vpop.f32.mrf.mxu1 }
 0x12a   : > { %v526_v30 = vadd.f32 %v1915_v49, %v525_v28 }
 0x12b   : > { %v527_v31 = vpop.f32.mrf.mxu0  ;;  %v752_v32 = vpop.f32.mrf.mxu1 }
 0x12c   : > { %v1939_v33 = vadd.f32 %v750_v29, %v526_v30 }
 0x12d   : > { %v530_v34 = vpop.f32.mrf.mxu0  ;;  %v755_v35 = vpop.f32.mrf.mxu1 }
 0x12e   : > { %v531_v36 = vadd.f32 %v1915_v49, %v530_v34 }
 0x12f   : > { %v532_v37 = vpop.f32.mrf.mxu0  ;;  %v757_v38 = vpop.f32.mrf.mxu1 }
 0x130   : > { %v1942_v39 = vadd.f32 %v755_v35, %v531_v36 }
 0x131   : > { %v535_v40 = vpop.f32.mrf.mxu0  ;;  %v760_v41 = vpop.f32.mrf.mxu1 }
 0x132   : > { %v536_v42 = vadd.f32 %v1915_v49, %v535_v40 }
 0x133   : > { %v537_v43 = vpop.f32.mrf.mxu0  ;;  %v762_v44 = vpop.f32.mrf.mxu1 }
 0x134   : > { %v1945_v45 = vadd.f32 %v760_v41, %v536_v42 }
 0x135   : > { %v540_v46 = vpop.f32.mrf.mxu0  ;;  %v765_v47 = vpop.f32.mrf.mxu1 }
 0x136   : > { %v541_v48 = vadd.f32 %v1915_v49, %v540_v46 }
 0x137   : > { %v542_v50 = vpop.f32.mrf.mxu0  ;;  %v767_v51 = vpop.f32.mrf.mxu1 }
 0x138   : > { %v1948_v52 = vadd.f32 %v765_v47, %v541_v48 }
 0x139   : > { %v545_v53 = vpop.f32.mrf.mxu0  ;;  %v770_v54 = vpop.f32.mrf.mxu1 }
 0x13a   : > { %v546_v56 = vadd.f32 %v1915_v49, %v545_v53 }
 0x13b   : > { %v547_v57 = vpop.f32.mrf.mxu0  ;;  %v772_v58 = vpop.f32.mrf.mxu1 }
 0x13c   : > { %v1951_v59 = vadd.f32 %v770_v54, %v546_v56 }
 0x13d   : > { %v550_v60 = vpop.f32.mrf.mxu0  ;;  %v775_v62 = vpop.f32.mrf.mxu1 }
 0x13e   : > { %v551_v63 = vadd.f32 %v1915_v49, %v550_v60 }
 0x13f   : > { %v552_v0 = vpop.f32.mrf.mxu0  ;;  %v777_v1 = vpop.f32.mrf.mxu1 }
 0x140   : > { %v1954_v3 = vadd.f32 %v775_v62, %v551_v63 }
 0x141   : > { %v555_v5 = vpop.f32.mrf.mxu0  ;;  %v780_v6 = vpop.f32.mrf.mxu1 }
 0x142   : > { %v556_v7 = vadd.f32 %v1915_v49, %v555_v5 }
 0x143   : > { %v557_v8 = vpop.f32.mrf.mxu0  ;;  %v782_v2 = vpop.f32.mrf.mxu1 }
 0x144   : > { %v1957_v10 = vadd.f32 %v780_v6, %v556_v7 }
 0x145   : > { %v560_v11 = vpop.f32.mrf.mxu0  ;;  %v785_v12 = vpop.f32.mrf.mxu1 }
 0x146   : > { %v561_v13 = vadd.f32 %v1915_v49, %v560_v11 }
 0x147   : > { %v562_v14 = vpop.f32.mrf.mxu0  ;;  %v787_v16 = vpop.f32.mrf.mxu1 }
 0x148   : > { %v1960_v17 = vadd.f32 %v785_v12, %v561_v13 }
 0x149   : > { %v565_v18 = vpop.f32.mrf.mxu0  ;;  %v790_v19 = vpop.f32.mrf.mxu1 }
 0x14a   : > { %v566_v20 = vadd.f32 %v1915_v49, %v565_v18 }
 0x14b   : > { %v567_v22 = vpop.f32.mrf.mxu0  ;;  %v792_v23 = vpop.f32.mrf.mxu1 }
 0x14c   : > { %v1963_v24 = vadd.f32 %v790_v19, %v566_v20 }
 0x14d   : > { %v1965_v25 = vpop.f32.mrf.mxu0  ;;  %v1967_v26 = vpop.f32.mrf.mxu1 }
 0x14f   : > { %v572_v28 = vpop.f32.mrf.mxu0  ;;  %v797_v29 = vpop.f32.mrf.mxu1 }
 0x151   : > { %v575_v30 = vpop.f32.mrf.mxu0  ;;  %v800_v31 = vpop.f32.mrf.mxu1 }
 0x153   : > { %v577_v32 = vpop.f32.mrf.mxu0  ;;  %v802_v34 = vpop.f32.mrf.mxu1 }
 0x155   : > { %v580_v35 = vpop.f32.mrf.mxu0  ;;  %v1969_v36 = vpop.f32.mrf.mxu1 }
 0x157   : > { %v582_v37 = vpop.f32.mrf.mxu0  ;;  %v807_v38 = vpop.f32.mrf.mxu1 }
 0x159   : > { %v585_v40 = vpop.f32.mrf.mxu0  ;;  %v810_v41 = vpop.f32.mrf.mxu1 }
 0x15b   : > { %v587_v42 = vpop.f32.mrf.mxu0  ;;  %v812_v43 = vpop.f32.mrf.mxu1 }
 0x15d   : > { %v1971_v44 = vpop.f32.mrf.mxu0  ;;  %v1973_v46 = vpop.f32.mrf.mxu1 }
 0x15f   : > { %v592_v47 = vpop.f32.mrf.mxu0  ;;  %v817_v48 = vpop.f32.mrf.mxu1 }
 0x161   : > { %v595_v50 = vpop.f32.mrf.mxu0  ;;  %v1975_v51 = vpop.f32.mrf.mxu1 }
 0x163   : > { %v597_v53 = vpop.f32.mrf.mxu0  ;;  %v822_v54 = vpop.f32.mrf.mxu1 }
 0x165   : > { %v1977_v56 = vpop.f32.mrf.mxu0  ;;  %v1979_v57 = vpop.f32.mrf.mxu1 }
 0x167   : > { %v602_v58 = vpop.f32.mrf.mxu0  ;;  %v827_v60 = vpop.f32.mrf.mxu1 }
 0x168   : > { %v576_v60 = vadd.f32 %v1915_v49, %v575_v30 }
 0x169   : > { %v1981_v62 = vpop.f32.mrf.mxu0  ;;  %v1983_v63 = vpop.f32.mrf.mxu1 }
 0x16b   : > { %v607_v0 = vpop.f32.mrf.mxu0  ;;  %v832_v1 = vpop.f32.mrf.mxu1 }
 0x16d   : > { %v1985_v5 = vpop.f32.mrf.mxu0  ;;  %v1987_v6 = vpop.f32.mrf.mxu1 }
 0x16f   : > { %v612_v7 = vpop.f32.mrf.mxu0  ;;  %v837_v8 = vpop.f32.mrf.mxu1 }
 0x170   : > { %v571_v7 = vadd.f32 %v1915_v49, %v1965_v25  ;;  %v586_v8 = vadd.f32 %v1915_v49, %v585_v40 }
 0x171   : > { %v1989_v2 = vpop.f32.mrf.mxu0  ;;  %v1991_v11 = vpop.f32.mrf.mxu1 }
 0x173   : > { %v617_v12 = vpop.f32.mrf.mxu0  ;;  %v842_v13 = vpop.f32.mrf.mxu1 }
 0x175   : > { %v1993_v14 = vpop.f32.mrf.mxu0  ;;  %v1995_v16 = vpop.f32.mrf.mxu1 }
 0x177   : > { %v622_v18 = vpop.f32.mrf.mxu0  ;;  %v847_v19 = vpop.f32.mrf.mxu1 }
 0x178   : > { %v801_v18 = vadd.f32 %v800_v31, %v576_v60  ;;  %v581_v19 = vadd.f32 %v1915_v49, %v580_v35 }
 0x179   : > { %v1997_v20 = vpop.f32.mrf.mxu0  ;;  %v1999_v22 = vpop.f32.mrf.mxu1 }
 0x17b   : > { %v627_v23 = vpop.f32.mrf.mxu0  ;;  %v852_v28 = vpop.f32.mrf.mxu1 }
 0x17d   : > { %v2001_v29 = vpop.f32.mrf.mxu0  ;;  %v2003_v32 = vpop.f32.mrf.mxu1 }
 0x17f   : > { %v632_v34 = vpop.f32.mrf.mxu0  ;;  %v857_v37 = vpop.f32.mrf.mxu1 }
 0x180   : > { %v796_v34 = vadd.f32 %v1967_v26, %v571_v7 }
 0x181   : > { %v2005_v38 = vpop.f32.mrf.mxu0  ;;  %v2007_v42 = vpop.f32.mrf.mxu1 }
 0x183   : > { %v637_v43 = vpop.f32.mrf.mxu0  ;;  %v862_v47 = vpop.f32.mrf.mxu1 }
 0x184   : > { %v811_v43 = vadd.f32 %v810_v41, %v586_v8  ;;  %v596_v47 = vadd.f32 %v1915_v49, %v595_v50  ;;  %v591_v41 = vadd.f32 %v1915_v49, %v1971_v44 }
 0x185   : > { %v2009_v48 = vpop.f32.mrf.mxu0  ;;  %v2011_v53 = vpop.f32.mrf.mxu1 }
 0x187   : > { %v642_v54 = vpop.f32.mrf.mxu0  ;;  %v867_v58 = vpop.f32.mrf.mxu1 }
 0x189   : > { %v2014_v0 = vpop.f32.mrf.mxu0  ;;  %v2016_v1 = vpop.f32.mrf.mxu1 }
 0x18b   : > { %v647_v12 = vpop.f32.mrf.mxu0  ;;  %v872_v13 = vpop.f32.mrf.mxu1 }
 0x18c   : > { %v606_v13 = vadd.f32 %v1915_v49, %v1981_v62 }
 0x18d   : > { %v1313_v23 = vpop.f32.mrf.mxu0  ;;  %v1337_v28 = vpop.f32.mrf.mxu1 }
 0x18e   : > { %v946_v30 = vadd.f32 %v1313_v23, %v1921_v61  ;;  %v1026_v37 = vadd.f32 %v1337_v28, %v801_v18  ;;  %v806_v61 = vadd.f32 %v1969_v36, %v581_v19 }
 0x18f   : > { %v940_v25 = vpop.f32.mrf.mxu0  ;;  %v1020_v31 = vpop.f32.mrf.mxu1 }
 0x190   : > { %v1100_v35 = vmax.f32 %v946_v30, 0.0  ;;  %v1116_v40 = vmax.f32 %v1026_v37, 0.0  ;;  %v941_v54 = vadd.f32 %v940_v25, %v1918_v55  ;;  %v1021_v26 = vadd.f32 %v1020_v31, %v796_v34 }
 0x191   : > { %v1316_v50 = vpop.f32.mrf.mxu0  ;;  %v1340_v58 = vpop.f32.mrf.mxu1  ;;  %v821_v55 = vadd.f32 %v1975_v51, %v596_v47  ;;  %v601_v34 = vadd.f32 %v1915_v49, %v1977_v56  ;;  %v616_v25 = vadd.f32 %v1915_v49, %v1989_v2 }
 0x192   : > { %1132 = vst [vmem:[%s2029_s7 + $0x8] sm:$0xff] %v1100_v35  ;;  %1148 = vst [vmem:[%s2029_s7 + $0x88] sm:$0xff] %v1116_v40  ;;  %v1099_v60 = vmax.f32 %v941_v54, 0.0  ;;  %v1115_v7 = vmax.f32 %v1021_v26, 0.0  ;;  %v956_v8 = vadd.f32 %v1316_v50, %v1927_v9  ;;  %v1036_v12 = vadd.f32 %v1340_v58, %v811_v43 }
 0x193   : > { %v950_v36 = vpop.f32.mrf.mxu0  ;;  %v1030_v18 = vpop.f32.mrf.mxu1  ;;  %v816_v9 = vadd.f32 %v1973_v46, %v591_v41  ;;  %v611_v26 = vadd.f32 %v1915_v49, %v1985_v5 }
 0x194   : > { %1131 = vst [vmem:[%s2029_s7] sm:$0xff] %v1099_v60  ;;  %1147 = vst [vmem:[%s2029_s7 + $0x80] sm:$0xff] %v1115_v7  ;;  %v1102_v44 = vmax.f32 %v956_v8, 0.0  ;;  %v1118_v19 = vmax.f32 %v1036_v12, 0.0  ;;  %v951_v23 = vadd.f32 %v950_v36, %v1924_v4  ;;  %v1031_v28 = vadd.f32 %v1030_v18, %v806_v61 }
 0x195   : > { %v1319_v51 = vpop.f32.mrf.mxu0  ;;  %v1343_v30 = vpop.f32.mrf.mxu1  ;;  %v831_v4 = vadd.f32 %v1983_v63, %v606_v13  ;;  %v626_v60 = vadd.f32 %v1915_v49, %v1997_v20  ;;  %v621_v13 = vadd.f32 %v1915_v49, %v1993_v14 }
 0x196   : > { %1134 = vst [vmem:[%s2029_s7 + $0x18] sm:$0xff] %v1102_v44  ;;  %1150 = vst [vmem:[%s2029_s7 + $0x98] sm:$0xff] %v1118_v19  ;;  %v1101_v62 = vmax.f32 %v951_v23, 0.0  ;;  %v1117_v37 = vmax.f32 %v1031_v28, 0.0  ;;  %v966_v43 = vadd.f32 %v1319_v51, %v1933_v21  ;;  %v1046_v47 = vadd.f32 %v1343_v30, %v821_v55 }
 0x197   : > { %v960_v46 = vpop.f32.mrf.mxu0  ;;  %v1040_v31 = vpop.f32.mrf.mxu1  ;;  %v826_v21 = vadd.f32 %v1979_v57, %v601_v34  ;;  %v636_v23 = vadd.f32 %v1915_v49, %v2005_v38  ;;  %v631_v30 = vadd.f32 %v1915_v49, %v2001_v29 }
 0x198   : > { %1133 = vst [vmem:[%s2029_s7 + $0x10] sm:$0xff] %v1101_v62  ;;  %1149 = vst [vmem:[%s2029_s7 + $0x90] sm:$0xff] %v1117_v37  ;;  %v1104_v56 = vmax.f32 %v966_v43, 0.0  ;;  %v1120_v35 = vmax.f32 %v1046_v47, 0.0  ;;  %v961_v40 = vadd.f32 %v960_v46, %v1930_v15  ;;  %v1041_v54 = vadd.f32 %v1040_v31, %v816_v9 }
 0x199   : > { %v1322_v63 = vpop.f32.mrf.mxu0  ;;  %v1346_v61 = vpop.f32.mrf.mxu1  ;;  %v841_v15 = vadd.f32 %v1991_v11, %v616_v25 }
 0x19a   : > { %1136 = vst [vmem:[%s2029_s7 + $0x28] sm:$0xff] %v1104_v56  ;;  %1152 = vst [vmem:[%s2029_s7 + $0xa8] sm:$0xff] %v1120_v35  ;;  %v1103_v2 = vmax.f32 %v961_v40, 0.0  ;;  %v1119_v41 = vmax.f32 %v1041_v54, 0.0  ;;  %v976_v50 = vadd.f32 %v1322_v63, %v1939_v33  ;;  %v1056_v58 = vadd.f32 %v1346_v61, %v831_v4 }
 0x19b   : > { %v970_v57 = vpop.f32.mrf.mxu0  ;;  %v1050_v7 = vpop.f32.mrf.mxu1  ;;  %v836_v33 = vadd.f32 %v1987_v6, %v611_v26  ;;  %v646_v4 = vadd.f32 %v1915_v49, %v2014_v0  ;;  %v641_v35 = vadd.f32 %v1915_v49, %v2009_v48 }
 0x19c   : > { %1135 = vst [vmem:[%s2029_s7 + $0x20] sm:$0xff] %v1103_v2  ;;  %1151 = vst [vmem:[%s2029_s7 + $0xa0] sm:$0xff] %v1119_v41  ;;  %v1106_v5 = vmax.f32 %v976_v50, 0.0  ;;  %v1122_v8 = vmax.f32 %v1056_v58, 0.0  ;;  %v971_v12 = vadd.f32 %v970_v57, %v1936_v27  ;;  %v1051_v55 = vadd.f32 %v1050_v7, %v826_v21 }
 0x19d   : > { %v1325_v11 = vpop.f32.mrf.mxu0  ;;  %v1349_v36 = vpop.f32.mrf.mxu1  ;;  %v851_v27 = vadd.f32 %v1999_v22, %v626_v60  ;;  %v866_v41 = vadd.f32 %v2011_v53, %v641_v35 }
 0x19e   : > { %1138 = vst [vmem:[%s2029_s7 + $0x38] sm:$0xff] %v1106_v5  ;;  %1154 = vst [vmem:[%s2029_s7 + $0xb8] sm:$0xff] %v1122_v8  ;;  %v1105_v20 = vmax.f32 %v971_v12, 0.0  ;;  %v1121_v18 = vmax.f32 %v1051_v55, 0.0  ;;  %v986_v44 = vadd.f32 %v1325_v11, %v1945_v45  ;;  %v1066_v19 = vadd.f32 %v1349_v36, %v841_v15 }
 0x19f   : > { %v980_v6 = vpop.f32.mrf.mxu0  ;;  %v1060_v28 = vpop.f32.mrf.mxu1  ;;  %v846_v45 = vadd.f32 %v1995_v16, %v621_v13 }
 0x1a0   : > { %1137 = vst [vmem:[%s2029_s7 + $0x30] sm:$0xff] %v1105_v20  ;;  %1153 = vst [vmem:[%s2029_s7 + $0xb0] sm:$0xff] %v1121_v18  ;;  %v1108_v14 = vmax.f32 %v986_v44, 0.0  ;;  %v1124_v9 = vmax.f32 %v1066_v19, 0.0  ;;  %v981_v34 = vadd.f32 %v980_v6, %v1942_v39  ;;  %v1061_v51 = vadd.f32 %v1060_v28, %v836_v33 }
 0x1a1   : > { %v1328_v22 = vpop.f32.mrf.mxu0  ;;  %v1352_v62 = vpop.f32.mrf.mxu1  ;;  %v861_v39 = vadd.f32 %v2007_v42, %v636_v23 }
 0x1a2   : > { %1140 = vst [vmem:[%s2029_s7 + $0x48] sm:$0xff] %v1108_v14  ;;  %1156 = vst [vmem:[%s2029_s7 + $0xc8] sm:$0xff] %v1124_v9  ;;  %v1107_v38 = vmax.f32 %v981_v34, 0.0  ;;  %v1123_v37 = vmax.f32 %v1061_v51, 0.0  ;;  %v996_v43 = vadd.f32 %v1328_v22, %v1951_v59  ;;  %v1076_v47 = vadd.f32 %v1352_v62, %v851_v27 }
 0x1a3   : > { %v990_v16 = vpop.f32.mrf.mxu0  ;;  %v1070_v25 = vpop.f32.mrf.mxu1  ;;  %v856_v59 = vadd.f32 %v2003_v32, %v631_v30 }
 0x1a4   : > { %1139 = vst [vmem:[%s2029_s7 + $0x40] sm:$0xff] %v1107_v38  ;;  %1155 = vst [vmem:[%s2029_s7 + $0xc0] sm:$0xff] %v1123_v37  ;;  %v1110_v29 = vmax.f32 %v996_v43, 0.0  ;;  %v1126_v46 = vmax.f32 %v1076_v47, 0.0  ;;  %v991_v31 = vadd.f32 %v990_v16, %v1948_v52  ;;  %v1071_v56 = vadd.f32 %v1070_v25, %v846_v45 }
 0x1a5   : > { %v1331_v42 = vpop.f32.mrf.mxu0  ;;  %v1355_v40 = vpop.f32.mrf.mxu1  ;;  %v871_v52 = vadd.f32 %v2016_v1, %v646_v4 }
 0x1a6   : > { %1142 = vst [vmem:[%s2029_s7 + $0x58] sm:$0xff] %v1110_v29  ;;  %1158 = vst [vmem:[%s2029_s7 + $0xd8] sm:$0xff] %v1126_v46  ;;  %v1109_v0 = vmax.f32 %v991_v31, 0.0  ;;  %v1125_v54 = vmax.f32 %v1071_v56, 0.0  ;;  %v1006_v21 = vadd.f32 %v1331_v42, %v1957_v10  ;;  %v1086_v26 = vadd.f32 %v1355_v40, %v861_v39 }
 0x1a7   : > { %v1000_v63 = vpop.f32.mrf.mxu0  ;;  %v1080_v61 = vpop.f32.mrf.mxu1 }
 0x1a8   : > { %1141 = vst [vmem:[%s2029_s7 + $0x50] sm:$0xff] %v1109_v0  ;;  %1157 = vst [vmem:[%s2029_s7 + $0xd0] sm:$0xff] %v1125_v54  ;;  %v1112_v32 = vmax.f32 %v1006_v21, 0.0  ;;  %v1128_v49 = vmax.f32 %v1086_v26, 0.0  ;;  %v1001_v48 = vadd.f32 %v1000_v63, %v1954_v3  ;;  %v1081_v2 = vadd.f32 %v1080_v61, %v856_v59 }
 0x1a9   : > { %v1334_v50 = vpop.f32.mrf.mxu0  ;;  %v1358_v58 = vpop.f32.mrf.mxu1 }
 0x1aa   : > { %1144 = vst [vmem:[%s2029_s7 + $0x68] sm:$0xff] %v1112_v32  ;;  %1160 = vst [vmem:[%s2029_s7 + $0xe8] sm:$0xff] %v1128_v49  ;;  %v1111_v10 = vmax.f32 %v1001_v48, 0.0  ;;  %v1127_v1 = vmax.f32 %v1081_v2, 0.0  ;;  %v1016_v15 = vadd.f32 %v1334_v50, %v1963_v24  ;;  %v1096_v60 = vadd.f32 %v1358_v58, %v871_v52 }
 0x1ab   : > { %v1010_v57 = vpop.f32.mrf.mxu0  ;;  %v1090_v7 = vpop.f32.mrf.mxu1 }
 0x1ac   : > { %1143 = vst [vmem:[%s2029_s7 + $0x60] sm:$0xff] %v1111_v10  ;;  %1159 = vst [vmem:[%s2029_s7 + $0xe0] sm:$0xff] %v1127_v1  ;;  %v1114_v3 = vmax.f32 %v1016_v15, 0.0  ;;  %v1130_v5 = vmax.f32 %v1096_v60, 0.0  ;;  %v1011_v53 = vadd.f32 %v1010_v57, %v1960_v17  ;;  %v1091_v8 = vadd.f32 %v1090_v7, %v866_v41 }
 0x1ae   : > { %1146 = vst [vmem:[%s2029_s7 + $0x78] sm:$0xff] %v1114_v3  ;;  %1162 = vst [vmem:[%s2029_s7 + $0xf8] sm:$0xff] %v1130_v5  ;;  %v1113_v12 = vmax.f32 %v1011_v53, 0.0  ;;  %v1129_v55 = vmax.f32 %v1091_v8, 0.0 }
 0x1b0   : > { %1145 = vst [vmem:[%s2029_s7 + $0x70] sm:$0xff] %v1113_v12  ;;  %1161 = vst [vmem:[%s2029_s7 + $0xf0] sm:$0xff] %v1129_v55 }
 0x1b1 PF: > { %s13_s12 = sadd.s32 1, %s1407_s12  }
 0x1b2   : > { %p10_p4 = scmp.ge.s32.totalorder %s13_s12, 4  }
 0x1b4   :  { %12 = sbr.rel (!%p10_p4) target bundleno = 1 (0x1), region = 62 }

// kernel: autoencoder9_forward.20
= control target key start
LH: loop header
LB: loop body
LE: loop exit
PB: predicated region body
PF: predicated region fallthrough
CT: control target
= control target key end

     0   :  { %s2072_s12 = smov 0   ;;  %s3235_s0 = inlined_call_operand.vmem [shape: f32[1536,1152], index: 0, kind: input, shape index: {}]   ;;  %s3236_s1 = inlined_call_operand.vmem [shape: f32[1152,128], index: 1, kind: input, shape index: {}]   ;;  %s3237_s2 = inlined_call_operand.vmem [shape: f32[1,128], index: 2, kind: input, shape index: {}]   ;;  %s3238_s3 = inlined_call_operand.vmem [shape: f32[1536,128], index: 3, kind: output, shape index: {}]  }
   0x1 LB: > { %s1861_s13 = sadd.s32 4294967295, %s2049_s12   ;;  %p1865_p0 = scmp.ge.s32.totalorder %s2049_s12, 1  ;;  %s2049_s12 = sphi %s2072_s12, %s13_s12  }
   0x2   : > { %p139_p1 = scmp.lt.s32.totalorder %s2049_s12, 7 }
   0x4   : > { %p140_p2 = pnand %p1865_p0, %p139_p1 }
   0x6   : > { %143 = sbr.rel (%p140_p2) target bundleno = 561 (0x231), region = 32 }
   0xb   : > { %v480_v0 = vld [vmem:[%s3236_s1 + $0x78] sm:$0xff]  ;;  %v2051_v2 = vmov 0.0   ;;  %v479_v3 = vld [vmem:[%s3236_s1 + $0x70] sm:$0xff]  ;;  %v478_v5 = vld [vmem:[%s3236_s1 + $0x68] sm:$0xff]  ;;  %s1866_s4 = sshll.u32 %s1861_s13, 5 }
   0xc   : > { %v512_v1 = vld [vmem:[%s3236_s1 + $0x178] sm:$0xff]  ;;  %616 = vmatprep.subr.mxu0 %v2051_v2  ;;  %841 = vmatprep.subr.mxu1 %v2051_v2  ;;  %v511_v4 = vld [vmem:[%s3236_s1 + $0x170] sm:$0xff]  ;;  %v510_v6 = vld [vmem:[%s3236_s1 + $0x168] sm:$0xff]  ;;  %p165_p3 = scmp.lt.s32.totalorder %s1866_s4, 191 }
   0xd   : > { %617 = vmatpush1.msra.mxu0 %v480_v0  ;;  %842 = vmatpush1.msra.mxu1 %v512_v1  ;;  %v477_v7 = vld [vmem:[%s3236_s1 + $0x60] sm:$0xff]  ;;  %v476_v9 = vld [vmem:[%s3236_s1 + $0x58] sm:$0xff]  ;;  %v475_v11 = vld [vmem:[%s3236_s1 + $0x50] sm:$0xff] }
   0xe   : > { %618 = vmatprep.subr.mxu0 %v2051_v2  ;;  %843 = vmatprep.subr.mxu1 %v2051_v2  ;;  %v509_v8 = vld [vmem:[%s3236_s1 + $0x160] sm:$0xff]  ;;  %v508_v10 = vld [vmem:[%s3236_s1 + $0x158] sm:$0xff]  ;;  %v507_v12 = vld [vmem:[%s3236_s1 + $0x150] sm:$0xff]  ;;  %s3258_s4 = smov (!%p165_p3, %s1866_s4), 191 }
   0xf   : > { %619 = vmatpush1.msra.mxu0 %v479_v3  ;;  %844 = vmatpush1.msra.mxu1 %v511_v4  ;;  %v474_v13 = vld [vmem:[%s3236_s1 + $0x48] sm:$0xff]  ;;  %v473_v15 = vld [vmem:[%s3236_s1 + $0x40] sm:$0xff]  ;;  %v472_v17 = vld [vmem:[%s3236_s1 + $0x38] sm:$0xff]  ;;  %s2033_s26 = smul.u32 72, %s3258_s4 }
  0x10   : > { %620 = vmatprep.subr.mxu0 %v2051_v2  ;;  %845 = vmatprep.subr.mxu1 %v2051_v2  ;;  %v506_v14 = vld [vmem:[%s3236_s1 + $0x148] sm:$0xff]  ;;  %v505_v16 = vld [vmem:[%s3236_s1 + $0x140] sm:$0xff]  ;;  %v504_v18 = vld [vmem:[%s3236_s1 + $0x138] sm:$0xff] }
  0x11   : > { %621 = vmatpush1.msra.mxu0 %v478_v5  ;;  %846 = vmatpush1.msra.mxu1 %v510_v6  ;;  %v471_v19 = vld [vmem:[%s3236_s1 + $0x30] sm:$0xff]  ;;  %v470_v21 = vld [vmem:[%s3236_s1 + $0x28] sm:$0xff]  ;;  %v469_v23 = vld [vmem:[%s3236_s1 + $0x20] sm:$0xff]  ;;  %s2326_s10 = scalar_lea.vmem %s3235_s0, %s2033_s26 }
  0x12   : > { %622 = vmatprep.subr.mxu0 %v2051_v2  ;;  %847 = vmatprep.subr.mxu1 %v2051_v2  ;;  %v503_v20 = vld [vmem:[%s3236_s1 + $0x130] sm:$0xff]  ;;  %v502_v22 = vld [vmem:[%s3236_s1 + $0x128] sm:$0xff]  ;;  %v501_v24 = vld [vmem:[%s3236_s1 + $0x120] sm:$0xff] }
  0x13   : > { %623 = vmatpush1.msra.mxu0 %v477_v7  ;;  %848 = vmatpush1.msra.mxu1 %v509_v8  ;;  %v468_v25 = vld [vmem:[%s3236_s1 + $0x18] sm:$0xff]  ;;  %v467_v27 = vld [vmem:[%s3236_s1 + $0x10] sm:$0xff]  ;;  %v466_v29 = vld [vmem:[%s3236_s1 + $0x8] sm:$0xff] }
  0x14   : > { %624 = vmatprep.subr.mxu0 %v2051_v2  ;;  %849 = vmatprep.subr.mxu1 %v2051_v2  ;;  %v500_v26 = vld [vmem:[%s3236_s1 + $0x118] sm:$0xff]  ;;  %v499_v28 = vld [vmem:[%s3236_s1 + $0x110] sm:$0xff]  ;;  %v498_v30 = vld [vmem:[%s3236_s1 + $0x108] sm:$0xff] }
  0x15   : > { %625 = vmatpush1.msra.mxu0 %v476_v9  ;;  %850 = vmatpush1.msra.mxu1 %v508_v10  ;;  %v465_v31 = vld [vmem:[%s3236_s1] sm:$0xff]  ;;  %v496_v33 = vld [vmem:[%s3236_s1 + $0xf8] sm:$0xff]  ;;  %v495_v35 = vld [vmem:[%s3236_s1 + $0xf0] sm:$0xff] }
  0x16   : > { %626 = vmatprep.subr.mxu0 %v2051_v2  ;;  %851 = vmatprep.subr.mxu1 %v2051_v2  ;;  %v497_v32 = vld [vmem:[%s3236_s1 + $0x100] sm:$0xff]  ;;  %v528_v34 = vld [vmem:[%s3236_s1 + $0x1f8] sm:$0xff]  ;;  %v527_v36 = vld [vmem:[%s3236_s1 + $0x1f0] sm:$0xff] }
  0x17   : > { %627 = vmatpush1.msra.mxu0 %v475_v11  ;;  %852 = vmatpush1.msra.mxu1 %v507_v12  ;;  %v494_v37 = vld [vmem:[%s3236_s1 + $0xe8] sm:$0xff]  ;;  %v493_v39 = vld [vmem:[%s3236_s1 + $0xe0] sm:$0xff]  ;;  %v492_v41 = vld [vmem:[%s3236_s1 + $0xd8] sm:$0xff] }
  0x18   : > { %628 = vmatprep.subr.mxu0 %v2051_v2  ;;  %853 = vmatprep.subr.mxu1 %v2051_v2  ;;  %v526_v38 = vld [vmem:[%s3236_s1 + $0x1e8] sm:$0xff]  ;;  %v525_v40 = vld [vmem:[%s3236_s1 + $0x1e0] sm:$0xff]  ;;  %v524_v42 = vld [vmem:[%s3236_s1 + $0x1d8] sm:$0xff] }
  0x19   : > { %629 = vmatpush1.msra.mxu0 %v474_v13  ;;  %854 = vmatpush1.msra.mxu1 %v506_v14  ;;  %v491_v43 = vld [vmem:[%s3236_s1 + $0xd0] sm:$0xff]  ;;  %v490_v45 = vld [vmem:[%s3236_s1 + $0xc8] sm:$0xff]  ;;  %v489_v47 = vld [vmem:[%s3236_s1 + $0xc0] sm:$0xff] }
  0x1a   : > { %630 = vmatprep.subr.mxu0 %v2051_v2  ;;  %855 = vmatprep.subr.mxu1 %v2051_v2  ;;  %v523_v44 = vld [vmem:[%s3236_s1 + $0x1d0] sm:$0xff]  ;;  %v522_v46 = vld [vmem:[%s3236_s1 + $0x1c8] sm:$0xff]  ;;  %v521_v48 = vld [vmem:[%s3236_s1 + $0x1c0] sm:$0xff] }
  0x1b   : > { %631 = vmatpush1.msra.mxu0 %v473_v15  ;;  %856 = vmatpush1.msra.mxu1 %v505_v16  ;;  %v488_v49 = vld [vmem:[%s3236_s1 + $0xb8] sm:$0xff]  ;;  %v487_v51 = vld [vmem:[%s3236_s1 + $0xb0] sm:$0xff]  ;;  %v486_v53 = vld [vmem:[%s3236_s1 + $0xa8] sm:$0xff] }
  0x1c   : > { %632 = vmatprep.subr.mxu0 %v2051_v2  ;;  %857 = vmatprep.subr.mxu1 %v2051_v2  ;;  %v520_v50 = vld [vmem:[%s3236_s1 + $0x1b8] sm:$0xff]  ;;  %v519_v52 = vld [vmem:[%s3236_s1 + $0x1b0] sm:$0xff]  ;;  %v518_v54 = vld [vmem:[%s3236_s1 + $0x1a8] sm:$0xff] }
  0x1d   : > { %633 = vmatpush1.msra.mxu0 %v472_v17  ;;  %858 = vmatpush1.msra.mxu1 %v504_v18  ;;  %v485_v55 = vld [vmem:[%s3236_s1 + $0xa0] sm:$0xff]  ;;  %v484_v57 = vld [vmem:[%s3236_s1 + $0x98] sm:$0xff]  ;;  %v483_v59 = vld [vmem:[%s3236_s1 + $0x90] sm:$0xff] }
  0x1e   : > { %634 = vmatprep.subr.mxu0 %v2051_v2  ;;  %859 = vmatprep.subr.mxu1 %v2051_v2  ;;  %v517_v56 = vld [vmem:[%s3236_s1 + $0x1a0] sm:$0xff]  ;;  %v516_v58 = vld [vmem:[%s3236_s1 + $0x198] sm:$0xff]  ;;  %v515_v60 = vld [vmem:[%s3236_s1 + $0x190] sm:$0xff] }
  0x1f   : > { %635 = vmatpush1.msra.mxu0 %v471_v19  ;;  %860 = vmatpush1.msra.mxu1 %v503_v20  ;;  %v482_v61 = vld [vmem:[%s3236_s1 + $0x88] sm:$0xff]  ;;  %v481_v63 = vld [vmem:[%s3236_s1 + $0x80] sm:$0xff]  ;;  %v180_v3 = vld [vmem:[%s2326_s10 + $0x18] sm:$0xff] }
  0x20   : > { %636 = vmatprep.subr.mxu0 %v2051_v2  ;;  %861 = vmatprep.subr.mxu1 %v2051_v2  ;;  %v514_v62 = vld [vmem:[%s3236_s1 + $0x188] sm:$0xff]  ;;  %v513_v1 = vld [vmem:[%s3236_s1 + $0x180] sm:$0xff]  ;;  %v179_v5 = vld [vmem:[%s2326_s10 + $0x10] sm:$0xff] }
  0x21   : > { %637 = vmatpush1.msra.mxu0 %v470_v21  ;;  %862 = vmatpush1.msra.mxu1 %v502_v22  ;;  %v178_v0 = vld [vmem:[%s2326_s10 + $0x8] sm:$0xff]  ;;  %v177_v4 = vld [vmem:[%s2326_s10] sm:$0xff]  ;;  %v544_v6 = vld [vmem:[%s3236_s1 + $0x278] sm:$0xff] }
  0x22   : > { %638 = vmatprep.subr.mxu0 %v2051_v2  ;;  %863 = vmatprep.subr.mxu1 %v2051_v2  ;;  %v576_v7 = vld [vmem:[%s3236_s1 + $0x378] sm:$0xff]  ;;  %v187_v8 = vld [vmem:[%s2326_s10 + $0x50] sm:$0xff]  ;;  %v189_v9 = vld [vmem:[%s2326_s10 + $0x60] sm:$0xff] }
  0x23   : > { %639 = vmatpush1.msra.mxu0 %v469_v23  ;;  %864 = vmatpush1.msra.mxu1 %v501_v24  ;;  %v186_v10 = vld [vmem:[%s2326_s10 + $0x48] sm:$0xff]  ;;  %v188_v11 = vld [vmem:[%s2326_s10 + $0x58] sm:$0xff]  ;;  %v543_v12 = vld [vmem:[%s3236_s1 + $0x270] sm:$0xff] }
  0x24   : > { %640 = vmatprep.subr.mxu0 %v2051_v2  ;;  %865 = vmatprep.subr.mxu1 %v2051_v2  ;;  %v575_v13 = vld [vmem:[%s3236_s1 + $0x370] sm:$0xff]  ;;  %v196_v14 = vld [vmem:[%s2326_s10 + $0x98] sm:$0xff]  ;;  %v198_v15 = vld [vmem:[%s2326_s10 + $0xa8] sm:$0xff] }
  0x25   : > { %641 = vmatpush1.msra.mxu0 %v468_v25  ;;  %866 = vmatpush1.msra.mxu1 %v500_v26  ;;  %v195_v16 = vld [vmem:[%s2326_s10 + $0x90] sm:$0xff]  ;;  %v197_v17 = vld [vmem:[%s2326_s10 + $0xa0] sm:$0xff]  ;;  %v542_v18 = vld [vmem:[%s3236_s1 + $0x268] sm:$0xff] }
  0x26   : > { %642 = vmatprep.subr.mxu0 %v2051_v2  ;;  %867 = vmatprep.subr.mxu1 %v2051_v2  ;;  %v574_v19 = vld [vmem:[%s3236_s1 + $0x368] sm:$0xff]  ;;  %v205_v20 = vld [vmem:[%s2326_s10 + $0xe0] sm:$0xff]  ;;  %v207_v21 = vld [vmem:[%s2326_s10 + $0xf0] sm:$0xff] }
  0x27   : > { %643 = vmatpush1.msra.mxu0 %v467_v27  ;;  %868 = vmatpush1.msra.mxu1 %v499_v28  ;;  %v204_v22 = vld [vmem:[%s2326_s10 + $0xd8] sm:$0xff]  ;;  %v206_v23 = vld [vmem:[%s2326_s10 + $0xe8] sm:$0xff]  ;;  %v541_v24 = vld [vmem:[%s3236_s1 + $0x260] sm:$0xff] }
  0x28   : > { %644 = vmatprep.subr.mxu0 %v2051_v2  ;;  %869 = vmatprep.subr.mxu1 %v2051_v2  ;;  %v573_v25 = vld [vmem:[%s3236_s1 + $0x360] sm:$0xff]  ;;  %v214_v26 = vld [vmem:[%s2326_s10 + $0x128] sm:$0xff]  ;;  %v216_v27 = vld [vmem:[%s2326_s10 + $0x138] sm:$0xff] }
  0x29   : > { %645 = vmatpush1.msra.mxu0 %v466_v29  ;;  %870 = vmatpush1.msra.mxu1 %v498_v30  ;;  %v213_v28 = vld [vmem:[%s2326_s10 + $0x120] sm:$0xff]  ;;  %v215_v29 = vld [vmem:[%s2326_s10 + $0x130] sm:$0xff]  ;;  %v540_v30 = vld [vmem:[%s3236_s1 + $0x258] sm:$0xff] }
  0x2a   : > { %646 = vmatprep.subr.mxu0 %v2051_v2  ;;  %871 = vmatprep.subr.mxu1 %v2051_v2 }
  0x2b   : > { %647 = vmatpush1.msra.mxu0 %v465_v31  ;;  %872 = vmatpush1.msra.mxu1 %v497_v32  ;;  %v572_v31 = vld [vmem:[%s3236_s1 + $0x358] sm:$0xff]  ;;  %v223_v32 = vld [vmem:[%s2326_s10 + $0x170] sm:$0xff] }
  0x2c   : > { %648 = vmatprep.subr.mxu0 %v2051_v2  ;;  %873 = vmatprep.subr.mxu1 %v2051_v2 }
  0x2d   : > { %649 = vmatpush2.msra.mxu0 %v496_v33  ;;  %874 = vmatpush2.msra.mxu1 %v528_v34  ;;  %v225_v33 = vld [vmem:[%s2326_s10 + $0x180] sm:$0xff]  ;;  %v222_v34 = vld [vmem:[%s2326_s10 + $0x168] sm:$0xff] }
  0x2e   : > { %650 = vmatprep.subr.mxu0 %v2051_v2  ;;  %875 = vmatprep.subr.mxu1 %v2051_v2 }
  0x2f   : > { %651 = vmatpush2.msra.mxu0 %v495_v35  ;;  %876 = vmatpush2.msra.mxu1 %v527_v36  ;;  %v224_v35 = vld [vmem:[%s2326_s10 + $0x178] sm:$0xff]  ;;  %v539_v36 = vld [vmem:[%s3236_s1 + $0x250] sm:$0xff] }
  0x30   : > { %652 = vmatprep.subr.mxu0 %v2051_v2  ;;  %877 = vmatprep.subr.mxu1 %v2051_v2 }
  0x31   : > { %653 = vmatpush2.msra.mxu0 %v494_v37  ;;  %878 = vmatpush2.msra.mxu1 %v526_v38  ;;  %v571_v37 = vld [vmem:[%s3236_s1 + $0x350] sm:$0xff]  ;;  %v232_v38 = vld [vmem:[%s2326_s10 + $0x1b8] sm:$0xff] }
  0x32   : > { %654 = vmatprep.subr.mxu0 %v2051_v2  ;;  %879 = vmatprep.subr.mxu1 %v2051_v2 }
  0x33   : > { %655 = vmatpush2.msra.mxu0 %v493_v39  ;;  %880 = vmatpush2.msra.mxu1 %v525_v40  ;;  %v234_v39 = vld [vmem:[%s2326_s10 + $0x1c8] sm:$0xff]  ;;  %v231_v40 = vld [vmem:[%s2326_s10 + $0x1b0] sm:$0xff] }
  0x34   : > { %656 = vmatprep.subr.mxu0 %v2051_v2  ;;  %881 = vmatprep.subr.mxu1 %v2051_v2 }
  0x35   : > { %657 = vmatpush2.msra.mxu0 %v492_v41  ;;  %882 = vmatpush2.msra.mxu1 %v524_v42  ;;  %v233_v41 = vld [vmem:[%s2326_s10 + $0x1c0] sm:$0xff]  ;;  %v538_v42 = vld [vmem:[%s3236_s1 + $0x248] sm:$0xff] }
  0x36   : > { %658 = vmatprep.subr.mxu0 %v2051_v2  ;;  %883 = vmatprep.subr.mxu1 %v2051_v2 }
  0x37   : > { %659 = vmatpush2.msra.mxu0 %v491_v43  ;;  %884 = vmatpush2.msra.mxu1 %v523_v44  ;;  %v570_v43 = vld [vmem:[%s3236_s1 + $0x348] sm:$0xff]  ;;  %v241_v44 = vld [vmem:[%s2326_s10 + $0x200] sm:$0xff] }
  0x38   : > { %660 = vmatprep.subr.mxu0 %v2051_v2  ;;  %885 = vmatprep.subr.mxu1 %v2051_v2 }
  0x39   : > { %661 = vmatpush2.msra.mxu0 %v490_v45  ;;  %886 = vmatpush2.msra.mxu1 %v522_v46  ;;  %v243_v45 = vld [vmem:[%s2326_s10 + $0x210] sm:$0xff]  ;;  %v240_v46 = vld [vmem:[%s2326_s10 + $0x1f8] sm:$0xff] }
  0x3a   : > { %662 = vmatprep.subr.mxu0 %v2051_v2  ;;  %887 = vmatprep.subr.mxu1 %v2051_v2 }
  0x3b   : > { %663 = vmatpush2.msra.mxu0 %v489_v47  ;;  %888 = vmatpush2.msra.mxu1 %v521_v48  ;;  %v242_v47 = vld [vmem:[%s2326_s10 + $0x208] sm:$0xff]  ;;  %v537_v48 = vld [vmem:[%s3236_s1 + $0x240] sm:$0xff] }
  0x3c   : > { %664 = vmatprep.subr.mxu0 %v2051_v2  ;;  %889 = vmatprep.subr.mxu1 %v2051_v2 }
  0x3d   : > { %665 = vmatpush2.msra.mxu0 %v488_v49  ;;  %890 = vmatpush2.msra.mxu1 %v520_v50  ;;  %v569_v49 = vld [vmem:[%s3236_s1 + $0x340] sm:$0xff]  ;;  %v250_v50 = vld [vmem:[%s2326_s10 + $0x248] sm:$0xff] }
  0x3e   : > { %666 = vmatprep.subr.mxu0 %v2051_v2  ;;  %891 = vmatprep.subr.mxu1 %v2051_v2 }
  0x3f   : > { %667 = vmatpush2.msra.mxu0 %v487_v51  ;;  %892 = vmatpush2.msra.mxu1 %v519_v52  ;;  %v252_v51 = vld [vmem:[%s2326_s10 + $0x258] sm:$0xff]  ;;  %v249_v52 = vld [vmem:[%s2326_s10 + $0x240] sm:$0xff] }
  0x40   : > { %668 = vmatprep.subr.mxu0 %v2051_v2  ;;  %893 = vmatprep.subr.mxu1 %v2051_v2 }
  0x41   : > { %669 = vmatpush2.msra.mxu0 %v486_v53  ;;  %894 = vmatpush2.msra.mxu1 %v518_v54  ;;  %v251_v53 = vld [vmem:[%s2326_s10 + $0x250] sm:$0xff]  ;;  %v536_v54 = vld [vmem:[%s3236_s1 + $0x238] sm:$0xff] }
  0x42   : > { %670 = vmatprep.subr.mxu0 %v2051_v2  ;;  %895 = vmatprep.subr.mxu1 %v2051_v2 }
  0x43   : > { %671 = vmatpush2.msra.mxu0 %v485_v55  ;;  %896 = vmatpush2.msra.mxu1 %v517_v56  ;;  %v568_v55 = vld [vmem:[%s3236_s1 + $0x338] sm:$0xff]  ;;  %v259_v56 = vld [vmem:[%s2326_s10 + $0x290] sm:$0xff] }
  0x44   : > { %672 = vmatprep.subr.mxu0 %v2051_v2  ;;  %897 = vmatprep.subr.mxu1 %v2051_v2 }
  0x45   : > { %673 = vmatpush2.msra.mxu0 %v484_v57  ;;  %898 = vmatpush2.msra.mxu1 %v516_v58  ;;  %v261_v57 = vld [vmem:[%s2326_s10 + $0x2a0] sm:$0xff]  ;;  %v258_v58 = vld [vmem:[%s2326_s10 + $0x288] sm:$0xff] }
  0x46   : > { %674 = vmatprep.subr.mxu0 %v2051_v2  ;;  %899 = vmatprep.subr.mxu1 %v2051_v2 }
  0x47   : > { %675 = vmatpush2.msra.mxu0 %v483_v59  ;;  %900 = vmatpush2.msra.mxu1 %v515_v60  ;;  %v260_v59 = vld [vmem:[%s2326_s10 + $0x298] sm:$0xff]  ;;  %v535_v60 = vld [vmem:[%s3236_s1 + $0x230] sm:$0xff] }
  0x48   : > { %676 = vmatprep.subr.mxu0 %v2051_v2  ;;  %901 = vmatprep.subr.mxu1 %v2051_v2 }
  0x49   : > { %677 = vmatpush2.msra.mxu0 %v482_v61  ;;  %902 = vmatpush2.msra.mxu1 %v514_v62  ;;  %v567_v61 = vld [vmem:[%s3236_s1 + $0x330] sm:$0xff]  ;;  %v268_v62 = vld [vmem:[%s2326_s10 + $0x2d8] sm:$0xff] }
  0x4a   : > { %678 = vmatprep.subr.mxu0 %v2051_v2  ;;  %903 = vmatprep.subr.mxu1 %v2051_v2 }
  0x4b   : > { %679 = vmatpush2.msra.mxu0 %v481_v63  ;;  %680 = vmatprep.mubr.f32.mxu0 %v178_v0  ;;  %v270_v63 = vld [vmem:[%s2326_s10 + $0x2e8] sm:$0xff]  ;;  %v267_v0 = vld [vmem:[%s2326_s10 + $0x2d0] sm:$0xff] }
  0x4c   : > { %904 = vmatpush2.msra.mxu1 %v513_v1  ;;  %905 = vmatprep.mubr.f32.mxu1 %v180_v3  ;;  %v269_v1 = vld [vmem:[%s2326_s10 + $0x2e0] sm:$0xff]  ;;  %v534_v3 = vld [vmem:[%s3236_s1 + $0x228] sm:$0xff] }
  0x4d   : > { %681 = vmatmul.mubr.f32.vlgmr.msra.gmra.mxu0 %v177_v4  ;;  %906 = vmatmul.mubr.f32.vlgmr.msra.gmra.mxu1 %v179_v5  ;;  %v566_v4 = vld [vmem:[%s3236_s1 + $0x328] sm:$0xff]  ;;  %v277_v5 = vld [vmem:[%s2326_s10 + $0x320] sm:$0xff] }
  0x4e   : > { %1066 = vmatprep.subr.mxu0 %v2051_v2  ;;  %1291 = vmatprep.subr.mxu1 %v2051_v2 }
  0x4f   : > { %1067 = vmatpush1.msra.mxu0 %v544_v6  ;;  %1292 = vmatpush1.msra.mxu1 %v576_v7  ;;  %v279_v6 = vld [vmem:[%s2326_s10 + $0x330] sm:$0xff]  ;;  %v276_v7 = vld [vmem:[%s2326_s10 + $0x318] sm:$0xff] }
  0x50   : > { %685 = vmatprep.mubr.f32.mxu0 %v187_v8  ;;  %910 = vmatprep.mubr.f32.mxu1 %v189_v9  ;;  %v278_v8 = vld [vmem:[%s2326_s10 + $0x328] sm:$0xff]  ;;  %v533_v9 = vld [vmem:[%s3236_s1 + $0x220] sm:$0xff] }
  0x51   : > { %686 = vmatmul.mubr.f32.gmra.mxu0 %v186_v10  ;;  %911 = vmatmul.mubr.f32.gmra.mxu1 %v188_v11  ;;  %v565_v10 = vld [vmem:[%s3236_s1 + $0x320] sm:$0xff]  ;;  %v286_v11 = vld [vmem:[%s2326_s10 + $0x368] sm:$0xff] }
  0x52   : > { %1068 = vmatprep.subr.mxu0 %v2051_v2  ;;  %1293 = vmatprep.subr.mxu1 %v2051_v2 }
  0x53   : > { %1069 = vmatpush1.msra.mxu0 %v543_v12  ;;  %1294 = vmatpush1.msra.mxu1 %v575_v13  ;;  %v288_v12 = vld [vmem:[%s2326_s10 + $0x378] sm:$0xff]  ;;  %v285_v13 = vld [vmem:[%s2326_s10 + $0x360] sm:$0xff] }
  0x54   : > { %690 = vmatprep.mubr.f32.mxu0 %v196_v14  ;;  %915 = vmatprep.mubr.f32.mxu1 %v198_v15  ;;  %v287_v14 = vld [vmem:[%s2326_s10 + $0x370] sm:$0xff]  ;;  %v532_v15 = vld [vmem:[%s3236_s1 + $0x218] sm:$0xff] }
  0x55   : > { %691 = vmatmul.mubr.f32.gmra.mxu0 %v195_v16  ;;  %916 = vmatmul.mubr.f32.gmra.mxu1 %v197_v17  ;;  %v564_v16 = vld [vmem:[%s3236_s1 + $0x318] sm:$0xff]  ;;  %v295_v17 = vld [vmem:[%s2326_s10 + $0x3b0] sm:$0xff] }
  0x56   : > { %1070 = vmatprep.subr.mxu0 %v2051_v2  ;;  %1295 = vmatprep.subr.mxu1 %v2051_v2 }
  0x57   : > { %1071 = vmatpush1.msra.mxu0 %v542_v18  ;;  %1296 = vmatpush1.msra.mxu1 %v574_v19  ;;  %v297_v18 = vld [vmem:[%s2326_s10 + $0x3c0] sm:$0xff]  ;;  %v294_v19 = vld [vmem:[%s2326_s10 + $0x3a8] sm:$0xff] }
  0x58   : > { %695 = vmatprep.mubr.f32.mxu0 %v205_v20  ;;  %920 = vmatprep.mubr.f32.mxu1 %v207_v21  ;;  %v296_v20 = vld [vmem:[%s2326_s10 + $0x3b8] sm:$0xff]  ;;  %v531_v21 = vld [vmem:[%s3236_s1 + $0x210] sm:$0xff] }
  0x59   : > { %696 = vmatmul.mubr.f32.gmra.mxu0 %v204_v22  ;;  %921 = vmatmul.mubr.f32.gmra.mxu1 %v206_v23  ;;  %v563_v22 = vld [vmem:[%s3236_s1 + $0x310] sm:$0xff]  ;;  %v304_v23 = vld [vmem:[%s2326_s10 + $0x3f8] sm:$0xff] }
  0x5a   : > { %1072 = vmatprep.subr.mxu0 %v2051_v2  ;;  %1297 = vmatprep.subr.mxu1 %v2051_v2 }
  0x5b   : > { %1073 = vmatpush1.msra.mxu0 %v541_v24  ;;  %1298 = vmatpush1.msra.mxu1 %v573_v25  ;;  %v306_v24 = vld [vmem:[%s2326_s10 + $0x408] sm:$0xff]  ;;  %v303_v25 = vld [vmem:[%s2326_s10 + $0x3f0] sm:$0xff] }
  0x5c   : > { %700 = vmatprep.mubr.f32.mxu0 %v214_v26  ;;  %925 = vmatprep.mubr.f32.mxu1 %v216_v27  ;;  %v305_v26 = vld [vmem:[%s2326_s10 + $0x400] sm:$0xff]  ;;  %v530_v27 = vld [vmem:[%s3236_s1 + $0x208] sm:$0xff] }
  0x5d   : > { %701 = vmatmul.mubr.f32.gmra.mxu0 %v213_v28  ;;  %926 = vmatmul.mubr.f32.gmra.mxu1 %v215_v29  ;;  %v562_v28 = vld [vmem:[%s3236_s1 + $0x308] sm:$0xff]  ;;  %v313_v29 = vld [vmem:[%s2326_s10 + $0x440] sm:$0xff] }
  0x5e   : > { %1074 = vmatprep.subr.mxu0 %v2051_v2  ;;  %1299 = vmatprep.subr.mxu1 %v2051_v2 }
  0x5f   : > { %1075 = vmatpush1.msra.mxu0 %v540_v30  ;;  %1300 = vmatpush1.msra.mxu1 %v572_v31  ;;  %v315_v30 = vld [vmem:[%s2326_s10 + $0x450] sm:$0xff]  ;;  %v312_v31 = vld [vmem:[%s2326_s10 + $0x438] sm:$0xff] }
  0x60   : > { %705 = vmatprep.mubr.f32.mxu0 %v223_v32  ;;  %930 = vmatprep.mubr.f32.mxu1 %v225_v33  ;;  %v314_v32 = vld [vmem:[%s2326_s10 + $0x448] sm:$0xff]  ;;  %v529_v33 = vld [vmem:[%s3236_s1 + $0x200] sm:$0xff] }
  0x61   : > { %706 = vmatmul.mubr.f32.gmra.mxu0 %v222_v34  ;;  %931 = vmatmul.mubr.f32.gmra.mxu1 %v224_v35  ;;  %v561_v34 = vld [vmem:[%s3236_s1 + $0x300] sm:$0xff]  ;;  %v322_v35 = vld [vmem:[%s2326_s10 + $0x488] sm:$0xff] }
  0x62   : > { %1076 = vmatprep.subr.mxu0 %v2051_v2  ;;  %1301 = vmatprep.subr.mxu1 %v2051_v2 }
  0x63   : > { %1077 = vmatpush1.msra.mxu0 %v539_v36  ;;  %1302 = vmatpush1.msra.mxu1 %v571_v37  ;;  %v324_v36 = vld [vmem:[%s2326_s10 + $0x498] sm:$0xff]  ;;  %v321_v37 = vld [vmem:[%s2326_s10 + $0x480] sm:$0xff] }
  0x64   : > { %710 = vmatprep.mubr.f32.mxu0 %v232_v38  ;;  %935 = vmatprep.mubr.f32.mxu1 %v234_v39  ;;  %v323_v38 = vld [vmem:[%s2326_s10 + $0x490] sm:$0xff]  ;;  %v560_v39 = vld [vmem:[%s3236_s1 + $0x2f8] sm:$0xff] }
  0x65   : > { %711 = vmatmul.mubr.f32.gmra.mxu0 %v231_v40  ;;  %936 = vmatmul.mubr.f32.gmra.mxu1 %v233_v41  ;;  %v592_v40 = vld [vmem:[%s3236_s1 + $0x3f8] sm:$0xff]  ;;  %v331_v41 = vld [vmem:[%s2326_s10 + $0x4d0] sm:$0xff] }
  0x66   : > { %1078 = vmatprep.subr.mxu0 %v2051_v2  ;;  %1303 = vmatprep.subr.mxu1 %v2051_v2 }
  0x67   : > { %1079 = vmatpush1.msra.mxu0 %v538_v42  ;;  %1304 = vmatpush1.msra.mxu1 %v570_v43  ;;  %v333_v42 = vld [vmem:[%s2326_s10 + $0x4e0] sm:$0xff]  ;;  %v330_v43 = vld [vmem:[%s2326_s10 + $0x4c8] sm:$0xff] }
  0x68   : > { %715 = vmatprep.mubr.f32.mxu0 %v241_v44  ;;  %940 = vmatprep.mubr.f32.mxu1 %v243_v45  ;;  %v332_v44 = vld [vmem:[%s2326_s10 + $0x4d8] sm:$0xff]  ;;  %v559_v45 = vld [vmem:[%s3236_s1 + $0x2f0] sm:$0xff] }
  0x69   : > { %716 = vmatmul.mubr.f32.gmra.mxu0 %v240_v46  ;;  %941 = vmatmul.mubr.f32.gmra.mxu1 %v242_v47  ;;  %v591_v46 = vld [vmem:[%s3236_s1 + $0x3f0] sm:$0xff]  ;;  %v340_v47 = vld [vmem:[%s2326_s10 + $0x518] sm:$0xff] }
  0x6a   : > { %1080 = vmatprep.subr.mxu0 %v2051_v2  ;;  %1305 = vmatprep.subr.mxu1 %v2051_v2 }
  0x6b   : > { %1081 = vmatpush1.msra.mxu0 %v537_v48  ;;  %1306 = vmatpush1.msra.mxu1 %v569_v49  ;;  %v342_v48 = vld [vmem:[%s2326_s10 + $0x528] sm:$0xff]  ;;  %v339_v49 = vld [vmem:[%s2326_s10 + $0x510] sm:$0xff] }
  0x6c   : > { %720 = vmatprep.mubr.f32.mxu0 %v250_v50  ;;  %945 = vmatprep.mubr.f32.mxu1 %v252_v51  ;;  %v341_v50 = vld [vmem:[%s2326_s10 + $0x520] sm:$0xff]  ;;  %v558_v51 = vld [vmem:[%s3236_s1 + $0x2e8] sm:$0xff] }
  0x6d   : > { %721 = vmatmul.mubr.f32.gmra.mxu0 %v249_v52  ;;  %946 = vmatmul.mubr.f32.gmra.mxu1 %v251_v53  ;;  %v590_v52 = vld [vmem:[%s3236_s1 + $0x3e8] sm:$0xff]  ;;  %v349_v53 = vld [vmem:[%s2326_s10 + $0x560] sm:$0xff] }
  0x6e   : > { %1082 = vmatprep.subr.mxu0 %v2051_v2  ;;  %1307 = vmatprep.subr.mxu1 %v2051_v2 }
  0x6f   : > { %1083 = vmatpush1.msra.mxu0 %v536_v54  ;;  %1308 = vmatpush1.msra.mxu1 %v568_v55  ;;  %v351_v54 = vld [vmem:[%s2326_s10 + $0x570] sm:$0xff]  ;;  %v348_v55 = vld [vmem:[%s2326_s10 + $0x558] sm:$0xff] }
  0x70   : > { %725 = vmatprep.mubr.f32.mxu0 %v259_v56  ;;  %950 = vmatprep.mubr.f32.mxu1 %v261_v57  ;;  %v350_v56 = vld [vmem:[%s2326_s10 + $0x568] sm:$0xff]  ;;  %v557_v57 = vld [vmem:[%s3236_s1 + $0x2e0] sm:$0xff] }
  0x71   : > { %726 = vmatmul.mubr.f32.gmra.mxu0 %v258_v58  ;;  %951 = vmatmul.mubr.f32.gmra.mxu1 %v260_v59  ;;  %v589_v58 = vld [vmem:[%s3236_s1 + $0x3e0] sm:$0xff]  ;;  %v358_v59 = vld [vmem:[%s2326_s10 + $0x5a8] sm:$0xff] }
  0x72   : > { %1084 = vmatprep.subr.mxu0 %v2051_v2  ;;  %1309 = vmatprep.subr.mxu1 %v2051_v2 }
  0x73   : > { %1085 = vmatpush1.msra.mxu0 %v535_v60  ;;  %1310 = vmatpush1.msra.mxu1 %v567_v61  ;;  %v360_v60 = vld [vmem:[%s2326_s10 + $0x5b8] sm:$0xff]  ;;  %v357_v61 = vld [vmem:[%s2326_s10 + $0x5a0] sm:$0xff] }
  0x74   : > { %730 = vmatprep.mubr.f32.mxu0 %v268_v62  ;;  %955 = vmatprep.mubr.f32.mxu1 %v270_v63  ;;  %v359_v62 = vld [vmem:[%s2326_s10 + $0x5b0] sm:$0xff]  ;;  %v556_v63 = vld [vmem:[%s3236_s1 + $0x2d8] sm:$0xff] }
  0x75   : > { %731 = vmatmul.mubr.f32.gmra.mxu0 %v267_v0  ;;  %956 = vmatmul.mubr.f32.gmra.mxu1 %v269_v1  ;;  %v588_v0 = vld [vmem:[%s3236_s1 + $0x3d8] sm:$0xff]  ;;  %v367_v1 = vld [vmem:[%s2326_s10 + $0x5f0] sm:$0xff] }
  0x76   : > { %1086 = vmatprep.subr.mxu0 %v2051_v2  ;;  %1311 = vmatprep.subr.mxu1 %v2051_v2 }
  0x77   : > { %1087 = vmatpush1.msra.mxu0 %v534_v3  ;;  %1312 = vmatpush1.msra.mxu1 %v566_v4  ;;  %v369_v3 = vld [vmem:[%s2326_s10 + $0x600] sm:$0xff]  ;;  %v366_v4 = vld [vmem:[%s2326_s10 + $0x5e8] sm:$0xff] }
  0x78   : > { %735 = vmatprep.mubr.f32.mxu0 %v277_v5  ;;  %960 = vmatprep.mubr.f32.mxu1 %v279_v6  ;;  %v368_v5 = vld [vmem:[%s2326_s10 + $0x5f8] sm:$0xff]  ;;  %v555_v6 = vld [vmem:[%s3236_s1 + $0x2d0] sm:$0xff] }
  0x79   : > { %736 = vmatmul.mubr.f32.gmra.mxu0 %v276_v7  ;;  %961 = vmatmul.mubr.f32.gmra.mxu1 %v278_v8  ;;  %v587_v7 = vld [vmem:[%s3236_s1 + $0x3d0] sm:$0xff]  ;;  %v376_v8 = vld [vmem:[%s2326_s10 + $0x638] sm:$0xff] }
  0x7a   : > { %1088 = vmatprep.subr.mxu0 %v2051_v2  ;;  %1313 = vmatprep.subr.mxu1 %v2051_v2 }
  0x7b   : > { %1089 = vmatpush1.msra.mxu0 %v533_v9  ;;  %1314 = vmatpush1.msra.mxu1 %v565_v10  ;;  %v378_v9 = vld [vmem:[%s2326_s10 + $0x648] sm:$0xff]  ;;  %v375_v10 = vld [vmem:[%s2326_s10 + $0x630] sm:$0xff] }
  0x7c   : > { %740 = vmatprep.mubr.f32.mxu0 %v286_v11  ;;  %965 = vmatprep.mubr.f32.mxu1 %v288_v12  ;;  %v377_v11 = vld [vmem:[%s2326_s10 + $0x640] sm:$0xff]  ;;  %v554_v12 = vld [vmem:[%s3236_s1 + $0x2c8] sm:$0xff] }
  0x7d   : > { %741 = vmatmul.mubr.f32.gmra.mxu0 %v285_v13  ;;  %966 = vmatmul.mubr.f32.gmra.mxu1 %v287_v14  ;;  %v586_v13 = vld [vmem:[%s3236_s1 + $0x3c8] sm:$0xff]  ;;  %v385_v14 = vld [vmem:[%s2326_s10 + $0x680] sm:$0xff] }
  0x7e   : > { %1090 = vmatprep.subr.mxu0 %v2051_v2  ;;  %1315 = vmatprep.subr.mxu1 %v2051_v2 }
  0x7f   : > { %1091 = vmatpush1.msra.mxu0 %v532_v15  ;;  %1316 = vmatpush1.msra.mxu1 %v564_v16  ;;  %v387_v15 = vld [vmem:[%s2326_s10 + $0x690] sm:$0xff]  ;;  %v384_v16 = vld [vmem:[%s2326_s10 + $0x678] sm:$0xff] }
  0x80   : > { %745 = vmatprep.mubr.f32.mxu0 %v295_v17  ;;  %970 = vmatprep.mubr.f32.mxu1 %v297_v18  ;;  %v386_v17 = vld [vmem:[%s2326_s10 + $0x688] sm:$0xff]  ;;  %v553_v18 = vld [vmem:[%s3236_s1 + $0x2c0] sm:$0xff] }
  0x81   : > { %746 = vmatmul.mubr.f32.gmra.mxu0 %v294_v19  ;;  %971 = vmatmul.mubr.f32.gmra.mxu1 %v296_v20  ;;  %v585_v19 = vld [vmem:[%s3236_s1 + $0x3c0] sm:$0xff]  ;;  %v394_v20 = vld [vmem:[%s2326_s10 + $0x6c8] sm:$0xff] }
  0x82   : > { %1092 = vmatprep.subr.mxu0 %v2051_v2  ;;  %1317 = vmatprep.subr.mxu1 %v2051_v2 }
  0x83   : > { %1093 = vmatpush1.msra.mxu0 %v531_v21  ;;  %1318 = vmatpush1.msra.mxu1 %v563_v22  ;;  %v396_v21 = vld [vmem:[%s2326_s10 + $0x6d8] sm:$0xff]  ;;  %v393_v22 = vld [vmem:[%s2326_s10 + $0x6c0] sm:$0xff] }
  0x84   : > { %750 = vmatprep.mubr.f32.mxu0 %v304_v23  ;;  %975 = vmatprep.mubr.f32.mxu1 %v306_v24  ;;  %v395_v23 = vld [vmem:[%s2326_s10 + $0x6d0] sm:$0xff]  ;;  %v552_v24 = vld [vmem:[%s3236_s1 + $0x2b8] sm:$0xff] }
  0x85   : > { %751 = vmatmul.mubr.f32.gmra.mxu0 %v303_v25  ;;  %976 = vmatmul.mubr.f32.gmra.mxu1 %v305_v26  ;;  %v584_v25 = vld [vmem:[%s3236_s1 + $0x3b8] sm:$0xff]  ;;  %v403_v26 = vld [vmem:[%s2326_s10 + $0x710] sm:$0xff] }
  0x86   : > { %1094 = vmatprep.subr.mxu0 %v2051_v2  ;;  %1319 = vmatprep.subr.mxu1 %v2051_v2 }
  0x87   : > { %1095 = vmatpush1.msra.mxu0 %v530_v27  ;;  %1320 = vmatpush1.msra.mxu1 %v562_v28  ;;  %v405_v27 = vld [vmem:[%s2326_s10 + $0x720] sm:$0xff]  ;;  %v402_v28 = vld [vmem:[%s2326_s10 + $0x708] sm:$0xff] }
  0x88   : > { %755 = vmatprep.mubr.f32.mxu0 %v313_v29  ;;  %980 = vmatprep.mubr.f32.mxu1 %v315_v30  ;;  %v404_v29 = vld [vmem:[%s2326_s10 + $0x718] sm:$0xff]  ;;  %v551_v30 = vld [vmem:[%s3236_s1 + $0x2b0] sm:$0xff] }
  0x89   : > { %756 = vmatmul.mubr.f32.gmra.mxu0 %v312_v31  ;;  %981 = vmatmul.mubr.f32.gmra.mxu1 %v314_v32  ;;  %v583_v31 = vld [vmem:[%s3236_s1 + $0x3b0] sm:$0xff]  ;;  %v412_v32 = vld [vmem:[%s2326_s10 + $0x758] sm:$0xff] }
  0x8a   : > { %1096 = vmatprep.subr.mxu0 %v2051_v2  ;;  %1321 = vmatprep.subr.mxu1 %v2051_v2 }
  0x8b   : > { %1097 = vmatpush1.msra.mxu0 %v529_v33  ;;  %1322 = vmatpush1.msra.mxu1 %v561_v34  ;;  %v414_v33 = vld [vmem:[%s2326_s10 + $0x768] sm:$0xff]  ;;  %v411_v34 = vld [vmem:[%s2326_s10 + $0x750] sm:$0xff] }
  0x8c   : > { %760 = vmatprep.mubr.f32.mxu0 %v322_v35  ;;  %985 = vmatprep.mubr.f32.mxu1 %v324_v36  ;;  %v413_v35 = vld [vmem:[%s2326_s10 + $0x760] sm:$0xff]  ;;  %v550_v36 = vld [vmem:[%s3236_s1 + $0x2a8] sm:$0xff] }
  0x8d   : > { %761 = vmatmul.mubr.f32.gmra.mxu0 %v321_v37  ;;  %986 = vmatmul.mubr.f32.gmra.mxu1 %v323_v38  ;;  %v582_v37 = vld [vmem:[%s3236_s1 + $0x3a8] sm:$0xff]  ;;  %v421_v38 = vld [vmem:[%s2326_s10 + $0x7a0] sm:$0xff] }
  0x8e   : > { %1098 = vmatprep.subr.mxu0 %v2051_v2  ;;  %1323 = vmatprep.subr.mxu1 %v2051_v2 }
  0x8f   : > { %1099 = vmatpush2.msra.mxu0 %v560_v39  ;;  %1324 = vmatpush2.msra.mxu1 %v592_v40  ;;  %v423_v39 = vld [vmem:[%s2326_s10 + $0x7b0] sm:$0xff]  ;;  %v420_v40 = vld [vmem:[%s2326_s10 + $0x798] sm:$0xff] }
  0x90   : > { %765 = vmatprep.mubr.f32.mxu0 %v331_v41  ;;  %990 = vmatprep.mubr.f32.mxu1 %v333_v42  ;;  %v422_v41 = vld [vmem:[%s2326_s10 + $0x7a8] sm:$0xff]  ;;  %v549_v42 = vld [vmem:[%s3236_s1 + $0x2a0] sm:$0xff] }
  0x91   : > { %766 = vmatmul.mubr.f32.gmra.mxu0 %v330_v43  ;;  %991 = vmatmul.mubr.f32.gmra.mxu1 %v332_v44  ;;  %v581_v43 = vld [vmem:[%s3236_s1 + $0x3a0] sm:$0xff]  ;;  %v430_v44 = vld [vmem:[%s2326_s10 + $0x7e8] sm:$0xff] }
  0x92   : > { %1100 = vmatprep.subr.mxu0 %v2051_v2  ;;  %1325 = vmatprep.subr.mxu1 %v2051_v2 }
  0x93   : > { %1101 = vmatpush2.msra.mxu0 %v559_v45  ;;  %1326 = vmatpush2.msra.mxu1 %v591_v46  ;;  %v432_v45 = vld [vmem:[%s2326_s10 + $0x7f8] sm:$0xff]  ;;  %v429_v46 = vld [vmem:[%s2326_s10 + $0x7e0] sm:$0xff] }
  0x94   : > { %770 = vmatprep.mubr.f32.mxu0 %v340_v47  ;;  %995 = vmatprep.mubr.f32.mxu1 %v342_v48  ;;  %v431_v47 = vld [vmem:[%s2326_s10 + $0x7f0] sm:$0xff]  ;;  %v548_v48 = vld [vmem:[%s3236_s1 + $0x298] sm:$0xff] }
  0x95   : > { %771 = vmatmul.mubr.f32.gmra.mxu0 %v339_v49  ;;  %996 = vmatmul.mubr.f32.gmra.mxu1 %v341_v50  ;;  %v580_v49 = vld [vmem:[%s3236_s1 + $0x398] sm:$0xff]  ;;  %v439_v50 = vld [vmem:[%s2326_s10 + $0x830] sm:$0xff] }
  0x96   : > { %1102 = vmatprep.subr.mxu0 %v2051_v2  ;;  %1327 = vmatprep.subr.mxu1 %v2051_v2 }
  0x97   : > { %1103 = vmatpush2.msra.mxu0 %v558_v51  ;;  %1328 = vmatpush2.msra.mxu1 %v590_v52  ;;  %v441_v51 = vld [vmem:[%s2326_s10 + $0x840] sm:$0xff]  ;;  %v438_v52 = vld [vmem:[%s2326_s10 + $0x828] sm:$0xff] }
  0x98   : > { %775 = vmatprep.mubr.f32.mxu0 %v349_v53  ;;  %1000 = vmatprep.mubr.f32.mxu1 %v351_v54  ;;  %v440_v53 = vld [vmem:[%s2326_s10 + $0x838] sm:$0xff]  ;;  %v547_v54 = vld [vmem:[%s3236_s1 + $0x290] sm:$0xff] }
  0x99   : > { %776 = vmatmul.mubr.f32.gmra.mxu0 %v348_v55  ;;  %1001 = vmatmul.mubr.f32.gmra.mxu1 %v350_v56  ;;  %v579_v55 = vld [vmem:[%s3236_s1 + $0x390] sm:$0xff]  ;;  %v448_v56 = vld [vmem:[%s2326_s10 + $0x878] sm:$0xff] }
  0x9a   : > { %1104 = vmatprep.subr.mxu0 %v2051_v2  ;;  %1329 = vmatprep.subr.mxu1 %v2051_v2 }
  0x9b   : > { %1105 = vmatpush2.msra.mxu0 %v557_v57  ;;  %1330 = vmatpush2.msra.mxu1 %v589_v58  ;;  %v450_v57 = vld [vmem:[%s2326_s10 + $0x888] sm:$0xff]  ;;  %v447_v58 = vld [vmem:[%s2326_s10 + $0x870] sm:$0xff] }
  0x9c   : > { %780 = vmatprep.mubr.f32.mxu0 %v358_v59  ;;  %1005 = vmatprep.mubr.f32.mxu1 %v360_v60  ;;  %v449_v59 = vld [vmem:[%s2326_s10 + $0x880] sm:$0xff]  ;;  %v546_v60 = vld [vmem:[%s3236_s1 + $0x288] sm:$0xff] }
  0x9d   : > { %781 = vmatmul.mubr.f32.gmra.mxu0 %v357_v61  ;;  %1006 = vmatmul.mubr.f32.gmra.mxu1 %v359_v62  ;;  %v578_v61 = vld [vmem:[%s3236_s1 + $0x388] sm:$0xff]  ;;  %v457_v62 = vld [vmem:[%s2326_s10 + $0x8c0] sm:$0xff] }
  0x9e   : > { %1106 = vmatprep.subr.mxu0 %v2051_v2  ;;  %1331 = vmatprep.subr.mxu1 %v2051_v2 }
  0x9f   : > { %1107 = vmatpush2.msra.mxu0 %v556_v63  ;;  %1332 = vmatpush2.msra.mxu1 %v588_v0  ;;  %v459_v63 = vld [vmem:[%s2326_s10 + $0x8d0] sm:$0xff]  ;;  %v456_v0 = vld [vmem:[%s2326_s10 + $0x8b8] sm:$0xff] }
  0xa0   : > { %785 = vmatprep.mubr.f32.mxu0 %v367_v1  ;;  %1010 = vmatprep.mubr.f32.mxu1 %v369_v3  ;;  %v458_v1 = vld [vmem:[%s2326_s10 + $0x8c8] sm:$0xff]  ;;  %v545_v3 = vld [vmem:[%s3236_s1 + $0x280] sm:$0xff] }
  0xa1   : > { %786 = vmatmul.mubr.f32.gmra.mxu0 %v366_v4  ;;  %1011 = vmatmul.mubr.f32.gmra.mxu1 %v368_v5  ;;  %v577_v4 = vld [vmem:[%s3236_s1 + $0x380] sm:$0xff]  ;;  %v182_v5 = vld [vmem:[%s2326_s10 + $0x28] sm:$0xff] }
  0xa2   : > { %1108 = vmatprep.subr.mxu0 %v2051_v2  ;;  %1333 = vmatprep.subr.mxu1 %v2051_v2 }
  0xa3   : > { %1109 = vmatpush2.msra.mxu0 %v555_v6  ;;  %1334 = vmatpush2.msra.mxu1 %v587_v7  ;;  %v184_v6 = vld [vmem:[%s2326_s10 + $0x38] sm:$0xff]  ;;  %v181_v7 = vld [vmem:[%s2326_s10 + $0x20] sm:$0xff] }
  0xa4   : > { %790 = vmatprep.mubr.f32.mxu0 %v376_v8  ;;  %1015 = vmatprep.mubr.f32.mxu1 %v378_v9  ;;  %v183_v8 = vld [vmem:[%s2326_s10 + $0x30] sm:$0xff]  ;;  %v608_v9 = vld [vmem:[%s3236_s1 + $0x478] sm:$0xff] }
  0xa5   : > { %791 = vmatmul.mubr.f32.gmra.mxu0 %v375_v10  ;;  %1016 = vmatmul.mubr.f32.gmra.mxu1 %v377_v11  ;;  %v191_v10 = vld [vmem:[%s2326_s10 + $0x70] sm:$0xff]  ;;  %v193_v11 = vld [vmem:[%s2326_s10 + $0x80] sm:$0xff] }
  0xa6   : > { %1110 = vmatprep.subr.mxu0 %v2051_v2  ;;  %1335 = vmatprep.subr.mxu1 %v2051_v2 }
  0xa7   : > { %1111 = vmatpush2.msra.mxu0 %v554_v12  ;;  %1336 = vmatpush2.msra.mxu1 %v586_v13  ;;  %v192_v12 = vld [vmem:[%s2326_s10 + $0x78] sm:$0xff] }
  0xa8   : > { %795 = vmatprep.mubr.f32.mxu0 %v385_v14  ;;  %1020 = vmatprep.mubr.f32.mxu1 %v387_v15  ;;  %v200_v13 = vld [vmem:[%s2326_s10 + $0xb8] sm:$0xff]  ;;  %v202_v14 = vld [vmem:[%s2326_s10 + $0xc8] sm:$0xff]  ;;  %v607_v15 = vld [vmem:[%s3236_s1 + $0x470] sm:$0xff] }
  0xa9   : > { %796 = vmatmul.mubr.f32.gmra.mxu0 %v384_v16  ;;  %1021 = vmatmul.mubr.f32.gmra.mxu1 %v386_v17  ;;  %v199_v16 = vld [vmem:[%s2326_s10 + $0xb0] sm:$0xff]  ;;  %v201_v17 = vld [vmem:[%s2326_s10 + $0xc0] sm:$0xff] }
  0xaa   : > { %1112 = vmatprep.subr.mxu0 %v2051_v2  ;;  %1337 = vmatprep.subr.mxu1 %v2051_v2 }
  0xab   : > { %1113 = vmatpush2.msra.mxu0 %v553_v18  ;;  %1338 = vmatpush2.msra.mxu1 %v585_v19  ;;  %v209_v18 = vld [vmem:[%s2326_s10 + $0x100] sm:$0xff]  ;;  %v211_v19 = vld [vmem:[%s2326_s10 + $0x110] sm:$0xff] }
  0xac   : > { %800 = vmatprep.mubr.f32.mxu0 %v394_v20  ;;  %1025 = vmatprep.mubr.f32.mxu1 %v396_v21  ;;  %v606_v20 = vld [vmem:[%s3236_s1 + $0x468] sm:$0xff]  ;;  %v208_v21 = vld [vmem:[%s2326_s10 + $0xf8] sm:$0xff] }
  0xad   : > { %801 = vmatmul.mubr.f32.gmra.mxu0 %v393_v22  ;;  %1026 = vmatmul.mubr.f32.gmra.mxu1 %v395_v23  ;;  %v210_v22 = vld [vmem:[%s2326_s10 + $0x108] sm:$0xff] }
  0xae   : > { %1114 = vmatprep.subr.mxu0 %v2051_v2  ;;  %1339 = vmatprep.subr.mxu1 %v2051_v2  ;;  %v218_v23 = vld [vmem:[%s2326_s10 + $0x148] sm:$0xff] }
  0xaf   : > { %1115 = vmatpush2.msra.mxu0 %v552_v24  ;;  %1340 = vmatpush2.msra.mxu1 %v584_v25  ;;  %v220_v24 = vld [vmem:[%s2326_s10 + $0x158] sm:$0xff]  ;;  %v605_v25 = vld [vmem:[%s3236_s1 + $0x460] sm:$0xff] }
  0xb0   : > { %805 = vmatprep.mubr.f32.mxu0 %v403_v26  ;;  %1030 = vmatprep.mubr.f32.mxu1 %v405_v27  ;;  %v217_v26 = vld [vmem:[%s2326_s10 + $0x140] sm:$0xff]  ;;  %v219_v27 = vld [vmem:[%s2326_s10 + $0x150] sm:$0xff] }
  0xb1   : > { %806 = vmatmul.mubr.f32.gmra.mxu0 %v402_v28  ;;  %1031 = vmatmul.mubr.f32.gmra.mxu1 %v404_v29  ;;  %v227_v28 = vld [vmem:[%s2326_s10 + $0x190] sm:$0xff]  ;;  %v229_v29 = vld [vmem:[%s2326_s10 + $0x1a0] sm:$0xff] }
  0xb2   : > { %1116 = vmatprep.subr.mxu0 %v2051_v2  ;;  %1341 = vmatprep.subr.mxu1 %v2051_v2 }
  0xb3   : > { %1117 = vmatpush2.msra.mxu0 %v551_v30  ;;  %1342 = vmatpush2.msra.mxu1 %v583_v31  ;;  %v604_v30 = vld [vmem:[%s3236_s1 + $0x458] sm:$0xff]  ;;  %v226_v31 = vld [vmem:[%s2326_s10 + $0x188] sm:$0xff] }
  0xb4   : > { %810 = vmatprep.mubr.f32.mxu0 %v412_v32  ;;  %1035 = vmatprep.mubr.f32.mxu1 %v414_v33  ;;  %v228_v32 = vld [vmem:[%s2326_s10 + $0x198] sm:$0xff] }
  0xb5   : > { %811 = vmatmul.mubr.f32.gmra.mxu0 %v411_v34  ;;  %1036 = vmatmul.mubr.f32.gmra.mxu1 %v413_v35  ;;  %v236_v33 = vld [vmem:[%s2326_s10 + $0x1d8] sm:$0xff]  ;;  %v238_v34 = vld [vmem:[%s2326_s10 + $0x1e8] sm:$0xff]  ;;  %v603_v35 = vld [vmem:[%s3236_s1 + $0x450] sm:$0xff] }
  0xb6   : > { %1118 = vmatprep.subr.mxu0 %v2051_v2  ;;  %1343 = vmatprep.subr.mxu1 %v2051_v2 }
  0xb7   : > { %1119 = vmatpush2.msra.mxu0 %v550_v36  ;;  %1344 = vmatpush2.msra.mxu1 %v582_v37  ;;  %v235_v36 = vld [vmem:[%s2326_s10 + $0x1d0] sm:$0xff]  ;;  %v237_v37 = vld [vmem:[%s2326_s10 + $0x1e0] sm:$0xff] }
  0xb8   : > { %815 = vmatprep.mubr.f32.mxu0 %v421_v38  ;;  %1040 = vmatprep.mubr.f32.mxu1 %v423_v39  ;;  %v245_v38 = vld [vmem:[%s2326_s10 + $0x220] sm:$0xff]  ;;  %v247_v39 = vld [vmem:[%s2326_s10 + $0x230] sm:$0xff] }
  0xb9   : > { %816 = vmatmul.mubr.f32.gmra.mxu0 %v420_v40  ;;  %1041 = vmatmul.mubr.f32.gmra.mxu1 %v422_v41  ;;  %v602_v40 = vld [vmem:[%s3236_s1 + $0x448] sm:$0xff]  ;;  %v244_v41 = vld [vmem:[%s2326_s10 + $0x218] sm:$0xff] }
  0xba   : > { %1120 = vmatprep.subr.mxu0 %v2051_v2  ;;  %1345 = vmatprep.subr.mxu1 %v2051_v2 }
  0xbb   : > { %1121 = vmatpush2.msra.mxu0 %v549_v42  ;;  %1346 = vmatpush2.msra.mxu1 %v581_v43  ;;  %v246_v42 = vld [vmem:[%s2326_s10 + $0x228] sm:$0xff] }
  0xbc   : > { %820 = vmatprep.mubr.f32.mxu0 %v430_v44  ;;  %1045 = vmatprep.mubr.f32.mxu1 %v432_v45  ;;  %v254_v43 = vld [vmem:[%s2326_s10 + $0x268] sm:$0xff]  ;;  %v256_v44 = vld [vmem:[%s2326_s10 + $0x278] sm:$0xff]  ;;  %v601_v45 = vld [vmem:[%s3236_s1 + $0x440] sm:$0xff] }
  0xbd   : > { %821 = vmatmul.mubr.f32.gmra.mxu0 %v429_v46  ;;  %1046 = vmatmul.mubr.f32.gmra.mxu1 %v431_v47  ;;  %v253_v46 = vld [vmem:[%s2326_s10 + $0x260] sm:$0xff]  ;;  %v255_v47 = vld [vmem:[%s2326_s10 + $0x270] sm:$0xff] }
  0xbe   : > { %1122 = vmatprep.subr.mxu0 %v2051_v2  ;;  %1347 = vmatprep.subr.mxu1 %v2051_v2 }
  0xbf   : > { %1123 = vmatpush2.msra.mxu0 %v548_v48  ;;  %1348 = vmatpush2.msra.mxu1 %v580_v49  ;;  %v263_v48 = vld [vmem:[%s2326_s10 + $0x2b0] sm:$0xff]  ;;  %v265_v49 = vld [vmem:[%s2326_s10 + $0x2c0] sm:$0xff] }
  0xc0   : > { %825 = vmatprep.mubr.f32.mxu0 %v439_v50  ;;  %1050 = vmatprep.mubr.f32.mxu1 %v441_v51  ;;  %v600_v50 = vld [vmem:[%s3236_s1 + $0x438] sm:$0xff]  ;;  %v262_v51 = vld [vmem:[%s2326_s10 + $0x2a8] sm:$0xff] }
  0xc1   : > { %826 = vmatmul.mubr.f32.gmra.mxu0 %v438_v52  ;;  %1051 = vmatmul.mubr.f32.gmra.mxu1 %v440_v53  ;;  %v264_v52 = vld [vmem:[%s2326_s10 + $0x2b8] sm:$0xff] }
  0xc2   : > { %1124 = vmatprep.subr.mxu0 %v2051_v2  ;;  %1349 = vmatprep.subr.mxu1 %v2051_v2  ;;  %v272_v53 = vld [vmem:[%s2326_s10 + $0x2f8] sm:$0xff] }
  0xc3   : > { %1125 = vmatpush2.msra.mxu0 %v547_v54  ;;  %1350 = vmatpush2.msra.mxu1 %v579_v55  ;;  %v274_v54 = vld [vmem:[%s2326_s10 + $0x308] sm:$0xff]  ;;  %v599_v55 = vld [vmem:[%s3236_s1 + $0x430] sm:$0xff] }
  0xc4   : > { %830 = vmatprep.mubr.f32.mxu0 %v448_v56  ;;  %1055 = vmatprep.mubr.f32.mxu1 %v450_v57  ;;  %v271_v56 = vld [vmem:[%s2326_s10 + $0x2f0] sm:$0xff]  ;;  %v273_v57 = vld [vmem:[%s2326_s10 + $0x300] sm:$0xff] }
  0xc5   : > { %831 = vmatmul.mubr.f32.gmra.mxu0 %v447_v58  ;;  %1056 = vmatmul.mubr.f32.gmra.mxu1 %v449_v59  ;;  %v281_v58 = vld [vmem:[%s2326_s10 + $0x340] sm:$0xff]  ;;  %v283_v59 = vld [vmem:[%s2326_s10 + $0x350] sm:$0xff] }
  0xc6   : > { %1126 = vmatprep.subr.mxu0 %v2051_v2  ;;  %1351 = vmatprep.subr.mxu1 %v2051_v2 }
  0xc7   : > { %1127 = vmatpush2.msra.mxu0 %v546_v60  ;;  %1352 = vmatpush2.msra.mxu1 %v578_v61  ;;  %v598_v60 = vld [vmem:[%s3236_s1 + $0x428] sm:$0xff]  ;;  %v280_v61 = vld [vmem:[%s2326_s10 + $0x338] sm:$0xff] }
  0xc8   : > { %835 = vmatprep.mubr.f32.mxu0 %v457_v62  ;;  %1060 = vmatprep.mubr.f32.mxu1 %v459_v63  ;;  %v282_v62 = vld [vmem:[%s2326_s10 + $0x348] sm:$0xff] }
  0xc9   : > { %836 = vmatmul.mubr.f32.gmra.mxu0 %v456_v0  ;;  %1061 = vmatmul.mubr.f32.gmra.mxu1 %v458_v1  ;;  %v290_v63 = vld [vmem:[%s2326_s10 + $0x388] sm:$0xff]  ;;  %v292_v0 = vld [vmem:[%s2326_s10 + $0x398] sm:$0xff]  ;;  %v597_v1 = vld [vmem:[%s3236_s1 + $0x420] sm:$0xff] }
  0xca   : > { %1128 = vmatprep.subr.mxu0 %v2051_v2  ;;  %1353 = vmatprep.subr.mxu1 %v2051_v2  ;;  %v190_v2 = vld [vmem:[%s2326_s10 + $0x68] sm:$0xff] }
  0xcb   : > { %1129 = vmatpush2.msra.mxu0 %v545_v3  ;;  %1354 = vmatpush2.msra.mxu1 %v577_v4  ;;  %v289_v3 = vld [vmem:[%s2326_s10 + $0x380] sm:$0xff]  ;;  %v291_v4 = vld [vmem:[%s2326_s10 + $0x390] sm:$0xff] }
  0xcc   : > { %1130 = vmatprep.mubr.f32.mxu0 %v182_v5  ;;  %1355 = vmatprep.mubr.f32.mxu1 %v184_v6  ;;  %v299_v5 = vld [vmem:[%s2326_s10 + $0x3d0] sm:$0xff]  ;;  %v301_v6 = vld [vmem:[%s2326_s10 + $0x3e0] sm:$0xff] }
  0xcd   : > { %1131 = vmatmul.mubr.f32.vlgmr.msra.gmra.mxu0 %v181_v7  ;;  %1356 = vmatmul.mubr.f32.vlgmr.msra.gmra.mxu1 %v183_v8  ;;  %v596_v7 = vld [vmem:[%s3236_s1 + $0x418] sm:$0xff]  ;;  %v298_v8 = vld [vmem:[%s2326_s10 + $0x3c8] sm:$0xff] }
  0xce   : > { %1921 = vmatprep.subr.mxu0 %v608_v9  ;;  %2001 = vmatprep.subr.mxu1 %v608_v9 }
  0xcf   : > { %1922 = vmatpush3.msra.mxu0 %v608_v9  ;;  %2017 = vmatpush3.msra.mxu1 %v608_v9  ;;  %v300_v9 = vld [vmem:[%s2326_s10 + $0x3d8] sm:$0xff] }
  0xd0   : > { %1135 = vmatprep.mubr.f32.mxu0 %v191_v10  ;;  %1360 = vmatprep.mubr.f32.mxu1 %v193_v11  ;;  %v308_v10 = vld [vmem:[%s2326_s10 + $0x418] sm:$0xff]  ;;  %v310_v11 = vld [vmem:[%s2326_s10 + $0x428] sm:$0xff] }
  0xd1   : > { %1136 = vmatmul.mubr.f32.gmra.mxu0 %v190_v2  ;;  %1361 = vmatmul.mubr.f32.gmra.mxu1 %v192_v12  ;;  %v595_v2 = vld [vmem:[%s3236_s1 + $0x410] sm:$0xff] }
  0xd2   : > { %1140 = vmatprep.mubr.f32.mxu0 %v200_v13  ;;  %1365 = vmatprep.mubr.f32.mxu1 %v202_v14  ;;  %v307_v12 = vld [vmem:[%s2326_s10 + $0x410] sm:$0xff]  ;;  %v309_v13 = vld [vmem:[%s2326_s10 + $0x420] sm:$0xff] }
  0xd3   : > { %1923 = vmatprep.subr.mxu0 %v607_v15  ;;  %2002 = vmatprep.subr.mxu1 %v607_v15  ;;  %v317_v14 = vld [vmem:[%s2326_s10 + $0x460] sm:$0xff] }
  0xd4   : > { %1924 = vmatpush3.msra.mxu0 %v607_v15  ;;  %2018 = vmatpush3.msra.mxu1 %v607_v15  ;;  %v319_v15 = vld [vmem:[%s2326_s10 + $0x470] sm:$0xff] }
  0xd5   : > { %1141 = vmatmul.mubr.f32.gmra.mxu0 %v199_v16  ;;  %1366 = vmatmul.mubr.f32.gmra.mxu1 %v201_v17  ;;  %v594_v16 = vld [vmem:[%s3236_s1 + $0x408] sm:$0xff]  ;;  %v316_v17 = vld [vmem:[%s2326_s10 + $0x458] sm:$0xff] }
  0xd6   : > { %1145 = vmatprep.mubr.f32.mxu0 %v209_v18  ;;  %1370 = vmatprep.mubr.f32.mxu1 %v211_v19  ;;  %v318_v18 = vld [vmem:[%s2326_s10 + $0x468] sm:$0xff] }
  0xd7   : > { %1925 = vmatprep.subr.mxu0 %v606_v20  ;;  %2003 = vmatprep.subr.mxu1 %v606_v20  ;;  %v326_v19 = vld [vmem:[%s2326_s10 + $0x4a8] sm:$0xff] }
  0xd8   : > { %1926 = vmatpush3.msra.mxu0 %v606_v20  ;;  %2019 = vmatpush3.msra.mxu1 %v606_v20  ;;  %v328_v20 = vld [vmem:[%s2326_s10 + $0x4b8] sm:$0xff] }
  0xd9   : > { %1146 = vmatmul.mubr.f32.gmra.mxu0 %v208_v21  ;;  %1371 = vmatmul.mubr.f32.gmra.mxu1 %v210_v22  ;;  %v593_v21 = vld [vmem:[%s3236_s1 + $0x400] sm:$0xff] }
  0xda   : > { %1150 = vmatprep.mubr.f32.mxu0 %v218_v23  ;;  %1375 = vmatprep.mubr.f32.mxu1 %v220_v24  ;;  %v325_v22 = vld [vmem:[%s2326_s10 + $0x4a0] sm:$0xff]  ;;  %v327_v23 = vld [vmem:[%s2326_s10 + $0x4b0] sm:$0xff] }
  0xdb   : > { %1927 = vmatprep.subr.mxu0 %v605_v25  ;;  %2004 = vmatprep.subr.mxu1 %v605_v25  ;;  %v2849_v24 = vld [vmem:[%s3237_s2] ss:$0 sm:$0xff] }
  0xdc   : > { %1928 = vmatpush3.msra.mxu0 %v605_v25  ;;  %2020 = vmatpush3.msra.mxu1 %v605_v25  ;;  %v335_v25 = vld [vmem:[%s2326_s10 + $0x4f0] sm:$0xff] }
  0xdd   : > { %1151 = vmatmul.mubr.f32.gmra.mxu0 %v217_v26  ;;  %1376 = vmatmul.mubr.f32.gmra.mxu1 %v219_v27  ;;  %v337_v26 = vld [vmem:[%s2326_s10 + $0x500] sm:$0xff] }
  0xde   : > { %1155 = vmatprep.mubr.f32.mxu0 %v227_v28  ;;  %1380 = vmatprep.mubr.f32.mxu1 %v229_v29 }
  0xdf   : > { %1929 = vmatprep.subr.mxu0 %v604_v30  ;;  %2005 = vmatprep.subr.mxu1 %v604_v30 }
  0xe0   : > { %1930 = vmatpush3.msra.mxu0 %v604_v30  ;;  %2021 = vmatpush3.msra.mxu1 %v604_v30  ;;  %v334_v30 = vld [vmem:[%s2326_s10 + $0x4e8] sm:$0xff] }
  0xe1   : > { %1156 = vmatmul.mubr.f32.gmra.mxu0 %v226_v31  ;;  %1381 = vmatmul.mubr.f32.gmra.mxu1 %v228_v32  ;;  %v336_v31 = vld [vmem:[%s2326_s10 + $0x4f8] sm:$0xff] }
  0xe2   : > { %1160 = vmatprep.mubr.f32.mxu0 %v236_v33  ;;  %1385 = vmatprep.mubr.f32.mxu1 %v238_v34  ;;  %v344_v34 = vld [vmem:[%s2326_s10 + $0x538] sm:$0xff] }
  0xe3   : > { %1931 = vmatprep.subr.mxu0 %v603_v35  ;;  %2006 = vmatprep.subr.mxu1 %v603_v35 }
  0xe4   : > { %1932 = vmatpush3.msra.mxu0 %v603_v35  ;;  %2022 = vmatpush3.msra.mxu1 %v603_v35  ;;  %v346_v35 = vld [vmem:[%s2326_s10 + $0x548] sm:$0xff] }
  0xe5   : > { %1161 = vmatmul.mubr.f32.gmra.mxu0 %v235_v36  ;;  %1386 = vmatmul.mubr.f32.gmra.mxu1 %v237_v37 }
  0xe6   : > { %1165 = vmatprep.mubr.f32.mxu0 %v245_v38  ;;  %1390 = vmatprep.mubr.f32.mxu1 %v247_v39 }
  0xe7   : > { %1933 = vmatprep.subr.mxu0 %v602_v40  ;;  %2007 = vmatprep.subr.mxu1 %v602_v40 }
  0xe8   : > { %1934 = vmatpush3.msra.mxu0 %v602_v40  ;;  %2023 = vmatpush3.msra.mxu1 %v602_v40  ;;  %v343_v40 = vld [vmem:[%s2326_s10 + $0x530] sm:$0xff] }
  0xe9   : > { %1166 = vmatmul.mubr.f32.gmra.mxu0 %v244_v41  ;;  %1391 = vmatmul.mubr.f32.gmra.mxu1 %v246_v42  ;;  %v345_v41 = vld [vmem:[%s2326_s10 + $0x540] sm:$0xff] }
  0xea   : > { %1170 = vmatprep.mubr.f32.mxu0 %v254_v43  ;;  %1395 = vmatprep.mubr.f32.mxu1 %v256_v44  ;;  %v353_v44 = vld [vmem:[%s2326_s10 + $0x580] sm:$0xff] }
  0xeb   : > { %1935 = vmatprep.subr.mxu0 %v601_v45  ;;  %2008 = vmatprep.subr.mxu1 %v601_v45 }
  0xec   : > { %1936 = vmatpush3.msra.mxu0 %v601_v45  ;;  %2024 = vmatpush3.msra.mxu1 %v601_v45  ;;  %v355_v45 = vld [vmem:[%s2326_s10 + $0x590] sm:$0xff] }
  0xed   : > { %1171 = vmatmul.mubr.f32.gmra.mxu0 %v253_v46  ;;  %1396 = vmatmul.mubr.f32.gmra.mxu1 %v255_v47 }
  0xee   : > { %1175 = vmatprep.mubr.f32.mxu0 %v263_v48  ;;  %1400 = vmatprep.mubr.f32.mxu1 %v265_v49 }
  0xef   : > { %1937 = vmatprep.subr.mxu0 %v600_v50  ;;  %2009 = vmatprep.subr.mxu1 %v600_v50 }
  0xf0   : > { %1938 = vmatpush3.msra.mxu0 %v600_v50  ;;  %2025 = vmatpush3.msra.mxu1 %v600_v50  ;;  %v352_v50 = vld [vmem:[%s2326_s10 + $0x578] sm:$0xff] }
  0xf1   : > { %1176 = vmatmul.mubr.f32.gmra.mxu0 %v262_v51  ;;  %1401 = vmatmul.mubr.f32.gmra.mxu1 %v264_v52  ;;  %v354_v51 = vld [vmem:[%s2326_s10 + $0x588] sm:$0xff] }
  0xf2   : > { %1180 = vmatprep.mubr.f32.mxu0 %v272_v53  ;;  %1405 = vmatprep.mubr.f32.mxu1 %v274_v54  ;;  %v362_v54 = vld [vmem:[%s2326_s10 + $0x5c8] sm:$0xff] }
  0xf3   : > { %1939 = vmatprep.subr.mxu0 %v599_v55  ;;  %2010 = vmatprep.subr.mxu1 %v599_v55 }
  0xf4   : > { %1940 = vmatpush3.msra.mxu0 %v599_v55  ;;  %2026 = vmatpush3.msra.mxu1 %v599_v55  ;;  %v364_v55 = vld [vmem:[%s2326_s10 + $0x5d8] sm:$0xff] }
  0xf5   : > { %1181 = vmatmul.mubr.f32.gmra.mxu0 %v271_v56  ;;  %1406 = vmatmul.mubr.f32.gmra.mxu1 %v273_v57 }
  0xf6   : > { %1185 = vmatprep.mubr.f32.mxu0 %v281_v58  ;;  %1410 = vmatprep.mubr.f32.mxu1 %v283_v59 }
  0xf7   : > { %1941 = vmatprep.subr.mxu0 %v598_v60  ;;  %2011 = vmatprep.subr.mxu1 %v598_v60 }
  0xf8   : > { %1942 = vmatpush3.msra.mxu0 %v598_v60  ;;  %2027 = vmatpush3.msra.mxu1 %v598_v60  ;;  %v361_v60 = vld [vmem:[%s2326_s10 + $0x5c0] sm:$0xff] }
  0xf9   : > { %1186 = vmatmul.mubr.f32.gmra.mxu0 %v280_v61  ;;  %1411 = vmatmul.mubr.f32.gmra.mxu1 %v282_v62  ;;  %v363_v61 = vld [vmem:[%s2326_s10 + $0x5d0] sm:$0xff] }
  0xfa   : > { %1190 = vmatprep.mubr.f32.mxu0 %v290_v63  ;;  %1415 = vmatprep.mubr.f32.mxu1 %v292_v0  ;;  %v371_v0 = vld [vmem:[%s2326_s10 + $0x610] sm:$0xff] }
  0xfb   : > { %1943 = vmatprep.subr.mxu0 %v597_v1  ;;  %2012 = vmatprep.subr.mxu1 %v597_v1 }
  0xfc   : > { %1944 = vmatpush3.msra.mxu0 %v597_v1  ;;  %2028 = vmatpush3.msra.mxu1 %v597_v1  ;;  %v373_v1 = vld [vmem:[%s2326_s10 + $0x620] sm:$0xff] }
  0xfd   : > { %1191 = vmatmul.mubr.f32.gmra.mxu0 %v289_v3  ;;  %1416 = vmatmul.mubr.f32.gmra.mxu1 %v291_v4 }
  0xfe   : > { %1195 = vmatprep.mubr.f32.mxu0 %v299_v5  ;;  %1420 = vmatprep.mubr.f32.mxu1 %v301_v6 }
  0xff   : > { %1945 = vmatprep.subr.mxu0 %v596_v7  ;;  %2013 = vmatprep.subr.mxu1 %v596_v7 }
 0x100   : > { %1946 = vmatpush3.msra.mxu0 %v596_v7  ;;  %2029 = vmatpush3.msra.mxu1 %v596_v7  ;;  %v370_v7 = vld [vmem:[%s2326_s10 + $0x608] sm:$0xff] }
 0x101   : > { %1196 = vmatmul.mubr.f32.gmra.mxu0 %v298_v8  ;;  %1421 = vmatmul.mubr.f32.gmra.mxu1 %v300_v9  ;;  %v372_v8 = vld [vmem:[%s2326_s10 + $0x618] sm:$0xff] }
 0x102   : > { %1200 = vmatprep.mubr.f32.mxu0 %v308_v10  ;;  %1425 = vmatprep.mubr.f32.mxu1 %v310_v11  ;;  %v380_v11 = vld [vmem:[%s2326_s10 + $0x658] sm:$0xff] }
 0x103   : > { %1947 = vmatprep.subr.mxu0 %v595_v2  ;;  %2014 = vmatprep.subr.mxu1 %v595_v2 }
 0x104   : > { %1948 = vmatpush3.msra.mxu0 %v595_v2  ;;  %2030 = vmatpush3.msra.mxu1 %v595_v2  ;;  %v382_v2 = vld [vmem:[%s2326_s10 + $0x668] sm:$0xff] }
 0x105   : > { %1201 = vmatmul.mubr.f32.gmra.mxu0 %v307_v12  ;;  %1426 = vmatmul.mubr.f32.gmra.mxu1 %v309_v13 }
 0x106   : > { %1205 = vmatprep.mubr.f32.mxu0 %v317_v14  ;;  %1430 = vmatprep.mubr.f32.mxu1 %v319_v15 }
 0x107   : > { %1949 = vmatprep.subr.mxu0 %v594_v16  ;;  %2015 = vmatprep.subr.mxu1 %v594_v16 }
 0x108   : > { %1950 = vmatpush3.msra.mxu0 %v594_v16  ;;  %2031 = vmatpush3.msra.mxu1 %v594_v16  ;;  %v379_v16 = vld [vmem:[%s2326_s10 + $0x650] sm:$0xff] }
 0x109   : > { %1206 = vmatmul.mubr.f32.gmra.mxu0 %v316_v17  ;;  %1431 = vmatmul.mubr.f32.gmra.mxu1 %v318_v18  ;;  %v381_v17 = vld [vmem:[%s2326_s10 + $0x660] sm:$0xff] }
 0x10a   : > { %1210 = vmatprep.mubr.f32.mxu0 %v326_v19  ;;  %1435 = vmatprep.mubr.f32.mxu1 %v328_v20  ;;  %v389_v20 = vld [vmem:[%s2326_s10 + $0x6a0] sm:$0xff] }
 0x10b   : > { %1951 = vmatprep.subr.mxu0 %v593_v21  ;;  %2016 = vmatprep.subr.mxu1 %v593_v21 }
 0x10c   : > { %1952 = vmatpush3.msra.mxu0 %v593_v21  ;;  %2032 = vmatpush3.msra.mxu1 %v593_v21  ;;  %v391_v21 = vld [vmem:[%s2326_s10 + $0x6b0] sm:$0xff] }
 0x10d   : > { %v682_v27 = vpop.f32.mrf.mxu0  ;;  %v907_v28 = vpop.f32.mrf.mxu1  ;;  %1211 = vmatmul.mubr.f32.gmra.mxu0 %v325_v22  ;;  %1436 = vmatmul.mubr.f32.gmra.mxu1 %v327_v23 }
 0x10e   : > { %v683_v29 = vadd.f32 %v2849_v24, %v682_v27  ;;  %1215 = vmatprep.mubr.f32.mxu0 %v335_v25  ;;  %1440 = vmatprep.mubr.f32.mxu1 %v337_v26  ;;  %v388_v27 = vld [vmem:[%s2326_s10 + $0x698] sm:$0xff] }
 0x10f   : > { %v684_v32 = vpop.f32.mrf.mxu0  ;;  %v909_v33 = vpop.f32.mrf.mxu1 }
 0x110   : > { %v2858_v36 = vadd.f32 %v907_v28, %v683_v29  ;;  %v390_v28 = vld [vmem:[%s2326_s10 + $0x6a8] sm:$0xff]  ;;  %v400_v32 = vld [vmem:[%s2326_s10 + $0x6f8] sm:$0xff] }
 0x111   : > { %v687_v37 = vpop.f32.mrf.mxu0  ;;  %v912_v38 = vpop.f32.mrf.mxu1  ;;  %1216 = vmatmul.mubr.f32.gmra.mxu0 %v334_v30  ;;  %1441 = vmatmul.mubr.f32.gmra.mxu1 %v336_v31  ;;  %v398_v31 = vld [vmem:[%s2326_s10 + $0x6e8] sm:$0xff] }
 0x112   : > { %v688_v39 = vadd.f32 %v2849_v24, %v687_v37  ;;  %1220 = vmatprep.mubr.f32.mxu0 %v344_v34  ;;  %1445 = vmatprep.mubr.f32.mxu1 %v346_v35 }
 0x113   : > { %v689_v42 = vpop.f32.mrf.mxu0  ;;  %v914_v43 = vpop.f32.mrf.mxu1 }
 0x114   : > { %v2865_v46 = vadd.f32 %v912_v38, %v688_v39  ;;  %v397_v38 = vld [vmem:[%s2326_s10 + $0x6e0] sm:$0xff]  ;;  %v399_v39 = vld [vmem:[%s2326_s10 + $0x6f0] sm:$0xff] }
 0x115   : > { %v692_v47 = vpop.f32.mrf.mxu0  ;;  %v917_v48 = vpop.f32.mrf.mxu1  ;;  %1221 = vmatmul.mubr.f32.gmra.mxu0 %v343_v40  ;;  %1446 = vmatmul.mubr.f32.gmra.mxu1 %v345_v41  ;;  %v407_v42 = vld [vmem:[%s2326_s10 + $0x730] sm:$0xff]  ;;  %v409_v43 = vld [vmem:[%s2326_s10 + $0x740] sm:$0xff] }
 0x116   : > { %v693_v49 = vadd.f32 %v2849_v24, %v692_v47  ;;  %1225 = vmatprep.mubr.f32.mxu0 %v353_v44  ;;  %1450 = vmatprep.mubr.f32.mxu1 %v355_v45 }
 0x117   : > { %v694_v52 = vpop.f32.mrf.mxu0  ;;  %v919_v53 = vpop.f32.mrf.mxu1 }
 0x118   : > { %v2872_v56 = vadd.f32 %v917_v48, %v693_v49  ;;  %v406_v49 = vld [vmem:[%s2326_s10 + $0x728] sm:$0xff]  ;;  %v416_v53 = vld [vmem:[%s2326_s10 + $0x778] sm:$0xff] }
 0x119   : > { %v697_v57 = vpop.f32.mrf.mxu0  ;;  %v922_v58 = vpop.f32.mrf.mxu1  ;;  %1226 = vmatmul.mubr.f32.gmra.mxu0 %v352_v50  ;;  %1451 = vmatmul.mubr.f32.gmra.mxu1 %v354_v51  ;;  %v408_v50 = vld [vmem:[%s2326_s10 + $0x738] sm:$0xff] }
 0x11a   : > { %v698_v59 = vadd.f32 %v2849_v24, %v697_v57  ;;  %1230 = vmatprep.mubr.f32.mxu0 %v362_v54  ;;  %1455 = vmatprep.mubr.f32.mxu1 %v364_v55  ;;  %v418_v54 = vld [vmem:[%s2326_s10 + $0x788] sm:$0xff] }
 0x11b   : > { %v699_v62 = vpop.f32.mrf.mxu0  ;;  %v924_v63 = vpop.f32.mrf.mxu1 }
 0x11c   : > { %v2879_v3 = vadd.f32 %v922_v58, %v698_v59 }
 0x11d   : > { %v702_v4 = vpop.f32.mrf.mxu0  ;;  %v927_v5 = vpop.f32.mrf.mxu1  ;;  %1231 = vmatmul.mubr.f32.gmra.mxu0 %v361_v60  ;;  %1456 = vmatmul.mubr.f32.gmra.mxu1 %v363_v61  ;;  %v415_v60 = vld [vmem:[%s2326_s10 + $0x770] sm:$0xff]  ;;  %v417_v61 = vld [vmem:[%s2326_s10 + $0x780] sm:$0xff] }
 0x11e   : > { %v703_v6 = vadd.f32 %v2849_v24, %v702_v4  ;;  %1235 = vmatprep.mubr.f32.mxu0 %v371_v0  ;;  %1460 = vmatprep.mubr.f32.mxu1 %v373_v1  ;;  %v425_v0 = vld [vmem:[%s2326_s10 + $0x7c0] sm:$0xff]  ;;  %v427_v1 = vld [vmem:[%s2326_s10 + $0x7d0] sm:$0xff] }
 0x11f   : > { %v704_v9 = vpop.f32.mrf.mxu0  ;;  %v929_v10 = vpop.f32.mrf.mxu1 }
 0x120   : > { %v2886_v12 = vadd.f32 %v927_v5, %v703_v6  ;;  %v426_v9 = vld [vmem:[%s2326_s10 + $0x7c8] sm:$0xff] }
 0x121   : > { %v707_v13 = vpop.f32.mrf.mxu0  ;;  %v932_v14 = vpop.f32.mrf.mxu1  ;;  %1236 = vmatmul.mubr.f32.gmra.mxu0 %v370_v7  ;;  %1461 = vmatmul.mubr.f32.gmra.mxu1 %v372_v8  ;;  %v424_v8 = vld [vmem:[%s2326_s10 + $0x7b8] sm:$0xff] }
 0x122   : > { %v708_v15 = vadd.f32 %v2849_v24, %v707_v13  ;;  %1240 = vmatprep.mubr.f32.mxu0 %v380_v11  ;;  %1465 = vmatprep.mubr.f32.mxu1 %v382_v2  ;;  %v434_v2 = vld [vmem:[%s2326_s10 + $0x808] sm:$0xff]  ;;  %v436_v13 = vld [vmem:[%s2326_s10 + $0x818] sm:$0xff] }
 0x123   : > { %v709_v18 = vpop.f32.mrf.mxu0  ;;  %v934_v19 = vpop.f32.mrf.mxu1 }
 0x124   : > { %v2893_v22 = vadd.f32 %v932_v14, %v708_v15  ;;  %v433_v18 = vld [vmem:[%s2326_s10 + $0x800] sm:$0xff]  ;;  %v435_v19 = vld [vmem:[%s2326_s10 + $0x810] sm:$0xff] }
 0x125   : > { %v712_v23 = vpop.f32.mrf.mxu0  ;;  %v937_v25 = vpop.f32.mrf.mxu1  ;;  %1241 = vmatmul.mubr.f32.gmra.mxu0 %v379_v16  ;;  %1466 = vmatmul.mubr.f32.gmra.mxu1 %v381_v17 }
 0x126   : > { %v713_v26 = vadd.f32 %v2849_v24, %v712_v23  ;;  %1245 = vmatprep.mubr.f32.mxu0 %v389_v20  ;;  %1470 = vmatprep.mubr.f32.mxu1 %v391_v21  ;;  %v443_v23 = vld [vmem:[%s2326_s10 + $0x850] sm:$0xff] }
 0x127   : > { %v714_v29 = vpop.f32.mrf.mxu0  ;;  %v939_v30 = vpop.f32.mrf.mxu1 }
 0x128   : > { %v2900_v33 = vadd.f32 %v937_v25, %v713_v26  ;;  %v445_v25 = vld [vmem:[%s2326_s10 + $0x860] sm:$0xff]  ;;  %v442_v30 = vld [vmem:[%s2326_s10 + $0x848] sm:$0xff] }
 0x129   : > { %v717_v34 = vpop.f32.mrf.mxu0  ;;  %v942_v35 = vpop.f32.mrf.mxu1  ;;  %1246 = vmatmul.mubr.f32.gmra.mxu0 %v388_v27  ;;  %1471 = vmatmul.mubr.f32.gmra.mxu1 %v390_v28 }
 0x12a   : > { %v718_v37 = vadd.f32 %v2849_v24, %v717_v34  ;;  %1250 = vmatprep.mubr.f32.mxu0 %v398_v31  ;;  %1475 = vmatprep.mubr.f32.mxu1 %v400_v32  ;;  %v444_v31 = vld [vmem:[%s2326_s10 + $0x858] sm:$0xff] }
 0x12b   : > { %v719_v40 = vpop.f32.mrf.mxu0  ;;  %v944_v41 = vpop.f32.mrf.mxu1 }
 0x12c   : > { %v2907_v44 = vadd.f32 %v942_v35, %v718_v37  ;;  %v452_v35 = vld [vmem:[%s2326_s10 + $0x898] sm:$0xff]  ;;  %v454_v37 = vld [vmem:[%s2326_s10 + $0x8a8] sm:$0xff] }
 0x12d   : > { %v722_v45 = vpop.f32.mrf.mxu0  ;;  %v947_v47 = vpop.f32.mrf.mxu1  ;;  %1251 = vmatmul.mubr.f32.gmra.mxu0 %v397_v38  ;;  %1476 = vmatmul.mubr.f32.gmra.mxu1 %v399_v39 }
 0x12e   : > { %v723_v48 = vadd.f32 %v2849_v24, %v722_v45  ;;  %1255 = vmatprep.mubr.f32.mxu0 %v407_v42  ;;  %1480 = vmatprep.mubr.f32.mxu1 %v409_v43  ;;  %v451_v42 = vld [vmem:[%s2326_s10 + $0x890] sm:$0xff]  ;;  %v453_v43 = vld [vmem:[%s2326_s10 + $0x8a0] sm:$0xff] }
 0x12f   : > { %v724_v51 = vpop.f32.mrf.mxu0  ;;  %v949_v52 = vpop.f32.mrf.mxu1 }
 0x130   : > { %v2914_v55 = vadd.f32 %v947_v47, %v723_v48  ;;  %v461_v48 = vld [vmem:[%s2326_s10 + $0x8e0] sm:$0xff] }
 0x131   : > { %v727_v57 = vpop.f32.mrf.mxu0  ;;  %v952_v58 = vpop.f32.mrf.mxu1  ;;  %1256 = vmatmul.mubr.f32.gmra.mxu0 %v406_v49  ;;  %1481 = vmatmul.mubr.f32.gmra.mxu1 %v408_v50  ;;  %v463_v49 = vld [vmem:[%s2326_s10 + $0x8f0] sm:$0xff] }
 0x132   : > { %v728_v59 = vadd.f32 %v2849_v24, %v727_v57  ;;  %1260 = vmatprep.mubr.f32.mxu0 %v416_v53  ;;  %1485 = vmatprep.mubr.f32.mxu1 %v418_v54  ;;  %v460_v54 = vld [vmem:[%s2326_s10 + $0x8d8] sm:$0xff]  ;;  %v462_v57 = vld [vmem:[%s2326_s10 + $0x8e8] sm:$0xff] }
 0x133   : > { %v729_v62 = vpop.f32.mrf.mxu0  ;;  %v954_v63 = vpop.f32.mrf.mxu1 }
 0x134   : > { %v2921_v4 = vadd.f32 %v952_v58, %v728_v59 }
 0x135   : > { %v732_v5 = vpop.f32.mrf.mxu0  ;;  %v957_v6 = vpop.f32.mrf.mxu1  ;;  %1261 = vmatmul.mubr.f32.gmra.mxu0 %v415_v60  ;;  %1486 = vmatmul.mubr.f32.gmra.mxu1 %v417_v61  ;;  %v185_v60 = vld [vmem:[%s2326_s10 + $0x40] sm:$0xff] }
 0x136   : > { %v733_v7 = vadd.f32 %v2849_v24, %v732_v5  ;;  %1265 = vmatprep.mubr.f32.mxu0 %v425_v0  ;;  %1490 = vmatprep.mubr.f32.mxu1 %v427_v1  ;;  %v329_v61 = vld [vmem:[%s2326_s10 + $0x4c0] sm:$0xff]  ;;  %v194_v5 = vld [vmem:[%s2326_s10 + $0x88] sm:$0xff] }
 0x137   : > { %v734_v10 = vpop.f32.mrf.mxu0  ;;  %v959_v11 = vpop.f32.mrf.mxu1 }
 0x138   : > { %v2928_v14 = vadd.f32 %v957_v6, %v733_v7  ;;  %v338_v6 = vld [vmem:[%s2326_s10 + $0x508] sm:$0xff]  ;;  %v347_v10 = vld [vmem:[%s2326_s10 + $0x550] sm:$0xff] }
 0x139   : > { %v737_v15 = vpop.f32.mrf.mxu0  ;;  %v962_v16 = vpop.f32.mrf.mxu1  ;;  %1266 = vmatmul.mubr.f32.gmra.mxu0 %v424_v8  ;;  %1491 = vmatmul.mubr.f32.gmra.mxu1 %v426_v9  ;;  %v203_v9 = vld [vmem:[%s2326_s10 + $0xd0] sm:$0xff] }
 0x13a   : > { %v738_v17 = vadd.f32 %v2849_v24, %v737_v15  ;;  %1270 = vmatprep.mubr.f32.mxu0 %v434_v2  ;;  %1495 = vmatprep.mubr.f32.mxu1 %v436_v13 }
 0x13b   : > { %v739_v20 = vpop.f32.mrf.mxu0  ;;  %v964_v21 = vpop.f32.mrf.mxu1 }
 0x13c   : > { %v2935_v26 = vadd.f32 %v962_v16, %v738_v17  ;;  %v212_v16 = vld [vmem:[%s2326_s10 + $0x118] sm:$0xff]  ;;  %v221_v20 = vld [vmem:[%s2326_s10 + $0x160] sm:$0xff] }
 0x13d   : > { %v742_v27 = vpop.f32.mrf.mxu0  ;;  %v967_v28 = vpop.f32.mrf.mxu1  ;;  %1271 = vmatmul.mubr.f32.gmra.mxu0 %v433_v18  ;;  %1496 = vmatmul.mubr.f32.gmra.mxu1 %v435_v19  ;;  %v356_v17 = vld [vmem:[%s2326_s10 + $0x598] sm:$0xff]  ;;  %v365_v21 = vld [vmem:[%s2326_s10 + $0x5e0] sm:$0xff] }
 0x13e   : > { %v743_v29 = vadd.f32 %v2849_v24, %v742_v27  ;;  %1275 = vmatprep.mubr.f32.mxu0 %v443_v23  ;;  %1500 = vmatprep.mubr.f32.mxu1 %v445_v25 }
 0x13f   : > { %v744_v32 = vpop.f32.mrf.mxu0  ;;  %v969_v34 = vpop.f32.mrf.mxu1 }
 0x140   : > { %v2942_v38 = vadd.f32 %v967_v28, %v743_v29  ;;  %v230_v29 = vld [vmem:[%s2326_s10 + $0x1a8] sm:$0xff]  ;;  %v239_v34 = vld [vmem:[%s2326_s10 + $0x1f0] sm:$0xff] }
 0x141   : > { %v747_v39 = vpop.f32.mrf.mxu0  ;;  %v972_v40 = vpop.f32.mrf.mxu1  ;;  %1276 = vmatmul.mubr.f32.gmra.mxu0 %v442_v30  ;;  %1501 = vmatmul.mubr.f32.gmra.mxu1 %v444_v31  ;;  %v374_v30 = vld [vmem:[%s2326_s10 + $0x628] sm:$0xff] }
 0x142   : > { %v748_v41 = vadd.f32 %v2849_v24, %v747_v39  ;;  %1280 = vmatprep.mubr.f32.mxu0 %v452_v35  ;;  %1505 = vmatprep.mubr.f32.mxu1 %v454_v37  ;;  %v383_v35 = vld [vmem:[%s2326_s10 + $0x670] sm:$0xff] }
 0x143   : > { %v749_v45 = vpop.f32.mrf.mxu0  ;;  %v974_v47 = vpop.f32.mrf.mxu1 }
 0x144   : > { %v2949_v50 = vadd.f32 %v972_v40, %v748_v41 }
 0x145   : > { %v752_v51 = vpop.f32.mrf.mxu0  ;;  %v977_v52 = vpop.f32.mrf.mxu1  ;;  %1281 = vmatmul.mubr.f32.gmra.mxu0 %v451_v42  ;;  %1506 = vmatmul.mubr.f32.gmra.mxu1 %v453_v43  ;;  %v248_v42 = vld [vmem:[%s2326_s10 + $0x238] sm:$0xff] }
 0x146   : > { %v753_v53 = vadd.f32 %v2849_v24, %v752_v51  ;;  %1285 = vmatprep.mubr.f32.mxu0 %v461_v48  ;;  %1510 = vmatprep.mubr.f32.mxu1 %v463_v49  ;;  %v392_v43 = vld [vmem:[%s2326_s10 + $0x6b8] sm:$0xff]  ;;  %v257_v48 = vld [vmem:[%s2326_s10 + $0x280] sm:$0xff] }
 0x147   : > { %v754_v58 = vpop.f32.mrf.mxu0  ;;  %v979_v59 = vpop.f32.mrf.mxu1  ;;  %v401_v49 = vld [vmem:[%s2326_s10 + $0x700] sm:$0xff] }
 0x148   : > { %v2956_v62 = vadd.f32 %v977_v52, %v753_v53  ;;  %v410_v58 = vld [vmem:[%s2326_s10 + $0x748] sm:$0xff] }
 0x149   : > { %v757_v63 = vpop.f32.mrf.mxu0  ;;  %v982_v0 = vpop.f32.mrf.mxu1  ;;  %1286 = vmatmul.mubr.f32.gmra.mxu0 %v460_v54  ;;  %1511 = vmatmul.mubr.f32.gmra.mxu1 %v462_v57  ;;  %v266_v57 = vld [vmem:[%s2326_s10 + $0x2c8] sm:$0xff] }
 0x14a   : > { %v758_v1 = vadd.f32 %v2849_v24, %v757_v63  ;;  %1953 = vmatprep.mubr.f32.mxu0 %v185_v60  ;;  %1977 = vmatprep.mubr.f32.mxu1 %v329_v61  ;;  %v275_v61 = vld [vmem:[%s2326_s10 + $0x310] sm:$0xff] }
 0x14b   : > { %v759_v7 = vpop.f32.mrf.mxu0  ;;  %v984_v8 = vpop.f32.mrf.mxu1  ;;  %v419_v63 = vld [vmem:[%s2326_s10 + $0x790] sm:$0xff] }
 0x14c   : > { %v2963_v11 = vadd.f32 %v982_v0, %v758_v1  ;;  %v284_v7 = vld [vmem:[%s2326_s10 + $0x358] sm:$0xff] }
 0x14d   : > { %v762_v2 = vpop.f32.mrf.mxu0  ;;  %v987_v13 = vpop.f32.mrf.mxu1  ;;  %1954 = vmatmul.mubr.f32.vlgmr.msra.gmra.mxu0 %v194_v5  ;;  %1978 = vmatmul.mubr.f32.vlgmr.msra.gmra.mxu1 %v338_v6  ;;  %v428_v8 = vld [vmem:[%s2326_s10 + $0x7d8] sm:$0xff] }
 0x14e   : > { %v763_v15 = vadd.f32 %v2849_v24, %v762_v2  ;;  %1956 = vmatprep.mubr.f32.mxu0 %v203_v9  ;;  %1980 = vmatprep.mubr.f32.mxu1 %v347_v10  ;;  %v293_v2 = vld [vmem:[%s2326_s10 + $0x3a0] sm:$0xff] }
 0x14f   : > { %v764_v18 = vpop.f32.mrf.mxu0  ;;  %v989_v19 = vpop.f32.mrf.mxu1 }
 0x150   : > { %v2970_v23 = vadd.f32 %v987_v13, %v763_v15  ;;  %v437_v13 = vld [vmem:[%s2326_s10 + $0x820] sm:$0xff]  ;;  %v302_v19 = vld [vmem:[%s2326_s10 + $0x3e8] sm:$0xff] }
 0x151   : > { %v767_v25 = vpop.f32.mrf.mxu0  ;;  %v992_v27 = vpop.f32.mrf.mxu1  ;;  %1957 = vmatmul.mubr.f32.gmra.mxu0 %v212_v16  ;;  %1981 = vmatmul.mubr.f32.gmra.mxu1 %v356_v17 }
 0x152   : > { %v768_v28 = vadd.f32 %v2849_v24, %v767_v25  ;;  %1959 = vmatprep.mubr.f32.mxu0 %v221_v20  ;;  %1983 = vmatprep.mubr.f32.mxu1 %v365_v21  ;;  %v446_v20 = vld [vmem:[%s2326_s10 + $0x868] sm:$0xff] }
 0x153   : > { %v769_v31 = vpop.f32.mrf.mxu0  ;;  %v994_v32 = vpop.f32.mrf.mxu1 }
 0x154   : > { %v2977_v37 = vadd.f32 %v992_v27, %v768_v28  ;;  %v311_v27 = vld [vmem:[%s2326_s10 + $0x430] sm:$0xff] }
 0x155   : > { %v772_v39 = vpop.f32.mrf.mxu0  ;;  %v997_v40 = vpop.f32.mrf.mxu1  ;;  %1960 = vmatmul.mubr.f32.gmra.mxu0 %v230_v29  ;;  %1984 = vmatmul.mubr.f32.gmra.mxu1 %v374_v30  ;;  %v455_v28 = vld [vmem:[%s2326_s10 + $0x8b0] sm:$0xff] }
 0x156   : > { %v773_v41 = vadd.f32 %v2849_v24, %v772_v39  ;;  %1962 = vmatprep.mubr.f32.mxu0 %v239_v34  ;;  %1986 = vmatprep.mubr.f32.mxu1 %v383_v35  ;;  %v320_v34 = vld [vmem:[%s2326_s10 + $0x478] sm:$0xff] }
 0x157   : > { %v774_v45 = vpop.f32.mrf.mxu0  ;;  %v999_v47 = vpop.f32.mrf.mxu1  ;;  %v464_v35 = vld [vmem:[%s2326_s10 + $0x8f8] sm:$0xff]  ;;  %s1869_s10 = sshll.u32 %s3258_s4, 3 }
 0x158   : > { %v2984_v51 = vadd.f32 %v997_v40, %v773_v41  ;;  %s3147_s17 = scalar_lea.vmem %s3238_s3, %s1869_s10 }
 0x159   : > { %v777_v52 = vpop.f32.mrf.mxu0  ;;  %v1002_v53 = vpop.f32.mrf.mxu1  ;;  %1963 = vmatmul.mubr.f32.gmra.mxu0 %v248_v42  ;;  %1987 = vmatmul.mubr.f32.gmra.mxu1 %v392_v43 }
 0x15a   : > { %v778_v54 = vadd.f32 %v2849_v24, %v777_v52  ;;  %1965 = vmatprep.mubr.f32.mxu0 %v257_v48  ;;  %1989 = vmatprep.mubr.f32.mxu1 %v401_v49 }
 0x15b   : > { %v779_v59 = vpop.f32.mrf.mxu0  ;;  %v1004_v60 = vpop.f32.mrf.mxu1 }
 0x15c   : > { %v2991_v0 = vadd.f32 %v1002_v53, %v778_v54 }
 0x15d   : > { %v782_v1 = vpop.f32.mrf.mxu0  ;;  %v1007_v5 = vpop.f32.mrf.mxu1  ;;  %1966 = vmatmul.mubr.f32.gmra.mxu0 %v266_v57  ;;  %1990 = vmatmul.mubr.f32.gmra.mxu1 %v410_v58 }
 0x15e   : > { %v783_v6 = vadd.f32 %v2849_v24, %v782_v1  ;;  %1968 = vmatprep.mubr.f32.mxu0 %v275_v61  ;;  %1992 = vmatprep.mubr.f32.mxu1 %v419_v63 }
 0x15f   : > { %v784_v9 = vpop.f32.mrf.mxu0  ;;  %v1009_v10 = vpop.f32.mrf.mxu1 }
 0x160   : > { %v2998_v15 = vadd.f32 %v1007_v5, %v783_v6 }
 0x161   : > { %v787_v16 = vpop.f32.mrf.mxu0  ;;  %v1012_v17 = vpop.f32.mrf.mxu1  ;;  %1969 = vmatmul.mubr.f32.gmra.mxu0 %v284_v7  ;;  %1993 = vmatmul.mubr.f32.gmra.mxu1 %v428_v8 }
 0x162   : > { %v788_v18 = vadd.f32 %v2849_v24, %v787_v16  ;;  %1971 = vmatprep.mubr.f32.mxu0 %v293_v2  ;;  %1995 = vmatprep.mubr.f32.mxu1 %v437_v13 }
 0x163   : > { %v789_v21 = vpop.f32.mrf.mxu0  ;;  %v1014_v25 = vpop.f32.mrf.mxu1 }
 0x164   : > { %v3005_v29 = vadd.f32 %v1012_v17, %v788_v18 }
 0x165   : > { %v792_v30 = vpop.f32.mrf.mxu0  ;;  %v1017_v31 = vpop.f32.mrf.mxu1  ;;  %1972 = vmatmul.mubr.f32.gmra.mxu0 %v302_v19  ;;  %1996 = vmatmul.mubr.f32.gmra.mxu1 %v446_v20 }
 0x166   : > { %v793_v32 = vadd.f32 %v2849_v24, %v792_v30  ;;  %1974 = vmatprep.mubr.f32.mxu0 %v311_v27  ;;  %1998 = vmatprep.mubr.f32.mxu1 %v455_v28 }
 0x167   : > { %v794_v39 = vpop.f32.mrf.mxu0  ;;  %v1019_v40 = vpop.f32.mrf.mxu1 }
 0x168   : > { %v3010_v41 = vadd.f32 %v1017_v31, %v793_v32 }
 0x169   : > { %v797_v42 = vpop.f32.mrf.mxu0  ;;  %v1022_v43 = vpop.f32.mrf.mxu1  ;;  %1975 = vmatmul.mubr.f32.gmra.mxu0 %v320_v34  ;;  %1999 = vmatmul.mubr.f32.gmra.mxu1 %v464_v35 }
 0x16a   : > { %v798_v45 = vadd.f32 %v2849_v24, %v797_v42 }
 0x16b   : > { %v799_v47 = vpop.f32.mrf.mxu0  ;;  %v1024_v48 = vpop.f32.mrf.mxu1 }
 0x16c   : > { %v3013_v49 = vadd.f32 %v1022_v43, %v798_v45 }
 0x16d   : > { %v802_v52 = vpop.f32.mrf.mxu0  ;;  %v1027_v53 = vpop.f32.mrf.mxu1 }
 0x16e   : > { %v803_v54 = vadd.f32 %v2849_v24, %v802_v52 }
 0x16f   : > { %v804_v57 = vpop.f32.mrf.mxu0  ;;  %v1029_v58 = vpop.f32.mrf.mxu1 }
 0x170   : > { %v3016_v59 = vadd.f32 %v1027_v53, %v803_v54 }
 0x171   : > { %v807_v60 = vpop.f32.mrf.mxu0  ;;  %v1032_v61 = vpop.f32.mrf.mxu1 }
 0x172   : > { %v808_v63 = vadd.f32 %v2849_v24, %v807_v60 }
 0x173   : > { %v809_v1 = vpop.f32.mrf.mxu0  ;;  %v1034_v5 = vpop.f32.mrf.mxu1 }
 0x174   : > { %v3019_v6 = vadd.f32 %v1032_v61, %v808_v63 }
 0x175   : > { %v812_v7 = vpop.f32.mrf.mxu0  ;;  %v1037_v8 = vpop.f32.mrf.mxu1 }
 0x176   : > { %v813_v9 = vadd.f32 %v2849_v24, %v812_v7 }
 0x177   : > { %v814_v10 = vpop.f32.mrf.mxu0  ;;  %v1039_v2 = vpop.f32.mrf.mxu1 }
 0x178   : > { %v3022_v13 = vadd.f32 %v1037_v8, %v813_v9 }
 0x179   : > { %v817_v16 = vpop.f32.mrf.mxu0  ;;  %v1042_v17 = vpop.f32.mrf.mxu1 }
 0x17a   : > { %v818_v18 = vadd.f32 %v2849_v24, %v817_v16 }
 0x17b   : > { %v819_v19 = vpop.f32.mrf.mxu0  ;;  %v1044_v20 = vpop.f32.mrf.mxu1 }
 0x17c   : > { %v3025_v21 = vadd.f32 %v1042_v17, %v818_v18 }
 0x17d   : > { %v822_v25 = vpop.f32.mrf.mxu0  ;;  %v1047_v27 = vpop.f32.mrf.mxu1 }
 0x17e   : > { %v823_v28 = vadd.f32 %v2849_v24, %v822_v25 }
 0x17f   : > { %v824_v30 = vpop.f32.mrf.mxu0  ;;  %v1049_v31 = vpop.f32.mrf.mxu1 }
 0x180   : > { %v3028_v32 = vadd.f32 %v1047_v27, %v823_v28 }
 0x181   : > { %v827_v34 = vpop.f32.mrf.mxu0  ;;  %v1052_v35 = vpop.f32.mrf.mxu1 }
 0x182   : > { %v828_v39 = vadd.f32 %v2849_v24, %v827_v34 }
 0x183   : > { %v829_v40 = vpop.f32.mrf.mxu0  ;;  %v1054_v42 = vpop.f32.mrf.mxu1 }
 0x184   : > { %v3031_v43 = vadd.f32 %v1052_v35, %v828_v39 }
 0x185   : > { %v832_v45 = vpop.f32.mrf.mxu0  ;;  %v1057_v47 = vpop.f32.mrf.mxu1 }
 0x186   : > { %v833_v48 = vadd.f32 %v2849_v24, %v832_v45 }
 0x187   : > { %v834_v52 = vpop.f32.mrf.mxu0  ;;  %v1059_v53 = vpop.f32.mrf.mxu1 }
 0x188   : > { %v3034_v54 = vadd.f32 %v1057_v47, %v833_v48 }
 0x189   : > { %v837_v57 = vpop.f32.mrf.mxu0  ;;  %v1062_v58 = vpop.f32.mrf.mxu1 }
 0x18a   : > { %3239 = vst [vmem:[#allocation2_spill] sm:$0xff] %v3034_v54  ;;  %v838_v60 = vadd.f32 %v2849_v24, %v837_v57 }
 0x18b   : > { %v839_v61 = vpop.f32.mrf.mxu0  ;;  %v1064_v63 = vpop.f32.mrf.mxu1 }
 0x18c   : > { %v3037_v1 = vadd.f32 %v1062_v58, %v838_v60 }
 0x18d   : > { %v1132_v5 = vpop.f32.mrf.mxu0  ;;  %v1357_v7 = vpop.f32.mrf.mxu1 }
 0x18e   : > { %v1133_v8 = vadd.f32 %v1132_v5, %v2858_v36 }
 0x18f   : > { %v1134_v9 = vpop.f32.mrf.mxu0  ;;  %v1359_v10 = vpop.f32.mrf.mxu1 }
 0x190   : > { %v3040_v2 = vadd.f32 %v1357_v7, %v1133_v8 }
 0x191   : > { %v1137_v16 = vpop.f32.mrf.mxu0  ;;  %v1362_v17 = vpop.f32.mrf.mxu1 }
 0x192   : > { %v1138_v18 = vadd.f32 %v1137_v16, %v2865_v46 }
 0x193   : > { %v1139_v19 = vpop.f32.mrf.mxu0  ;;  %v1364_v20 = vpop.f32.mrf.mxu1 }
 0x194   : > { %v3043_v25 = vadd.f32 %v1362_v17, %v1138_v18 }
 0x195   : > { %v1142_v24 = vpop.f32.mrf.mxu0  ;;  %v1367_v27 = vpop.f32.mrf.mxu1 }
 0x196   : > { %v1143_v28 = vadd.f32 %v1142_v24, %v2872_v56 }
 0x197   : > { %v1144_v30 = vpop.f32.mrf.mxu0  ;;  %v1369_v31 = vpop.f32.mrf.mxu1 }
 0x198   : > { %v3046_v34 = vadd.f32 %v1367_v27, %v1143_v28 }
 0x199   : > { %v1147_v36 = vpop.f32.mrf.mxu0  ;;  %v1372_v35 = vpop.f32.mrf.mxu1 }
 0x19a   : > { %v1148_v39 = vadd.f32 %v1147_v36, %v2879_v3 }
 0x19b   : > { %v1149_v40 = vpop.f32.mrf.mxu0  ;;  %v1374_v42 = vpop.f32.mrf.mxu1 }
 0x19c   : > { %v3049_v45 = vadd.f32 %v1372_v35, %v1148_v39 }
 0x19d   : > { %v1152_v46 = vpop.f32.mrf.mxu0  ;;  %v1377_v47 = vpop.f32.mrf.mxu1 }
 0x19e   : > { %v1153_v48 = vadd.f32 %v1152_v46, %v2886_v12 }
 0x19f   : > { %v1154_v52 = vpop.f32.mrf.mxu0  ;;  %v1379_v53 = vpop.f32.mrf.mxu1 }
 0x1a0   : > { %v3052_v57 = vadd.f32 %v1377_v47, %v1153_v48 }
 0x1a1   : > { %v1157_v56 = vpop.f32.mrf.mxu0  ;;  %v1382_v58 = vpop.f32.mrf.mxu1 }
 0x1a2   : > { %v1158_v60 = vadd.f32 %v1157_v56, %v2893_v22 }
 0x1a3   : > { %v1159_v61 = vpop.f32.mrf.mxu0  ;;  %v1384_v63 = vpop.f32.mrf.mxu1 }
 0x1a4   : > { %v3055_v5 = vadd.f32 %v1382_v58, %v1158_v60 }
 0x1a5   : > { %v1162_v3 = vpop.f32.mrf.mxu0  ;;  %v1387_v7 = vpop.f32.mrf.mxu1 }
 0x1a6   : > { %v1163_v8 = vadd.f32 %v1162_v3, %v2900_v33 }
 0x1a7   : > { %v1164_v9 = vpop.f32.mrf.mxu0  ;;  %v1389_v10 = vpop.f32.mrf.mxu1 }
 0x1a8   : > { %v3058_v16 = vadd.f32 %v1387_v7, %v1163_v8 }
 0x1a9   : > { %v1167_v12 = vpop.f32.mrf.mxu0  ;;  %v1392_v17 = vpop.f32.mrf.mxu1 }
 0x1aa   : > { %v1168_v18 = vadd.f32 %v1167_v12, %v2907_v44 }
 0x1ab   : > { %v1169_v19 = vpop.f32.mrf.mxu0  ;;  %v1394_v20 = vpop.f32.mrf.mxu1 }
 0x1ac   : > { %v3061_v24 = vadd.f32 %v1392_v17, %v1168_v18 }
 0x1ad   : > { %v1172_v22 = vpop.f32.mrf.mxu0  ;;  %v1397_v27 = vpop.f32.mrf.mxu1 }
 0x1ae   : > { %v1173_v28 = vadd.f32 %v1172_v22, %v2914_v55 }
 0x1af   : > { %v1174_v30 = vpop.f32.mrf.mxu0  ;;  %v1399_v31 = vpop.f32.mrf.mxu1 }
 0x1b0   : > { %v3064_v36 = vadd.f32 %v1397_v27, %v1173_v28 }
 0x1b1   : > { %v1177_v33 = vpop.f32.mrf.mxu0  ;;  %v1402_v35 = vpop.f32.mrf.mxu1 }
 0x1b2   : > { %v1178_v39 = vadd.f32 %v1177_v33, %v2921_v4 }
 0x1b3   : > { %v1179_v40 = vpop.f32.mrf.mxu0  ;;  %v1404_v42 = vpop.f32.mrf.mxu1 }
 0x1b4   : > { %v3067_v46 = vadd.f32 %v1402_v35, %v1178_v39 }
 0x1b5   : > { %v1182_v44 = vpop.f32.mrf.mxu0  ;;  %v1407_v47 = vpop.f32.mrf.mxu1 }
 0x1b6   : > { %v1183_v48 = vadd.f32 %v1182_v44, %v2928_v14 }
 0x1b7   : > { %v1184_v52 = vpop.f32.mrf.mxu0  ;;  %v1409_v53 = vpop.f32.mrf.mxu1 }
 0x1b8   : > { %v3070_v56 = vadd.f32 %v1407_v47, %v1183_v48 }
 0x1b9   : > { %v1187_v55 = vpop.f32.mrf.mxu0  ;;  %v1412_v58 = vpop.f32.mrf.mxu1 }
 0x1ba   : > { %3240 = vst [vmem:[#allocation3_spill] sm:$0xff] %v3070_v56  ;;  %v1188_v60 = vadd.f32 %v1187_v55, %v2935_v26 }
 0x1bb   : > { %v1189_v61 = vpop.f32.mrf.mxu0  ;;  %v1414_v63 = vpop.f32.mrf.mxu1 }
 0x1bc   : > { %v3073_v3 = vadd.f32 %v1412_v58, %v1188_v60 }
 0x1bd   : > { %v1192_v4 = vpop.f32.mrf.mxu0  ;;  %v1417_v7 = vpop.f32.mrf.mxu1 }
 0x1be   : > { %v1193_v8 = vadd.f32 %v1192_v4, %v2942_v38 }
 0x1bf   : > { %v1194_v9 = vpop.f32.mrf.mxu0  ;;  %v1419_v10 = vpop.f32.mrf.mxu1 }
 0x1c0   : > { %v3076_v12 = vadd.f32 %v1417_v7, %v1193_v8 }
 0x1c1   : > { %v1197_v14 = vpop.f32.mrf.mxu0  ;;  %v1422_v17 = vpop.f32.mrf.mxu1 }
 0x1c2   : > { %3241 = vst [vmem:[#allocation4_spill] sm:$0xff] %v3076_v12  ;;  %v1198_v18 = vadd.f32 %v1197_v14, %v2949_v50 }
 0x1c3   : > { %v1199_v19 = vpop.f32.mrf.mxu0  ;;  %v1424_v20 = vpop.f32.mrf.mxu1 }
 0x1c4   : > { %v3079_v22 = vadd.f32 %v1422_v17, %v1198_v18 }
 0x1c5   : > { %v1202_v26 = vpop.f32.mrf.mxu0  ;;  %v1427_v27 = vpop.f32.mrf.mxu1 }
 0x1c6   : > { %3242 = vst [vmem:[#allocation5_spill] sm:$0xff] %v3079_v22  ;;  %v1203_v28 = vadd.f32 %v1202_v26, %v2956_v62 }
 0x1c7   : > { %v1204_v30 = vpop.f32.mrf.mxu0  ;;  %v1429_v31 = vpop.f32.mrf.mxu1 }
 0x1c8   : > { %v3082_v33 = vadd.f32 %v1427_v27, %v1203_v28 }
 0x1c9   : > { %v1207_v38 = vpop.f32.mrf.mxu0  ;;  %v1432_v35 = vpop.f32.mrf.mxu1 }
 0x1ca   : > { %3243 = vst [vmem:[#allocation6_spill] sm:$0xff] %v3082_v33  ;;  %v1208_v39 = vadd.f32 %v1207_v38, %v2963_v11 }
 0x1cb   : > { %v1209_v40 = vpop.f32.mrf.mxu0  ;;  %v1434_v42 = vpop.f32.mrf.mxu1 }
 0x1cc   : > { %v3085_v44 = vadd.f32 %v1432_v35, %v1208_v39 }
 0x1cd   : > { %v1212_v50 = vpop.f32.mrf.mxu0  ;;  %v1437_v47 = vpop.f32.mrf.mxu1 }
 0x1ce   : > { %3244 = vst [vmem:[#allocation7_spill] sm:$0xff] %v3085_v44  ;;  %v1213_v48 = vadd.f32 %v1212_v50, %v2970_v23 }
 0x1cf   : > { %v1214_v52 = vpop.f32.mrf.mxu0  ;;  %v1439_v53 = vpop.f32.mrf.mxu1 }
 0x1d0   : > { %v3088_v55 = vadd.f32 %v1437_v47, %v1213_v48 }
 0x1d1   : > { %v1217_v62 = vpop.f32.mrf.mxu0  ;;  %v1442_v58 = vpop.f32.mrf.mxu1 }
 0x1d3   : > { %v1219_v60 = vpop.f32.mrf.mxu0  ;;  %v1444_v61 = vpop.f32.mrf.mxu1 }
 0x1d5   : > { %v1222_v63 = vpop.f32.mrf.mxu0  ;;  %v3090_v4 = vpop.f32.mrf.mxu1 }
 0x1d7   : > { %v1224_v11 = vpop.f32.mrf.mxu0  ;;  %v1449_v7 = vpop.f32.mrf.mxu1 }
 0x1d9   : > { %v1227_v8 = vpop.f32.mrf.mxu0  ;;  %v1452_v9 = vpop.f32.mrf.mxu1 }
 0x1db   : > { %v1229_v10 = vpop.f32.mrf.mxu0  ;;  %v1454_v14 = vpop.f32.mrf.mxu1 }
 0x1dd   : > { %v3092_v17 = vpop.f32.mrf.mxu0  ;;  %v3094_v23 = vpop.f32.mrf.mxu1 }
 0x1df   : > { %v1234_v18 = vpop.f32.mrf.mxu0  ;;  %v1459_v19 = vpop.f32.mrf.mxu1 }
 0x1e1   : > { %v1237_v20 = vpop.f32.mrf.mxu0  ;;  %v3096_v26 = vpop.f32.mrf.mxu1 }
 0x1e3   : > { %v1239_v27 = vpop.f32.mrf.mxu0  ;;  %v1464_v28 = vpop.f32.mrf.mxu1 }
 0x1e5   : > { %v3098_v30 = vpop.f32.mrf.mxu0  ;;  %v3100_v31 = vpop.f32.mrf.mxu1 }
 0x1e7   : > { %v1244_v38 = vpop.f32.mrf.mxu0  ;;  %v1469_v35 = vpop.f32.mrf.mxu1 }
 0x1e9   : > { %v3102_v39 = vpop.f32.mrf.mxu0  ;;  %v3104_v40 = vpop.f32.mrf.mxu1 }
 0x1eb   : > { %v1249_v42 = vpop.f32.mrf.mxu0  ;;  %v1474_v50 = vpop.f32.mrf.mxu1 }
 0x1ed   : > { %v3106_v47 = vpop.f32.mrf.mxu0  ;;  %v3108_v48 = vpop.f32.mrf.mxu1 }
 0x1ef   : > { %v1254_v52 = vpop.f32.mrf.mxu0  ;;  %v1479_v53 = vpop.f32.mrf.mxu1 }
 0x1f1   : > { %v3110_v60 = vpop.f32.mrf.mxu0  ;;  %v3112_v61 = vpop.f32.mrf.mxu1 }
 0x1f3   : > { %v1259_v11 = vpop.f32.mrf.mxu0  ;;  %v1484_v7 = vpop.f32.mrf.mxu1 }
 0x1f5   : > { %v3114_v10 = vpop.f32.mrf.mxu0  ;;  %v3116_v14 = vpop.f32.mrf.mxu1 }
 0x1f7   : > { %v1264_v18 = vpop.f32.mrf.mxu0  ;;  %v1489_v19 = vpop.f32.mrf.mxu1 }
 0x1f9   : > { %v3118_v27 = vpop.f32.mrf.mxu0  ;;  %v3120_v28 = vpop.f32.mrf.mxu1 }
 0x1fb   : > { %v1269_v38 = vpop.f32.mrf.mxu0  ;;  %v1494_v35 = vpop.f32.mrf.mxu1 }
 0x1fc   : > { %v1218_v35 = vadd.f32 %v1217_v62, %v2977_v37  ;;  %v1238_v37 = vadd.f32 %v1237_v20, %v3005_v29  ;;  %v1233_v29 = vadd.f32 %v3092_v17, %v2998_v15 }
 0x1fd   : > { %v3122_v42 = vpop.f32.mrf.mxu0  ;;  %v3124_v50 = vpop.f32.mrf.mxu1 }
 0x1fe   : > { %3245 = vst [vmem:[#allocation8_spill] sm:$0xff] %v3124_v50  ;;  %v1443_v56 = vadd.f32 %v1442_v58, %v1218_v35 }
 0x1ff   : > { %v1274_v52 = vpop.f32.mrf.mxu0  ;;  %v1499_v53 = vpop.f32.mrf.mxu1 }
 0x200   : > { %v1228_v52 = vadd.f32 %v1227_v8, %v2991_v0 }
 0x201   : > { %v3126_v11 = vpop.f32.mrf.mxu0  ;;  %v3128_v7 = vpop.f32.mrf.mxu1 }
 0x203   : > { %v1279_v33 = vpop.f32.mrf.mxu0  ;;  %v1504_v18 = vpop.f32.mrf.mxu1 }
 0x204   : > { %v1223_v33 = vadd.f32 %v1222_v63, %v2984_v51 }
 0x205   : > { %v3130_v19 = vpop.f32.mrf.mxu0  ;;  %v3132_v44 = vpop.f32.mrf.mxu1 }
 0x206   : > { %3246 = vst [vmem:[#allocation9_spill] sm:$0xff] %v3130_v19  ;;  %3247 = vst [vmem:[#allocation10_spill] sm:$0xff] %v3132_v44 }
 0x207   : > { %v1284_v12 = vpop.f32.mrf.mxu0  ;;  %v1509_v38 = vpop.f32.mrf.mxu1 }
 0x208   : > { %v1453_v38 = vadd.f32 %v1452_v9, %v1228_v52 }
 0x209   : > { %v3135_v22 = vpop.f32.mrf.mxu0  ;;  %v3137_v54 = vpop.f32.mrf.mxu1 }
 0x20b   : > { %v1289_v53 = vpop.f32.mrf.mxu0  ;;  %v1514_v50 = vpop.f32.mrf.mxu1 }
 0x20d   : > { %v1955_v18 = vpop.f32.mrf.mxu0  ;;  %v1979_v19 = vpop.f32.mrf.mxu1 }
 0x20e   : > { %v1588_v44 = vadd.f32 %v1955_v18, %v3043_v25  ;;  %v1668_v12 = vadd.f32 %v1979_v19, %v1443_v56  ;;  %v1448_v56 = vadd.f32 %v3090_v4, %v1223_v33  ;;  %v1243_v33 = vadd.f32 %v3098_v30, %v3010_v41 }
 0x20f   : > { %v1582_v0 = vpop.f32.mrf.mxu0  ;;  %v1662_v62 = vpop.f32.mrf.mxu1 }
 0x210   : > { %v1742_v58 = vmax.f32 %v1588_v44, 0.0  ;;  %v1758_v8 = vmax.f32 %v1668_v12, 0.0  ;;  %v1583_v51 = vadd.f32 %v1582_v0, %v3040_v2  ;;  %v1663_v25 = vadd.f32 %v1662_v62, %v3088_v55 }
 0x211   : > { %v1958_v63 = vpop.f32.mrf.mxu0  ;;  %v1982_v9 = vpop.f32.mrf.mxu1  ;;  %v1463_v2 = vadd.f32 %v3096_v26, %v1238_v37  ;;  %v1248_v55 = vadd.f32 %v3102_v39, %v3013_v49  ;;  %v1258_v37 = vadd.f32 %v3110_v60, %v3019_v6 }
 0x212   : > { %1774 = vst [vmem:[%s3147_s17 + $0x8] sm:$0xff] %v1742_v58  ;;  %1790 = vst [vmem:[%s3147_s17 + $0x88] sm:$0xff] %v1758_v8  ;;  %v1741_v20 = vmax.f32 %v1583_v51, 0.0  ;;  %v1757_v50 = vmax.f32 %v1663_v25, 0.0  ;;  %v1598_v44 = vadd.f32 %v1958_v63, %v3049_v45  ;;  %v1678_v19 = vadd.f32 %v1982_v9, %v1453_v38 }
 0x213   : > { %v1592_v4 = vpop.f32.mrf.mxu0  ;;  %v1672_v35 = vpop.f32.mrf.mxu1  ;;  %v1458_v45 = vadd.f32 %v3094_v23, %v1233_v29  ;;  %v1253_v8 = vadd.f32 %v3106_v47, %v3016_v59  ;;  %v1268_v29 = vadd.f32 %v3118_v27, %v3025_v21 }
 0x214   : > { %1773 = vst [vmem:[%s3147_s17] sm:$0xff] %v1741_v20  ;;  %1789 = vst [vmem:[%s3147_s17 + $0x80] sm:$0xff] %v1757_v50  ;;  %v1744_v15 = vmax.f32 %v1598_v44, 0.0  ;;  %v1760_v17 = vmax.f32 %v1678_v19, 0.0  ;;  %v1593_v52 = vadd.f32 %v1592_v4, %v3046_v34  ;;  %v1673_v53 = vadd.f32 %v1672_v35, %v1448_v56 }
 0x215   : > { %v1961_v26 = vpop.f32.mrf.mxu0  ;;  %v1985_v18 = vpop.f32.mrf.mxu1  ;;  %v1473_v34 = vadd.f32 %v3104_v40, %v1248_v55  ;;  %v1263_v50 = vadd.f32 %v3114_v10, %v3022_v13  ;;  %v1278_v55 = vadd.f32 %v3126_v11, %v3031_v43 }
 0x216   : > { %1776 = vst [vmem:[%s3147_s17 + $0x18] sm:$0xff] %v1744_v15  ;;  %1792 = vst [vmem:[%s3147_s17 + $0x98] sm:$0xff] %v1760_v17  ;;  %v1743_v49 = vmax.f32 %v1593_v52, 0.0  ;;  %v1759_v39 = vmax.f32 %v1673_v53, 0.0  ;;  %v1608_v12 = vadd.f32 %v1961_v26, %v3055_v5  ;;  %v1688_v38 = vadd.f32 %v1985_v18, %v1463_v2  ;;  %v3248_v18 = vld [vmem:[#allocation3_spill] sm:$0xff] }
 0x217   : > { %v1602_v23 = vpop.f32.mrf.mxu0  ;;  %v1682_v0 = vpop.f32.mrf.mxu1  ;;  %v1468_v5 = vadd.f32 %v3100_v31, %v1243_v33  ;;  %v1273_v17 = vadd.f32 %v3122_v42, %v3028_v32  ;;  %v1288_v33 = vadd.f32 %v3135_v22, %v3037_v1 }
 0x218   : > { %1775 = vst [vmem:[%s3147_s17 + $0x10] sm:$0xff] %v1743_v49  ;;  %1791 = vst [vmem:[%s3147_s17 + $0x90] sm:$0xff] %v1759_v39  ;;  %v1746_v41 = vmax.f32 %v1608_v12, 0.0  ;;  %v1762_v30 = vmax.f32 %v1688_v38, 0.0  ;;  %v1603_v62 = vadd.f32 %v1602_v23, %v3052_v57  ;;  %v1683_v58 = vadd.f32 %v1682_v0, %v1458_v45  ;;  %v3250_v38 = vld [vmem:[#allocation2_spill] sm:$0xff]  ;;  %v3252_v0 = vld [vmem:[#allocation5_spill] sm:$0xff] }
 0x219   : > { %v1964_v40 = vpop.f32.mrf.mxu0  ;;  %v1988_v51 = vpop.f32.mrf.mxu1  ;;  %v1483_v57 = vadd.f32 %v3112_v61, %v1258_v37 }
 0x21a   : > { %1778 = vst [vmem:[%s3147_s17 + $0x28] sm:$0xff] %v1746_v41  ;;  %1794 = vst [vmem:[%s3147_s17 + $0xa8] sm:$0xff] %v1762_v30  ;;  %v1745_v6 = vmax.f32 %v1603_v62, 0.0  ;;  %v1761_v60 = vmax.f32 %v1683_v58, 0.0  ;;  %v1618_v25 = vadd.f32 %v1964_v40, %v3061_v24  ;;  %v1698_v56 = vadd.f32 %v1988_v51, %v1473_v34  ;;  %v3251_v34 = vld [vmem:[#allocation9_spill] sm:$0xff]  ;;  %v3253_v51 = vld [vmem:[#allocation4_spill] sm:$0xff] }
 0x21b   : > { %v1612_v31 = vpop.f32.mrf.mxu0  ;;  %v1692_v63 = vpop.f32.mrf.mxu1  ;;  %v1478_v24 = vadd.f32 %v3108_v48, %v1253_v8  ;;  %v1283_v37 = vadd.f32 %v3251_v34, %v3250_v38  ;;  %v1513_v62 = vadd.f32 %v3137_v54, %v1288_v33 }
 0x21c   : > { %1777 = vst [vmem:[%s3147_s17 + $0x20] sm:$0xff] %v1745_v6  ;;  %1793 = vst [vmem:[%s3147_s17 + $0xa0] sm:$0xff] %v1761_v60  ;;  %v1748_v59 = vmax.f32 %v1618_v25, 0.0  ;;  %v1764_v47 = vmax.f32 %v1698_v56, 0.0  ;;  %v1613_v9 = vadd.f32 %v1612_v31, %v3058_v16  ;;  %v1693_v20 = vadd.f32 %v1692_v63, %v1468_v5  ;;  %v3254_v25 = vld [vmem:[#allocation10_spill] sm:$0xff]  ;;  %v3255_v63 = vld [vmem:[#allocation7_spill] sm:$0xff] }
 0x21d   : > { %v1967_v61 = vpop.f32.mrf.mxu0  ;;  %v1991_v44 = vpop.f32.mrf.mxu1  ;;  %v1493_v16 = vadd.f32 %v3120_v28, %v1268_v29  ;;  %v1508_v56 = vadd.f32 %v3254_v25, %v1283_v37 }
 0x21e   : > { %1780 = vst [vmem:[%s3147_s17 + $0x38] sm:$0xff] %v1748_v59  ;;  %1796 = vst [vmem:[%s3147_s17 + $0xb8] sm:$0xff] %v1764_v47  ;;  %v1747_v21 = vmax.f32 %v1613_v9, 0.0  ;;  %v1763_v27 = vmax.f32 %v1693_v20, 0.0  ;;  %v1628_v19 = vadd.f32 %v1967_v61, %v3067_v46  ;;  %v1708_v2 = vadd.f32 %v1991_v44, %v1483_v57  ;;  %v3256_v61 = vld [vmem:[#allocation6_spill] sm:$0xff] }
 0x21f   : > { %v1622_v48 = vpop.f32.mrf.mxu0  ;;  %v1702_v4 = vpop.f32.mrf.mxu1  ;;  %v1488_v46 = vadd.f32 %v3116_v14, %v1263_v50 }
 0x220   : > { %1779 = vst [vmem:[%s3147_s17 + $0x30] sm:$0xff] %v1747_v21  ;;  %1795 = vst [vmem:[%s3147_s17 + $0xb0] sm:$0xff] %v1763_v27  ;;  %v1750_v13 = vmax.f32 %v1628_v19, 0.0  ;;  %v1766_v10 = vmax.f32 %v1708_v2, 0.0  ;;  %v1623_v35 = vadd.f32 %v1622_v48, %v3064_v36  ;;  %v1703_v15 = vadd.f32 %v1702_v4, %v1478_v24 }
 0x221   : > { %v1970_v28 = vpop.f32.mrf.mxu0  ;;  %v1994_v52 = vpop.f32.mrf.mxu1  ;;  %v1503_v36 = vadd.f32 %v3128_v7, %v1278_v55 }
 0x222   : > { %1782 = vst [vmem:[%s3147_s17 + $0x48] sm:$0xff] %v1750_v13  ;;  %1798 = vst [vmem:[%s3147_s17 + $0xc8] sm:$0xff] %v1766_v10  ;;  %v1749_v43 = vmax.f32 %v1623_v35, 0.0  ;;  %v1765_v11 = vmax.f32 %v1703_v15, 0.0  ;;  %v1638_v53 = vadd.f32 %v1970_v28, %v3073_v3  ;;  %v1718_v45 = vadd.f32 %v1994_v52, %v1493_v16  ;;  %v3249_v3 = vld [vmem:[#allocation8_spill] sm:$0xff] }
 0x223   : > { %v1632_v14 = vpop.f32.mrf.mxu0  ;;  %v1712_v26 = vpop.f32.mrf.mxu1  ;;  %v1498_v12 = vadd.f32 %v3249_v3, %v1273_v17 }
 0x224   : > { %1781 = vst [vmem:[%s3147_s17 + $0x40] sm:$0xff] %v1749_v43  ;;  %1797 = vst [vmem:[%s3147_s17 + $0xc0] sm:$0xff] %v1765_v11  ;;  %v1752_v32 = vmax.f32 %v1638_v53, 0.0  ;;  %v1768_v42 = vmax.f32 %v1718_v45, 0.0  ;;  %v1633_v49 = vadd.f32 %v1632_v14, %v3248_v18  ;;  %v1713_v39 = vadd.f32 %v1712_v26, %v1488_v46 }
 0x225   : > { %v1973_v7 = vpop.f32.mrf.mxu0  ;;  %v1997_v23 = vpop.f32.mrf.mxu1 }
 0x226   : > { %1784 = vst [vmem:[%s3147_s17 + $0x58] sm:$0xff] %v1752_v32  ;;  %1800 = vst [vmem:[%s3147_s17 + $0xd8] sm:$0xff] %v1768_v42  ;;  %v1751_v1 = vmax.f32 %v1633_v49, 0.0  ;;  %v1767_v22 = vmax.f32 %v1713_v39, 0.0  ;;  %v1648_v41 = vadd.f32 %v1973_v7, %v3252_v0  ;;  %v1728_v30 = vadd.f32 %v1997_v23, %v1503_v36 }
 0x227   : > { %v1642_v58 = vpop.f32.mrf.mxu0  ;;  %v1722_v5 = vpop.f32.mrf.mxu1 }
 0x228   : > { %1783 = vst [vmem:[%s3147_s17 + $0x50] sm:$0xff] %v1751_v1  ;;  %1799 = vst [vmem:[%s3147_s17 + $0xd0] sm:$0xff] %v1767_v22  ;;  %v1754_v8 = vmax.f32 %v1648_v41, 0.0  ;;  %v1770_v40 = vmax.f32 %v1728_v30, 0.0  ;;  %v1643_v6 = vadd.f32 %v1642_v58, %v3253_v51  ;;  %v1723_v60 = vadd.f32 %v1722_v5, %v1498_v12 }
 0x229   : > { %v1976_v57 = vpop.f32.mrf.mxu0  ;;  %v2000_v29 = vpop.f32.mrf.mxu1 }
 0x22a   : > { %1786 = vst [vmem:[%s3147_s17 + $0x68] sm:$0xff] %v1754_v8  ;;  %1802 = vst [vmem:[%s3147_s17 + $0xe8] sm:$0xff] %v1770_v40  ;;  %v1753_v54 = vmax.f32 %v1643_v6, 0.0  ;;  %v1769_v31 = vmax.f32 %v1723_v60, 0.0  ;;  %v1658_v59 = vadd.f32 %v1976_v57, %v3255_v63  ;;  %v1738_v47 = vadd.f32 %v2000_v29, %v1513_v62 }
 0x22b   : > { %v1652_v9 = vpop.f32.mrf.mxu0  ;;  %v1732_v20 = vpop.f32.mrf.mxu1 }
 0x22c   : > { %1785 = vst [vmem:[%s3147_s17 + $0x60] sm:$0xff] %v1753_v54  ;;  %1801 = vst [vmem:[%s3147_s17 + $0xe0] sm:$0xff] %v1769_v31  ;;  %v1756_v24 = vmax.f32 %v1658_v59, 0.0  ;;  %v1772_v50 = vmax.f32 %v1738_v47, 0.0  ;;  %v1653_v44 = vadd.f32 %v1652_v9, %v3256_v61  ;;  %v1733_v21 = vadd.f32 %v1732_v20, %v1508_v56 }
 0x22e   : > { %1788 = vst [vmem:[%s3147_s17 + $0x78] sm:$0xff] %v1756_v24  ;;  %1804 = vst [vmem:[%s3147_s17 + $0xf8] sm:$0xff] %v1772_v50  ;;  %v1755_v27 = vmax.f32 %v1653_v44, 0.0  ;;  %v1771_v19 = vmax.f32 %v1733_v21, 0.0 }
 0x230   : > { %1787 = vst [vmem:[%s3147_s17 + $0x70] sm:$0xff] %v1755_v27  ;;  %1803 = vst [vmem:[%s3147_s17 + $0xf0] sm:$0xff] %v1771_v19 }
 0x231 PF: > { %s13_s12 = sadd.s32 1, %s2049_s12  }
 0x232   : > { %p10_p4 = scmp.ge.s32.totalorder %s13_s12, 8  }
 0x234   :  { %12 = sbr.rel (!%p10_p4) target bundleno = 1 (0x1), region = 62 }

// kernel: autoencoder9_forward.21
= control target key start
LH: loop header
LB: loop body
LE: loop exit
PB: predicated region body
PF: predicated region fallthrough
CT: control target
= control target key end

     0   :  { %s1608_s12 = smov 0   ;;  %s2568_s0 = inlined_call_operand.vmem [shape: f32[6400,1024], index: 0, kind: input, shape index: {}]   ;;  %s2569_s1 = inlined_call_operand.vmem [shape: f32[1024,128], index: 1, kind: input, shape index: {}]   ;;  %s2570_s2 = inlined_call_operand.vmem [shape: f32[1,128], index: 2, kind: input, shape index: {}]   ;;  %s2571_s3 = inlined_call_operand.vmem [shape: f32[6400,128], index: 3, kind: output, shape index: {}]  }
   0x1 LB: > { %s1556_s13 = sadd.s32 4294967295, %s1585_s12   ;;  %p1560_p0 = scmp.ge.s32.totalorder %s1585_s12, 1  ;;  %s1585_s12 = sphi %s1608_s12, %s13_s12  }
   0x2   : > { %p139_p1 = scmp.lt.s32.totalorder %s1585_s12, 26 }
   0x4   : > { %p140_p2 = pnand %p1560_p0, %p139_p1 }
   0x5   : > { %s1561_s4 = sshll.u32 (!%p140_p2), %s1556_s13, 5 }
   0x6   : > { %143 = sbr.rel (%p140_p2) target bundleno = 526 (0x20e), region = 32  ;;  %p165_p3 = scmp.lt.s32.totalorder (!%p140_p2), %s1561_s4, 799 }
   0xb   : > { %v448_v0 = vld [vmem:[%s2569_s1 + $0x78] sm:$0xff]  ;;  %v1587_v2 = vmov 0.0   ;;  %v447_v3 = vld [vmem:[%s2569_s1 + $0x70] sm:$0xff]  ;;  %v446_v5 = vld [vmem:[%s2569_s1 + $0x68] sm:$0xff]  ;;  %s2573_s4 = smov (!%p165_p3, %s1561_s4), 799 }
   0xc   : > { %v480_v1 = vld [vmem:[%s2569_s1 + $0x178] sm:$0xff]  ;;  %568 = vmatprep.subr.mxu0 %v1587_v2  ;;  %793 = vmatprep.subr.mxu1 %v1587_v2  ;;  %v479_v4 = vld [vmem:[%s2569_s1 + $0x170] sm:$0xff]  ;;  %v478_v6 = vld [vmem:[%s2569_s1 + $0x168] sm:$0xff]  ;;  %s1569_s26 = sshll.u32 %s2573_s4, 6 }
   0xd   : > { %569 = vmatpush1.msra.mxu0 %v448_v0  ;;  %794 = vmatpush1.msra.mxu1 %v480_v1  ;;  %v445_v7 = vld [vmem:[%s2569_s1 + $0x60] sm:$0xff]  ;;  %v444_v9 = vld [vmem:[%s2569_s1 + $0x58] sm:$0xff]  ;;  %v443_v11 = vld [vmem:[%s2569_s1 + $0x50] sm:$0xff]  ;;  %s1862_s10 = scalar_lea.vmem %s2568_s0, %s1569_s26 }
   0xe   : > { %570 = vmatprep.subr.mxu0 %v1587_v2  ;;  %795 = vmatprep.subr.mxu1 %v1587_v2  ;;  %v477_v8 = vld [vmem:[%s2569_s1 + $0x160] sm:$0xff]  ;;  %v476_v10 = vld [vmem:[%s2569_s1 + $0x158] sm:$0xff]  ;;  %v475_v12 = vld [vmem:[%s2569_s1 + $0x150] sm:$0xff] }
   0xf   : > { %571 = vmatpush1.msra.mxu0 %v447_v3  ;;  %796 = vmatpush1.msra.mxu1 %v479_v4  ;;  %v442_v13 = vld [vmem:[%s2569_s1 + $0x48] sm:$0xff]  ;;  %v441_v15 = vld [vmem:[%s2569_s1 + $0x40] sm:$0xff]  ;;  %v440_v17 = vld [vmem:[%s2569_s1 + $0x38] sm:$0xff] }
  0x10   : > { %572 = vmatprep.subr.mxu0 %v1587_v2  ;;  %797 = vmatprep.subr.mxu1 %v1587_v2  ;;  %v474_v14 = vld [vmem:[%s2569_s1 + $0x148] sm:$0xff]  ;;  %v473_v16 = vld [vmem:[%s2569_s1 + $0x140] sm:$0xff]  ;;  %v472_v18 = vld [vmem:[%s2569_s1 + $0x138] sm:$0xff] }
  0x11   : > { %573 = vmatpush1.msra.mxu0 %v446_v5  ;;  %798 = vmatpush1.msra.mxu1 %v478_v6  ;;  %v439_v19 = vld [vmem:[%s2569_s1 + $0x30] sm:$0xff]  ;;  %v438_v21 = vld [vmem:[%s2569_s1 + $0x28] sm:$0xff]  ;;  %v437_v23 = vld [vmem:[%s2569_s1 + $0x20] sm:$0xff] }
  0x12   : > { %574 = vmatprep.subr.mxu0 %v1587_v2  ;;  %799 = vmatprep.subr.mxu1 %v1587_v2  ;;  %v471_v20 = vld [vmem:[%s2569_s1 + $0x130] sm:$0xff]  ;;  %v470_v22 = vld [vmem:[%s2569_s1 + $0x128] sm:$0xff]  ;;  %v469_v24 = vld [vmem:[%s2569_s1 + $0x120] sm:$0xff] }
  0x13   : > { %575 = vmatpush1.msra.mxu0 %v445_v7  ;;  %800 = vmatpush1.msra.mxu1 %v477_v8  ;;  %v436_v25 = vld [vmem:[%s2569_s1 + $0x18] sm:$0xff]  ;;  %v435_v27 = vld [vmem:[%s2569_s1 + $0x10] sm:$0xff]  ;;  %v434_v29 = vld [vmem:[%s2569_s1 + $0x8] sm:$0xff] }
  0x14   : > { %576 = vmatprep.subr.mxu0 %v1587_v2  ;;  %801 = vmatprep.subr.mxu1 %v1587_v2  ;;  %v468_v26 = vld [vmem:[%s2569_s1 + $0x118] sm:$0xff]  ;;  %v467_v28 = vld [vmem:[%s2569_s1 + $0x110] sm:$0xff]  ;;  %v466_v30 = vld [vmem:[%s2569_s1 + $0x108] sm:$0xff] }
  0x15   : > { %577 = vmatpush1.msra.mxu0 %v444_v9  ;;  %802 = vmatpush1.msra.mxu1 %v476_v10  ;;  %v433_v31 = vld [vmem:[%s2569_s1] sm:$0xff]  ;;  %v464_v33 = vld [vmem:[%s2569_s1 + $0xf8] sm:$0xff]  ;;  %v463_v35 = vld [vmem:[%s2569_s1 + $0xf0] sm:$0xff] }
  0x16   : > { %578 = vmatprep.subr.mxu0 %v1587_v2  ;;  %803 = vmatprep.subr.mxu1 %v1587_v2  ;;  %v465_v32 = vld [vmem:[%s2569_s1 + $0x100] sm:$0xff]  ;;  %v496_v34 = vld [vmem:[%s2569_s1 + $0x1f8] sm:$0xff]  ;;  %v495_v36 = vld [vmem:[%s2569_s1 + $0x1f0] sm:$0xff] }
  0x17   : > { %579 = vmatpush1.msra.mxu0 %v443_v11  ;;  %804 = vmatpush1.msra.mxu1 %v475_v12  ;;  %v462_v37 = vld [vmem:[%s2569_s1 + $0xe8] sm:$0xff]  ;;  %v461_v39 = vld [vmem:[%s2569_s1 + $0xe0] sm:$0xff]  ;;  %v460_v41 = vld [vmem:[%s2569_s1 + $0xd8] sm:$0xff] }
  0x18   : > { %580 = vmatprep.subr.mxu0 %v1587_v2  ;;  %805 = vmatprep.subr.mxu1 %v1587_v2  ;;  %v494_v38 = vld [vmem:[%s2569_s1 + $0x1e8] sm:$0xff]  ;;  %v493_v40 = vld [vmem:[%s2569_s1 + $0x1e0] sm:$0xff]  ;;  %v492_v42 = vld [vmem:[%s2569_s1 + $0x1d8] sm:$0xff] }
  0x19   : > { %581 = vmatpush1.msra.mxu0 %v442_v13  ;;  %806 = vmatpush1.msra.mxu1 %v474_v14  ;;  %v459_v43 = vld [vmem:[%s2569_s1 + $0xd0] sm:$0xff]  ;;  %v458_v45 = vld [vmem:[%s2569_s1 + $0xc8] sm:$0xff]  ;;  %v457_v47 = vld [vmem:[%s2569_s1 + $0xc0] sm:$0xff] }
  0x1a   : > { %582 = vmatprep.subr.mxu0 %v1587_v2  ;;  %807 = vmatprep.subr.mxu1 %v1587_v2  ;;  %v491_v44 = vld [vmem:[%s2569_s1 + $0x1d0] sm:$0xff]  ;;  %v490_v46 = vld [vmem:[%s2569_s1 + $0x1c8] sm:$0xff]  ;;  %v489_v48 = vld [vmem:[%s2569_s1 + $0x1c0] sm:$0xff] }
  0x1b   : > { %583 = vmatpush1.msra.mxu0 %v441_v15  ;;  %808 = vmatpush1.msra.mxu1 %v473_v16  ;;  %v456_v49 = vld [vmem:[%s2569_s1 + $0xb8] sm:$0xff]  ;;  %v455_v51 = vld [vmem:[%s2569_s1 + $0xb0] sm:$0xff]  ;;  %v454_v53 = vld [vmem:[%s2569_s1 + $0xa8] sm:$0xff] }
  0x1c   : > { %584 = vmatprep.subr.mxu0 %v1587_v2  ;;  %809 = vmatprep.subr.mxu1 %v1587_v2  ;;  %v488_v50 = vld [vmem:[%s2569_s1 + $0x1b8] sm:$0xff]  ;;  %v487_v52 = vld [vmem:[%s2569_s1 + $0x1b0] sm:$0xff]  ;;  %v486_v54 = vld [vmem:[%s2569_s1 + $0x1a8] sm:$0xff] }
  0x1d   : > { %585 = vmatpush1.msra.mxu0 %v440_v17  ;;  %810 = vmatpush1.msra.mxu1 %v472_v18  ;;  %v453_v55 = vld [vmem:[%s2569_s1 + $0xa0] sm:$0xff]  ;;  %v452_v57 = vld [vmem:[%s2569_s1 + $0x98] sm:$0xff]  ;;  %v451_v59 = vld [vmem:[%s2569_s1 + $0x90] sm:$0xff] }
  0x1e   : > { %586 = vmatprep.subr.mxu0 %v1587_v2  ;;  %811 = vmatprep.subr.mxu1 %v1587_v2  ;;  %v485_v56 = vld [vmem:[%s2569_s1 + $0x1a0] sm:$0xff]  ;;  %v484_v58 = vld [vmem:[%s2569_s1 + $0x198] sm:$0xff]  ;;  %v483_v60 = vld [vmem:[%s2569_s1 + $0x190] sm:$0xff] }
  0x1f   : > { %587 = vmatpush1.msra.mxu0 %v439_v19  ;;  %812 = vmatpush1.msra.mxu1 %v471_v20  ;;  %v450_v61 = vld [vmem:[%s2569_s1 + $0x88] sm:$0xff]  ;;  %v449_v0 = vld [vmem:[%s2569_s1 + $0x80] sm:$0xff]  ;;  %v180_v4 = vld [vmem:[%s1862_s10 + $0x18] sm:$0xff] }
  0x20   : > { %588 = vmatprep.subr.mxu0 %v1587_v2  ;;  %813 = vmatprep.subr.mxu1 %v1587_v2  ;;  %v482_v62 = vld [vmem:[%s2569_s1 + $0x188] sm:$0xff]  ;;  %v177_v1 = vld [vmem:[%s1862_s10] sm:$0xff]  ;;  %v179_v5 = vld [vmem:[%s1862_s10 + $0x10] sm:$0xff] }
  0x21   : > { %589 = vmatpush1.msra.mxu0 %v438_v21  ;;  %814 = vmatpush1.msra.mxu1 %v470_v22  ;;  %v178_v63 = vld [vmem:[%s1862_s10 + $0x8] sm:$0xff]  ;;  %v481_v3 = vld [vmem:[%s2569_s1 + $0x180] sm:$0xff]  ;;  %v512_v6 = vld [vmem:[%s2569_s1 + $0x278] sm:$0xff] }
  0x22   : > { %590 = vmatprep.subr.mxu0 %v1587_v2  ;;  %815 = vmatprep.subr.mxu1 %v1587_v2  ;;  %v186_v7 = vld [vmem:[%s1862_s10 + $0x48] sm:$0xff]  ;;  %v544_v8 = vld [vmem:[%s2569_s1 + $0x378] sm:$0xff]  ;;  %v185_v9 = vld [vmem:[%s1862_s10 + $0x40] sm:$0xff] }
  0x23   : > { %591 = vmatpush1.msra.mxu0 %v437_v23  ;;  %816 = vmatpush1.msra.mxu1 %v469_v24  ;;  %v188_v10 = vld [vmem:[%s1862_s10 + $0x58] sm:$0xff]  ;;  %v187_v11 = vld [vmem:[%s1862_s10 + $0x50] sm:$0xff]  ;;  %v194_v13 = vld [vmem:[%s1862_s10 + $0x88] sm:$0xff] }
  0x24   : > { %592 = vmatprep.subr.mxu0 %v1587_v2  ;;  %817 = vmatprep.subr.mxu1 %v1587_v2  ;;  %v511_v12 = vld [vmem:[%s2569_s1 + $0x270] sm:$0xff]  ;;  %v193_v15 = vld [vmem:[%s1862_s10 + $0x80] sm:$0xff]  ;;  %v196_v16 = vld [vmem:[%s1862_s10 + $0x98] sm:$0xff] }
  0x25   : > { %593 = vmatpush1.msra.mxu0 %v436_v25  ;;  %818 = vmatpush1.msra.mxu1 %v468_v26  ;;  %v543_v14 = vld [vmem:[%s2569_s1 + $0x370] sm:$0xff]  ;;  %v510_v18 = vld [vmem:[%s2569_s1 + $0x268] sm:$0xff]  ;;  %v201_v21 = vld [vmem:[%s1862_s10 + $0xc0] sm:$0xff] }
  0x26   : > { %594 = vmatprep.subr.mxu0 %v1587_v2  ;;  %819 = vmatprep.subr.mxu1 %v1587_v2  ;;  %v195_v17 = vld [vmem:[%s1862_s10 + $0x90] sm:$0xff]  ;;  %v202_v19 = vld [vmem:[%s1862_s10 + $0xc8] sm:$0xff]  ;;  %v204_v22 = vld [vmem:[%s1862_s10 + $0xd8] sm:$0xff] }
  0x27   : > { %595 = vmatpush1.msra.mxu0 %v435_v27  ;;  %820 = vmatpush1.msra.mxu1 %v467_v28  ;;  %v542_v20 = vld [vmem:[%s2569_s1 + $0x368] sm:$0xff]  ;;  %v203_v23 = vld [vmem:[%s1862_s10 + $0xd0] sm:$0xff]  ;;  %v509_v24 = vld [vmem:[%s2569_s1 + $0x260] sm:$0xff] }
  0x28   : > { %596 = vmatprep.subr.mxu0 %v1587_v2  ;;  %821 = vmatprep.subr.mxu1 %v1587_v2  ;;  %v210_v25 = vld [vmem:[%s1862_s10 + $0x108] sm:$0xff]  ;;  %v541_v26 = vld [vmem:[%s2569_s1 + $0x360] sm:$0xff]  ;;  %v212_v28 = vld [vmem:[%s1862_s10 + $0x118] sm:$0xff] }
  0x29   : > { %597 = vmatpush1.msra.mxu0 %v434_v29  ;;  %822 = vmatpush1.msra.mxu1 %v466_v30  ;;  %v209_v27 = vld [vmem:[%s1862_s10 + $0x100] sm:$0xff]  ;;  %v211_v29 = vld [vmem:[%s1862_s10 + $0x110] sm:$0xff]  ;;  %v508_v30 = vld [vmem:[%s2569_s1 + $0x258] sm:$0xff] }
  0x2a   : > { %598 = vmatprep.subr.mxu0 %v1587_v2  ;;  %823 = vmatprep.subr.mxu1 %v1587_v2 }
  0x2b   : > { %599 = vmatpush1.msra.mxu0 %v433_v31  ;;  %824 = vmatpush1.msra.mxu1 %v465_v32  ;;  %v218_v31 = vld [vmem:[%s1862_s10 + $0x148] sm:$0xff]  ;;  %v540_v32 = vld [vmem:[%s2569_s1 + $0x358] sm:$0xff] }
  0x2c   : > { %600 = vmatprep.subr.mxu0 %v1587_v2  ;;  %825 = vmatprep.subr.mxu1 %v1587_v2 }
  0x2d   : > { %601 = vmatpush2.msra.mxu0 %v464_v33  ;;  %826 = vmatpush2.msra.mxu1 %v496_v34  ;;  %v217_v33 = vld [vmem:[%s1862_s10 + $0x140] sm:$0xff]  ;;  %v220_v34 = vld [vmem:[%s1862_s10 + $0x158] sm:$0xff] }
  0x2e   : > { %602 = vmatprep.subr.mxu0 %v1587_v2  ;;  %827 = vmatprep.subr.mxu1 %v1587_v2 }
  0x2f   : > { %603 = vmatpush2.msra.mxu0 %v463_v35  ;;  %828 = vmatpush2.msra.mxu1 %v495_v36  ;;  %v219_v35 = vld [vmem:[%s1862_s10 + $0x150] sm:$0xff] }
  0x30   : > { %604 = vmatprep.subr.mxu0 %v1587_v2  ;;  %829 = vmatprep.subr.mxu1 %v1587_v2  ;;  %v507_v36 = vld [vmem:[%s2569_s1 + $0x250] sm:$0xff] }
  0x31   : > { %605 = vmatpush2.msra.mxu0 %v462_v37  ;;  %830 = vmatpush2.msra.mxu1 %v494_v38  ;;  %v226_v37 = vld [vmem:[%s1862_s10 + $0x188] sm:$0xff]  ;;  %v539_v38 = vld [vmem:[%s2569_s1 + $0x350] sm:$0xff] }
  0x32   : > { %606 = vmatprep.subr.mxu0 %v1587_v2  ;;  %831 = vmatprep.subr.mxu1 %v1587_v2 }
  0x33   : > { %607 = vmatpush2.msra.mxu0 %v461_v39  ;;  %832 = vmatpush2.msra.mxu1 %v493_v40  ;;  %v225_v39 = vld [vmem:[%s1862_s10 + $0x180] sm:$0xff]  ;;  %v228_v40 = vld [vmem:[%s1862_s10 + $0x198] sm:$0xff] }
  0x34   : > { %608 = vmatprep.subr.mxu0 %v1587_v2  ;;  %833 = vmatprep.subr.mxu1 %v1587_v2 }
  0x35   : > { %609 = vmatpush2.msra.mxu0 %v460_v41  ;;  %834 = vmatpush2.msra.mxu1 %v492_v42  ;;  %v227_v41 = vld [vmem:[%s1862_s10 + $0x190] sm:$0xff]  ;;  %v506_v42 = vld [vmem:[%s2569_s1 + $0x248] sm:$0xff] }
  0x36   : > { %610 = vmatprep.subr.mxu0 %v1587_v2  ;;  %835 = vmatprep.subr.mxu1 %v1587_v2 }
  0x37   : > { %611 = vmatpush2.msra.mxu0 %v459_v43  ;;  %836 = vmatpush2.msra.mxu1 %v491_v44  ;;  %v234_v43 = vld [vmem:[%s1862_s10 + $0x1c8] sm:$0xff] }
  0x38   : > { %612 = vmatprep.subr.mxu0 %v1587_v2  ;;  %837 = vmatprep.subr.mxu1 %v1587_v2  ;;  %v538_v44 = vld [vmem:[%s2569_s1 + $0x348] sm:$0xff] }
  0x39   : > { %613 = vmatpush2.msra.mxu0 %v458_v45  ;;  %838 = vmatpush2.msra.mxu1 %v490_v46  ;;  %v233_v45 = vld [vmem:[%s1862_s10 + $0x1c0] sm:$0xff]  ;;  %v236_v46 = vld [vmem:[%s1862_s10 + $0x1d8] sm:$0xff] }
  0x3a   : > { %614 = vmatprep.subr.mxu0 %v1587_v2  ;;  %839 = vmatprep.subr.mxu1 %v1587_v2 }
  0x3b   : > { %615 = vmatpush2.msra.mxu0 %v457_v47  ;;  %840 = vmatpush2.msra.mxu1 %v489_v48  ;;  %v235_v47 = vld [vmem:[%s1862_s10 + $0x1d0] sm:$0xff]  ;;  %v505_v48 = vld [vmem:[%s2569_s1 + $0x240] sm:$0xff] }
  0x3c   : > { %616 = vmatprep.subr.mxu0 %v1587_v2  ;;  %841 = vmatprep.subr.mxu1 %v1587_v2 }
  0x3d   : > { %617 = vmatpush2.msra.mxu0 %v456_v49  ;;  %842 = vmatpush2.msra.mxu1 %v488_v50  ;;  %v242_v49 = vld [vmem:[%s1862_s10 + $0x208] sm:$0xff]  ;;  %v537_v50 = vld [vmem:[%s2569_s1 + $0x340] sm:$0xff] }
  0x3e   : > { %618 = vmatprep.subr.mxu0 %v1587_v2  ;;  %843 = vmatprep.subr.mxu1 %v1587_v2 }
  0x3f   : > { %619 = vmatpush2.msra.mxu0 %v455_v51  ;;  %844 = vmatpush2.msra.mxu1 %v487_v52  ;;  %v241_v51 = vld [vmem:[%s1862_s10 + $0x200] sm:$0xff]  ;;  %v244_v52 = vld [vmem:[%s1862_s10 + $0x218] sm:$0xff] }
  0x40   : > { %620 = vmatprep.subr.mxu0 %v1587_v2  ;;  %845 = vmatprep.subr.mxu1 %v1587_v2 }
  0x41   : > { %621 = vmatpush2.msra.mxu0 %v454_v53  ;;  %846 = vmatpush2.msra.mxu1 %v486_v54  ;;  %v243_v53 = vld [vmem:[%s1862_s10 + $0x210] sm:$0xff]  ;;  %v504_v54 = vld [vmem:[%s2569_s1 + $0x238] sm:$0xff] }
  0x42   : > { %622 = vmatprep.subr.mxu0 %v1587_v2  ;;  %847 = vmatprep.subr.mxu1 %v1587_v2 }
  0x43   : > { %623 = vmatpush2.msra.mxu0 %v453_v55  ;;  %848 = vmatpush2.msra.mxu1 %v485_v56  ;;  %v250_v55 = vld [vmem:[%s1862_s10 + $0x248] sm:$0xff]  ;;  %v536_v56 = vld [vmem:[%s2569_s1 + $0x338] sm:$0xff] }
  0x44   : > { %624 = vmatprep.subr.mxu0 %v1587_v2  ;;  %849 = vmatprep.subr.mxu1 %v1587_v2 }
  0x45   : > { %625 = vmatpush2.msra.mxu0 %v452_v57  ;;  %850 = vmatpush2.msra.mxu1 %v484_v58  ;;  %v249_v57 = vld [vmem:[%s1862_s10 + $0x240] sm:$0xff]  ;;  %v252_v58 = vld [vmem:[%s1862_s10 + $0x258] sm:$0xff] }
  0x46   : > { %626 = vmatprep.subr.mxu0 %v1587_v2  ;;  %851 = vmatprep.subr.mxu1 %v1587_v2 }
  0x47   : > { %627 = vmatpush2.msra.mxu0 %v451_v59  ;;  %852 = vmatpush2.msra.mxu1 %v483_v60  ;;  %v251_v59 = vld [vmem:[%s1862_s10 + $0x250] sm:$0xff] }
  0x48   : > { %628 = vmatprep.subr.mxu0 %v1587_v2  ;;  %853 = vmatprep.subr.mxu1 %v1587_v2  ;;  %v503_v60 = vld [vmem:[%s2569_s1 + $0x230] sm:$0xff] }
  0x49   : > { %629 = vmatpush2.msra.mxu0 %v450_v61  ;;  %854 = vmatpush2.msra.mxu1 %v482_v62  ;;  %v258_v61 = vld [vmem:[%s1862_s10 + $0x288] sm:$0xff]  ;;  %v535_v62 = vld [vmem:[%s2569_s1 + $0x330] sm:$0xff] }
  0x4a   : > { %630 = vmatprep.subr.mxu0 %v1587_v2  ;;  %632 = vmatprep.mubr.f32.mxu0 %v178_v63  ;;  %v257_v63 = vld [vmem:[%s1862_s10 + $0x280] sm:$0xff] }
  0x4b   : > { %631 = vmatpush2.msra.mxu0 %v449_v0  ;;  %855 = vmatprep.subr.mxu1 %v1587_v2  ;;  %v260_v0 = vld [vmem:[%s1862_s10 + $0x298] sm:$0xff] }
  0x4c   : > { %633 = vmatmul.mubr.f32.vlgmr.msra.gmra.mxu0 %v177_v1  ;;  %856 = vmatpush2.msra.mxu1 %v481_v3  ;;  %v259_v1 = vld [vmem:[%s1862_s10 + $0x290] sm:$0xff]  ;;  %v502_v3 = vld [vmem:[%s2569_s1 + $0x228] sm:$0xff] }
  0x4d   : > { %857 = vmatprep.mubr.f32.mxu1 %v180_v4  ;;  %1018 = vmatprep.subr.mxu0 %v1587_v2  ;;  %v266_v4 = vld [vmem:[%s1862_s10 + $0x2c8] sm:$0xff] }
  0x4e   : > { %858 = vmatmul.mubr.f32.vlgmr.msra.gmra.mxu1 %v179_v5  ;;  %1019 = vmatpush1.msra.mxu0 %v512_v6  ;;  %v534_v5 = vld [vmem:[%s2569_s1 + $0x328] sm:$0xff]  ;;  %v265_v6 = vld [vmem:[%s1862_s10 + $0x2c0] sm:$0xff] }
  0x4f   : > { %1243 = vmatprep.subr.mxu1 %v1587_v2  ;;  %637 = vmatprep.mubr.f32.mxu0 %v186_v7  ;;  %v268_v7 = vld [vmem:[%s1862_s10 + $0x2d8] sm:$0xff] }
  0x50   : > { %1244 = vmatpush1.msra.mxu1 %v544_v8  ;;  %638 = vmatmul.mubr.f32.gmra.mxu0 %v185_v9  ;;  %v267_v8 = vld [vmem:[%s1862_s10 + $0x2d0] sm:$0xff]  ;;  %v501_v9 = vld [vmem:[%s2569_s1 + $0x220] sm:$0xff] }
  0x51   : > { %862 = vmatprep.mubr.f32.mxu1 %v188_v10  ;;  %1020 = vmatprep.subr.mxu0 %v1587_v2  ;;  %v274_v10 = vld [vmem:[%s1862_s10 + $0x308] sm:$0xff] }
  0x52   : > { %863 = vmatmul.mubr.f32.gmra.mxu1 %v187_v11  ;;  %1021 = vmatpush1.msra.mxu0 %v511_v12  ;;  %v533_v11 = vld [vmem:[%s2569_s1 + $0x320] sm:$0xff] }
  0x53   : > { %1245 = vmatprep.subr.mxu1 %v1587_v2  ;;  %642 = vmatprep.mubr.f32.mxu0 %v194_v13  ;;  %v273_v12 = vld [vmem:[%s1862_s10 + $0x300] sm:$0xff]  ;;  %v276_v13 = vld [vmem:[%s1862_s10 + $0x318] sm:$0xff] }
  0x54   : > { %1246 = vmatpush1.msra.mxu1 %v543_v14  ;;  %643 = vmatmul.mubr.f32.gmra.mxu0 %v193_v15  ;;  %v275_v14 = vld [vmem:[%s1862_s10 + $0x310] sm:$0xff]  ;;  %v500_v15 = vld [vmem:[%s2569_s1 + $0x218] sm:$0xff] }
  0x55   : > { %867 = vmatprep.mubr.f32.mxu1 %v196_v16  ;;  %1022 = vmatprep.subr.mxu0 %v1587_v2  ;;  %v282_v16 = vld [vmem:[%s1862_s10 + $0x348] sm:$0xff] }
  0x56   : > { %868 = vmatmul.mubr.f32.gmra.mxu1 %v195_v17  ;;  %1023 = vmatpush1.msra.mxu0 %v510_v18  ;;  %v532_v17 = vld [vmem:[%s2569_s1 + $0x318] sm:$0xff]  ;;  %v281_v18 = vld [vmem:[%s1862_s10 + $0x340] sm:$0xff] }
  0x57   : > { %1247 = vmatprep.subr.mxu1 %v1587_v2  ;;  %647 = vmatprep.mubr.f32.mxu0 %v202_v19  ;;  %v284_v19 = vld [vmem:[%s1862_s10 + $0x358] sm:$0xff] }
  0x58   : > { %1248 = vmatpush1.msra.mxu1 %v542_v20  ;;  %648 = vmatmul.mubr.f32.gmra.mxu0 %v201_v21  ;;  %v283_v20 = vld [vmem:[%s1862_s10 + $0x350] sm:$0xff] }
  0x59   : > { %872 = vmatprep.mubr.f32.mxu1 %v204_v22  ;;  %1024 = vmatprep.subr.mxu0 %v1587_v2  ;;  %v499_v21 = vld [vmem:[%s2569_s1 + $0x210] sm:$0xff]  ;;  %v290_v22 = vld [vmem:[%s1862_s10 + $0x388] sm:$0xff] }
  0x5a   : > { %873 = vmatmul.mubr.f32.gmra.mxu1 %v203_v23  ;;  %1025 = vmatpush1.msra.mxu0 %v509_v24  ;;  %v531_v23 = vld [vmem:[%s2569_s1 + $0x310] sm:$0xff]  ;;  %v289_v24 = vld [vmem:[%s1862_s10 + $0x380] sm:$0xff] }
  0x5b   : > { %1249 = vmatprep.subr.mxu1 %v1587_v2  ;;  %652 = vmatprep.mubr.f32.mxu0 %v210_v25  ;;  %v292_v25 = vld [vmem:[%s1862_s10 + $0x398] sm:$0xff] }
  0x5c   : > { %1250 = vmatpush1.msra.mxu1 %v541_v26  ;;  %653 = vmatmul.mubr.f32.gmra.mxu0 %v209_v27  ;;  %v291_v26 = vld [vmem:[%s1862_s10 + $0x390] sm:$0xff]  ;;  %v498_v27 = vld [vmem:[%s2569_s1 + $0x208] sm:$0xff] }
  0x5d   : > { %877 = vmatprep.mubr.f32.mxu1 %v212_v28  ;;  %1026 = vmatprep.subr.mxu0 %v1587_v2  ;;  %v298_v28 = vld [vmem:[%s1862_s10 + $0x3c8] sm:$0xff] }
  0x5e   : > { %878 = vmatmul.mubr.f32.gmra.mxu1 %v211_v29  ;;  %1027 = vmatpush1.msra.mxu0 %v508_v30  ;;  %v530_v29 = vld [vmem:[%s2569_s1 + $0x308] sm:$0xff]  ;;  %v297_v30 = vld [vmem:[%s1862_s10 + $0x3c0] sm:$0xff] }
  0x5f   : > { %1251 = vmatprep.subr.mxu1 %v1587_v2  ;;  %657 = vmatprep.mubr.f32.mxu0 %v218_v31  ;;  %v300_v31 = vld [vmem:[%s1862_s10 + $0x3d8] sm:$0xff] }
  0x60   : > { %1252 = vmatpush1.msra.mxu1 %v540_v32  ;;  %658 = vmatmul.mubr.f32.gmra.mxu0 %v217_v33  ;;  %v299_v32 = vld [vmem:[%s1862_s10 + $0x3d0] sm:$0xff]  ;;  %v497_v33 = vld [vmem:[%s2569_s1 + $0x200] sm:$0xff] }
  0x61   : > { %882 = vmatprep.mubr.f32.mxu1 %v220_v34  ;;  %1028 = vmatprep.subr.mxu0 %v1587_v2  ;;  %v306_v34 = vld [vmem:[%s1862_s10 + $0x408] sm:$0xff] }
  0x62   : > { %883 = vmatmul.mubr.f32.gmra.mxu1 %v219_v35  ;;  %1029 = vmatpush1.msra.mxu0 %v507_v36  ;;  %v529_v35 = vld [vmem:[%s2569_s1 + $0x300] sm:$0xff] }
  0x63   : > { %1253 = vmatprep.subr.mxu1 %v1587_v2  ;;  %662 = vmatprep.mubr.f32.mxu0 %v226_v37  ;;  %v305_v36 = vld [vmem:[%s1862_s10 + $0x400] sm:$0xff]  ;;  %v308_v37 = vld [vmem:[%s1862_s10 + $0x418] sm:$0xff] }
  0x64   : > { %1254 = vmatpush1.msra.mxu1 %v539_v38  ;;  %663 = vmatmul.mubr.f32.gmra.mxu0 %v225_v39  ;;  %v307_v38 = vld [vmem:[%s1862_s10 + $0x410] sm:$0xff]  ;;  %v528_v39 = vld [vmem:[%s2569_s1 + $0x2f8] sm:$0xff] }
  0x65   : > { %887 = vmatprep.mubr.f32.mxu1 %v228_v40  ;;  %1030 = vmatprep.subr.mxu0 %v1587_v2  ;;  %v314_v40 = vld [vmem:[%s1862_s10 + $0x448] sm:$0xff] }
  0x66   : > { %888 = vmatmul.mubr.f32.gmra.mxu1 %v227_v41  ;;  %1031 = vmatpush1.msra.mxu0 %v506_v42  ;;  %v560_v41 = vld [vmem:[%s2569_s1 + $0x3f8] sm:$0xff]  ;;  %v313_v42 = vld [vmem:[%s1862_s10 + $0x440] sm:$0xff] }
  0x67   : > { %1255 = vmatprep.subr.mxu1 %v1587_v2  ;;  %667 = vmatprep.mubr.f32.mxu0 %v234_v43  ;;  %v316_v43 = vld [vmem:[%s1862_s10 + $0x458] sm:$0xff] }
  0x68   : > { %1256 = vmatpush1.msra.mxu1 %v538_v44  ;;  %668 = vmatmul.mubr.f32.gmra.mxu0 %v233_v45  ;;  %v315_v44 = vld [vmem:[%s1862_s10 + $0x450] sm:$0xff] }
  0x69   : > { %892 = vmatprep.mubr.f32.mxu1 %v236_v46  ;;  %1032 = vmatprep.subr.mxu0 %v1587_v2  ;;  %v527_v45 = vld [vmem:[%s2569_s1 + $0x2f0] sm:$0xff]  ;;  %v322_v46 = vld [vmem:[%s1862_s10 + $0x488] sm:$0xff] }
  0x6a   : > { %893 = vmatmul.mubr.f32.gmra.mxu1 %v235_v47  ;;  %1033 = vmatpush1.msra.mxu0 %v505_v48  ;;  %v559_v47 = vld [vmem:[%s2569_s1 + $0x3f0] sm:$0xff]  ;;  %v321_v48 = vld [vmem:[%s1862_s10 + $0x480] sm:$0xff] }
  0x6b   : > { %1257 = vmatprep.subr.mxu1 %v1587_v2  ;;  %672 = vmatprep.mubr.f32.mxu0 %v242_v49  ;;  %v324_v49 = vld [vmem:[%s1862_s10 + $0x498] sm:$0xff] }
  0x6c   : > { %1258 = vmatpush1.msra.mxu1 %v537_v50  ;;  %673 = vmatmul.mubr.f32.gmra.mxu0 %v241_v51  ;;  %v323_v50 = vld [vmem:[%s1862_s10 + $0x490] sm:$0xff]  ;;  %v526_v51 = vld [vmem:[%s2569_s1 + $0x2e8] sm:$0xff] }
  0x6d   : > { %897 = vmatprep.mubr.f32.mxu1 %v244_v52  ;;  %1034 = vmatprep.subr.mxu0 %v1587_v2  ;;  %v330_v52 = vld [vmem:[%s1862_s10 + $0x4c8] sm:$0xff] }
  0x6e   : > { %898 = vmatmul.mubr.f32.gmra.mxu1 %v243_v53  ;;  %1035 = vmatpush1.msra.mxu0 %v504_v54  ;;  %v558_v53 = vld [vmem:[%s2569_s1 + $0x3e8] sm:$0xff]  ;;  %v329_v54 = vld [vmem:[%s1862_s10 + $0x4c0] sm:$0xff] }
  0x6f   : > { %1259 = vmatprep.subr.mxu1 %v1587_v2  ;;  %677 = vmatprep.mubr.f32.mxu0 %v250_v55  ;;  %v332_v55 = vld [vmem:[%s1862_s10 + $0x4d8] sm:$0xff] }
  0x70   : > { %1260 = vmatpush1.msra.mxu1 %v536_v56  ;;  %678 = vmatmul.mubr.f32.gmra.mxu0 %v249_v57  ;;  %v331_v56 = vld [vmem:[%s1862_s10 + $0x4d0] sm:$0xff]  ;;  %v525_v57 = vld [vmem:[%s2569_s1 + $0x2e0] sm:$0xff] }
  0x71   : > { %902 = vmatprep.mubr.f32.mxu1 %v252_v58  ;;  %1036 = vmatprep.subr.mxu0 %v1587_v2  ;;  %v338_v58 = vld [vmem:[%s1862_s10 + $0x508] sm:$0xff] }
  0x72   : > { %903 = vmatmul.mubr.f32.gmra.mxu1 %v251_v59  ;;  %1037 = vmatpush1.msra.mxu0 %v503_v60  ;;  %v557_v59 = vld [vmem:[%s2569_s1 + $0x3e0] sm:$0xff] }
  0x73   : > { %1261 = vmatprep.subr.mxu1 %v1587_v2  ;;  %682 = vmatprep.mubr.f32.mxu0 %v258_v61  ;;  %v337_v60 = vld [vmem:[%s1862_s10 + $0x500] sm:$0xff]  ;;  %v340_v61 = vld [vmem:[%s1862_s10 + $0x518] sm:$0xff] }
  0x74   : > { %1262 = vmatpush1.msra.mxu1 %v535_v62  ;;  %683 = vmatmul.mubr.f32.gmra.mxu0 %v257_v63  ;;  %v339_v62 = vld [vmem:[%s1862_s10 + $0x510] sm:$0xff]  ;;  %v524_v63 = vld [vmem:[%s2569_s1 + $0x2d8] sm:$0xff] }
  0x75   : > { %907 = vmatprep.mubr.f32.mxu1 %v260_v0  ;;  %1038 = vmatprep.subr.mxu0 %v1587_v2  ;;  %v346_v0 = vld [vmem:[%s1862_s10 + $0x548] sm:$0xff] }
  0x76   : > { %908 = vmatmul.mubr.f32.gmra.mxu1 %v259_v1  ;;  %1039 = vmatpush1.msra.mxu0 %v502_v3  ;;  %v556_v1 = vld [vmem:[%s2569_s1 + $0x3d8] sm:$0xff]  ;;  %v345_v3 = vld [vmem:[%s1862_s10 + $0x540] sm:$0xff] }
  0x77   : > { %1263 = vmatprep.subr.mxu1 %v1587_v2  ;;  %687 = vmatprep.mubr.f32.mxu0 %v266_v4  ;;  %v348_v4 = vld [vmem:[%s1862_s10 + $0x558] sm:$0xff] }
  0x78   : > { %1264 = vmatpush1.msra.mxu1 %v534_v5  ;;  %688 = vmatmul.mubr.f32.gmra.mxu0 %v265_v6  ;;  %v347_v5 = vld [vmem:[%s1862_s10 + $0x550] sm:$0xff] }
  0x79   : > { %912 = vmatprep.mubr.f32.mxu1 %v268_v7  ;;  %1040 = vmatprep.subr.mxu0 %v1587_v2  ;;  %v523_v6 = vld [vmem:[%s2569_s1 + $0x2d0] sm:$0xff]  ;;  %v354_v7 = vld [vmem:[%s1862_s10 + $0x588] sm:$0xff] }
  0x7a   : > { %913 = vmatmul.mubr.f32.gmra.mxu1 %v267_v8  ;;  %1041 = vmatpush1.msra.mxu0 %v501_v9  ;;  %v555_v8 = vld [vmem:[%s2569_s1 + $0x3d0] sm:$0xff]  ;;  %v353_v9 = vld [vmem:[%s1862_s10 + $0x580] sm:$0xff] }
  0x7b   : > { %1265 = vmatprep.subr.mxu1 %v1587_v2  ;;  %692 = vmatprep.mubr.f32.mxu0 %v274_v10  ;;  %v356_v10 = vld [vmem:[%s1862_s10 + $0x598] sm:$0xff] }
  0x7c   : > { %1266 = vmatpush1.msra.mxu1 %v533_v11  ;;  %693 = vmatmul.mubr.f32.gmra.mxu0 %v273_v12  ;;  %v355_v11 = vld [vmem:[%s1862_s10 + $0x590] sm:$0xff]  ;;  %v522_v12 = vld [vmem:[%s2569_s1 + $0x2c8] sm:$0xff] }
  0x7d   : > { %917 = vmatprep.mubr.f32.mxu1 %v276_v13  ;;  %1042 = vmatprep.subr.mxu0 %v1587_v2  ;;  %v362_v13 = vld [vmem:[%s1862_s10 + $0x5c8] sm:$0xff] }
  0x7e   : > { %918 = vmatmul.mubr.f32.gmra.mxu1 %v275_v14  ;;  %1043 = vmatpush1.msra.mxu0 %v500_v15  ;;  %v554_v14 = vld [vmem:[%s2569_s1 + $0x3c8] sm:$0xff]  ;;  %v361_v15 = vld [vmem:[%s1862_s10 + $0x5c0] sm:$0xff] }
  0x7f   : > { %1267 = vmatprep.subr.mxu1 %v1587_v2  ;;  %697 = vmatprep.mubr.f32.mxu0 %v282_v16  ;;  %v364_v16 = vld [vmem:[%s1862_s10 + $0x5d8] sm:$0xff] }
  0x80   : > { %1268 = vmatpush1.msra.mxu1 %v532_v17  ;;  %698 = vmatmul.mubr.f32.gmra.mxu0 %v281_v18  ;;  %v363_v17 = vld [vmem:[%s1862_s10 + $0x5d0] sm:$0xff]  ;;  %v521_v18 = vld [vmem:[%s2569_s1 + $0x2c0] sm:$0xff] }
  0x81   : > { %922 = vmatprep.mubr.f32.mxu1 %v284_v19  ;;  %1044 = vmatprep.subr.mxu0 %v1587_v2  ;;  %v370_v19 = vld [vmem:[%s1862_s10 + $0x608] sm:$0xff] }
  0x82   : > { %923 = vmatmul.mubr.f32.gmra.mxu1 %v283_v20  ;;  %1045 = vmatpush1.msra.mxu0 %v499_v21  ;;  %v553_v20 = vld [vmem:[%s2569_s1 + $0x3c0] sm:$0xff] }
  0x83   : > { %1269 = vmatprep.subr.mxu1 %v1587_v2  ;;  %702 = vmatprep.mubr.f32.mxu0 %v290_v22  ;;  %v369_v21 = vld [vmem:[%s1862_s10 + $0x600] sm:$0xff]  ;;  %v372_v22 = vld [vmem:[%s1862_s10 + $0x618] sm:$0xff] }
  0x84   : > { %1270 = vmatpush1.msra.mxu1 %v531_v23  ;;  %703 = vmatmul.mubr.f32.gmra.mxu0 %v289_v24  ;;  %v371_v23 = vld [vmem:[%s1862_s10 + $0x610] sm:$0xff]  ;;  %v520_v24 = vld [vmem:[%s2569_s1 + $0x2b8] sm:$0xff] }
  0x85   : > { %927 = vmatprep.mubr.f32.mxu1 %v292_v25  ;;  %1046 = vmatprep.subr.mxu0 %v1587_v2  ;;  %v378_v25 = vld [vmem:[%s1862_s10 + $0x648] sm:$0xff] }
  0x86   : > { %928 = vmatmul.mubr.f32.gmra.mxu1 %v291_v26  ;;  %1047 = vmatpush1.msra.mxu0 %v498_v27  ;;  %v552_v26 = vld [vmem:[%s2569_s1 + $0x3b8] sm:$0xff]  ;;  %v377_v27 = vld [vmem:[%s1862_s10 + $0x640] sm:$0xff] }
  0x87   : > { %1271 = vmatprep.subr.mxu1 %v1587_v2  ;;  %707 = vmatprep.mubr.f32.mxu0 %v298_v28  ;;  %v380_v28 = vld [vmem:[%s1862_s10 + $0x658] sm:$0xff] }
  0x88   : > { %1272 = vmatpush1.msra.mxu1 %v530_v29  ;;  %708 = vmatmul.mubr.f32.gmra.mxu0 %v297_v30  ;;  %v379_v29 = vld [vmem:[%s1862_s10 + $0x650] sm:$0xff] }
  0x89   : > { %932 = vmatprep.mubr.f32.mxu1 %v300_v31  ;;  %1048 = vmatprep.subr.mxu0 %v1587_v2  ;;  %v519_v30 = vld [vmem:[%s2569_s1 + $0x2b0] sm:$0xff]  ;;  %v386_v31 = vld [vmem:[%s1862_s10 + $0x688] sm:$0xff] }
  0x8a   : > { %933 = vmatmul.mubr.f32.gmra.mxu1 %v299_v32  ;;  %1049 = vmatpush1.msra.mxu0 %v497_v33  ;;  %v551_v32 = vld [vmem:[%s2569_s1 + $0x3b0] sm:$0xff]  ;;  %v385_v33 = vld [vmem:[%s1862_s10 + $0x680] sm:$0xff] }
  0x8b   : > { %1273 = vmatprep.subr.mxu1 %v1587_v2  ;;  %712 = vmatprep.mubr.f32.mxu0 %v306_v34  ;;  %v388_v34 = vld [vmem:[%s1862_s10 + $0x698] sm:$0xff] }
  0x8c   : > { %1274 = vmatpush1.msra.mxu1 %v529_v35  ;;  %713 = vmatmul.mubr.f32.gmra.mxu0 %v305_v36  ;;  %v387_v35 = vld [vmem:[%s1862_s10 + $0x690] sm:$0xff]  ;;  %v518_v36 = vld [vmem:[%s2569_s1 + $0x2a8] sm:$0xff] }
  0x8d   : > { %937 = vmatprep.mubr.f32.mxu1 %v308_v37  ;;  %1050 = vmatprep.subr.mxu0 %v1587_v2  ;;  %v394_v37 = vld [vmem:[%s1862_s10 + $0x6c8] sm:$0xff] }
  0x8e   : > { %938 = vmatmul.mubr.f32.gmra.mxu1 %v307_v38  ;;  %1051 = vmatpush2.msra.mxu0 %v528_v39  ;;  %v550_v38 = vld [vmem:[%s2569_s1 + $0x3a8] sm:$0xff]  ;;  %v393_v39 = vld [vmem:[%s1862_s10 + $0x6c0] sm:$0xff] }
  0x8f   : > { %1275 = vmatprep.subr.mxu1 %v1587_v2  ;;  %717 = vmatprep.mubr.f32.mxu0 %v314_v40  ;;  %v396_v40 = vld [vmem:[%s1862_s10 + $0x6d8] sm:$0xff] }
  0x90   : > { %1276 = vmatpush2.msra.mxu1 %v560_v41  ;;  %718 = vmatmul.mubr.f32.gmra.mxu0 %v313_v42  ;;  %v395_v41 = vld [vmem:[%s1862_s10 + $0x6d0] sm:$0xff]  ;;  %v517_v42 = vld [vmem:[%s2569_s1 + $0x2a0] sm:$0xff] }
  0x91   : > { %942 = vmatprep.mubr.f32.mxu1 %v316_v43  ;;  %1052 = vmatprep.subr.mxu0 %v1587_v2  ;;  %v402_v43 = vld [vmem:[%s1862_s10 + $0x708] sm:$0xff] }
  0x92   : > { %943 = vmatmul.mubr.f32.gmra.mxu1 %v315_v44  ;;  %1053 = vmatpush2.msra.mxu0 %v527_v45  ;;  %v549_v44 = vld [vmem:[%s2569_s1 + $0x3a0] sm:$0xff] }
  0x93   : > { %1277 = vmatprep.subr.mxu1 %v1587_v2  ;;  %722 = vmatprep.mubr.f32.mxu0 %v322_v46  ;;  %v401_v45 = vld [vmem:[%s1862_s10 + $0x700] sm:$0xff]  ;;  %v404_v46 = vld [vmem:[%s1862_s10 + $0x718] sm:$0xff] }
  0x94   : > { %1278 = vmatpush2.msra.mxu1 %v559_v47  ;;  %723 = vmatmul.mubr.f32.gmra.mxu0 %v321_v48  ;;  %v403_v47 = vld [vmem:[%s1862_s10 + $0x710] sm:$0xff]  ;;  %v516_v48 = vld [vmem:[%s2569_s1 + $0x298] sm:$0xff] }
  0x95   : > { %947 = vmatprep.mubr.f32.mxu1 %v324_v49  ;;  %1054 = vmatprep.subr.mxu0 %v1587_v2  ;;  %v410_v49 = vld [vmem:[%s1862_s10 + $0x748] sm:$0xff] }
  0x96   : > { %948 = vmatmul.mubr.f32.gmra.mxu1 %v323_v50  ;;  %1055 = vmatpush2.msra.mxu0 %v526_v51  ;;  %v548_v50 = vld [vmem:[%s2569_s1 + $0x398] sm:$0xff]  ;;  %v409_v51 = vld [vmem:[%s1862_s10 + $0x740] sm:$0xff] }
  0x97   : > { %1279 = vmatprep.subr.mxu1 %v1587_v2  ;;  %727 = vmatprep.mubr.f32.mxu0 %v330_v52  ;;  %v412_v52 = vld [vmem:[%s1862_s10 + $0x758] sm:$0xff] }
  0x98   : > { %1280 = vmatpush2.msra.mxu1 %v558_v53  ;;  %728 = vmatmul.mubr.f32.gmra.mxu0 %v329_v54  ;;  %v411_v53 = vld [vmem:[%s1862_s10 + $0x750] sm:$0xff] }
  0x99   : > { %952 = vmatprep.mubr.f32.mxu1 %v332_v55  ;;  %1056 = vmatprep.subr.mxu0 %v1587_v2  ;;  %v515_v54 = vld [vmem:[%s2569_s1 + $0x290] sm:$0xff]  ;;  %v418_v55 = vld [vmem:[%s1862_s10 + $0x788] sm:$0xff] }
  0x9a   : > { %953 = vmatmul.mubr.f32.gmra.mxu1 %v331_v56  ;;  %1057 = vmatpush2.msra.mxu0 %v525_v57  ;;  %v547_v56 = vld [vmem:[%s2569_s1 + $0x390] sm:$0xff]  ;;  %v417_v57 = vld [vmem:[%s1862_s10 + $0x780] sm:$0xff] }
  0x9b   : > { %1281 = vmatprep.subr.mxu1 %v1587_v2  ;;  %732 = vmatprep.mubr.f32.mxu0 %v338_v58  ;;  %v420_v58 = vld [vmem:[%s1862_s10 + $0x798] sm:$0xff] }
  0x9c   : > { %1282 = vmatpush2.msra.mxu1 %v557_v59  ;;  %733 = vmatmul.mubr.f32.gmra.mxu0 %v337_v60  ;;  %v419_v59 = vld [vmem:[%s1862_s10 + $0x790] sm:$0xff]  ;;  %v514_v60 = vld [vmem:[%s2569_s1 + $0x288] sm:$0xff] }
  0x9d   : > { %957 = vmatprep.mubr.f32.mxu1 %v340_v61  ;;  %1058 = vmatprep.subr.mxu0 %v1587_v2  ;;  %v426_v61 = vld [vmem:[%s1862_s10 + $0x7c8] sm:$0xff] }
  0x9e   : > { %958 = vmatmul.mubr.f32.gmra.mxu1 %v339_v62  ;;  %1059 = vmatpush2.msra.mxu0 %v524_v63  ;;  %v546_v62 = vld [vmem:[%s2569_s1 + $0x388] sm:$0xff]  ;;  %v425_v63 = vld [vmem:[%s1862_s10 + $0x7c0] sm:$0xff] }
  0x9f   : > { %1283 = vmatprep.subr.mxu1 %v1587_v2  ;;  %737 = vmatprep.mubr.f32.mxu0 %v346_v0  ;;  %v428_v0 = vld [vmem:[%s1862_s10 + $0x7d8] sm:$0xff] }
  0xa0   : > { %1284 = vmatpush2.msra.mxu1 %v556_v1  ;;  %738 = vmatmul.mubr.f32.gmra.mxu0 %v345_v3  ;;  %v427_v1 = vld [vmem:[%s1862_s10 + $0x7d0] sm:$0xff]  ;;  %v513_v3 = vld [vmem:[%s2569_s1 + $0x280] sm:$0xff] }
  0xa1   : > { %962 = vmatprep.mubr.f32.mxu1 %v348_v4  ;;  %1060 = vmatprep.subr.mxu0 %v1587_v2  ;;  %v182_v4 = vld [vmem:[%s1862_s10 + $0x28] sm:$0xff] }
  0xa2   : > { %963 = vmatmul.mubr.f32.gmra.mxu1 %v347_v5  ;;  %1061 = vmatpush2.msra.mxu0 %v523_v6  ;;  %v545_v5 = vld [vmem:[%s2569_s1 + $0x380] sm:$0xff] }
  0xa3   : > { %1285 = vmatprep.subr.mxu1 %v1587_v2  ;;  %742 = vmatprep.mubr.f32.mxu0 %v354_v7  ;;  %v181_v6 = vld [vmem:[%s1862_s10 + $0x20] sm:$0xff]  ;;  %v184_v7 = vld [vmem:[%s1862_s10 + $0x38] sm:$0xff] }
  0xa4   : > { %1286 = vmatpush2.msra.mxu1 %v555_v8  ;;  %743 = vmatmul.mubr.f32.gmra.mxu0 %v353_v9  ;;  %v190_v8 = vld [vmem:[%s1862_s10 + $0x68] sm:$0xff]  ;;  %v183_v9 = vld [vmem:[%s1862_s10 + $0x30] sm:$0xff] }
  0xa5   : > { %967 = vmatprep.mubr.f32.mxu1 %v356_v10  ;;  %1062 = vmatprep.subr.mxu0 %v1587_v2  ;;  %v192_v10 = vld [vmem:[%s1862_s10 + $0x78] sm:$0xff] }
  0xa6   : > { %968 = vmatmul.mubr.f32.gmra.mxu1 %v355_v11  ;;  %1063 = vmatpush2.msra.mxu0 %v522_v12  ;;  %v189_v11 = vld [vmem:[%s1862_s10 + $0x60] sm:$0xff]  ;;  %v198_v12 = vld [vmem:[%s1862_s10 + $0xa8] sm:$0xff] }
  0xa7   : > { %1287 = vmatprep.subr.mxu1 %v1587_v2  ;;  %747 = vmatprep.mubr.f32.mxu0 %v362_v13  ;;  %v191_v13 = vld [vmem:[%s1862_s10 + $0x70] sm:$0xff] }
  0xa8   : > { %1288 = vmatpush2.msra.mxu1 %v554_v14  ;;  %748 = vmatmul.mubr.f32.gmra.mxu0 %v361_v15  ;;  %v197_v14 = vld [vmem:[%s1862_s10 + $0xa0] sm:$0xff]  ;;  %v206_v15 = vld [vmem:[%s1862_s10 + $0xe8] sm:$0xff] }
  0xa9   : > { %972 = vmatprep.mubr.f32.mxu1 %v364_v16  ;;  %1064 = vmatprep.subr.mxu0 %v1587_v2  ;;  %v199_v16 = vld [vmem:[%s1862_s10 + $0xb0] sm:$0xff] }
  0xaa   : > { %973 = vmatmul.mubr.f32.gmra.mxu1 %v363_v17  ;;  %1065 = vmatpush2.msra.mxu0 %v521_v18  ;;  %v208_v17 = vld [vmem:[%s1862_s10 + $0xf8] sm:$0xff]  ;;  %v205_v18 = vld [vmem:[%s1862_s10 + $0xe0] sm:$0xff] }
  0xab   : > { %1289 = vmatprep.subr.mxu1 %v1587_v2  ;;  %752 = vmatprep.mubr.f32.mxu0 %v370_v19  ;;  %v214_v19 = vld [vmem:[%s1862_s10 + $0x128] sm:$0xff] }
  0xac   : > { %1290 = vmatpush2.msra.mxu1 %v553_v20  ;;  %753 = vmatmul.mubr.f32.gmra.mxu0 %v369_v21  ;;  %v207_v20 = vld [vmem:[%s1862_s10 + $0xf0] sm:$0xff]  ;;  %v216_v21 = vld [vmem:[%s1862_s10 + $0x138] sm:$0xff] }
  0xad   : > { %977 = vmatprep.mubr.f32.mxu1 %v372_v22  ;;  %1066 = vmatprep.subr.mxu0 %v1587_v2  ;;  %v213_v22 = vld [vmem:[%s1862_s10 + $0x120] sm:$0xff] }
  0xae   : > { %978 = vmatmul.mubr.f32.gmra.mxu1 %v371_v23  ;;  %1067 = vmatpush2.msra.mxu0 %v520_v24  ;;  %v222_v23 = vld [vmem:[%s1862_s10 + $0x168] sm:$0xff]  ;;  %v215_v24 = vld [vmem:[%s1862_s10 + $0x130] sm:$0xff] }
  0xaf   : > { %1291 = vmatprep.subr.mxu1 %v1587_v2  ;;  %757 = vmatprep.mubr.f32.mxu0 %v378_v25  ;;  %v224_v25 = vld [vmem:[%s1862_s10 + $0x178] sm:$0xff] }
  0xb0   : > { %1292 = vmatpush2.msra.mxu1 %v552_v26  ;;  %758 = vmatmul.mubr.f32.gmra.mxu0 %v377_v27  ;;  %v221_v26 = vld [vmem:[%s1862_s10 + $0x160] sm:$0xff]  ;;  %v230_v27 = vld [vmem:[%s1862_s10 + $0x1a8] sm:$0xff] }
  0xb1   : > { %982 = vmatprep.mubr.f32.mxu1 %v380_v28  ;;  %1068 = vmatprep.subr.mxu0 %v1587_v2  ;;  %v223_v28 = vld [vmem:[%s1862_s10 + $0x170] sm:$0xff] }
  0xb2   : > { %983 = vmatmul.mubr.f32.gmra.mxu1 %v379_v29  ;;  %1069 = vmatpush2.msra.mxu0 %v519_v30  ;;  %v232_v29 = vld [vmem:[%s1862_s10 + $0x1b8] sm:$0xff]  ;;  %v229_v30 = vld [vmem:[%s1862_s10 + $0x1a0] sm:$0xff] }
  0xb3   : > { %1293 = vmatprep.subr.mxu1 %v1587_v2  ;;  %762 = vmatprep.mubr.f32.mxu0 %v386_v31  ;;  %v238_v31 = vld [vmem:[%s1862_s10 + $0x1e8] sm:$0xff] }
  0xb4   : > { %1294 = vmatpush2.msra.mxu1 %v551_v32  ;;  %763 = vmatmul.mubr.f32.gmra.mxu0 %v385_v33  ;;  %v231_v32 = vld [vmem:[%s1862_s10 + $0x1b0] sm:$0xff]  ;;  %v240_v33 = vld [vmem:[%s1862_s10 + $0x1f8] sm:$0xff] }
  0xb5   : > { %987 = vmatprep.mubr.f32.mxu1 %v388_v34  ;;  %1070 = vmatprep.subr.mxu0 %v1587_v2  ;;  %v237_v34 = vld [vmem:[%s1862_s10 + $0x1e0] sm:$0xff] }
  0xb6   : > { %988 = vmatmul.mubr.f32.gmra.mxu1 %v387_v35  ;;  %1071 = vmatpush2.msra.mxu0 %v518_v36  ;;  %v246_v35 = vld [vmem:[%s1862_s10 + $0x228] sm:$0xff]  ;;  %v239_v36 = vld [vmem:[%s1862_s10 + $0x1f0] sm:$0xff] }
  0xb7   : > { %1295 = vmatprep.subr.mxu1 %v1587_v2  ;;  %767 = vmatprep.mubr.f32.mxu0 %v394_v37  ;;  %v248_v37 = vld [vmem:[%s1862_s10 + $0x238] sm:$0xff] }
  0xb8   : > { %1296 = vmatpush2.msra.mxu1 %v550_v38  ;;  %768 = vmatmul.mubr.f32.gmra.mxu0 %v393_v39  ;;  %v245_v38 = vld [vmem:[%s1862_s10 + $0x220] sm:$0xff]  ;;  %v254_v39 = vld [vmem:[%s1862_s10 + $0x268] sm:$0xff] }
  0xb9   : > { %992 = vmatprep.mubr.f32.mxu1 %v396_v40  ;;  %1072 = vmatprep.subr.mxu0 %v1587_v2  ;;  %v247_v40 = vld [vmem:[%s1862_s10 + $0x230] sm:$0xff] }
  0xba   : > { %993 = vmatmul.mubr.f32.gmra.mxu1 %v395_v41  ;;  %1073 = vmatpush2.msra.mxu0 %v517_v42  ;;  %v256_v41 = vld [vmem:[%s1862_s10 + $0x278] sm:$0xff]  ;;  %v253_v42 = vld [vmem:[%s1862_s10 + $0x260] sm:$0xff] }
  0xbb   : > { %1297 = vmatprep.subr.mxu1 %v1587_v2  ;;  %772 = vmatprep.mubr.f32.mxu0 %v402_v43  ;;  %v262_v43 = vld [vmem:[%s1862_s10 + $0x2a8] sm:$0xff] }
  0xbc   : > { %1298 = vmatpush2.msra.mxu1 %v549_v44  ;;  %773 = vmatmul.mubr.f32.gmra.mxu0 %v401_v45  ;;  %v255_v44 = vld [vmem:[%s1862_s10 + $0x270] sm:$0xff]  ;;  %v264_v45 = vld [vmem:[%s1862_s10 + $0x2b8] sm:$0xff] }
  0xbd   : > { %997 = vmatprep.mubr.f32.mxu1 %v404_v46  ;;  %1074 = vmatprep.subr.mxu0 %v1587_v2  ;;  %v261_v46 = vld [vmem:[%s1862_s10 + $0x2a0] sm:$0xff] }
  0xbe   : > { %998 = vmatmul.mubr.f32.gmra.mxu1 %v403_v47  ;;  %1075 = vmatpush2.msra.mxu0 %v516_v48  ;;  %v270_v47 = vld [vmem:[%s1862_s10 + $0x2e8] sm:$0xff]  ;;  %v263_v48 = vld [vmem:[%s1862_s10 + $0x2b0] sm:$0xff] }
  0xbf   : > { %1299 = vmatprep.subr.mxu1 %v1587_v2  ;;  %777 = vmatprep.mubr.f32.mxu0 %v410_v49  ;;  %v272_v49 = vld [vmem:[%s1862_s10 + $0x2f8] sm:$0xff] }
  0xc0   : > { %1300 = vmatpush2.msra.mxu1 %v548_v50  ;;  %778 = vmatmul.mubr.f32.gmra.mxu0 %v409_v51  ;;  %v269_v50 = vld [vmem:[%s1862_s10 + $0x2e0] sm:$0xff]  ;;  %v278_v51 = vld [vmem:[%s1862_s10 + $0x328] sm:$0xff] }
  0xc1   : > { %1002 = vmatprep.mubr.f32.mxu1 %v412_v52  ;;  %1076 = vmatprep.subr.mxu0 %v1587_v2  ;;  %v271_v52 = vld [vmem:[%s1862_s10 + $0x2f0] sm:$0xff] }
  0xc2   : > { %1003 = vmatmul.mubr.f32.gmra.mxu1 %v411_v53  ;;  %1077 = vmatpush2.msra.mxu0 %v515_v54  ;;  %v280_v53 = vld [vmem:[%s1862_s10 + $0x338] sm:$0xff]  ;;  %v277_v54 = vld [vmem:[%s1862_s10 + $0x320] sm:$0xff] }
  0xc3   : > { %1301 = vmatprep.subr.mxu1 %v1587_v2  ;;  %782 = vmatprep.mubr.f32.mxu0 %v418_v55  ;;  %v286_v55 = vld [vmem:[%s1862_s10 + $0x368] sm:$0xff] }
  0xc4   : > { %1302 = vmatpush2.msra.mxu1 %v547_v56  ;;  %783 = vmatmul.mubr.f32.gmra.mxu0 %v417_v57  ;;  %v279_v56 = vld [vmem:[%s1862_s10 + $0x330] sm:$0xff]  ;;  %v288_v57 = vld [vmem:[%s1862_s10 + $0x378] sm:$0xff] }
  0xc5   : > { %1007 = vmatprep.mubr.f32.mxu1 %v420_v58  ;;  %1078 = vmatprep.subr.mxu0 %v1587_v2  ;;  %v285_v58 = vld [vmem:[%s1862_s10 + $0x360] sm:$0xff] }
  0xc6   : > { %1008 = vmatmul.mubr.f32.gmra.mxu1 %v419_v59  ;;  %1079 = vmatpush2.msra.mxu0 %v514_v60  ;;  %v294_v59 = vld [vmem:[%s1862_s10 + $0x3a8] sm:$0xff]  ;;  %v287_v60 = vld [vmem:[%s1862_s10 + $0x370] sm:$0xff] }
  0xc7   : > { %1303 = vmatprep.subr.mxu1 %v1587_v2  ;;  %787 = vmatprep.mubr.f32.mxu0 %v426_v61  ;;  %v296_v61 = vld [vmem:[%s1862_s10 + $0x3b8] sm:$0xff] }
  0xc8   : > { %1304 = vmatpush2.msra.mxu1 %v546_v62  ;;  %788 = vmatmul.mubr.f32.gmra.mxu0 %v425_v63  ;;  %v293_v62 = vld [vmem:[%s1862_s10 + $0x3a0] sm:$0xff]  ;;  %v302_v63 = vld [vmem:[%s1862_s10 + $0x3e8] sm:$0xff] }
  0xc9   : > { %1012 = vmatprep.mubr.f32.mxu1 %v428_v0  ;;  %1080 = vmatprep.subr.mxu0 %v1587_v2  ;;  %v295_v0 = vld [vmem:[%s1862_s10 + $0x3b0] sm:$0xff] }
  0xca   : > { %1013 = vmatmul.mubr.f32.gmra.mxu1 %v427_v1  ;;  %1081 = vmatpush2.msra.mxu0 %v513_v3  ;;  %v304_v1 = vld [vmem:[%s1862_s10 + $0x3f8] sm:$0xff]  ;;  %v301_v3 = vld [vmem:[%s1862_s10 + $0x3e0] sm:$0xff] }
  0xcb   : > { %1305 = vmatprep.subr.mxu1 %v1587_v2  ;;  %1082 = vmatprep.mubr.f32.mxu0 %v182_v4  ;;  %v200_v2 = vld [vmem:[%s1862_s10 + $0xb8] sm:$0xff]  ;;  %v310_v4 = vld [vmem:[%s1862_s10 + $0x428] sm:$0xff] }
  0xcc   : > { %1306 = vmatpush2.msra.mxu1 %v545_v5  ;;  %1083 = vmatmul.mubr.f32.vlgmr.msra.gmra.mxu0 %v181_v6  ;;  %v303_v5 = vld [vmem:[%s1862_s10 + $0x3f0] sm:$0xff]  ;;  %v312_v6 = vld [vmem:[%s1862_s10 + $0x438] sm:$0xff] }
  0xcd   : > { %1307 = vmatprep.mubr.f32.mxu1 %v184_v7  ;;  %1087 = vmatprep.mubr.f32.mxu0 %v190_v8  ;;  %v309_v7 = vld [vmem:[%s1862_s10 + $0x420] sm:$0xff] }
  0xce   : > { %1308 = vmatmul.mubr.f32.vlgmr.msra.gmra.mxu1 %v183_v9  ;;  %v2336_v8 = vld [vmem:[%s2570_s2] ss:$0 sm:$0xff]  ;;  %v318_v9 = vld [vmem:[%s1862_s10 + $0x468] sm:$0xff] }
  0xcf   : > { %1312 = vmatprep.mubr.f32.mxu1 %v192_v10  ;;  %v311_v10 = vld [vmem:[%s1862_s10 + $0x430] sm:$0xff] }
  0xd0   : > { %1088 = vmatmul.mubr.f32.gmra.mxu0 %v189_v11 }
  0xd1   : > { %1092 = vmatprep.mubr.f32.mxu0 %v198_v12  ;;  %v320_v12 = vld [vmem:[%s1862_s10 + $0x478] sm:$0xff] }
  0xd2   : > { %1313 = vmatmul.mubr.f32.gmra.mxu1 %v191_v13 }
  0xd3   : > { %1317 = vmatprep.mubr.f32.mxu1 %v200_v2  ;;  %v317_v2 = vld [vmem:[%s1862_s10 + $0x460] sm:$0xff] }
  0xd4   : > { %1093 = vmatmul.mubr.f32.gmra.mxu0 %v197_v14 }
  0xd5   : > { %1097 = vmatprep.mubr.f32.mxu0 %v206_v15 }
  0xd6   : > { %1318 = vmatmul.mubr.f32.gmra.mxu1 %v199_v16  ;;  %v326_v16 = vld [vmem:[%s1862_s10 + $0x4a8] sm:$0xff] }
  0xd7   : > { %1322 = vmatprep.mubr.f32.mxu1 %v208_v17 }
  0xd8   : > { %1098 = vmatmul.mubr.f32.gmra.mxu0 %v205_v18  ;;  %v319_v18 = vld [vmem:[%s1862_s10 + $0x470] sm:$0xff] }
  0xd9   : > { %1102 = vmatprep.mubr.f32.mxu0 %v214_v19 }
  0xda   : > { %1323 = vmatmul.mubr.f32.gmra.mxu1 %v207_v20 }
  0xdb   : > { %1327 = vmatprep.mubr.f32.mxu1 %v216_v21  ;;  %v328_v21 = vld [vmem:[%s1862_s10 + $0x4b8] sm:$0xff] }
  0xdc   : > { %1103 = vmatmul.mubr.f32.gmra.mxu0 %v213_v22 }
  0xdd   : > { %1107 = vmatprep.mubr.f32.mxu0 %v222_v23  ;;  %v325_v23 = vld [vmem:[%s1862_s10 + $0x4a0] sm:$0xff] }
  0xde   : > { %1328 = vmatmul.mubr.f32.gmra.mxu1 %v215_v24 }
  0xdf   : > { %1332 = vmatprep.mubr.f32.mxu1 %v224_v25 }
  0xe0   : > { %1108 = vmatmul.mubr.f32.gmra.mxu0 %v221_v26  ;;  %v334_v26 = vld [vmem:[%s1862_s10 + $0x4e8] sm:$0xff] }
  0xe1   : > { %1112 = vmatprep.mubr.f32.mxu0 %v230_v27 }
  0xe2   : > { %1333 = vmatmul.mubr.f32.gmra.mxu1 %v223_v28  ;;  %v327_v28 = vld [vmem:[%s1862_s10 + $0x4b0] sm:$0xff] }
  0xe3   : > { %1337 = vmatprep.mubr.f32.mxu1 %v232_v29 }
  0xe4   : > { %1113 = vmatmul.mubr.f32.gmra.mxu0 %v229_v30 }
  0xe5   : > { %1117 = vmatprep.mubr.f32.mxu0 %v238_v31  ;;  %v336_v31 = vld [vmem:[%s1862_s10 + $0x4f8] sm:$0xff] }
  0xe6   : > { %1338 = vmatmul.mubr.f32.gmra.mxu1 %v231_v32 }
  0xe7   : > { %1342 = vmatprep.mubr.f32.mxu1 %v240_v33  ;;  %v333_v33 = vld [vmem:[%s1862_s10 + $0x4e0] sm:$0xff] }
  0xe8   : > { %1118 = vmatmul.mubr.f32.gmra.mxu0 %v237_v34 }
  0xe9   : > { %1122 = vmatprep.mubr.f32.mxu0 %v246_v35 }
  0xea   : > { %1343 = vmatmul.mubr.f32.gmra.mxu1 %v239_v36  ;;  %v342_v36 = vld [vmem:[%s1862_s10 + $0x528] sm:$0xff] }
  0xeb   : > { %1347 = vmatprep.mubr.f32.mxu1 %v248_v37 }
  0xec   : > { %1123 = vmatmul.mubr.f32.gmra.mxu0 %v245_v38  ;;  %v335_v38 = vld [vmem:[%s1862_s10 + $0x4f0] sm:$0xff] }
  0xed   : > { %1127 = vmatprep.mubr.f32.mxu0 %v254_v39 }
  0xee   : > { %1348 = vmatmul.mubr.f32.gmra.mxu1 %v247_v40 }
  0xef   : > { %1352 = vmatprep.mubr.f32.mxu1 %v256_v41  ;;  %v344_v41 = vld [vmem:[%s1862_s10 + $0x538] sm:$0xff] }
  0xf0   : > { %1128 = vmatmul.mubr.f32.gmra.mxu0 %v253_v42 }
  0xf1   : > { %1132 = vmatprep.mubr.f32.mxu0 %v262_v43  ;;  %v341_v43 = vld [vmem:[%s1862_s10 + $0x520] sm:$0xff] }
  0xf2   : > { %1353 = vmatmul.mubr.f32.gmra.mxu1 %v255_v44 }
  0xf3   : > { %1357 = vmatprep.mubr.f32.mxu1 %v264_v45 }
  0xf4   : > { %1133 = vmatmul.mubr.f32.gmra.mxu0 %v261_v46  ;;  %v350_v46 = vld [vmem:[%s1862_s10 + $0x568] sm:$0xff] }
  0xf5   : > { %1137 = vmatprep.mubr.f32.mxu0 %v270_v47 }
  0xf6   : > { %1358 = vmatmul.mubr.f32.gmra.mxu1 %v263_v48  ;;  %v343_v48 = vld [vmem:[%s1862_s10 + $0x530] sm:$0xff] }
  0xf7   : > { %1362 = vmatprep.mubr.f32.mxu1 %v272_v49 }
  0xf8   : > { %1138 = vmatmul.mubr.f32.gmra.mxu0 %v269_v50 }
  0xf9   : > { %1142 = vmatprep.mubr.f32.mxu0 %v278_v51  ;;  %v352_v51 = vld [vmem:[%s1862_s10 + $0x578] sm:$0xff] }
  0xfa   : > { %1363 = vmatmul.mubr.f32.gmra.mxu1 %v271_v52 }
  0xfb   : > { %1367 = vmatprep.mubr.f32.mxu1 %v280_v53  ;;  %v349_v53 = vld [vmem:[%s1862_s10 + $0x560] sm:$0xff] }
  0xfc   : > { %1143 = vmatmul.mubr.f32.gmra.mxu0 %v277_v54 }
  0xfd   : > { %1147 = vmatprep.mubr.f32.mxu0 %v286_v55 }
  0xfe   : > { %1368 = vmatmul.mubr.f32.gmra.mxu1 %v279_v56  ;;  %v358_v56 = vld [vmem:[%s1862_s10 + $0x5a8] sm:$0xff] }
  0xff   : > { %1372 = vmatprep.mubr.f32.mxu1 %v288_v57 }
 0x100   : > { %1148 = vmatmul.mubr.f32.gmra.mxu0 %v285_v58  ;;  %v351_v58 = vld [vmem:[%s1862_s10 + $0x570] sm:$0xff] }
 0x101   : > { %1152 = vmatprep.mubr.f32.mxu0 %v294_v59 }
 0x102   : > { %1373 = vmatmul.mubr.f32.gmra.mxu1 %v287_v60 }
 0x103   : > { %1377 = vmatprep.mubr.f32.mxu1 %v296_v61  ;;  %v360_v61 = vld [vmem:[%s1862_s10 + $0x5b8] sm:$0xff] }
 0x104   : > { %1153 = vmatmul.mubr.f32.gmra.mxu0 %v293_v62 }
 0x105   : > { %1157 = vmatprep.mubr.f32.mxu0 %v302_v63  ;;  %v357_v63 = vld [vmem:[%s1862_s10 + $0x5a0] sm:$0xff] }
 0x106   : > { %1378 = vmatmul.mubr.f32.gmra.mxu1 %v295_v0 }
 0x107   : > { %1382 = vmatprep.mubr.f32.mxu1 %v304_v1 }
 0x108   : > { %1158 = vmatmul.mubr.f32.gmra.mxu0 %v301_v3  ;;  %v366_v3 = vld [vmem:[%s1862_s10 + $0x5e8] sm:$0xff] }
 0x109   : > { %1162 = vmatprep.mubr.f32.mxu0 %v310_v4 }
 0x10a   : > { %1383 = vmatmul.mubr.f32.gmra.mxu1 %v303_v5  ;;  %v359_v5 = vld [vmem:[%s1862_s10 + $0x5b0] sm:$0xff] }
 0x10b   : > { %1387 = vmatprep.mubr.f32.mxu1 %v312_v6 }
 0x10c   : > { %v634_v11 = vpop.f32.mrf.mxu0  ;;  %1163 = vmatmul.mubr.f32.gmra.mxu0 %v309_v7 }
 0x10d   : > { %v635_v13 = vadd.f32 %v2336_v8, %v634_v11  ;;  %1167 = vmatprep.mubr.f32.mxu0 %v318_v9  ;;  %v368_v9 = vld [vmem:[%s1862_s10 + $0x5f8] sm:$0xff]  ;;  %v365_v11 = vld [vmem:[%s1862_s10 + $0x5e0] sm:$0xff] }
 0x10e   : > { %v859_v14 = vpop.f32.mrf.mxu1  ;;  %1388 = vmatmul.mubr.f32.gmra.mxu1 %v311_v10  ;;  %v636_v15 = vpop.f32.mrf.mxu0 }
 0x10f   : > { %v2344_v17 = vadd.f32 %v859_v14, %v635_v13  ;;  %1392 = vmatprep.mubr.f32.mxu1 %v320_v12  ;;  %v367_v15 = vld [vmem:[%s1862_s10 + $0x5f0] sm:$0xff] }
 0x110   : > { %v861_v19 = vpop.f32.mrf.mxu1  ;;  %v639_v20 = vpop.f32.mrf.mxu0  ;;  %1168 = vmatmul.mubr.f32.gmra.mxu0 %v317_v2  ;;  %v374_v2 = vld [vmem:[%s1862_s10 + $0x628] sm:$0xff] }
 0x111   : > { %v640_v22 = vadd.f32 %v2336_v8, %v639_v20  ;;  %1172 = vmatprep.mubr.f32.mxu0 %v326_v16  ;;  %v376_v19 = vld [vmem:[%s1862_s10 + $0x638] sm:$0xff] }
 0x112   : > { %v864_v24 = vpop.f32.mrf.mxu1  ;;  %1393 = vmatmul.mubr.f32.gmra.mxu1 %v319_v18  ;;  %v641_v25 = vpop.f32.mrf.mxu0 }
 0x113   : > { %v2351_v27 = vadd.f32 %v864_v24, %v640_v22  ;;  %1397 = vmatprep.mubr.f32.mxu1 %v328_v21  ;;  %v373_v21 = vld [vmem:[%s1862_s10 + $0x620] sm:$0xff]  ;;  %v382_v24 = vld [vmem:[%s1862_s10 + $0x668] sm:$0xff] }
 0x114   : > { %v866_v29 = vpop.f32.mrf.mxu1  ;;  %v644_v30 = vpop.f32.mrf.mxu0  ;;  %1173 = vmatmul.mubr.f32.gmra.mxu0 %v325_v23 }
 0x115   : > { %v645_v32 = vadd.f32 %v2336_v8, %v644_v30  ;;  %1177 = vmatprep.mubr.f32.mxu0 %v334_v26  ;;  %v375_v26 = vld [vmem:[%s1862_s10 + $0x630] sm:$0xff]  ;;  %v384_v30 = vld [vmem:[%s1862_s10 + $0x678] sm:$0xff] }
 0x116   : > { %v869_v34 = vpop.f32.mrf.mxu1  ;;  %1398 = vmatmul.mubr.f32.gmra.mxu1 %v327_v28  ;;  %v646_v35 = vpop.f32.mrf.mxu0 }
 0x117   : > { %v2358_v37 = vadd.f32 %v869_v34, %v645_v32  ;;  %1402 = vmatprep.mubr.f32.mxu1 %v336_v31  ;;  %v381_v32 = vld [vmem:[%s1862_s10 + $0x660] sm:$0xff]  ;;  %v390_v35 = vld [vmem:[%s1862_s10 + $0x6a8] sm:$0xff] }
 0x118   : > { %v871_v39 = vpop.f32.mrf.mxu1  ;;  %v649_v40 = vpop.f32.mrf.mxu0  ;;  %1178 = vmatmul.mubr.f32.gmra.mxu0 %v333_v33 }
 0x119   : > { %v650_v42 = vadd.f32 %v2336_v8, %v649_v40  ;;  %1182 = vmatprep.mubr.f32.mxu0 %v342_v36 }
 0x11a   : > { %v874_v44 = vpop.f32.mrf.mxu1  ;;  %1403 = vmatmul.mubr.f32.gmra.mxu1 %v335_v38  ;;  %v651_v45 = vpop.f32.mrf.mxu0  ;;  %v383_v38 = vld [vmem:[%s1862_s10 + $0x670] sm:$0xff] }
 0x11b   : > { %v2365_v47 = vadd.f32 %v874_v44, %v650_v42  ;;  %1407 = vmatprep.mubr.f32.mxu1 %v344_v41  ;;  %v392_v41 = vld [vmem:[%s1862_s10 + $0x6b8] sm:$0xff] }
 0x11c   : > { %v876_v49 = vpop.f32.mrf.mxu1  ;;  %v654_v50 = vpop.f32.mrf.mxu0  ;;  %1183 = vmatmul.mubr.f32.gmra.mxu0 %v341_v43  ;;  %v389_v43 = vld [vmem:[%s1862_s10 + $0x6a0] sm:$0xff] }
 0x11d   : > { %v655_v52 = vadd.f32 %v2336_v8, %v654_v50  ;;  %1187 = vmatprep.mubr.f32.mxu0 %v350_v46  ;;  %v398_v46 = vld [vmem:[%s1862_s10 + $0x6e8] sm:$0xff]  ;;  %v391_v49 = vld [vmem:[%s1862_s10 + $0x6b0] sm:$0xff] }
 0x11e   : > { %v879_v54 = vpop.f32.mrf.mxu1  ;;  %1408 = vmatmul.mubr.f32.gmra.mxu1 %v343_v48  ;;  %v656_v55 = vpop.f32.mrf.mxu0 }
 0x11f   : > { %v2372_v57 = vadd.f32 %v879_v54, %v655_v52  ;;  %1412 = vmatprep.mubr.f32.mxu1 %v352_v51  ;;  %v400_v52 = vld [vmem:[%s1862_s10 + $0x6f8] sm:$0xff]  ;;  %v397_v54 = vld [vmem:[%s1862_s10 + $0x6e0] sm:$0xff] }
 0x120   : > { %v881_v59 = vpop.f32.mrf.mxu1  ;;  %v659_v60 = vpop.f32.mrf.mxu0  ;;  %1188 = vmatmul.mubr.f32.gmra.mxu0 %v349_v53 }
 0x121   : > { %v660_v62 = vadd.f32 %v2336_v8, %v659_v60  ;;  %1192 = vmatprep.mubr.f32.mxu0 %v358_v56  ;;  %v399_v60 = vld [vmem:[%s1862_s10 + $0x6f0] sm:$0xff] }
 0x122   : > { %v884_v0 = vpop.f32.mrf.mxu1  ;;  %1413 = vmatmul.mubr.f32.gmra.mxu1 %v351_v58  ;;  %v661_v1 = vpop.f32.mrf.mxu0  ;;  %v406_v58 = vld [vmem:[%s1862_s10 + $0x728] sm:$0xff] }
 0x123   : > { %v2379_v4 = vadd.f32 %v884_v0, %v660_v62  ;;  %1417 = vmatprep.mubr.f32.mxu1 %v360_v61  ;;  %v405_v1 = vld [vmem:[%s1862_s10 + $0x720] sm:$0xff] }
 0x124   : > { %v886_v6 = vpop.f32.mrf.mxu1  ;;  %v664_v7 = vpop.f32.mrf.mxu0  ;;  %1193 = vmatmul.mubr.f32.gmra.mxu0 %v357_v63  ;;  %v408_v63 = vld [vmem:[%s1862_s10 + $0x738] sm:$0xff] }
 0x125   : > { %v665_v10 = vadd.f32 %v2336_v8, %v664_v7  ;;  %1197 = vmatprep.mubr.f32.mxu0 %v366_v3  ;;  %v414_v6 = vld [vmem:[%s1862_s10 + $0x768] sm:$0xff] }
 0x126   : > { %v889_v12 = vpop.f32.mrf.mxu1  ;;  %1418 = vmatmul.mubr.f32.gmra.mxu1 %v359_v5  ;;  %v666_v13 = vpop.f32.mrf.mxu0 }
 0x127   : > { %v2386_v14 = vadd.f32 %v889_v12, %v665_v10  ;;  %1422 = vmatprep.mubr.f32.mxu1 %v368_v9  ;;  %v407_v9 = vld [vmem:[%s1862_s10 + $0x730] sm:$0xff]  ;;  %v416_v12 = vld [vmem:[%s1862_s10 + $0x778] sm:$0xff] }
 0x128   : > { %v891_v16 = vpop.f32.mrf.mxu1  ;;  %v669_v18 = vpop.f32.mrf.mxu0  ;;  %1198 = vmatmul.mubr.f32.gmra.mxu0 %v365_v11 }
 0x129   : > { %v670_v20 = vadd.f32 %v2336_v8, %v669_v18  ;;  %1202 = vmatprep.mubr.f32.mxu0 %v374_v2  ;;  %v413_v2 = vld [vmem:[%s1862_s10 + $0x760] sm:$0xff]  ;;  %v422_v18 = vld [vmem:[%s1862_s10 + $0x7a8] sm:$0xff] }
 0x12a   : > { %v894_v22 = vpop.f32.mrf.mxu1  ;;  %1423 = vmatmul.mubr.f32.gmra.mxu1 %v367_v15  ;;  %v671_v23 = vpop.f32.mrf.mxu0 }
 0x12b   : > { %v2393_v25 = vadd.f32 %v894_v22, %v670_v20  ;;  %1427 = vmatprep.mubr.f32.mxu1 %v376_v19  ;;  %v415_v20 = vld [vmem:[%s1862_s10 + $0x770] sm:$0xff]  ;;  %v424_v23 = vld [vmem:[%s1862_s10 + $0x7b8] sm:$0xff] }
 0x12c   : > { %v896_v28 = vpop.f32.mrf.mxu1  ;;  %v674_v29 = vpop.f32.mrf.mxu0  ;;  %1203 = vmatmul.mubr.f32.gmra.mxu0 %v373_v21 }
 0x12d   : > { %v675_v31 = vadd.f32 %v2336_v8, %v674_v29  ;;  %1207 = vmatprep.mubr.f32.mxu0 %v382_v24 }
 0x12e   : > { %v899_v33 = vpop.f32.mrf.mxu1  ;;  %1428 = vmatmul.mubr.f32.gmra.mxu1 %v375_v26  ;;  %v676_v34 = vpop.f32.mrf.mxu0  ;;  %v421_v26 = vld [vmem:[%s1862_s10 + $0x7a0] sm:$0xff] }
 0x12f   : > { %v2400_v36 = vadd.f32 %v899_v33, %v675_v31  ;;  %1432 = vmatprep.mubr.f32.mxu1 %v384_v30  ;;  %v430_v30 = vld [vmem:[%s1862_s10 + $0x7e8] sm:$0xff] }
 0x130   : > { %v901_v39 = vpop.f32.mrf.mxu1  ;;  %v679_v40 = vpop.f32.mrf.mxu0  ;;  %1208 = vmatmul.mubr.f32.gmra.mxu0 %v381_v32  ;;  %v423_v32 = vld [vmem:[%s1862_s10 + $0x7b0] sm:$0xff] }
 0x131   : > { %v680_v42 = vadd.f32 %v2336_v8, %v679_v40  ;;  %1212 = vmatprep.mubr.f32.mxu0 %v390_v35  ;;  %v432_v35 = vld [vmem:[%s1862_s10 + $0x7f8] sm:$0xff]  ;;  %v429_v39 = vld [vmem:[%s1862_s10 + $0x7e0] sm:$0xff] }
 0x132   : > { %v904_v44 = vpop.f32.mrf.mxu1  ;;  %1433 = vmatmul.mubr.f32.gmra.mxu1 %v383_v38  ;;  %v681_v45 = vpop.f32.mrf.mxu0 }
 0x133   : > { %v2407_v48 = vadd.f32 %v904_v44, %v680_v42  ;;  %1437 = vmatprep.mubr.f32.mxu1 %v392_v41 }
 0x134   : > { %v906_v50 = vpop.f32.mrf.mxu1  ;;  %v684_v51 = vpop.f32.mrf.mxu0  ;;  %1213 = vmatmul.mubr.f32.gmra.mxu0 %v389_v43  ;;  %v431_v43 = vld [vmem:[%s1862_s10 + $0x7f0] sm:$0xff]  ;;  %s1565_s10 = sshll.u32 %s2573_s4, 3 }
 0x135   : > { %v685_v53 = vadd.f32 %v2336_v8, %v684_v51  ;;  %1217 = vmatprep.mubr.f32.mxu0 %v398_v46  ;;  %s2500_s7 = scalar_lea.vmem %s2571_s3, %s1565_s10 }
 0x136   : > { %v909_v55 = vpop.f32.mrf.mxu1  ;;  %1438 = vmatmul.mubr.f32.gmra.mxu1 %v391_v49  ;;  %v686_v56 = vpop.f32.mrf.mxu0 }
 0x137   : > { %v2414_v59 = vadd.f32 %v909_v55, %v685_v53  ;;  %1442 = vmatprep.mubr.f32.mxu1 %v400_v52 }
 0x138   : > { %v911_v61 = vpop.f32.mrf.mxu1  ;;  %v689_v62 = vpop.f32.mrf.mxu0  ;;  %1218 = vmatmul.mubr.f32.gmra.mxu0 %v397_v54 }
 0x139   : > { %v690_v0 = vadd.f32 %v2336_v8, %v689_v62  ;;  %1222 = vmatprep.mubr.f32.mxu0 %v406_v58 }
 0x13a   : > { %v914_v3 = vpop.f32.mrf.mxu1  ;;  %1443 = vmatmul.mubr.f32.gmra.mxu1 %v399_v60  ;;  %v691_v5 = vpop.f32.mrf.mxu0 }
 0x13b   : > { %v2421_v7 = vadd.f32 %v914_v3, %v690_v0  ;;  %1447 = vmatprep.mubr.f32.mxu1 %v408_v63 }
 0x13c   : > { %v916_v10 = vpop.f32.mrf.mxu1  ;;  %v694_v11 = vpop.f32.mrf.mxu0  ;;  %1223 = vmatmul.mubr.f32.gmra.mxu0 %v405_v1 }
 0x13d   : > { %v695_v13 = vadd.f32 %v2336_v8, %v694_v11  ;;  %1227 = vmatprep.mubr.f32.mxu0 %v414_v6 }
 0x13e   : > { %v919_v15 = vpop.f32.mrf.mxu1  ;;  %1448 = vmatmul.mubr.f32.gmra.mxu1 %v407_v9  ;;  %v696_v16 = vpop.f32.mrf.mxu0 }
 0x13f   : > { %v2428_v19 = vadd.f32 %v919_v15, %v695_v13  ;;  %1452 = vmatprep.mubr.f32.mxu1 %v416_v12 }
 0x140   : > { %v921_v21 = vpop.f32.mrf.mxu1  ;;  %v699_v22 = vpop.f32.mrf.mxu0  ;;  %1228 = vmatmul.mubr.f32.gmra.mxu0 %v413_v2 }
 0x141   : > { %v700_v24 = vadd.f32 %v2336_v8, %v699_v22  ;;  %1232 = vmatprep.mubr.f32.mxu0 %v422_v18 }
 0x142   : > { %v924_v28 = vpop.f32.mrf.mxu1  ;;  %1453 = vmatmul.mubr.f32.gmra.mxu1 %v415_v20  ;;  %v701_v29 = vpop.f32.mrf.mxu0 }
 0x143   : > { %v2435_v31 = vadd.f32 %v924_v28, %v700_v24  ;;  %1457 = vmatprep.mubr.f32.mxu1 %v424_v23 }
 0x144   : > { %v926_v33 = vpop.f32.mrf.mxu1  ;;  %v704_v34 = vpop.f32.mrf.mxu0  ;;  %1233 = vmatmul.mubr.f32.gmra.mxu0 %v421_v26 }
 0x145   : > { %v705_v38 = vadd.f32 %v2336_v8, %v704_v34  ;;  %1237 = vmatprep.mubr.f32.mxu0 %v430_v30 }
 0x146   : > { %v929_v40 = vpop.f32.mrf.mxu1  ;;  %1458 = vmatmul.mubr.f32.gmra.mxu1 %v423_v32  ;;  %v706_v41 = vpop.f32.mrf.mxu0 }
 0x147   : > { %v2441_v42 = vadd.f32 %v929_v40, %v705_v38  ;;  %1462 = vmatprep.mubr.f32.mxu1 %v432_v35 }
 0x148   : > { %v931_v44 = vpop.f32.mrf.mxu1  ;;  %v709_v45 = vpop.f32.mrf.mxu0  ;;  %1238 = vmatmul.mubr.f32.gmra.mxu0 %v429_v39 }
 0x149   : > { %v710_v46 = vadd.f32 %v2336_v8, %v709_v45 }
 0x14a   : > { %v934_v49 = vpop.f32.mrf.mxu1  ;;  %1463 = vmatmul.mubr.f32.gmra.mxu1 %v431_v43  ;;  %v711_v50 = vpop.f32.mrf.mxu0 }
 0x14b   : > { %v2445_v51 = vadd.f32 %v934_v49, %v710_v46 }
 0x14c   : > { %v936_v52 = vpop.f32.mrf.mxu1  ;;  %v714_v53 = vpop.f32.mrf.mxu0 }
 0x14d   : > { %v715_v54 = vadd.f32 %v2336_v8, %v714_v53 }
 0x14e   : > { %v939_v55 = vpop.f32.mrf.mxu1  ;;  %v716_v56 = vpop.f32.mrf.mxu0 }
 0x14f   : > { %v2448_v58 = vadd.f32 %v939_v55, %v715_v54 }
 0x150   : > { %v941_v60 = vpop.f32.mrf.mxu1  ;;  %v719_v61 = vpop.f32.mrf.mxu0 }
 0x151   : > { %v720_v62 = vadd.f32 %v2336_v8, %v719_v61 }
 0x152   : > { %v944_v63 = vpop.f32.mrf.mxu1  ;;  %v721_v0 = vpop.f32.mrf.mxu0 }
 0x153   : > { %v2451_v1 = vadd.f32 %v944_v63, %v720_v62 }
 0x154   : > { %v946_v3 = vpop.f32.mrf.mxu1  ;;  %v724_v5 = vpop.f32.mrf.mxu0 }
 0x155   : > { %v725_v6 = vadd.f32 %v2336_v8, %v724_v5 }
 0x156   : > { %v949_v9 = vpop.f32.mrf.mxu1  ;;  %v726_v10 = vpop.f32.mrf.mxu0 }
 0x157   : > { %v2454_v11 = vadd.f32 %v949_v9, %v725_v6 }
 0x158   : > { %v951_v12 = vpop.f32.mrf.mxu1  ;;  %v729_v13 = vpop.f32.mrf.mxu0 }
 0x159   : > { %v730_v2 = vadd.f32 %v2336_v8, %v729_v13 }
 0x15a   : > { %v954_v15 = vpop.f32.mrf.mxu1  ;;  %v731_v16 = vpop.f32.mrf.mxu0 }
 0x15b   : > { %v2457_v18 = vadd.f32 %v954_v15, %v730_v2 }
 0x15c   : > { %v956_v20 = vpop.f32.mrf.mxu1  ;;  %v734_v21 = vpop.f32.mrf.mxu0 }
 0x15d   : > { %v735_v22 = vadd.f32 %v2336_v8, %v734_v21 }
 0x15e   : > { %v959_v23 = vpop.f32.mrf.mxu1  ;;  %v736_v24 = vpop.f32.mrf.mxu0 }
 0x15f   : > { %v2460_v26 = vadd.f32 %v959_v23, %v735_v22 }
 0x160   : > { %v961_v28 = vpop.f32.mrf.mxu1  ;;  %v739_v29 = vpop.f32.mrf.mxu0 }
 0x161   : > { %v740_v30 = vadd.f32 %v2336_v8, %v739_v29 }
 0x162   : > { %v964_v32 = vpop.f32.mrf.mxu1  ;;  %v741_v33 = vpop.f32.mrf.mxu0 }
 0x163   : > { %v2463_v34 = vadd.f32 %v964_v32, %v740_v30 }
 0x164   : > { %v966_v35 = vpop.f32.mrf.mxu1  ;;  %v744_v38 = vpop.f32.mrf.mxu0 }
 0x165   : > { %v745_v39 = vadd.f32 %v2336_v8, %v744_v38 }
 0x166   : > { %v969_v40 = vpop.f32.mrf.mxu1  ;;  %v746_v41 = vpop.f32.mrf.mxu0 }
 0x167   : > { %v2466_v43 = vadd.f32 %v969_v40, %v745_v39 }
 0x168   : > { %v971_v44 = vpop.f32.mrf.mxu1  ;;  %v749_v45 = vpop.f32.mrf.mxu0 }
 0x169   : > { %v750_v46 = vadd.f32 %v2336_v8, %v749_v45 }
 0x16a   : > { %v974_v49 = vpop.f32.mrf.mxu1  ;;  %v751_v50 = vpop.f32.mrf.mxu0 }
 0x16b   : > { %v2469_v52 = vadd.f32 %v974_v49, %v750_v46 }
 0x16c   : > { %v976_v53 = vpop.f32.mrf.mxu1  ;;  %v754_v54 = vpop.f32.mrf.mxu0 }
 0x16d   : > { %v755_v55 = vadd.f32 %v2336_v8, %v754_v54 }
 0x16e   : > { %v979_v56 = vpop.f32.mrf.mxu1  ;;  %v756_v60 = vpop.f32.mrf.mxu0 }
 0x16f   : > { %v2472_v61 = vadd.f32 %v979_v56, %v755_v55 }
 0x170   : > { %v981_v62 = vpop.f32.mrf.mxu1  ;;  %v759_v63 = vpop.f32.mrf.mxu0 }
 0x171   : > { %v760_v0 = vadd.f32 %v2336_v8, %v759_v63 }
 0x172   : > { %v984_v3 = vpop.f32.mrf.mxu1  ;;  %v761_v5 = vpop.f32.mrf.mxu0 }
 0x173   : > { %v2475_v6 = vadd.f32 %v984_v3, %v760_v0 }
 0x174   : > { %v986_v9 = vpop.f32.mrf.mxu1  ;;  %v764_v10 = vpop.f32.mrf.mxu0 }
 0x175   : > { %v765_v12 = vadd.f32 %v2336_v8, %v764_v10 }
 0x176   : > { %v989_v13 = vpop.f32.mrf.mxu1  ;;  %v766_v2 = vpop.f32.mrf.mxu0 }
 0x177   : > { %v2478_v15 = vadd.f32 %v989_v13, %v765_v12 }
 0x178   : > { %v991_v16 = vpop.f32.mrf.mxu1  ;;  %v769_v20 = vpop.f32.mrf.mxu0 }
 0x179   : > { %v770_v21 = vadd.f32 %v2336_v8, %v769_v20 }
 0x17a   : > { %v994_v22 = vpop.f32.mrf.mxu1  ;;  %v771_v23 = vpop.f32.mrf.mxu0 }
 0x17b   : > { %v2481_v24 = vadd.f32 %v994_v22, %v770_v21 }
 0x17c   : > { %v996_v28 = vpop.f32.mrf.mxu1  ;;  %v774_v29 = vpop.f32.mrf.mxu0 }
 0x17d   : > { %v775_v30 = vadd.f32 %v2336_v8, %v774_v29 }
 0x17e   : > { %v999_v32 = vpop.f32.mrf.mxu1  ;;  %v776_v33 = vpop.f32.mrf.mxu0 }
 0x17f   : > { %v2484_v35 = vadd.f32 %v999_v32, %v775_v30 }
 0x180   : > { %v1001_v38 = vpop.f32.mrf.mxu1  ;;  %v779_v39 = vpop.f32.mrf.mxu0 }
 0x181   : > { %v780_v40 = vadd.f32 %v2336_v8, %v779_v39 }
 0x182   : > { %v1004_v41 = vpop.f32.mrf.mxu1  ;;  %v781_v44 = vpop.f32.mrf.mxu0 }
 0x183   : > { %v2487_v45 = vadd.f32 %v1004_v41, %v780_v40 }
 0x184   : > { %v1006_v46 = vpop.f32.mrf.mxu1  ;;  %v784_v49 = vpop.f32.mrf.mxu0 }
 0x185   : > { %v785_v50 = vadd.f32 %v2336_v8, %v784_v49 }
 0x186   : > { %v1009_v53 = vpop.f32.mrf.mxu1  ;;  %v786_v54 = vpop.f32.mrf.mxu0 }
 0x187   : > { %v2490_v55 = vadd.f32 %v1009_v53, %v785_v50 }
 0x188   : > { %v1011_v56 = vpop.f32.mrf.mxu1  ;;  %v789_v60 = vpop.f32.mrf.mxu0 }
 0x189   : > { %v790_v62 = vadd.f32 %v2336_v8, %v789_v60 }
 0x18a   : > { %v1014_v63 = vpop.f32.mrf.mxu1  ;;  %v791_v0 = vpop.f32.mrf.mxu0 }
 0x18b   : > { %v2493_v3 = vadd.f32 %v1014_v63, %v790_v62 }
 0x18c   : > { %v1016_v5 = vpop.f32.mrf.mxu1  ;;  %v1084_v9 = vpop.f32.mrf.mxu0 }
 0x18d   : > { %v1085_v10 = vadd.f32 %v1084_v9, %v2344_v17 }
 0x18e   : > { %v1309_v12 = vpop.f32.mrf.mxu1  ;;  %v1086_v13 = vpop.f32.mrf.mxu0 }
 0x18f   : > { %v1310_v2 = vadd.f32 %v1309_v12, %v1085_v10 }
 0x190   : > { %v1311_v8 = vpop.f32.mrf.mxu1  ;;  %v1089_v16 = vpop.f32.mrf.mxu0 }
 0x191   : > { %1468 = vst [vmem:[%s2500_s7] sm:$0xff] %v1310_v2  ;;  %v1090_v20 = vadd.f32 %v1089_v16, %v2351_v27 }
 0x192   : > { %v1314_v21 = vpop.f32.mrf.mxu1  ;;  %v1091_v22 = vpop.f32.mrf.mxu0 }
 0x193   : > { %v1315_v23 = vadd.f32 %v1314_v21, %v1090_v20 }
 0x194   : > { %v1316_v17 = vpop.f32.mrf.mxu1  ;;  %v1094_v28 = vpop.f32.mrf.mxu0 }
 0x195   : > { %1469 = vst [vmem:[%s2500_s7 + $0x8] sm:$0xff] %v1315_v23  ;;  %v1095_v29 = vadd.f32 %v1094_v28, %v2358_v37 }
 0x196   : > { %v1319_v30 = vpop.f32.mrf.mxu1  ;;  %v1096_v32 = vpop.f32.mrf.mxu0 }
 0x197   : > { %v1320_v33 = vadd.f32 %v1319_v30, %v1095_v29 }
 0x198   : > { %v1321_v38 = vpop.f32.mrf.mxu1  ;;  %v1099_v39 = vpop.f32.mrf.mxu0 }
 0x199   : > { %1470 = vst [vmem:[%s2500_s7 + $0x10] sm:$0xff] %v1320_v33  ;;  %v1100_v40 = vadd.f32 %v1099_v39, %v2365_v47 }
 0x19a   : > { %v1324_v41 = vpop.f32.mrf.mxu1  ;;  %v1101_v27 = vpop.f32.mrf.mxu0 }
 0x19b   : > { %v1325_v44 = vadd.f32 %v1324_v41, %v1100_v40 }
 0x19c   : > { %v1326_v46 = vpop.f32.mrf.mxu1  ;;  %v1104_v49 = vpop.f32.mrf.mxu0 }
 0x19d   : > { %1471 = vst [vmem:[%s2500_s7 + $0x18] sm:$0xff] %v1325_v44  ;;  %v1105_v50 = vadd.f32 %v1104_v49, %v2372_v57 }
 0x19e   : > { %v1329_v53 = vpop.f32.mrf.mxu1  ;;  %v1106_v37 = vpop.f32.mrf.mxu0 }
 0x19f   : > { %v1330_v54 = vadd.f32 %v1329_v53, %v1105_v50 }
 0x1a0   : > { %v1331_v56 = vpop.f32.mrf.mxu1  ;;  %v1109_v60 = vpop.f32.mrf.mxu0 }
 0x1a1   : > { %1472 = vst [vmem:[%s2500_s7 + $0x20] sm:$0xff] %v1330_v54  ;;  %v1110_v62 = vadd.f32 %v1109_v60, %v2379_v4 }
 0x1a2   : > { %v1334_v63 = vpop.f32.mrf.mxu1  ;;  %v1111_v47 = vpop.f32.mrf.mxu0 }
 0x1a3   : > { %v1335_v0 = vadd.f32 %v1334_v63, %v1110_v62 }
 0x1a4   : > { %v1336_v5 = vpop.f32.mrf.mxu1  ;;  %v1114_v9 = vpop.f32.mrf.mxu0 }
 0x1a5   : > { %1473 = vst [vmem:[%s2500_s7 + $0x28] sm:$0xff] %v1335_v0  ;;  %v1115_v10 = vadd.f32 %v1114_v9, %v2386_v14 }
 0x1a6   : > { %v1339_v12 = vpop.f32.mrf.mxu1  ;;  %v1116_v57 = vpop.f32.mrf.mxu0 }
 0x1a7   : > { %v1340_v13 = vadd.f32 %v1339_v12, %v1115_v10 }
 0x1a8   : > { %v1341_v2 = vpop.f32.mrf.mxu1  ;;  %v1119_v8 = vpop.f32.mrf.mxu0 }
 0x1a9   : > { %1474 = vst [vmem:[%s2500_s7 + $0x30] sm:$0xff] %v1340_v13  ;;  %v1120_v16 = vadd.f32 %v1119_v8, %v2393_v25 }
 0x1aa   : > { %v1344_v20 = vpop.f32.mrf.mxu1  ;;  %v1121_v4 = vpop.f32.mrf.mxu0 }
 0x1ab   : > { %v1345_v21 = vadd.f32 %v1344_v20, %v1120_v16 }
 0x1ac   : > { %v1346_v22 = vpop.f32.mrf.mxu1  ;;  %v1124_v23 = vpop.f32.mrf.mxu0 }
 0x1ad   : > { %1475 = vst [vmem:[%s2500_s7 + $0x38] sm:$0xff] %v1345_v21  ;;  %v1125_v17 = vadd.f32 %v1124_v23, %v2400_v36 }
 0x1ae   : > { %v1349_v28 = vpop.f32.mrf.mxu1  ;;  %v1126_v14 = vpop.f32.mrf.mxu0 }
 0x1af   : > { %v1350_v29 = vadd.f32 %v1349_v28, %v1125_v17 }
 0x1b0   : > { %v1351_v30 = vpop.f32.mrf.mxu1  ;;  %v1129_v32 = vpop.f32.mrf.mxu0 }
 0x1b1   : > { %1476 = vst [vmem:[%s2500_s7 + $0x40] sm:$0xff] %v1350_v29  ;;  %v1130_v33 = vadd.f32 %v1129_v32, %v2407_v48 }
 0x1b2   : > { %v1354_v38 = vpop.f32.mrf.mxu1  ;;  %v1131_v25 = vpop.f32.mrf.mxu0 }
 0x1b3   : > { %v1355_v39 = vadd.f32 %v1354_v38, %v1130_v33 }
 0x1b4   : > { %v1356_v40 = vpop.f32.mrf.mxu1  ;;  %v1134_v41 = vpop.f32.mrf.mxu0 }
 0x1b5   : > { %1477 = vst [vmem:[%s2500_s7 + $0x48] sm:$0xff] %v1355_v39  ;;  %v1135_v27 = vadd.f32 %v1134_v41, %v2414_v59 }
 0x1b6   : > { %v1359_v44 = vpop.f32.mrf.mxu1  ;;  %v1136_v36 = vpop.f32.mrf.mxu0 }
 0x1b7   : > { %v1360_v46 = vadd.f32 %v1359_v44, %v1135_v27 }
 0x1b8   : > { %v1361_v49 = vpop.f32.mrf.mxu1  ;;  %v1139_v50 = vpop.f32.mrf.mxu0 }
 0x1b9   : > { %1478 = vst [vmem:[%s2500_s7 + $0x50] sm:$0xff] %v1360_v46  ;;  %v1140_v53 = vadd.f32 %v1139_v50, %v2421_v7 }
 0x1ba   : > { %v1364_v37 = vpop.f32.mrf.mxu1  ;;  %v1141_v48 = vpop.f32.mrf.mxu0 }
 0x1bb   : > { %v1365_v54 = vadd.f32 %v1364_v37, %v1140_v53 }
 0x1bc   : > { %v1366_v56 = vpop.f32.mrf.mxu1  ;;  %v1144_v60 = vpop.f32.mrf.mxu0 }
 0x1bd   : > { %1479 = vst [vmem:[%s2500_s7 + $0x58] sm:$0xff] %v1365_v54  ;;  %v1145_v62 = vadd.f32 %v1144_v60, %v2428_v19 }
 0x1be   : > { %v1369_v63 = vpop.f32.mrf.mxu1  ;;  %v1146_v59 = vpop.f32.mrf.mxu0 }
 0x1bf   : > { %v1370_v47 = vadd.f32 %v1369_v63, %v1145_v62 }
 0x1c0   : > { %v1371_v0 = vpop.f32.mrf.mxu1  ;;  %v1149_v5 = vpop.f32.mrf.mxu0 }
 0x1c1   : > { %1480 = vst [vmem:[%s2500_s7 + $0x60] sm:$0xff] %v1370_v47  ;;  %v1150_v9 = vadd.f32 %v1149_v5, %v2435_v31 }
 0x1c2   : > { %v1374_v10 = vpop.f32.mrf.mxu1  ;;  %v1151_v7 = vpop.f32.mrf.mxu0 }
 0x1c3   : > { %v1375_v12 = vadd.f32 %v1374_v10, %v1150_v9 }
 0x1c4   : > { %v1376_v57 = vpop.f32.mrf.mxu1  ;;  %v1154_v13 = vpop.f32.mrf.mxu0 }
 0x1c5   : > { %1481 = vst [vmem:[%s2500_s7 + $0x68] sm:$0xff] %v1375_v12  ;;  %v1155_v2 = vadd.f32 %v1154_v13, %v2441_v42 }
 0x1c6   : > { %v1379_v8 = vpop.f32.mrf.mxu1  ;;  %v1156_v19 = vpop.f32.mrf.mxu0 }
 0x1c7   : > { %v1380_v16 = vadd.f32 %v1379_v8, %v1155_v2 }
 0x1c8   : > { %v1381_v20 = vpop.f32.mrf.mxu1  ;;  %v1159_v4 = vpop.f32.mrf.mxu0 }
 0x1c9   : > { %1482 = vst [vmem:[%s2500_s7 + $0x70] sm:$0xff] %v1380_v16  ;;  %v1160_v21 = vadd.f32 %v1159_v4, %v2445_v51 }
 0x1ca   : > { %v1384_v22 = vpop.f32.mrf.mxu1  ;;  %v1161_v31 = vpop.f32.mrf.mxu0 }
 0x1cb   : > { %v1385_v23 = vadd.f32 %v1384_v22, %v1160_v21 }
 0x1cc   : > { %v1386_v17 = vpop.f32.mrf.mxu1  ;;  %v1164_v28 = vpop.f32.mrf.mxu0 }
 0x1cd   : > { %1483 = vst [vmem:[%s2500_s7 + $0x78] sm:$0xff] %v1385_v23  ;;  %v1165_v14 = vadd.f32 %v1164_v28, %v2448_v58 }
 0x1ce   : > { %v1389_v29 = vpop.f32.mrf.mxu1  ;;  %v1166_v42 = vpop.f32.mrf.mxu0 }
 0x1cf   : > { %v1390_v30 = vadd.f32 %v1389_v29, %v1165_v14 }
 0x1d0   : > { %v1391_v32 = vpop.f32.mrf.mxu1  ;;  %v1169_v33 = vpop.f32.mrf.mxu0 }
 0x1d1   : > { %1484 = vst [vmem:[%s2500_s7 + $0x80] sm:$0xff] %v1390_v30  ;;  %v1170_v38 = vadd.f32 %v1169_v33, %v2451_v1 }
 0x1d2   : > { %v1394_v25 = vpop.f32.mrf.mxu1  ;;  %v1171_v51 = vpop.f32.mrf.mxu0 }
 0x1d3   : > { %v1395_v39 = vadd.f32 %v1394_v25, %v1170_v38 }
 0x1d4   : > { %v1396_v40 = vpop.f32.mrf.mxu1  ;;  %v1174_v41 = vpop.f32.mrf.mxu0 }
 0x1d5   : > { %1485 = vst [vmem:[%s2500_s7 + $0x88] sm:$0xff] %v1395_v39  ;;  %v1175_v27 = vadd.f32 %v1174_v41, %v2454_v11 }
 0x1d6   : > { %v1399_v44 = vpop.f32.mrf.mxu1  ;;  %v1176_v58 = vpop.f32.mrf.mxu0 }
 0x1d7   : > { %v1400_v36 = vadd.f32 %v1399_v44, %v1175_v27 }
 0x1d8   : > { %v1401_v46 = vpop.f32.mrf.mxu1  ;;  %v1179_v49 = vpop.f32.mrf.mxu0 }
 0x1d9   : > { %1486 = vst [vmem:[%s2500_s7 + $0x90] sm:$0xff] %v1400_v36  ;;  %v1180_v50 = vadd.f32 %v1179_v49, %v2457_v18 }
 0x1da   : > { %v1404_v53 = vpop.f32.mrf.mxu1  ;;  %v1181_v1 = vpop.f32.mrf.mxu0 }
 0x1db   : > { %v1405_v37 = vadd.f32 %v1404_v53, %v1180_v50 }
 0x1dc   : > { %v1406_v48 = vpop.f32.mrf.mxu1  ;;  %v1184_v54 = vpop.f32.mrf.mxu0 }
 0x1dd   : > { %1487 = vst [vmem:[%s2500_s7 + $0x98] sm:$0xff] %v1405_v37  ;;  %v1185_v56 = vadd.f32 %v1184_v54, %v2460_v26 }
 0x1de   : > { %v1409_v60 = vpop.f32.mrf.mxu1  ;;  %v1186_v11 = vpop.f32.mrf.mxu0 }
 0x1df   : > { %v1410_v62 = vadd.f32 %v1409_v60, %v1185_v56 }
 0x1e0   : > { %v1411_v63 = vpop.f32.mrf.mxu1  ;;  %v1189_v59 = vpop.f32.mrf.mxu0 }
 0x1e1   : > { %1488 = vst [vmem:[%s2500_s7 + $0xa0] sm:$0xff] %v1410_v62  ;;  %v1190_v47 = vadd.f32 %v1189_v59, %v2463_v34 }
 0x1e2   : > { %v1414_v0 = vpop.f32.mrf.mxu1  ;;  %v1191_v18 = vpop.f32.mrf.mxu0 }
 0x1e3   : > { %v1415_v5 = vadd.f32 %v1414_v0, %v1190_v47 }
 0x1e4   : > { %v1416_v9 = vpop.f32.mrf.mxu1  ;;  %v1194_v10 = vpop.f32.mrf.mxu0 }
 0x1e5   : > { %1489 = vst [vmem:[%s2500_s7 + $0xa8] sm:$0xff] %v1415_v5  ;;  %v1195_v7 = vadd.f32 %v1194_v10, %v2466_v43 }
 0x1e6   : > { %v1419_v12 = vpop.f32.mrf.mxu1  ;;  %v1196_v26 = vpop.f32.mrf.mxu0 }
 0x1e7   : > { %v1420_v57 = vadd.f32 %v1419_v12, %v1195_v7 }
 0x1e8   : > { %v1421_v13 = vpop.f32.mrf.mxu1  ;;  %v1199_v2 = vpop.f32.mrf.mxu0 }
 0x1e9   : > { %1490 = vst [vmem:[%s2500_s7 + $0xb0] sm:$0xff] %v1420_v57  ;;  %v1200_v8 = vadd.f32 %v1199_v2, %v2469_v52 }
 0x1ea   : > { %v1424_v19 = vpop.f32.mrf.mxu1  ;;  %v1201_v34 = vpop.f32.mrf.mxu0 }
 0x1eb   : > { %v1425_v16 = vadd.f32 %v1424_v19, %v1200_v8 }
 0x1ec   : > { %v1426_v20 = vpop.f32.mrf.mxu1  ;;  %v1204_v4 = vpop.f32.mrf.mxu0 }
 0x1ed   : > { %1491 = vst [vmem:[%s2500_s7 + $0xb8] sm:$0xff] %v1425_v16  ;;  %v1205_v21 = vadd.f32 %v1204_v4, %v2472_v61 }
 0x1ee   : > { %v1429_v22 = vpop.f32.mrf.mxu1  ;;  %v1206_v43 = vpop.f32.mrf.mxu0 }
 0x1ef   : > { %v1430_v31 = vadd.f32 %v1429_v22, %v1205_v21 }
 0x1f0   : > { %v1431_v23 = vpop.f32.mrf.mxu1  ;;  %v1209_v17 = vpop.f32.mrf.mxu0 }
 0x1f1   : > { %1492 = vst [vmem:[%s2500_s7 + $0xc0] sm:$0xff] %v1430_v31  ;;  %v1210_v28 = vadd.f32 %v1209_v17, %v2475_v6 }
 0x1f2   : > { %v1434_v14 = vpop.f32.mrf.mxu1  ;;  %v1211_v52 = vpop.f32.mrf.mxu0 }
 0x1f3   : > { %v1435_v29 = vadd.f32 %v1434_v14, %v1210_v28 }
 0x1f4   : > { %v1436_v42 = vpop.f32.mrf.mxu1  ;;  %v1214_v30 = vpop.f32.mrf.mxu0 }
 0x1f5   : > { %1493 = vst [vmem:[%s2500_s7 + $0xc8] sm:$0xff] %v1435_v29  ;;  %v1215_v32 = vadd.f32 %v1214_v30, %v2478_v15 }
 0x1f6   : > { %v1439_v33 = vpop.f32.mrf.mxu1  ;;  %v1216_v61 = vpop.f32.mrf.mxu0 }
 0x1f7   : > { %v1440_v38 = vadd.f32 %v1439_v33, %v1215_v32 }
 0x1f8   : > { %v1441_v25 = vpop.f32.mrf.mxu1  ;;  %v1219_v51 = vpop.f32.mrf.mxu0 }
 0x1f9   : > { %1494 = vst [vmem:[%s2500_s7 + $0xd0] sm:$0xff] %v1440_v38  ;;  %v1220_v39 = vadd.f32 %v1219_v51, %v2481_v24 }
 0x1fa   : > { %v1444_v40 = vpop.f32.mrf.mxu1  ;;  %v1221_v6 = vpop.f32.mrf.mxu0 }
 0x1fb   : > { %v1445_v41 = vadd.f32 %v1444_v40, %v1220_v39 }
 0x1fc   : > { %v1446_v27 = vpop.f32.mrf.mxu1  ;;  %v1224_v44 = vpop.f32.mrf.mxu0 }
 0x1fd   : > { %1495 = vst [vmem:[%s2500_s7 + $0xd8] sm:$0xff] %v1445_v41  ;;  %v1225_v58 = vadd.f32 %v1224_v44, %v2484_v35 }
 0x1fe   : > { %v1449_v36 = vpop.f32.mrf.mxu1  ;;  %v1226_v15 = vpop.f32.mrf.mxu0 }
 0x1ff   : > { %v1450_v46 = vadd.f32 %v1449_v36, %v1225_v58 }
 0x200   : > { %v1451_v49 = vpop.f32.mrf.mxu1  ;;  %v1229_v50 = vpop.f32.mrf.mxu0 }
 0x201   : > { %1496 = vst [vmem:[%s2500_s7 + $0xe0] sm:$0xff] %v1450_v46  ;;  %v1230_v53 = vadd.f32 %v1229_v50, %v2487_v45 }
 0x202   : > { %v1454_v1 = vpop.f32.mrf.mxu1  ;;  %v1231_v24 = vpop.f32.mrf.mxu0 }
 0x203   : > { %v1455_v37 = vadd.f32 %v1454_v1, %v1230_v53 }
 0x204   : > { %v1456_v48 = vpop.f32.mrf.mxu1  ;;  %v1234_v54 = vpop.f32.mrf.mxu0 }
 0x205   : > { %1497 = vst [vmem:[%s2500_s7 + $0xe8] sm:$0xff] %v1455_v37  ;;  %v1235_v56 = vadd.f32 %v1234_v54, %v2490_v55 }
 0x206   : > { %v1459_v60 = vpop.f32.mrf.mxu1  ;;  %v1236_v35 = vpop.f32.mrf.mxu0 }
 0x207   : > { %v1460_v11 = vadd.f32 %v1459_v60, %v1235_v56 }
 0x208   : > { %v1461_v62 = vpop.f32.mrf.mxu1  ;;  %v1239_v63 = vpop.f32.mrf.mxu0 }
 0x209   : > { %1498 = vst [vmem:[%s2500_s7 + $0xf0] sm:$0xff] %v1460_v11  ;;  %v1240_v59 = vadd.f32 %v1239_v63, %v2493_v3 }
 0x20a   : > { %v1464_v47 = vpop.f32.mrf.mxu1  ;;  %v1241_v0 = vpop.f32.mrf.mxu0 }
 0x20b   : > { %v1465_v45 = vadd.f32 %v1464_v47, %v1240_v59 }
 0x20c   : > { %v1466_v18 = vpop.f32.mrf.mxu1 }
 0x20d   : > { %1499 = vst [vmem:[%s2500_s7 + $0xf8] sm:$0xff] %v1465_v45 }
 0x20e PF: > { %s13_s12 = sadd.s32 1, %s1585_s12  }
 0x20f   : > { %p10_p4 = scmp.ge.s32.totalorder %s13_s12, 27  }
 0x211   :  { %12 = sbr.rel (!%p10_p4) target bundleno = 1 (0x1), region = 62 }

</bundles_post_ra>
